<compile_context>
chip_gen: v6e
topology: v6e:2x2x1
jax: 0.10.0
libtpu: 0.0.40
codegen_flags: <defaults>
</compile_context>

<pallas_src>
import itertools
import numpy as np
import jax
import jax.numpy as jnp
from jax import lax
from jax.experimental import pallas as pl
from jax.experimental.pallas import tpu as pltpu

X_DIM = 512                       # per-point feature dim (514 = 512 + 2)
GRID_SIDE = int(np.sqrt(2048))    # 45 (matches the PyTorch module)
N_GRID = GRID_SIDE * GRID_SIDE    # 2025


def _f32dot(a, b):
    """Exact-f32 matmul (used outside the kernel and in the references)."""
    return jnp.dot(a, b, precision=lax.Precision.HIGHEST,
                   preferred_element_type=jnp.float32)


def twofold_kernel(xw0_ref, xv0_ref, g_ref,
                   w0b_ref,
                   wr1_ref, br1_ref, wr2_ref, br2_ref, wo_ref, bo_ref,
                   v0a_ref,
                   vr1_ref, cr1_ref, vr2_ref, cr2_ref, v3_ref, c3_ref,
                   vo_ref, co_ref,
                   out_ref):
    f32 = jnp.float32
    bf16 = jnp.bfloat16
    g = g_ref[...]                                   # (tm, 2) grid coords

    # ---- fold 1 ----------------------------------------------------------
    # Linear(514,F): the 512-wide x part (+ bias) is hoisted per batch into
    # xw0; only the rank-2 grid-coordinate contribution is done here (VPU).
    h = xw0_ref[...] + g[:, 0:1] * w0b_ref[0:1, :] + g[:, 1:2] * w0b_ref[1:2, :]
    h = jnp.maximum(h, 0.0)                          # Dropout(0.2) = identity (eval)
    h = jnp.maximum(
        h + jnp.dot(h.astype(bf16), wr1_ref[...], preferred_element_type=f32)
        + br1_ref[...], 0.0)
    h = jnp.maximum(
        h + jnp.dot(h.astype(bf16), wr2_ref[...], preferred_element_type=f32)
        + br2_ref[...], 0.0)
    # Linear(F,2) + Tanh head on the VPU/XLU (a 2-column MXU matmul would
    # occupy the MXU for a full pass to produce 2 useful lanes).
    o1a = jnp.tanh(jnp.sum(h * wo_ref[0:1, :], axis=-1, keepdims=True) + bo_ref[:, 0:1])
    o1b = jnp.tanh(jnp.sum(h * wo_ref[1:2, :], axis=-1, keepdims=True) + bo_ref[:, 1:2])

    # ---- fold 2 ----------------------------------------------------------
    # Linear(514,F): the 512-wide x part (+ bias) hoisted into xv0; fold-1
    # output contributes rank-2 via v0a.
    h2 = xv0_ref[...] + o1a * v0a_ref[0:1, :] + o1b * v0a_ref[1:2, :]
    h2 = jnp.maximum(h2, 0.0)                        # Dropout identity
    h2 = jnp.maximum(
        h2 + jnp.dot(h2.astype(bf16), vr1_ref[...], preferred_element_type=f32)
        + cr1_ref[...], 0.0)
    h2 = jnp.maximum(
        h2 + jnp.dot(h2.astype(bf16), vr2_ref[...], preferred_element_type=f32)
        + cr2_ref[...], 0.0)
    h2 = jnp.maximum(
        jnp.dot(h2.astype(bf16), v3_ref[...], preferred_element_type=f32)
        + c3_ref[...], 0.0)
    out_ref[:, 0:1] = jnp.tanh(
        jnp.sum(h2 * vo_ref[0:1, :], axis=-1, keepdims=True) + co_ref[:, 0:1])
    out_ref[:, 1:2] = jnp.tanh(
        jnp.sum(h2 * vo_ref[1:2, :], axis=-1, keepdims=True) + co_ref[:, 1:2])


def make_grid_points() -> jnp.ndarray:
    lin = np.linspace(-1.0, 1.0, GRID_SIDE)
    pts = np.array(list(itertools.product(lin, lin)), dtype=np.float32)   # (2025, 2)
    return jnp.asarray(pts)


def init_params(key, feat_dims: int):
    """Deterministic PyTorch-style uniform(-1/sqrt(fan_in), 1/sqrt(fan_in)) init."""
    def linear(k, fan_in, fan_out):
        kw, kb = jax.random.split(k)
        s = 1.0 / np.sqrt(fan_in)
        w = jax.random.uniform(kw, (fan_in, fan_out), jnp.float32, -s, s)
        b = jax.random.uniform(kb, (1, fan_out), jnp.float32, -s, s)
        return w, b

    ks = jax.random.split(key, 9)
    # fold 1
    w0, b0 = linear(ks[0], X_DIM + 2, feat_dims)       # Linear(514, F)
    wr1, br1 = linear(ks[1], feat_dims, feat_dims)     # Residual_Linear_Layer
    wr2, br2 = linear(ks[2], feat_dims, feat_dims)
    wo, bo = linear(ks[3], feat_dims, 2)               # Linear(F, 2)
    # fold 2
    v0, c0 = linear(ks[4], X_DIM + 2, feat_dims)       # Linear(514, F)
    vr1, cr1 = linear(ks[5], feat_dims, feat_dims)
    vr2, cr2 = linear(ks[6], feat_dims, feat_dims)
    v3, c3 = linear(ks[7], feat_dims, feat_dims)       # Linear(F, F)
    vo, co = linear(ks[8], feat_dims, 2)               # Linear(F, 2)

    # split the 514-wide first linears along the concat boundary
    return [
        w0[:X_DIM], w0[X_DIM:], b0, wr1, br1, wr2, br2, wo, bo,     # fold1 (cat=[x512, grid2])
        v0[:2], v0[2:], c0, vr1, cr1, vr2, cr2, v3, c3, vo, co,     # fold2 (cat=[out2, x512])
    ]


def twofold_forward(x, grid_pts, params, *, tm=256):
    """x: (B, 1, 512) float32  ->  (B, N_GRID, 2) float32.  tm sweepable 256-512."""
    (w0a, w0b, b0, wr1, br1, wr2, br2, wo, bo,
     v0a, v0b, c0, vr1, cr1, vr2, cr2, v3, c3, vo, co) = params
    B = x.shape[0]
    F = w0a.shape[1]
    N = grid_pts.shape[0]
    n_tiles = pl.cdiv(N, tm)
    Np = n_tiles * tm

    xb = x[:, 0, :]                                           # (B, 512)
    # Hoist the row-invariant 512-wide matmuls (plus biases): one tiny
    # (B,512)x(512,F) per fold instead of (B*2025,512)x(512,F) in the kernel.
    xw0 = (_f32dot(xb, w0a) + b0).reshape(B, 1, F)            # fold-1 first layer, x part
    xv0 = (_f32dot(xb, v0b) + c0).reshape(B, 1, F)            # fold-2 first layer, x part

    # Grid coordinates: one (Np, 2) array shared by every batch (no repeat).
    g_pad = jnp.pad(grid_pts, ((0, Np - N), (0, 0)))

    bf16 = jnp.bfloat16
    kernel_args = [
        xw0, xv0, g_pad,
        w0b,
        wr1.astype(bf16), br1, wr2.astype(bf16), br2, wo.T, bo,
        v0a,
        vr1.astype(bf16), cr1, vr2.astype(bf16), cr2, v3.astype(bf16), c3,
        vo.T, co,
    ]

    vec_spec = pl.BlockSpec((None, 1, F), lambda b, t: (b, 0, 0))   # per-batch (1,F)
    g_spec = pl.BlockSpec((tm, 2), lambda b, t: (t, 0))
    const_specs = [pl.BlockSpec(a.shape, lambda b, t: (0, 0)) for a in kernel_args[3:]]

    out = pl.pallas_call(
        twofold_kernel,
        out_shape=jax.ShapeDtypeStruct((B, Np, 2), jnp.float32),
        grid_spec=pltpu.PrefetchScalarGridSpec(
            num_scalar_prefetch=0,
            grid=(B, n_tiles),
            in_specs=[vec_spec, vec_spec, g_spec] + const_specs,
            out_specs=pl.BlockSpec((None, tm, 2), lambda b, t: (b, t, 0)),
        ),
        compiler_params=pltpu.CompilerParams(
            dimension_semantics=("parallel", "parallel"),
            vmem_limit_bytes=48 * 1024 * 1024),
    )(*kernel_args)

    return out[:, :N, :]


def ref_forward(x, grid_pts, params, *, matmul_dtype=jnp.float32):
    """Plain-JAX reference mirroring the PyTorch forward.

    matmul_dtype=bfloat16 mirrors the kernel's MXU numerics (bf16 operands,
    f32 accumulation) for the five FxF matmuls; float32 is the exact reference.
    """
    (w0a, w0b, b0, wr1, br1, wr2, br2, wo, bo,
     v0a, v0b, c0, vr1, cr1, vr2, cr2, v3, c3, vo, co) = params

    def rdot(a, w):
        return jnp.dot(a.astype(matmul_dtype), w.astype(matmul_dtype),
                       precision=lax.Precision.HIGHEST,
                       preferred_element_type=jnp.float32)

    B = x.shape[0]
    N = grid_pts.shape[0]
    xr = jnp.broadcast_to(x, (B, N, X_DIM))
    gr = jnp.broadcast_to(grid_pts[None], (B, N, 2))

    # fold 1
    h = _f32dot(xr, w0a) + _f32dot(gr, w0b) + b0
    h = jax.nn.relu(h)
    h = jax.nn.relu(h + rdot(h, wr1) + br1)
    h = jax.nn.relu(h + rdot(h, wr2) + br2)
    o1 = jnp.tanh(_f32dot(h, wo) + bo)

    # fold 2
    h2 = _f32dot(o1, v0a) + _f32dot(xr, v0b) + c0
    h2 = jax.nn.relu(h2)
    h2 = jax.nn.relu(h2 + rdot(h2, vr1) + cr1)
    h2 = jax.nn.relu(h2 + rdot(h2, vr2) + cr2)
    h2 = jax.nn.relu(rdot(h2, v3) + c3)
    return jnp.tanh(_f32dot(h2, vo) + co)


if __name__ == "__main__":
    feat_dims = 256
    B = 2

    key = jax.random.PRNGKey(0)
    k_x, k_p = jax.random.split(key)
    x = jax.random.normal(k_x, (B, 1, X_DIM), dtype=jnp.float32)
    grid_pts = make_grid_points()
    params = init_params(k_p, feat_dims)

    fwd = jax.jit(twofold_forward)
    out = jax.block_until_ready(fwd(x, grid_pts, params))
    assert out.shape == (B, N_GRID, 2), out.shape

    # Tight check against a reference with matched numerics (bf16 MXU operands).
    ref_bf16 = jax.block_until_ready(
        ref_forward(x, grid_pts, params, matmul_dtype=jnp.bfloat16))
    np.testing.assert_allclose(np.asarray(out), np.asarray(ref_bf16),
                               atol=2e-3, rtol=2e-3)

    # Loose check against the exact-f32 reference (bf16 MXU rounding only).
    ref_f32 = jax.block_until_ready(ref_forward(x, grid_pts, params))
    np.testing.assert_allclose(np.asarray(out), np.asarray(ref_f32),
                               atol=5e-2, rtol=5e-2)

    print("KERNEL_OK")
</pallas_src>

<mosaic_0001>
module attributes {stable_mosaic.version = 11 : i64} {
  func.func @twofold_kernel(%arg0: i32, %arg1: i32, %arg2: memref<1x1x256xf32, #tpu.memory_space<vmem>>, %arg3: memref<1x1x256xf32, #tpu.memory_space<vmem>>, %arg4: memref<256x2xf32, #tpu.memory_space<vmem>>, %arg5: memref<2x256xf32, #tpu.memory_space<vmem>>, %arg6: memref<256x256xbf16, #tpu.memory_space<vmem>>, %arg7: memref<1x256xf32, #tpu.memory_space<vmem>>, %arg8: memref<256x256xbf16, #tpu.memory_space<vmem>>, %arg9: memref<1x256xf32, #tpu.memory_space<vmem>>, %arg10: memref<2x256xf32, #tpu.memory_space<vmem>>, %arg11: memref<1x2xf32, #tpu.memory_space<vmem>>, %arg12: memref<2x256xf32, #tpu.memory_space<vmem>>, %arg13: memref<256x256xbf16, #tpu.memory_space<vmem>>, %arg14: memref<1x256xf32, #tpu.memory_space<vmem>>, %arg15: memref<256x256xbf16, #tpu.memory_space<vmem>>, %arg16: memref<1x256xf32, #tpu.memory_space<vmem>>, %arg17: memref<256x256xbf16, #tpu.memory_space<vmem>>, %arg18: memref<1x256xf32, #tpu.memory_space<vmem>>, %arg19: memref<2x256xf32, #tpu.memory_space<vmem>>, %arg20: memref<1x2xf32, #tpu.memory_space<vmem>>, %arg21: memref<1x256x2xf32, #tpu.memory_space<vmem>>) attributes {dimension_semantics = [#tpu.dimension_semantics<parallel>, #tpu.dimension_semantics<parallel>], iteration_bounds = array<i64: 2, 8>, scalar_prefetch = 0 : i64, scratch_operands = 0 : i64, tpu.core_type = #tpu.core_type<tc>, window_params = [{transform_indices = @transform_0, window_bounds = array<i64: 1, 1, 256>}, {transform_indices = @transform_1, window_bounds = array<i64: 1, 1, 256>}, {transform_indices = @transform_2, window_bounds = array<i64: 256, 2>}, {pipeline_mode = #tpu.pipeline_mode<synchronous>, transform_indices = @transform_3, window_bounds = array<i64: 2, 256>}, {pipeline_mode = #tpu.pipeline_mode<synchronous>, transform_indices = @transform_4, window_bounds = array<i64: 256, 256>}, {pipeline_mode = #tpu.pipeline_mode<synchronous>, transform_indices = @transform_5, window_bounds = array<i64: 1, 256>}, {pipeline_mode = #tpu.pipeline_mode<synchronous>, transform_indices = @transform_6, window_bounds = array<i64: 256, 256>}, {pipeline_mode = #tpu.pipeline_mode<synchronous>, transform_indices = @transform_7, window_bounds = array<i64: 1, 256>}, {pipeline_mode = #tpu.pipeline_mode<synchronous>, transform_indices = @transform_8, window_bounds = array<i64: 2, 256>}, {pipeline_mode = #tpu.pipeline_mode<synchronous>, transform_indices = @transform_9, window_bounds = array<i64: 1, 2>}, {pipeline_mode = #tpu.pipeline_mode<synchronous>, transform_indices = @transform_10, window_bounds = array<i64: 2, 256>}, {pipeline_mode = #tpu.pipeline_mode<synchronous>, transform_indices = @transform_11, window_bounds = array<i64: 256, 256>}, {pipeline_mode = #tpu.pipeline_mode<synchronous>, transform_indices = @transform_12, window_bounds = array<i64: 1, 256>}, {pipeline_mode = #tpu.pipeline_mode<synchronous>, transform_indices = @transform_13, window_bounds = array<i64: 256, 256>}, {pipeline_mode = #tpu.pipeline_mode<synchronous>, transform_indices = @transform_14, window_bounds = array<i64: 1, 256>}, {pipeline_mode = #tpu.pipeline_mode<synchronous>, transform_indices = @transform_15, window_bounds = array<i64: 256, 256>}, {pipeline_mode = #tpu.pipeline_mode<synchronous>, transform_indices = @transform_16, window_bounds = array<i64: 1, 256>}, {pipeline_mode = #tpu.pipeline_mode<synchronous>, transform_indices = @transform_17, window_bounds = array<i64: 2, 256>}, {pipeline_mode = #tpu.pipeline_mode<synchronous>, transform_indices = @transform_18, window_bounds = array<i64: 1, 2>}, {transform_indices = @transform_19, window_bounds = array<i64: 1, 256, 2>}]} {
    %c0 = arith.constant 0 : index
    %c0_0 = arith.constant 0 : index
    %0 = vector.load %arg4[%c0, %c0_0] : memref<256x2xf32, #tpu.memory_space<vmem>>, vector<256x2xf32>
    %c0_1 = arith.constant 0 : index
    %c0_2 = arith.constant 0 : index
    %c0_3 = arith.constant 0 : index
    %1 = vector.load %arg2[%c0_1, %c0_2, %c0_3] : memref<1x1x256xf32, #tpu.memory_space<vmem>>, vector<1x1x256xf32>
    %2 = vector.shape_cast %1 : vector<1x1x256xf32> to vector<1x256xf32>
    %3 = vector.extract_strided_slice %0 {offsets = [0, 0], sizes = [256, 1], strides = [1, 1]} : vector<256x2xf32> to vector<256x1xf32>
    %c0_4 = arith.constant 0 : index
    %c0_5 = arith.constant 0 : index
    %4 = vector.load %arg5[%c0_4, %c0_5] : memref<2x256xf32, #tpu.memory_space<vmem>>, vector<1x256xf32>
    %5 = vector.broadcast %3 : vector<256x1xf32> to vector<256x256xf32>
    %6 = vector.broadcast %4 : vector<1x256xf32> to vector<256x256xf32>
    %7 = arith.mulf %5, %6 : vector<256x256xf32>
    %8 = vector.broadcast %2 : vector<1x256xf32> to vector<256x256xf32>
    %9 = arith.addf %8, %7 : vector<256x256xf32>
    %10 = vector.extract_strided_slice %0 {offsets = [0, 1], sizes = [256, 1], strides = [1, 1]} : vector<256x2xf32> to vector<256x1xf32>
    %c1 = arith.constant 1 : index
    %c0_6 = arith.constant 0 : index
    %11 = vector.load %arg5[%c1, %c0_6] : memref<2x256xf32, #tpu.memory_space<vmem>>, vector<1x256xf32>
    %12 = vector.broadcast %10 : vector<256x1xf32> to vector<256x256xf32>
    %13 = vector.broadcast %11 : vector<1x256xf32> to vector<256x256xf32>
    %14 = arith.mulf %12, %13 : vector<256x256xf32>
    %15 = arith.addf %9, %14 : vector<256x256xf32>
    %cst = arith.constant 0.000000e+00 : f32
    %16 = vector.broadcast %cst : f32 to vector<256x256xf32>
    %17 = arith.maximumf %15, %16 : vector<256x256xf32>
    %18 = arith.truncf %17 : vector<256x256xf32> to vector<256x256xbf16>
    %c0_7 = arith.constant 0 : index
    %c0_8 = arith.constant 0 : index
    %19 = vector.load %arg6[%c0_7, %c0_8] : memref<256x256xbf16, #tpu.memory_space<vmem>>, vector<256x256xbf16>
    %cst_9 = arith.constant dense<0.000000e+00> : vector<256x256xf32>
    %20 = tpu.matmul %18, %19, %cst_9 {dimension_numbers = #tpu.dot_dimension_numbers<[1], [0], [0], [1], [0, 0, 1, 1], [], []>} : vector<256x256xbf16>, vector<256x256xbf16>, vector<256x256xf32> -> vector<256x256xf32>
    %21 = arith.addf %17, %20 : vector<256x256xf32>
    %c0_10 = arith.constant 0 : index
    %c0_11 = arith.constant 0 : index
    %22 = vector.load %arg7[%c0_10, %c0_11] : memref<1x256xf32, #tpu.memory_space<vmem>>, vector<1x256xf32>
    %23 = vector.broadcast %22 : vector<1x256xf32> to vector<256x256xf32>
    %24 = arith.addf %21, %23 : vector<256x256xf32>
    %cst_12 = arith.constant 0.000000e+00 : f32
    %25 = vector.broadcast %cst_12 : f32 to vector<256x256xf32>
    %26 = arith.maximumf %24, %25 : vector<256x256xf32>
    %27 = arith.truncf %26 : vector<256x256xf32> to vector<256x256xbf16>
    %c0_13 = arith.constant 0 : index
    %c0_14 = arith.constant 0 : index
    %28 = vector.load %arg8[%c0_13, %c0_14] : memref<256x256xbf16, #tpu.memory_space<vmem>>, vector<256x256xbf16>
    %cst_15 = arith.constant dense<0.000000e+00> : vector<256x256xf32>
    %29 = tpu.matmul %27, %28, %cst_15 {dimension_numbers = #tpu.dot_dimension_numbers<[1], [0], [0], [1], [0, 0, 1, 1], [], []>} : vector<256x256xbf16>, vector<256x256xbf16>, vector<256x256xf32> -> vector<256x256xf32>
    %30 = arith.addf %26, %29 : vector<256x256xf32>
    %c0_16 = arith.constant 0 : index
    %c0_17 = arith.constant 0 : index
    %31 = vector.load %arg9[%c0_16, %c0_17] : memref<1x256xf32, #tpu.memory_space<vmem>>, vector<1x256xf32>
    %32 = vector.broadcast %31 : vector<1x256xf32> to vector<256x256xf32>
    %33 = arith.addf %30, %32 : vector<256x256xf32>
    %cst_18 = arith.constant 0.000000e+00 : f32
    %34 = vector.broadcast %cst_18 : f32 to vector<256x256xf32>
    %35 = arith.maximumf %33, %34 : vector<256x256xf32>
    %c0_19 = arith.constant 0 : index
    %c0_20 = arith.constant 0 : index
    %36 = vector.load %arg10[%c0_19, %c0_20] : memref<2x256xf32, #tpu.memory_space<vmem>>, vector<1x256xf32>
    %37 = vector.broadcast %36 : vector<1x256xf32> to vector<256x256xf32>
    %38 = arith.mulf %35, %37 : vector<256x256xf32>
    %cst_21 = arith.constant dense<0.000000e+00> : vector<256xf32>
    %39 = vector.multi_reduction <add>, %38, %cst_21 [1] : vector<256x256xf32> to vector<256xf32>
    %40 = vector.shape_cast %39 : vector<256xf32> to vector<256x1xf32>
    %c0_22 = arith.constant 0 : index
    %c0_23 = arith.constant 0 : index
    %41 = vector.load %arg11[%c0_22, %c0_23] : memref<1x2xf32, #tpu.memory_space<vmem>>, vector<1x1xf32>
    %42 = vector.broadcast %41 : vector<1x1xf32> to vector<256x1xf32>
    %43 = arith.addf %40, %42 : vector<256x1xf32>
    %44 = math.tanh %43 : vector<256x1xf32>
    %c1_24 = arith.constant 1 : index
    %c0_25 = arith.constant 0 : index
    %45 = vector.load %arg10[%c1_24, %c0_25] : memref<2x256xf32, #tpu.memory_space<vmem>>, vector<1x256xf32>
    %46 = vector.broadcast %45 : vector<1x256xf32> to vector<256x256xf32>
    %47 = arith.mulf %35, %46 : vector<256x256xf32>
    %cst_26 = arith.constant dense<0.000000e+00> : vector<256xf32>
    %48 = vector.multi_reduction <add>, %47, %cst_26 [1] : vector<256x256xf32> to vector<256xf32>
    %49 = vector.shape_cast %48 : vector<256xf32> to vector<256x1xf32>
    %c0_27 = arith.constant 0 : index
    %c1_28 = arith.constant 1 : index
    %50 = vector.load %arg11[%c0_27, %c1_28] : memref<1x2xf32, #tpu.memory_space<vmem>>, vector<1x1xf32>
    %51 = vector.broadcast %50 : vector<1x1xf32> to vector<256x1xf32>
    %52 = arith.addf %49, %51 : vector<256x1xf32>
    %53 = math.tanh %52 : vector<256x1xf32>
    %c0_29 = arith.constant 0 : index
    %c0_30 = arith.constant 0 : index
    %c0_31 = arith.constant 0 : index
    %54 = vector.load %arg3[%c0_29, %c0_30, %c0_31] : memref<1x1x256xf32, #tpu.memory_space<vmem>>, vector<1x1x256xf32>
    %55 = vector.shape_cast %54 : vector<1x1x256xf32> to vector<1x256xf32>
    %c0_32 = arith.constant 0 : index
    %c0_33 = arith.constant 0 : index
    %56 = vector.load %arg12[%c0_32, %c0_33] : memref<2x256xf32, #tpu.memory_space<vmem>>, vector<1x256xf32>
    %57 = vector.broadcast %44 : vector<256x1xf32> to vector<256x256xf32>
    %58 = vector.broadcast %56 : vector<1x256xf32> to vector<256x256xf32>
    %59 = arith.mulf %57, %58 : vector<256x256xf32>
    %60 = vector.broadcast %55 : vector<1x256xf32> to vector<256x256xf32>
    %61 = arith.addf %60, %59 : vector<256x256xf32>
    %c1_34 = arith.constant 1 : index
    %c0_35 = arith.constant 0 : index
    %62 = vector.load %arg12[%c1_34, %c0_35] : memref<2x256xf32, #tpu.memory_space<vmem>>, vector<1x256xf32>
    %63 = vector.broadcast %53 : vector<256x1xf32> to vector<256x256xf32>
    %64 = vector.broadcast %62 : vector<1x256xf32> to vector<256x256xf32>
    %65 = arith.mulf %63, %64 : vector<256x256xf32>
    %66 = arith.addf %61, %65 : vector<256x256xf32>
    %cst_36 = arith.constant 0.000000e+00 : f32
    %67 = vector.broadcast %cst_36 : f32 to vector<256x256xf32>
    %68 = arith.maximumf %66, %67 : vector<256x256xf32>
    %69 = arith.truncf %68 : vector<256x256xf32> to vector<256x256xbf16>
    %c0_37 = arith.constant 0 : index
    %c0_38 = arith.constant 0 : index
    %70 = vector.load %arg13[%c0_37, %c0_38] : memref<256x256xbf16, #tpu.memory_space<vmem>>, vector<256x256xbf16>
    %cst_39 = arith.constant dense<0.000000e+00> : vector<256x256xf32>
    %71 = tpu.matmul %69, %70, %cst_39 {dimension_numbers = #tpu.dot_dimension_numbers<[1], [0], [0], [1], [0, 0, 1, 1], [], []>} : vector<256x256xbf16>, vector<256x256xbf16>, vector<256x256xf32> -> vector<256x256xf32>
    %72 = arith.addf %68, %71 : vector<256x256xf32>
    %c0_40 = arith.constant 0 : index
    %c0_41 = arith.constant 0 : index
    %73 = vector.load %arg14[%c0_40, %c0_41] : memref<1x256xf32, #tpu.memory_space<vmem>>, vector<1x256xf32>
    %74 = vector.broadcast %73 : vector<1x256xf32> to vector<256x256xf32>
    %75 = arith.addf %72, %74 : vector<256x256xf32>
    %cst_42 = arith.constant 0.000000e+00 : f32
    %76 = vector.broadcast %cst_42 : f32 to vector<256x256xf32>
    %77 = arith.maximumf %75, %76 : vector<256x256xf32>
    %78 = arith.truncf %77 : vector<256x256xf32> to vector<256x256xbf16>
    %c0_43 = arith.constant 0 : index
    %c0_44 = arith.constant 0 : index
    %79 = vector.load %arg15[%c0_43, %c0_44] : memref<256x256xbf16, #tpu.memory_space<vmem>>, vector<256x256xbf16>
    %cst_45 = arith.constant dense<0.000000e+00> : vector<256x256xf32>
    %80 = tpu.matmul %78, %79, %cst_45 {dimension_numbers = #tpu.dot_dimension_numbers<[1], [0], [0], [1], [0, 0, 1, 1], [], []>} : vector<256x256xbf16>, vector<256x256xbf16>, vector<256x256xf32> -> vector<256x256xf32>
    %81 = arith.addf %77, %80 : vector<256x256xf32>
    %c0_46 = arith.constant 0 : index
    %c0_47 = arith.constant 0 : index
    %82 = vector.load %arg16[%c0_46, %c0_47] : memref<1x256xf32, #tpu.memory_space<vmem>>, vector<1x256xf32>
    %83 = vector.broadcast %82 : vector<1x256xf32> to vector<256x256xf32>
    %84 = arith.addf %81, %83 : vector<256x256xf32>
    %cst_48 = arith.constant 0.000000e+00 : f32
    %85 = vector.broadcast %cst_48 : f32 to vector<256x256xf32>
    %86 = arith.maximumf %84, %85 : vector<256x256xf32>
    %87 = arith.truncf %86 : vector<256x256xf32> to vector<256x256xbf16>
    %c0_49 = arith.constant 0 : index
    %c0_50 = arith.constant 0 : index
    %88 = vector.load %arg17[%c0_49, %c0_50] : memref<256x256xbf16, #tpu.memory_space<vmem>>, vector<256x256xbf16>
    %cst_51 = arith.constant dense<0.000000e+00> : vector<256x256xf32>
    %89 = tpu.matmul %87, %88, %cst_51 {dimension_numbers = #tpu.dot_dimension_numbers<[1], [0], [0], [1], [0, 0, 1, 1], [], []>} : vector<256x256xbf16>, vector<256x256xbf16>, vector<256x256xf32> -> vector<256x256xf32>
    %c0_52 = arith.constant 0 : index
    %c0_53 = arith.constant 0 : index
    %90 = vector.load %arg18[%c0_52, %c0_53] : memref<1x256xf32, #tpu.memory_space<vmem>>, vector<1x256xf32>
    %91 = vector.broadcast %90 : vector<1x256xf32> to vector<256x256xf32>
    %92 = arith.addf %89, %91 : vector<256x256xf32>
    %cst_54 = arith.constant 0.000000e+00 : f32
    %93 = vector.broadcast %cst_54 : f32 to vector<256x256xf32>
    %94 = arith.maximumf %92, %93 : vector<256x256xf32>
    %c0_55 = arith.constant 0 : index
    %c0_56 = arith.constant 0 : index
    %95 = vector.load %arg19[%c0_55, %c0_56] : memref<2x256xf32, #tpu.memory_space<vmem>>, vector<1x256xf32>
    %96 = vector.broadcast %95 : vector<1x256xf32> to vector<256x256xf32>
    %97 = arith.mulf %94, %96 : vector<256x256xf32>
    %cst_57 = arith.constant dense<0.000000e+00> : vector<256xf32>
    %98 = vector.multi_reduction <add>, %97, %cst_57 [1] : vector<256x256xf32> to vector<256xf32>
    %99 = vector.shape_cast %98 : vector<256xf32> to vector<256x1xf32>
    %c0_58 = arith.constant 0 : index
    %c0_59 = arith.constant 0 : index
    %100 = vector.load %arg20[%c0_58, %c0_59] : memref<1x2xf32, #tpu.memory_space<vmem>>, vector<1x1xf32>
    %101 = vector.broadcast %100 : vector<1x1xf32> to vector<256x1xf32>
    %102 = arith.addf %99, %101 : vector<256x1xf32>
    %103 = math.tanh %102 : vector<256x1xf32>
    %c0_60 = arith.constant 0 : index
    %c0_61 = arith.constant 0 : index
    %c0_62 = arith.constant 0 : index
    %104 = vector.load %arg21[%c0_60, %c0_61, %c0_62] : memref<1x256x2xf32, #tpu.memory_space<vmem>>, vector<1x256x1xf32>
    %105 = vector.shape_cast %104 : vector<1x256x1xf32> to vector<256x1xf32>
    %106 = vector.shape_cast %103 : vector<256x1xf32> to vector<1x256x1xf32>
    tpu.vector_store %arg21[%c0_60, %c0_61, %c0_62], %106 {strides = array<i32>} : memref<1x256x2xf32, #tpu.memory_space<vmem>>, vector<1x256x1xf32>,
    %c1_63 = arith.constant 1 : index
    %c0_64 = arith.constant 0 : index
    %107 = vector.load %arg19[%c1_63, %c0_64] : memref<2x256xf32, #tpu.memory_space<vmem>>, vector<1x256xf32>
    %108 = vector.broadcast %107 : vector<1x256xf32> to vector<256x256xf32>
    %109 = arith.mulf %94, %108 : vector<256x256xf32>
    %cst_65 = arith.constant dense<0.000000e+00> : vector<256xf32>
    %110 = vector.multi_reduction <add>, %109, %cst_65 [1] : vector<256x256xf32> to vector<256xf32>
    %111 = vector.shape_cast %110 : vector<256xf32> to vector<256x1xf32>
    %c0_66 = arith.constant 0 : index
    %c1_67 = arith.constant 1 : index
    %112 = vector.load %arg20[%c0_66, %c1_67] : memref<1x2xf32, #tpu.memory_space<vmem>>, vector<1x1xf32>
    %113 = vector.broadcast %112 : vector<1x1xf32> to vector<256x1xf32>
    %114 = arith.addf %111, %113 : vector<256x1xf32>
    %115 = math.tanh %114 : vector<256x1xf32>
    %c0_68 = arith.constant 0 : index
    %c0_69 = arith.constant 0 : index
    %c1_70 = arith.constant 1 : index
    %116 = vector.load %arg21[%c0_68, %c0_69, %c1_70] : memref<1x256x2xf32, #tpu.memory_space<vmem>>, vector<1x256x1xf32>
    %117 = vector.shape_cast %116 : vector<1x256x1xf32> to vector<256x1xf32>
    %118 = vector.shape_cast %115 : vector<256x1xf32> to vector<1x256x1xf32>
    tpu.vector_store %arg21[%c0_68, %c0_69, %c1_70], %118 {strides = array<i32>} : memref<1x256x2xf32, #tpu.memory_space<vmem>>, vector<1x256x1xf32>,
    return
  }
  func.func @transform_0(%arg0: i32, %arg1: i32) -> (i32, i32, i32) {
    %c0_i32 = arith.constant 0 : i32
    %c0_i32_0 = arith.constant 0 : i32
    %c0_i32_1 = arith.constant 0 : i32
    return %arg0, %c0_i32, %c0_i32_0 : i32, i32, i32
  }
  func.func @transform_1(%arg0: i32, %arg1: i32) -> (i32, i32, i32) {
    %c0_i32 = arith.constant 0 : i32
    %c0_i32_0 = arith.constant 0 : i32
    %c0_i32_1 = arith.constant 0 : i32
    return %arg0, %c0_i32, %c0_i32_0 : i32, i32, i32
  }
  func.func @transform_2(%arg0: i32, %arg1: i32) -> (i32, i32) {
    %c0_i32 = arith.constant 0 : i32
    %c0_i32_0 = arith.constant 0 : i32
    return %arg1, %c0_i32 : i32, i32
  }
  func.func @transform_3(%arg0: i32, %arg1: i32) -> (i32, i32) {
    %c0_i32 = arith.constant 0 : i32
    %c0_i32_0 = arith.constant 0 : i32
    %c0_i32_1 = arith.constant 0 : i32
    return %c0_i32, %c0_i32_0 : i32, i32
  }
  func.func @transform_4(%arg0: i32, %arg1: i32) -> (i32, i32) {
    %c0_i32 = arith.constant 0 : i32
    %c0_i32_0 = arith.constant 0 : i32
    %c0_i32_1 = arith.constant 0 : i32
    return %c0_i32, %c0_i32_0 : i32, i32
  }
  func.func @transform_5(%arg0: i32, %arg1: i32) -> (i32, i32) {
    %c0_i32 = arith.constant 0 : i32
    %c0_i32_0 = arith.constant 0 : i32
    %c0_i32_1 = arith.constant 0 : i32
    return %c0_i32, %c0_i32_0 : i32, i32
  }
  func.func @transform_6(%arg0: i32, %arg1: i32) -> (i32, i32) {
    %c0_i32 = arith.constant 0 : i32
    %c0_i32_0 = arith.constant 0 : i32
    %c0_i32_1 = arith.constant 0 : i32
    return %c0_i32, %c0_i32_0 : i32, i32
  }
  func.func @transform_7(%arg0: i32, %arg1: i32) -> (i32, i32) {
    %c0_i32 = arith.constant 0 : i32
    %c0_i32_0 = arith.constant 0 : i32
    %c0_i32_1 = arith.constant 0 : i32
    return %c0_i32, %c0_i32_0 : i32, i32
  }
  func.func @transform_8(%arg0: i32, %arg1: i32) -> (i32, i32) {
    %c0_i32 = arith.constant 0 : i32
    %c0_i32_0 = arith.constant 0 : i32
    %c0_i32_1 = arith.constant 0 : i32
    return %c0_i32, %c0_i32_0 : i32, i32
  }
  func.func @transform_9(%arg0: i32, %arg1: i32) -> (i32, i32) {
    %c0_i32 = arith.constant 0 : i32
    %c0_i32_0 = arith.constant 0 : i32
    %c0_i32_1 = arith.constant 0 : i32
    return %c0_i32, %c0_i32_0 : i32, i32
  }
  func.func @transform_10(%arg0: i32, %arg1: i32) -> (i32, i32) {
    %c0_i32 = arith.constant 0 : i32
    %c0_i32_0 = arith.constant 0 : i32
    %c0_i32_1 = arith.constant 0 : i32
    return %c0_i32, %c0_i32_0 : i32, i32
  }
  func.func @transform_11(%arg0: i32, %arg1: i32) -> (i32, i32) {
    %c0_i32 = arith.constant 0 : i32
    %c0_i32_0 = arith.constant 0 : i32
    %c0_i32_1 = arith.constant 0 : i32
    return %c0_i32, %c0_i32_0 : i32, i32
  }
  func.func @transform_12(%arg0: i32, %arg1: i32) -> (i32, i32) {
    %c0_i32 = arith.constant 0 : i32
    %c0_i32_0 = arith.constant 0 : i32
    %c0_i32_1 = arith.constant 0 : i32
    return %c0_i32, %c0_i32_0 : i32, i32
  }
  func.func @transform_13(%arg0: i32, %arg1: i32) -> (i32, i32) {
    %c0_i32 = arith.constant 0 : i32
    %c0_i32_0 = arith.constant 0 : i32
    %c0_i32_1 = arith.constant 0 : i32
    return %c0_i32, %c0_i32_0 : i32, i32
  }
  func.func @transform_14(%arg0: i32, %arg1: i32) -> (i32, i32) {
    %c0_i32 = arith.constant 0 : i32
    %c0_i32_0 = arith.constant 0 : i32
    %c0_i32_1 = arith.constant 0 : i32
    return %c0_i32, %c0_i32_0 : i32, i32
  }
  func.func @transform_15(%arg0: i32, %arg1: i32) -> (i32, i32) {
    %c0_i32 = arith.constant 0 : i32
    %c0_i32_0 = arith.constant 0 : i32
    %c0_i32_1 = arith.constant 0 : i32
    return %c0_i32, %c0_i32_0 : i32, i32
  }
  func.func @transform_16(%arg0: i32, %arg1: i32) -> (i32, i32) {
    %c0_i32 = arith.constant 0 : i32
    %c0_i32_0 = arith.constant 0 : i32
    %c0_i32_1 = arith.constant 0 : i32
    return %c0_i32, %c0_i32_0 : i32, i32
  }
  func.func @transform_17(%arg0: i32, %arg1: i32) -> (i32, i32) {
    %c0_i32 = arith.constant 0 : i32
    %c0_i32_0 = arith.constant 0 : i32
    %c0_i32_1 = arith.constant 0 : i32
    return %c0_i32, %c0_i32_0 : i32, i32
  }
  func.func @transform_18(%arg0: i32, %arg1: i32) -> (i32, i32) {
    %c0_i32 = arith.constant 0 : i32
    %c0_i32_0 = arith.constant 0 : i32
    %c0_i32_1 = arith.constant 0 : i32
    return %c0_i32, %c0_i32_0 : i32, i32
  }
  func.func @transform_19(%arg0: i32, %arg1: i32) -> (i32, i32, i32) {
    %c0_i32 = arith.constant 0 : i32
    %c0_i32_0 = arith.constant 0 : i32
    return %arg0, %arg1, %c0_i32 : i32, i32, i32
  }
}

</mosaic_0001>

<bundles_post_ra>
// kernel: twofold_forward.1
= control target key start
LH: loop header
LB: loop body
LE: loop exit
PB: predicated region body
PF: predicated region fallthrough
CT: control target
= control target key end

     0   :  { %s7104_s30 = smov 0   ;;  %s7106_s20 = smov 0   ;;  %s10957_s0 = inlined_call_operand.vmem [shape: f32[2,1,256], index: 0, kind: input, shape index: {}]   ;;  %s10958_s1 = inlined_call_operand.vmem [shape: f32[2,1,256], index: 1, kind: input, shape index: {}]   ;;  %s10959_s2 = inlined_call_operand.vmem [shape: f32[2048,2], index: 2, kind: input, shape index: {}]   ;;  %s10960_s3 = inlined_call_operand.vmem [shape: f32[2,256], index: 3, kind: input, shape index: {}]   ;;  %s10961_s4 = inlined_call_operand.vmem [shape: bf16[256,256], index: 4, kind: input, shape index: {}]   ;;  %s10962_s5 = inlined_call_operand.vmem [shape: f32[1,256], index: 5, kind: input, shape index: {}]   ;;  %s10963_s6 = inlined_call_operand.vmem [shape: bf16[256,256], index: 6, kind: input, shape index: {}]   ;;  %s10964_s7 = inlined_call_operand.vmem [shape: f32[1,256], index: 7, kind: input, shape index: {}]   ;;  %s10965_s8 = inlined_call_operand.vmem [shape: f32[2,256], index: 8, kind: input, shape index: {}]   ;;  %s10966_s9 = inlined_call_operand.vmem [shape: f32[1,2], index: 9, kind: input, shape index: {}]   ;;  %s10967_s10 = inlined_call_operand.vmem [shape: f32[2,256], index: 10, kind: input, shape index: {}]   ;;  %s10968_s11 = inlined_call_operand.vmem [shape: bf16[256,256], index: 11, kind: input, shape index: {}]   ;;  %s10969_s12 = inlined_call_operand.vmem [shape: f32[1,256], index: 12, kind: input, shape index: {}]   ;;  %s10970_s13 = inlined_call_operand.vmem [shape: bf16[256,256], index: 13, kind: input, shape index: {}]   ;;  %s10971_s14 = inlined_call_operand.vmem [shape: f32[1,256], index: 14, kind: input, shape index: {}]   ;;  %s10972_s15 = inlined_call_operand.vmem [shape: bf16[256,256], index: 15, kind: input, shape index: {}]   ;;  %s10973_s16 = inlined_call_operand.vmem [shape: f32[1,256], index: 16, kind: input, shape index: {}]   ;;  %s10974_s17 = inlined_call_operand.vmem [shape: f32[2,256], index: 17, kind: input, shape index: {}]   ;;  %s10975_s18 = inlined_call_operand.vmem [shape: f32[1,2], index: 18, kind: input, shape index: {}]   ;;  %s10976_s19 = inlined_call_operand.vmem [shape: f32[2,2048,2], index: 19, kind: output, shape index: {}]  }
   0x1   :  { %11320 = sst [smem:[#allocation33_spill]] %s10957_s0  ;;  %s7102_s0 = smov 0  }
   0x2   :  { %11321 = sst [smem:[#allocation34_spill]] %s10958_s1  ;;  %s7108_s21 = smov 0  }
   0x3   :  { %11322 = sst [smem:[#allocation35_spill]] %s10959_s2  ;;  %s7110_s1 = smov 0  }
   0x4   :  { %11323 = sst [smem:[#allocation36_spill]] %s10960_s3 }
   0x5 LB: > { %11324 = sst [smem:[#allocation2_spill]] %s6994_s21  ;;  %s38_s22 = sadd.s32 1, %s6990_s20  ;;  %s6998_s1 = sphi %s7110_s1, %s29_s1   ;;  %s6994_s21 = sphi %s7108_s21, %s11765_s21   ;;  %s6990_s20 = sphi %s7106_s20, %s11764_s20   ;;  %s6986_s30 = sphi %s7104_s30, %s11760_s30   ;;  %s6982_s0 = sphi %s7102_s0, %s11763_s0  }
   0x6   : > { %s41_s2 = sadd.s32 1, %s6994_s21  ;;  %p39_p0 = scmp.ge.s32.totalorder %s38_s22, 8 }
   0x7   : > { %p6138_p1 = scmp.ge.s32.totalorder %s6998_s1, 1  ;;  %p570_p2 = scmp.lt.s32.totalorder %s6998_s1, 17 }
   0x8   : > { %s11767_s22 = smov (%p39_p0, %s38_s22), 0  ;;  %s11769_s2 = smov (!%p39_p0, %s41_s2), %s6994_s21 }
   0x9   : > { %11325 = sst [smem:[#allocation3_spill]] %s11767_s22  ;;  %p571_p3 = pnand %p6138_p1, %p570_p2 }
   0xa   : > { %p43_p4 = scmp.ge.s32.totalorder %s11769_s2, 2 }
   0xb   : > { %574 = sbr.rel (%p571_p3) target bundleno = 1853 (0x73d), region = 96 }
   0xc   : > { %s11771_s2 = smov (%p43_p4, %s11769_s2), 0 }
   0xd   : > { %11326 = sst [smem:[#allocation4_spill]] %s11771_s2 }
  0x10   : > { %s6141_s23 = sshll.u32 %s6982_s0, 5  ;;  %p638_p5 = scmp.lt.s32.totalorder %s6986_s30, 1  ;;  %v10979_v0 = vmov 1   ;;  %v10981_v1 = vmov 0   ;;  %v6464_v2 = vld [vmem:[%s10961_s4 + $0x74] ss:$8 sps:$4 sm:$0xff]   ;;  %v857_v60 = vlaneseq }
  0x11   : > { %6390 = vset.pattern.permute.xlu1 %v10979_v0  ;;  %6389 = vset.pattern.permute.xlu0 %v10981_v1  ;;  %p647_p6 = scmp.lt.s32.totalorder %s6141_s23, 255  ;;  %v6466_v3 = vld [vmem:[%s10961_s4 + $0x70] ss:$8 sps:$4 sm:$0xff]   ;;  %v6467_v4 = vld [vmem:[%s10961_s4 + $0x64] ss:$8 sps:$4 sm:$0xff]   ;;  %s11327_s2 = sld [smem:[#allocation35_spill]] }
  0x12   : > { %s11773_s30 = smov (!%p638_p5, %s6986_s30), 1  ;;  %1563 = vmatprep.subr.bf16.mxu0 %v6464_v2  ;;  %6315 = vmatprep.subr.bf16.mxu1 %v6464_v2  ;;  %v6469_v5 = vld [vmem:[%s10961_s4 + $0x60] ss:$8 sps:$4 sm:$0xff]   ;;  %v6470_v6 = vld [vmem:[%s10961_s4 + $0x54] ss:$8 sps:$4 sm:$0xff]   ;;  %v858_v61 = vshrl.u32 %v857_v60, 7 }
  0x13   : > { %s11775_s23 = smov (!%p647_p6, %s6141_s23), 255  ;;  %s6144_s29 = sshll.u32 %s11773_s30, 8  ;;  %1564 = vmatpush1.bf16.msra.mxu0 %v6466_v3  ;;  %6331 = vmatpush1.bf16.msra.mxu1 %v6466_v3  ;;  %v6472_v9 = vld [vmem:[%s10961_s4 + $0x50] ss:$8 sps:$4 sm:$0xff]   ;;  %v6473_v10 = vld [vmem:[%s10961_s4 + $0x44] ss:$8 sps:$4 sm:$0xff]  }
  0x14   : > { %s6142_s0 = sshll.u32 %s11775_s23, 3  ;;  %1565 = vmatprep.subr.bf16.mxu0 %v6467_v4  ;;  %6316 = vmatprep.subr.bf16.mxu1 %v6467_v4  ;;  %s7158_s21 = sadd.s32 %s6144_s29, %s11775_s23  ;;  %v6475_v13 = vld [vmem:[%s10961_s4 + $0x40] ss:$8 sps:$4 sm:$0xff]   ;;  %v6476_v14 = vld [vmem:[%s10961_s4 + $0x34] ss:$8 sps:$4 sm:$0xff]   ;;  %v7314_v63 = vsub.s32 0, %v858_v61 }
  0x15   : > { %v6478_v16 = vld [vmem:[%s10961_s4 + $0x30] ss:$8 sps:$4 sm:$0xff]   ;;  %v6479_v17 = vld [vmem:[%s10961_s4 + $0x24] ss:$8 sps:$4 sm:$0xff]   ;;  %v6481_v18 = vld [vmem:[%s10961_s4 + $0x20] ss:$8 sps:$4 sm:$0xff]  }
  0x16   : > { %v6482_v19 = vld [vmem:[%s10961_s4 + $0x14] ss:$8 sps:$4 sm:$0xff]   ;;  %v6484_v21 = vld [vmem:[%s10961_s4 + $0x10] ss:$8 sps:$4 sm:$0xff]   ;;  %v6485_v23 = vld [vmem:[%s10961_s4 + $0x4] ss:$8 sps:$4 sm:$0xff]  }
  0x17   : > { %s7152_s22 = scalar_lea.vmem %s11327_s2, %s6142_s0  ;;  %1566 = vmatpush1.bf16.msra.mxu0 %v6469_v5  ;;  %6332 = vmatpush1.bf16.msra.mxu1 %v6469_v5  ;;  %v6487_v24 = vld [vmem:[%s10961_s4] ss:$8 sps:$4 sm:$0xff]   ;;  %v6488_v25 = vld [vmem:[%s10961_s4 + $0xf4] ss:$8 sps:$4 sm:$0xff]   ;;  %v6490_v26 = vld [vmem:[%s10961_s4 + $0xf0] ss:$8 sps:$4 sm:$0xff]  }
  0x18   : > { %v662_v7 = vld [vmem:[%s7152_s22] sm:$0xff]  ;;  %v663_v8 = vld [vmem:[%s7152_s22 + $0x8] sm:$0xff]  ;;  %1567 = vmatprep.subr.bf16.mxu0 %v6470_v6  ;;  %6317 = vmatprep.subr.bf16.mxu1 %v6470_v6  ;;  %v664_v11 = vld [vmem:[%s7152_s22 + $0x10] sm:$0xff]  ;;  %s6139_s23 = sshll.u32 %s11773_s30, 1  ;;  %11328 = vst [vmem:[#allocation5_spill] sm:$0xff] %v7314_v63  ;;  %v7316_v2 = vsub.s32 1, %v858_v61 }
  0x19   : > { %1009 = vperm.xlu1 %6390, %v662_v7   ;;  %698 = vperm.xlu0 %6389, %v662_v7   ;;  %v665_v12 = vld [vmem:[%s7152_s22 + $0x18] sm:$0xff]  ;;  %v667_v15 = vld [vmem:[%s7152_s22 + $0x28] sm:$0xff]  ;;  %v666_v20 = vld [vmem:[%s7152_s22 + $0x20] sm:$0xff]  ;;  %s11330_s26 = sld [smem:[#allocation33_spill]]  ;;  %s6145_s0 = sshll.u32 %s7158_s21, 3  ;;  %vm5716_vm0 = vcmask 7168  }
  0x1a   : > { %v668_v22 = vld [vmem:[%s7152_s22 + $0x30] sm:$0xff]  ;;  %v7212_v27 = vld [vmem:[%s7152_s22 + $0x48] sm:$0xff]  ;;  %v669_v30 = vld [vmem:[%s7152_s22 + $0x38] sm:$0xff]  ;;  %11329 = vst [vmem:[#allocation6_spill] sm:$0xff] %v7316_v2  ;;  %s11331_s25 = sld [smem:[#allocation36_spill]]  ;;  %s10752_s29 = scalar_lea.vmem %s10976_s19, %s6145_s0  ;;  %vm5993_vm1 = vcmask 15368  }
  0x1b   : > { %1568 = vmatpush1.bf16.msra.mxu0 %v6472_v9  ;;  %6333 = vmatpush1.bf16.msra.mxu1 %v6472_v9  ;;  %v6491_v28 = vld [vmem:[%s10961_s4 + $0xe4] ss:$8 sps:$4 sm:$0xff]   ;;  %v6493_v29 = vld [vmem:[%s10961_s4 + $0xe0] ss:$8 sps:$4 sm:$0xff]   ;;  %v6494_v31 = vld [vmem:[%s10961_s4 + $0xd4] ss:$8 sps:$4 sm:$0xff]  }
  0x1c   : > { %1569 = vmatprep.subr.bf16.mxu0 %v6473_v10  ;;  %6318 = vmatprep.subr.bf16.mxu1 %v6473_v10  ;;  %v672_v32 = vld [vmem:[%s7152_s22 + $0x50] sm:$0xff]  ;;  %v7231_v34 = vld [vmem:[%s7152_s22 + $0x68] sm:$0xff]  ;;  %v670_v37 = vld [vmem:[%s7152_s22 + $0x40] sm:$0xff]  ;;  %s11546_s28 = sld [smem:[#allocation34_spill]] }
  0x1d   : > { %1013 = vperm.xlu1 %6390, %v663_v8   ;;  %703 = vperm.xlu0 %6389, %v663_v8   ;;  %v6496_v33 = vld [vmem:[%s10961_s4 + $0xd0] ss:$8 sps:$4 sm:$0xff]   ;;  %v6497_v35 = vld [vmem:[%s10961_s4 + $0xc4] ss:$8 sps:$4 sm:$0xff]   ;;  %v6499_v36 = vld [vmem:[%s10961_s4 + $0xc0] ss:$8 sps:$4 sm:$0xff]  }
  0x1e   : > { %v6500_v38 = vld [vmem:[%s10961_s4 + $0xb4] ss:$8 sps:$4 sm:$0xff]   ;;  %v6502_v39 = vld [vmem:[%s10961_s4 + $0xb0] ss:$8 sps:$4 sm:$0xff]   ;;  %v6503_v40 = vld [vmem:[%s10961_s4 + $0xa4] ss:$8 sps:$4 sm:$0xff]  }
  0x1f   : > { %1570 = vmatpush1.bf16.msra.mxu0 %v6475_v13  ;;  %6334 = vmatpush1.bf16.msra.mxu1 %v6475_v13  ;;  %v676_v41 = vld [vmem:[%s7152_s22 + $0x70] sm:$0xff]  ;;  %v6505_v42 = vld [vmem:[%s10961_s4 + $0xa0] ss:$8 sps:$4 sm:$0xff]   ;;  %v6509_v45 = vld [vmem:[%s10961_s4 + $0x84] ss:$8 sps:$4 sm:$0xff]   ;;  %s641_s27 = scalar_lea.vmem %s11330_s26, %s6139_s23 }
  0x20   : > { %1571 = vmatprep.subr.bf16.mxu0 %v6476_v14  ;;  %6319 = vmatprep.subr.bf16.mxu1 %v6476_v14  ;;  %v6506_v43 = vld [vmem:[%s10961_s4 + $0x94] ss:$8 sps:$4 sm:$0xff]   ;;  %v6508_v44 = vld [vmem:[%s10961_s4 + $0x90] ss:$8 sps:$4 sm:$0xff]   ;;  %v679_v46 = vld [vmem:[%s7152_s22 + $0x88] sm:$0xff] }
  0x21   : > { %6391 = vset.pattern.permute.xlu1 %v10981_v1  ;;  %708 = vperm.xlu0 %6389, %v664_v11   ;;  %v6511_v47 = vld [vmem:[%s10961_s4 + $0x80] ss:$8 sps:$4 sm:$0xff]   ;;  %v673_v48 = vld [vmem:[%s7152_s22 + $0x58] sm:$0xff]  ;;  %v680_v49 = vld [vmem:[%s7152_s22 + $0x90] sm:$0xff] }
  0x22   : > { %713 = vperm.xlu1 %6391, %v665_v12   ;;  %v7277_v50 = vld [vmem:[%s7152_s22 + $0xa8] sm:$0xff]  ;;  %v674_v51 = vld [vmem:[%s7152_s22 + $0x60] sm:$0xff]  ;;  %v684_v52 = vld [vmem:[%s7152_s22 + $0xb0] sm:$0xff]  ;;  %s645_s24 = scalar_lea.vmem %s11546_s28, %s6139_s23 }
  0x23   : > { %1572 = vmatpush1.bf16.msra.mxu0 %v6478_v16  ;;  %6335 = vmatpush1.bf16.msra.mxu1 %v6478_v16  ;;  %v677_v53 = vld [vmem:[%s7152_s22 + $0x78] sm:$0xff]  ;;  %v7290_v54 = vld [vmem:[%s7152_s22 + $0xc8] sm:$0xff]  ;;  %v688_v55 = vld [vmem:[%s7152_s22 + $0xd0] sm:$0xff] }
  0x24   : > { %1573 = vmatprep.subr.bf16.mxu0 %v6479_v17  ;;  %6320 = vmatprep.subr.bf16.mxu1 %v6479_v17  ;;  %v678_v56 = vld [vmem:[%s7152_s22 + $0x80] sm:$0xff]  ;;  %v7300_v57 = vld [vmem:[%s7152_s22 + $0xe8] sm:$0xff]  ;;  %v692_v58 = vld [vmem:[%s7152_s22 + $0xf0] sm:$0xff] }
  0x25   : > { %723 = vperm.xlu0 %6389, %v667_v15   ;;  %v681_v59 = vld [vmem:[%s7152_s22 + $0x98] sm:$0xff]  ;;  %v682_v62 = vld [vmem:[%s7152_s22 + $0xa0] sm:$0xff] }
  0x26   : > { %6392 = vset.pattern.permute.xlu1 %v10979_v0  ;;  %v695_v3 = vld [vmem:[%s11331_s25] ss:$2 sm:$0x3]  ;;  %v6146_v5 = vld [vmem:[%s11331_s25 + $0x1] ss:$2 sm:$0x3] }
  0x27   : > { %1021 = vperm.xlu1 %6392, %v665_v12   ;;  %1574 = vmatpush1.bf16.msra.mxu0 %v6481_v18  ;;  %v694_v4 = vld [vmem:[%s641_s27] sm:$0x3]  ;;  %v7331_v6 = vrot.slane %v695_v3, %v7314_v63  ;;  %v7334_v7 = vrot.slane %v695_v3, %v7316_v2  ;;  %v7343_v10 = vrot.slane %v6146_v5, %v7316_v2  ;;  %v685_v17 = vld [vmem:[%s7152_s22 + $0xb8] sm:$0xff] }
  0x28   : > { %1575 = vmatprep.subr.bf16.mxu0 %v6482_v19  ;;  %6336 = vmatpush1.bf16.msra.mxu1 %v6481_v18  ;;  %v7337_v8 = vrot.slane %v694_v4, %v7314_v63  ;;  %v7340_v9 = vrot.slane %v694_v4, %v7316_v2  ;;  %v7346_v13 = vrot.slane %v6146_v5, %v7314_v63 }
  0x29   : > { %6394 = vset.pattern.permute.xlu0 %v10979_v0  ;;  %6321 = vmatprep.subr.bf16.mxu1 %v6482_v19 }
  0x2a   : > { %1017 = vperm.xlu0 %6394, %v664_v11  }
  0x2b   : > { %6393 = vset.pattern.permute.xlu1 %v10981_v1  ;;  %1576 = vmatpush1.bf16.msra.mxu0 %v6484_v21 }
  0x2c   : > { %718 = vperm.xlu1 %6393, %v666_v20   ;;  %1577 = vmatprep.subr.bf16.mxu0 %v6485_v23 }
  0x2d   : > { %6337 = vmatpush1.bf16.msra.mxu1 %v6484_v21 }
  0x2e   : > { %1033 = vperm.xlu0 %6394, %v668_v22   ;;  %6322 = vmatprep.subr.bf16.mxu1 %v6485_v23 }
  0x2f   : > { %1578 = vmatpush1.bf16.msra.mxu0 %v6487_v24 }
  0x30   : > { %6395 = vset.pattern.permute.xlu1 %v10979_v0  ;;  %1579 = vmatprep.subr.bf16.mxu0 %v6488_v25 }
  0x31   : > { %1025 = vperm.xlu1 %6395, %v666_v20   ;;  %6338 = vmatpush1.bf16.msra.mxu1 %v6487_v24 }
  0x32   : > { %6397 = vset.pattern.permute.xlu0 %v10981_v1  ;;  %6323 = vmatprep.subr.bf16.mxu1 %v6488_v25 }
  0x33   : > { %728 = vperm.xlu0 %6397, %v668_v22   ;;  %1580 = vmatpush2.bf16.msra.mxu0 %v6490_v26 }
  0x34   : > { %1581 = vmatprep.subr.bf16.mxu0 %v6491_v28 }
  0x35   : > { %1029 = vperm.xlu1 %6395, %v667_v15   ;;  %6339 = vmatpush2.bf16.msra.mxu1 %v6490_v26 }
  0x36   : > { %6324 = vmatprep.subr.bf16.mxu1 %v6491_v28 }
  0x37   : > { %743 = vperm.xlu0 %6397, %v7212_v27   ;;  %1582 = vmatpush2.bf16.msra.mxu0 %v6493_v29 }
  0x38   : > { %1583 = vmatprep.subr.bf16.mxu0 %v6494_v31 }
  0x39   : > { %6396 = vset.pattern.permute.xlu1 %v10981_v1  ;;  %6340 = vmatpush2.bf16.msra.mxu1 %v6493_v29 }
  0x3a   : > { %733 = vperm.xlu1 %6396, %v669_v30   ;;  %6325 = vmatprep.subr.bf16.mxu1 %v6494_v31 }
  0x3b   : > { %748 = vperm.xlu0 %6397, %v672_v32   ;;  %1584 = vmatpush2.bf16.msra.mxu0 %v6496_v33 }
  0x3c   : > { %1585 = vmatprep.subr.bf16.mxu0 %v6497_v35 }
  0x3d   : > { %6341 = vmatpush2.bf16.msra.mxu1 %v6496_v33 }
  0x3e   : > { %6398 = vset.pattern.permute.xlu1 %v10979_v0  ;;  %6326 = vmatprep.subr.bf16.mxu1 %v6497_v35 }
  0x3f   : > { %1037 = vperm.xlu1 %6398, %v669_v30   ;;  %763 = vperm.xlu0 %6397, %v7231_v34  }
  0x40   : > { %1586 = vmatpush2.bf16.msra.mxu0 %v6499_v36 }
  0x41   : > { %1587 = vmatprep.subr.bf16.mxu0 %v6500_v38  ;;  %6342 = vmatpush2.bf16.msra.mxu1 %v6499_v36 }
  0x42   : > { %6327 = vmatprep.subr.bf16.mxu1 %v6500_v38 }
  0x43   : > { %6399 = vset.pattern.permute.xlu1 %v10981_v1  ;;  %6404 = vset.pattern.permute.xlu0 %v10979_v0 }
  0x44   : > { %738 = vperm.xlu1 %6399, %v670_v37   ;;  %1049 = vperm.xlu0 %6404, %v672_v32  }
  0x45   : > { %1588 = vmatpush2.bf16.msra.mxu0 %v6502_v39  ;;  %6343 = vmatpush2.bf16.msra.mxu1 %v6502_v39 }
  0x46   : > { %1589 = vmatprep.subr.bf16.mxu0 %v6503_v40  ;;  %6328 = vmatprep.subr.bf16.mxu1 %v6503_v40 }
  0x48   : > { %6400 = vset.pattern.permute.xlu1 %v10979_v0  ;;  %1065 = vperm.xlu0 %6404, %v676_v41  }
  0x49   : > { %1041 = vperm.xlu1 %6400, %v670_v37   ;;  %1590 = vmatpush2.bf16.msra.mxu0 %v6505_v42 }
  0x4a   : > { %1591 = vmatprep.subr.bf16.mxu0 %v6506_v43  ;;  %6344 = vmatpush2.bf16.msra.mxu1 %v6505_v42 }
  0x4b   : > { %6329 = vmatprep.subr.bf16.mxu1 %v6506_v43 }
  0x4c   : > { %6407 = vset.pattern.permute.xlu0 %v10981_v1 }
  0x4d   : > { %1045 = vperm.xlu1 %6400, %v7212_v27   ;;  %768 = vperm.xlu0 %6407, %v676_v41  }
  0x4e   : > { %1592 = vmatpush2.bf16.msra.mxu0 %v6508_v44  ;;  %6345 = vmatpush2.bf16.msra.mxu1 %v6508_v44 }
  0x4f   : > { %1593 = vmatprep.subr.bf16.mxu0 %v6509_v45  ;;  %6330 = vmatprep.subr.bf16.mxu1 %v6509_v45  ;;  %v686_v45 = vld [vmem:[%s7152_s22 + $0xc0] sm:$0xff] }
  0x51   : > { %6401 = vset.pattern.permute.xlu1 %v10981_v1  ;;  %783 = vperm.xlu0 %6407, %v679_v46  }
  0x52   : > { %753 = vperm.xlu1 %6401, %v673_v48   ;;  %1594 = vmatpush2.bf16.msra.mxu0 %v6511_v47 }
  0x53   : > { %6346 = vmatpush2.bf16.msra.mxu1 %v6511_v47 }
  0x55   : > { %788 = vperm.xlu0 %6407, %v680_v49  }
  0x56   : > { %6402 = vset.pattern.permute.xlu1 %v10979_v0 }
  0x57   : > { %1053 = vperm.xlu1 %6402, %v673_v48  }
  0x59   : > { %803 = vperm.xlu0 %6407, %v7277_v50  }
  0x5b   : > { %6403 = vset.pattern.permute.xlu1 %v10981_v1 }
  0x5c   : > { %758 = vperm.xlu1 %6403, %v674_v51  }
  0x5d   : > { %6414 = vset.pattern.permute.xlu0 %v10979_v0 }
  0x5e   : > { %1081 = vperm.xlu0 %6414, %v680_v49  }
  0x60   : > { %6405 = vset.pattern.permute.xlu1 %v10979_v0 }
  0x61   : > { %1057 = vperm.xlu1 %6405, %v674_v51  }
  0x62   : > { %1097 = vperm.xlu0 %6414, %v684_v52  }
  0x65   : > { %1061 = vperm.xlu1 %6405, %v7231_v34  }
  0x66   : > { %6417 = vset.pattern.permute.xlu0 %v10981_v1 }
  0x67   : > { %808 = vperm.xlu0 %6417, %v684_v52  }
  0x69   : > { %6406 = vset.pattern.permute.xlu1 %v10981_v1 }
  0x6a   : > { %773 = vperm.xlu1 %6406, %v677_v53  }
  0x6b   : > { %823 = vperm.xlu0 %6417, %v7290_v54  }
  0x6e   : > { %6408 = vset.pattern.permute.xlu1 %v10979_v0 }
  0x6f   : > { %1069 = vperm.xlu1 %6408, %v677_v53   ;;  %828 = vperm.xlu0 %6417, %v688_v55  }
  0x73   : > { %6409 = vset.pattern.permute.xlu1 %v10981_v1  ;;  %6422 = vset.pattern.permute.xlu0 %v10979_v0 }
  0x74   : > { %778 = vperm.xlu1 %6409, %v678_v56   ;;  %1113 = vperm.xlu0 %6422, %v688_v55  }
  0x78   : > { %6410 = vset.pattern.permute.xlu1 %v10979_v0  ;;  %6425 = vset.pattern.permute.xlu0 %v10981_v1 }
  0x79   : > { %1073 = vperm.xlu1 %6410, %v678_v56   ;;  %843 = vperm.xlu0 %6425, %v7300_v57  }
  0x7d   : > { %1077 = vperm.xlu1 %6410, %v679_v46   ;;  %848 = vperm.xlu0 %6425, %v692_v58  }
  0x81   : > { %6411 = vset.pattern.permute.xlu1 %v10981_v1  ;;  %6428 = vset.pattern.permute.xlu0 %v10979_v0 }
  0x82   : > { %793 = vperm.xlu1 %6411, %v681_v59   ;;  %1129 = vperm.xlu0 %6428, %v692_v58  }
  0x86   : > { %6412 = vset.pattern.permute.xlu1 %v10979_v0  ;;  %6430 = vset.pattern.permute.xlu0 %v10981_v1 }
  0x87   : > { %1085 = vperm.xlu1 %6412, %v681_v59  }
  0x8b   : > { %6413 = vset.pattern.permute.xlu1 %v10981_v1 }
  0x8c   : > { %798 = vperm.xlu1 %6413, %v682_v62  }
  0x90   : > { %6415 = vset.pattern.permute.xlu1 %v10979_v0 }
  0x91   : > { %1089 = vperm.xlu1 %6415, %v682_v62  }
  0x94   : > { %v1010_v11 = vpop.permute.xlu1 %1009  ;;  %v699_v12 = vpop.permute.xlu0 %698 }
  0x95   : > { %v867_v14 = vmul.f32 %v7331_v6, %v699_v12  ;;  %v868_v15 = vmul.f32 %v7334_v7, %v699_v12  ;;  %1093 = vperm.xlu1 %6415, %v7277_v50   ;;  %v1148_v19 = vmul.f32 %v7343_v10, %v1010_v11  ;;  %v1147_v22 = vmul.f32 %v7346_v13, %v1010_v11 }
  0x97   : > { %v942_v16 = vadd.f32 %v7337_v8, %v867_v14  ;;  %v943_v18 = vadd.f32 %v7340_v9, %v868_v15 }
  0x98   : > { %v1014_v20 = vpop.permute.xlu1 %1013  ;;  %v704_v21 = vpop.permute.xlu0 %703 }
  0x99   : > { %v869_v23 = vmul.f32 %v7331_v6, %v704_v21  ;;  %v870_v24 = vmul.f32 %v7334_v7, %v704_v21  ;;  %6416 = vset.pattern.permute.xlu1 %v10981_v1  ;;  %v1149_v25 = vmul.f32 %v7346_v13, %v1014_v20  ;;  %v7360_v26 = vadd.f32 %v1148_v19, %v943_v18 }
  0x9a   : > { %813 = vperm.xlu1 %6416, %v685_v17   ;;  %v1150_v27 = vmul.f32 %v7343_v10, %v1014_v20  ;;  %v7365_v30 = vadd.f32 %v1147_v22, %v942_v16 }
  0x9b   : > { %v944_v28 = vadd.f32 %v7337_v8, %v869_v23  ;;  %v945_v29 = vadd.f32 %v7340_v9, %v870_v24  ;;  %v11022_v35 = vmax.f32 %v7360_v26, 0.0 }
  0x9c   : > { %v709_v31 = vpop.permute.xlu0 %708  ;;  %v11017_v38 = vmax.f32 %v7365_v30, 0.0 }
  0x9d   : > { %v714_v32 = vpop.permute.xlu1 %713  ;;  %v7367_v33 = vadd.f32 %v1150_v27, %v945_v29  ;;  %v7369_v34 = vadd.f32 %v1149_v25, %v944_v28  ;;  %v871_v36 = vmul.f32 %v7331_v6, %v709_v31  ;;  %v872_v42 = vmul.f32 %v7334_v7, %v709_v31  ;;  %v689_v31 = vld [vmem:[%s7152_s22 + $0xd8] sm:$0xff] }
  0x9e   : > { %6418 = vset.pattern.permute.xlu1 %v10979_v0  ;;  %v873_v40 = vmul.f32 %v7331_v6, %v714_v32  ;;  %v874_v41 = vmul.f32 %v7334_v7, %v714_v32 }
  0x9f   : > { %1101 = vperm.xlu1 %6418, %v685_v17   ;;  %v11011_v37 = vmax.f32 %v7367_v33, 0.0  ;;  %v11012_v39 = vmax.f32 %v7369_v34, 0.0  ;;  %v946_v48 = vadd.f32 %v7337_v8, %v871_v36  ;;  %v947_v53 = vadd.f32 %v7340_v9, %v872_v42 }
  0xa0   : > { %v724_v43 = vpop.permute.xlu0 %723  ;;  %v948_v51 = vadd.f32 %v7337_v8, %v873_v40  ;;  %v949_v52 = vadd.f32 %v7340_v9, %v874_v41 }
  0xa1   : > { %v1340_v44 = vpack.c.bf16 %v11011_v37, %v11022_v35  ;;  %v1339_v46 = vpack.c.bf16 %v11012_v39, %v11017_v38  ;;  %v877_v15 = vmul.f32 %v7331_v6, %v724_v43  ;;  %v878_v16 = vmul.f32 %v7334_v7, %v724_v43  ;;  %v6515_v38 = vld [vmem:[%s10963_s6 + $0x60] ss:$8 sps:$4 sm:$0xff]  }
  0xa2   : > { %v1022_v47 = vpop.permute.xlu1 %1021 }
  0xa3   : > { %v1153_v49 = vmul.f32 %v7346_v13, %v1022_v47  ;;  %v1154_v50 = vmul.f32 %v7343_v10, %v1022_v47  ;;  %6419 = vset.pattern.permute.xlu1 %v10981_v1  ;;  %1595 = vmatprep.mubr.bf16.mxu0 %v1340_v44  ;;  %v952_v25 = vadd.f32 %v7337_v8, %v877_v15 }
  0xa4   : > { %818 = vperm.xlu1 %6419, %v686_v45   ;;  %1596 = vmatmul.mubr.bf16.vlgmr.msra.gmra.mxu0 %v1339_v46  ;;  %v953_v27 = vadd.f32 %v7340_v9, %v878_v16  ;;  %v6514_v46 = vld [vmem:[%s10963_s6 + $0x74] ss:$8 sps:$4 sm:$0xff]  }
  0xa5   : > { %v1018_v55 = vpop.permute.xlu0 %1017  ;;  %v7396_v56 = vadd.f32 %v1153_v49, %v948_v51  ;;  %v7398_v58 = vadd.f32 %v1154_v50, %v949_v52  ;;  %2184 = vmatprep.subr.bf16.mxu1 %v6514_v46 }
  0xa6   : > { %v1151_v59 = vmul.f32 %v7346_v13, %v1018_v55  ;;  %v1152_v60 = vmul.f32 %v7343_v10, %v1018_v55 }
  0xa7   : > { %v719_v61 = vpop.permute.xlu1 %718  ;;  %v11007_v11 = vmax.f32 %v7398_v58, 0.0  ;;  %v11008_v14 = vmax.f32 %v7396_v56, 0.0 }
  0xa8   : > { %v7402_v62 = vadd.f32 %v1151_v59, %v946_v48  ;;  %v7404_v3 = vadd.f32 %v1152_v60, %v947_v53  ;;  %6420 = vset.pattern.permute.xlu1 %v10979_v0  ;;  %v875_v17 = vmul.f32 %v7331_v6, %v719_v61  ;;  %v876_v18 = vmul.f32 %v7334_v7, %v719_v61 }
  0xa9   : > { %1105 = vperm.xlu1 %6420, %v686_v45   ;;  %v1034_v4 = vpop.permute.xlu0 %1033 }
  0xaa   : > { %v11010_v5 = vmax.f32 %v7404_v3, 0.0  ;;  %v11009_v12 = vmax.f32 %v7402_v62, 0.0  ;;  %v950_v28 = vadd.f32 %v7337_v8, %v875_v17  ;;  %v951_v29 = vadd.f32 %v7340_v9, %v876_v18  ;;  %v690_v17 = vld [vmem:[%s7152_s22 + $0xe0] sm:$0xff] }
  0xab   : > { %v1159_v47 = vmul.f32 %v7346_v13, %v1034_v4  ;;  %v1160_v48 = vmul.f32 %v7343_v10, %v1034_v4 }
  0xac   : > { %v1026_v19 = vpop.permute.xlu1 %1025  ;;  %v1342_v20 = vpack.c.bf16 %v11007_v11, %v11010_v5  ;;  %v1341_v21 = vpack.c.bf16 %v11008_v14, %v11009_v12 }
  0xad   : > { %v1155_v22 = vmul.f32 %v7346_v13, %v1026_v19  ;;  %v1156_v23 = vmul.f32 %v7343_v10, %v1026_v19  ;;  %1109 = vperm.xlu1 %6420, %v7290_v54  }
  0xae   : > { %1605 = vmatprep.mubr.bf16.mxu0 %v1342_v20  ;;  %v729_v24 = vpop.permute.xlu0 %728 }
  0xaf   : > { %1606 = vmatmul.mubr.bf16.gmra.mxu0 %v1341_v21  ;;  %v879_v36 = vmul.f32 %v7331_v6, %v729_v24  ;;  %v880_v40 = vmul.f32 %v7334_v7, %v729_v24  ;;  %v7433_v41 = vadd.f32 %v1155_v22, %v950_v28  ;;  %v7435_v54 = vadd.f32 %v1156_v23, %v951_v29 }
  0xb0   : > { %v1030_v32 = vpop.permute.xlu1 %1029 }
  0xb1   : > { %v1157_v42 = vmul.f32 %v7346_v13, %v1030_v32  ;;  %v1158_v43 = vmul.f32 %v7343_v10, %v1030_v32  ;;  %6421 = vset.pattern.permute.xlu1 %v10981_v1  ;;  %v954_v49 = vadd.f32 %v7337_v8, %v879_v36  ;;  %v955_v50 = vadd.f32 %v7340_v9, %v880_v40 }
  0xb2   : > { %833 = vperm.xlu1 %6421, %v689_v31   ;;  %v11000_v52 = vmax.f32 %v7435_v54, 0.0  ;;  %v10997_v55 = vmax.f32 %v7433_v41, 0.0  ;;  %v744_v16 = vpop.permute.xlu0 %743 }
  0xb3   : > { %v7440_v44 = vadd.f32 %v1157_v42, %v952_v25  ;;  %v7442_v45 = vadd.f32 %v1158_v43, %v953_v27  ;;  %v7467_v18 = vadd.f32 %v1160_v48, %v955_v50  ;;  %v7469_v19 = vadd.f32 %v1159_v47, %v954_v49 }
  0xb4   : > { %v885_v48 = vmul.f32 %v7331_v6, %v744_v16  ;;  %v886_v49 = vmul.f32 %v7334_v7, %v744_v16 }
  0xb5   : > { %v734_v51 = vpop.permute.xlu1 %733  ;;  %v10995_v53 = vmax.f32 %v7442_v45, 0.0  ;;  %v10996_v59 = vmax.f32 %v7440_v44, 0.0  ;;  %v10994_v28 = vmax.f32 %v7467_v18, 0.0  ;;  %v10993_v29 = vmax.f32 %v7469_v19, 0.0 }
  0xb6   : > { %6423 = vset.pattern.permute.xlu1 %v10979_v0  ;;  %v881_v60 = vmul.f32 %v7331_v6, %v734_v51  ;;  %v882_v61 = vmul.f32 %v7334_v7, %v734_v51 }
  0xb7   : > { %1117 = vperm.xlu1 %6423, %v689_v31   ;;  %v1344_v4 = vpack.c.bf16 %v10995_v53, %v11000_v52  ;;  %v1343_v15 = vpack.c.bf16 %v10996_v59, %v10997_v55  ;;  %v749_v31 = vpop.permute.xlu0 %748 }
  0xb8   : > { %v956_v21 = vadd.f32 %v7337_v8, %v881_v60  ;;  %v957_v22 = vadd.f32 %v7340_v9, %v882_v61  ;;  %v887_v16 = vmul.f32 %v7331_v6, %v749_v31 }
  0xb9   : > { %1615 = vmatprep.mubr.bf16.mxu0 %v1344_v4 }
  0xba   : > { %v1038_v20 = vpop.permute.xlu1 %1037  ;;  %1616 = vmatmul.mubr.bf16.gmra.mxu0 %v1343_v15 }
  0xbb   : > { %v1161_v23 = vmul.f32 %v7346_v13, %v1038_v20  ;;  %v1162_v24 = vmul.f32 %v7343_v10, %v1038_v20  ;;  %6424 = vset.pattern.permute.xlu1 %v10981_v1  ;;  %v764_v50 = vpop.permute.xlu0 %763  ;;  %v961_v20 = vadd.f32 %v7340_v9, %v886_v49 }
  0xbc   : > { %838 = vperm.xlu1 %6424, %v690_v17  }
  0xbd   : > { %v7476_v25 = vadd.f32 %v1161_v23, %v956_v21  ;;  %v7478_v27 = vadd.f32 %v1162_v24, %v957_v22  ;;  %v693_v21 = vld [vmem:[%s7152_s22 + $0xf8] sm:$0xff]  ;;  %v888_v23 = vmul.f32 %v7334_v7, %v749_v31 }
  0xbf   : > { %v739_v32 = vpop.permute.xlu1 %738  ;;  %v10991_v36 = vmax.f32 %v7478_v27, 0.0  ;;  %v10992_v40 = vmax.f32 %v7476_v25, 0.0  ;;  %v963_v31 = vadd.f32 %v7340_v9, %v888_v23 }
  0xc0   : > { %6426 = vset.pattern.permute.xlu1 %v10979_v0  ;;  %v883_v46 = vmul.f32 %v7331_v6, %v739_v32  ;;  %v884_v47 = vmul.f32 %v7334_v7, %v739_v32 }
  0xc1   : > { %1121 = vperm.xlu1 %6426, %v690_v17   ;;  %v1346_v42 = vpack.c.bf16 %v10991_v36, %v10994_v28  ;;  %v1345_v43 = vpack.c.bf16 %v10992_v40, %v10993_v29  ;;  %v960_v17 = vadd.f32 %v7337_v8, %v885_v48  ;;  %v962_v48 = vadd.f32 %v7337_v8, %v887_v16 }
  0xc2   : > { %v958_v4 = vadd.f32 %v7337_v8, %v883_v46  ;;  %v959_v15 = vadd.f32 %v7340_v9, %v884_v47 }
  0xc3   : > { %1625 = vmatprep.mubr.bf16.mxu0 %v1346_v42 }
  0xc4   : > { %v1042_v51 = vpop.permute.xlu1 %1041  ;;  %1626 = vmatmul.mubr.bf16.gmra.mxu0 %v1345_v43  ;;  %v1050_v43 = vpop.permute.xlu0 %1049 }
  0xc5   : > { %v1163_v60 = vmul.f32 %v7346_v13, %v1042_v51  ;;  %v1164_v61 = vmul.f32 %v7343_v10, %v1042_v51  ;;  %1125 = vperm.xlu1 %6426, %v7300_v57   ;;  %v1167_v49 = vmul.f32 %v7346_v13, %v1050_v43  ;;  %v1168_v51 = vmul.f32 %v7343_v10, %v1050_v43 }
  0xc7   : > { %v7507_v24 = vadd.f32 %v1163_v60, %v958_v4  ;;  %v7509_v32 = vadd.f32 %v1164_v61, %v959_v15 }
  0xc8   : > { %v1046_v22 = vpop.permute.xlu1 %1045 }
  0xc9   : > { %v1165_v57 = vmul.f32 %v7346_v13, %v1046_v22  ;;  %v1166_v42 = vmul.f32 %v7343_v10, %v1046_v22  ;;  %6427 = vset.pattern.permute.xlu1 %v10981_v1  ;;  %v10984_v61 = vmax.f32 %v7509_v32, 0.0  ;;  %v10988_v15 = vmax.f32 %v7507_v24, 0.0 }
  0xca   : > { %853 = vperm.xlu1 %6427, %v693_v21  }
  0xcb   : > { %v7514_v46 = vadd.f32 %v1165_v57, %v960_v17  ;;  %v7516_v47 = vadd.f32 %v1166_v42, %v961_v20  ;;  %v7537_v57 = vadd.f32 %v1167_v49, %v962_v48  ;;  %v7539_v42 = vadd.f32 %v1168_v51, %v963_v31 }
  0xcd   : > { %v754_v60 = vpop.permute.xlu1 %753  ;;  %v10983_v4 = vmax.f32 %v7516_v47, 0.0  ;;  %v10985_v17 = vmax.f32 %v7514_v46, 0.0  ;;  %v10990_v48 = vmax.f32 %v7537_v57, 0.0 }
  0xce   : > { %6429 = vset.pattern.permute.xlu1 %v10979_v0  ;;  %v889_v20 = vmul.f32 %v7331_v6, %v754_v60  ;;  %v890_v22 = vmul.f32 %v7334_v7, %v754_v60 }
  0xcf   : > { %1133 = vperm.xlu1 %6429, %v693_v21   ;;  %v1348_v16 = vpack.c.bf16 %v10983_v4, %v10984_v61  ;;  %v1347_v23 = vpack.c.bf16 %v10985_v17, %v10988_v15 }
  0xd0   : > { %v964_v60 = vadd.f32 %v7337_v8, %v889_v20  ;;  %v965_v21 = vadd.f32 %v7340_v9, %v890_v22  ;;  %v1066_v20 = vpop.permute.xlu0 %1065 }
  0xd1   : > { %1635 = vmatprep.mubr.bf16.mxu0 %v1348_v16  ;;  %v10987_v16 = vmax.f32 %v7539_v42, 0.0 }
  0xd2   : > { %v1054_v43 = vpop.permute.xlu1 %1053  ;;  %1636 = vmatmul.mubr.bf16.gmra.mxu0 %v1347_v23 }
  0xd3   : > { %v1169_v0 = vmul.f32 %v7346_v13, %v1054_v43  ;;  %v1170_v1 = vmul.f32 %v7343_v10, %v1054_v43  ;;  %v893_v43 = vmul.f32 %v7331_v6, %v764_v50 }
  0xd5   : > { %v7545_v4 = vadd.f32 %v1169_v0, %v964_v60  ;;  %v7547_v61 = vadd.f32 %v1170_v1, %v965_v21  ;;  %v894_v60 = vmul.f32 %v7334_v7, %v764_v50 }
  0xd7   : > { %v759_v31 = vpop.permute.xlu1 %758  ;;  %v10986_v49 = vmax.f32 %v7547_v61, 0.0  ;;  %v10989_v51 = vmax.f32 %v7545_v4, 0.0 }
  0xd8   : > { %v891_v1 = vmul.f32 %v7331_v6, %v759_v31  ;;  %v892_v23 = vmul.f32 %v7334_v7, %v759_v31  ;;  %v969_v31 = vadd.f32 %v7340_v9, %v894_v60  ;;  %v1176_v60 = vmul.f32 %v7343_v10, %v1066_v20 }
  0xd9   : > { %v1350_v22 = vpack.c.bf16 %v10986_v49, %v10987_v16  ;;  %v1349_v0 = vpack.c.bf16 %v10989_v51, %v10990_v48  ;;  %v769_v16 = vpop.permute.xlu0 %768  ;;  %v968_v48 = vadd.f32 %v7337_v8, %v893_v43  ;;  %v1175_v43 = vmul.f32 %v7346_v13, %v1066_v20 }
  0xda   : > { %v966_v15 = vadd.f32 %v7337_v8, %v891_v1  ;;  %v967_v51 = vadd.f32 %v7340_v9, %v892_v23  ;;  %v895_v36 = vmul.f32 %v7331_v6, %v769_v16  ;;  %v896_v50 = vmul.f32 %v7334_v7, %v769_v16 }
  0xdb   : > { %1645 = vmatprep.mubr.bf16.mxu0 %v1350_v22 }
  0xdc   : > { %v1058_v21 = vpop.permute.xlu1 %1057  ;;  %1646 = vmatmul.mubr.bf16.gmra.mxu0 %v1349_v0  ;;  %v970_v28 = vadd.f32 %v7337_v8, %v895_v36  ;;  %v971_v16 = vadd.f32 %v7340_v9, %v896_v50 }
  0xdd   : > { %v1171_v17 = vmul.f32 %v7346_v13, %v1058_v21  ;;  %v1172_v49 = vmul.f32 %v7343_v10, %v1058_v21  ;;  %v784_v50 = vpop.permute.xlu0 %783 }
  0xdf   : > { %v7573_v40 = vadd.f32 %v1171_v17, %v966_v15  ;;  %v7575_v0 = vadd.f32 %v1172_v49, %v967_v51 }
  0xe0   : > { %v1062_v22 = vpop.permute.xlu1 %1061 }
  0xe1   : > { %v1173_v21 = vmul.f32 %v7346_v13, %v1062_v22  ;;  %v1174_v29 = vmul.f32 %v7343_v10, %v1062_v22  ;;  %v10999_v17 = vmax.f32 %v7575_v0, 0.0  ;;  %v11004_v51 = vmax.f32 %v7573_v40, 0.0 }
  0xe2   : > { %v7601_v22 = vadd.f32 %v1176_v60, %v971_v16 }
  0xe3   : > { %v7579_v1 = vadd.f32 %v1173_v21, %v968_v48  ;;  %v7581_v23 = vadd.f32 %v1174_v29, %v969_v31  ;;  %v7603_v21 = vadd.f32 %v1175_v43, %v970_v28 }
  0xe4   : > { %v11003_v60 = vmax.f32 %v7601_v22, 0.0 }
  0xe5   : > { %v774_v15 = vpop.permute.xlu1 %773  ;;  %v10998_v49 = vmax.f32 %v7581_v23, 0.0  ;;  %v11001_v48 = vmax.f32 %v7579_v1, 0.0  ;;  %v11006_v16 = vmax.f32 %v7603_v21, 0.0 }
  0xe6   : > { %v897_v29 = vmul.f32 %v7331_v6, %v774_v15  ;;  %v898_v31 = vmul.f32 %v7334_v7, %v774_v15 }
  0xe7   : > { %v1352_v36 = vpack.c.bf16 %v10998_v49, %v10999_v17  ;;  %v1351_v20 = vpack.c.bf16 %v11001_v48, %v11004_v51 }
  0xe8   : > { %v972_v15 = vadd.f32 %v7337_v8, %v897_v29  ;;  %v973_v59 = vadd.f32 %v7340_v9, %v898_v31  ;;  %v789_v29 = vpop.permute.xlu0 %788 }
  0xe9   : > { %1655 = vmatprep.mubr.bf16.mxu0 %v1352_v36  ;;  %v904_v12 = vmul.f32 %v7334_v7, %v789_v29 }
  0xea   : > { %v1070_v53 = vpop.permute.xlu1 %1069  ;;  %1656 = vmatmul.mubr.bf16.gmra.mxu0 %v1351_v20  ;;  %v902_v20 = vmul.f32 %v7334_v7, %v784_v50 }
  0xeb   : > { %v1177_v55 = vmul.f32 %v7346_v13, %v1070_v53  ;;  %v1178_v49 = vmul.f32 %v7343_v10, %v1070_v53 }
  0xed   : > { %v7609_v17 = vadd.f32 %v1177_v55, %v972_v15  ;;  %v7611_v52 = vadd.f32 %v1178_v49, %v973_v59  ;;  %v901_v49 = vmul.f32 %v7331_v6, %v784_v50 }
  0xef   : > { %v779_v28 = vpop.permute.xlu1 %778  ;;  %v11002_v43 = vmax.f32 %v7611_v52, 0.0  ;;  %v11005_v36 = vmax.f32 %v7609_v17, 0.0 }
  0xf0   : > { %v899_v55 = vmul.f32 %v7331_v6, %v779_v28  ;;  %v900_v59 = vmul.f32 %v7334_v7, %v779_v28  ;;  %v977_v28 = vadd.f32 %v7340_v9, %v902_v20 }
  0xf1   : > { %v1354_v31 = vpack.c.bf16 %v11002_v43, %v11003_v60  ;;  %v1353_v53 = vpack.c.bf16 %v11005_v36, %v11006_v16  ;;  %v7631_v60 = vpop.permute.xlu0 %803  ;;  %v976_v36 = vadd.f32 %v7337_v8, %v901_v49 }
  0xf2   : > { %v974_v51 = vadd.f32 %v7337_v8, %v899_v55  ;;  %v975_v16 = vadd.f32 %v7340_v9, %v900_v59 }
  0xf3   : > { %1665 = vmatprep.mubr.bf16.mxu0 %v1354_v31 }
  0xf4   : > { %v1074_v15 = vpop.permute.xlu1 %1073  ;;  %1666 = vmatmul.mubr.bf16.gmra.mxu0 %v1353_v53 }
  0xf5   : > { %v1179_v48 = vmul.f32 %v7346_v13, %v1074_v15  ;;  %v1180_v43 = vmul.f32 %v7343_v10, %v1074_v15  ;;  %v903_v15 = vmul.f32 %v7331_v6, %v789_v29  ;;  %v1082_v49 = vpop.permute.xlu0 %1081 }
  0xf6   : > { %v1183_v29 = vmul.f32 %v7346_v13, %v1082_v49 }
  0xf7   : > { %v7637_v11 = vadd.f32 %v1179_v48, %v974_v51  ;;  %v7641_v14 = vadd.f32 %v1180_v43, %v975_v16  ;;  %v978_v16 = vadd.f32 %v7337_v8, %v903_v15  ;;  %v979_v43 = vadd.f32 %v7340_v9, %v904_v12  ;;  %v6512_v12 = vld [vmem:[%s10963_s6 + $0x70] ss:$8 sps:$4 sm:$0xff]  }
  0xf8   : > { %v1078_v31 = vpop.permute.xlu1 %1077 }
  0xf9   : > { %v1181_v50 = vmul.f32 %v7346_v13, %v1078_v31  ;;  %v1182_v53 = vmul.f32 %v7343_v10, %v1078_v31  ;;  %v11014_v20 = vmax.f32 %v7641_v14, 0.0  ;;  %v11016_v48 = vmax.f32 %v7637_v11, 0.0 }
  0xfb   : > { %v7645_v55 = vadd.f32 %v1181_v50, %v976_v36  ;;  %v7647_v5 = vadd.f32 %v1182_v53, %v977_v28  ;;  %v1184_v36 = vmul.f32 %v7343_v10, %v1082_v49  ;;  %v6517_v49 = vld [vmem:[%s10963_s6 + $0x64] ss:$8 sps:$4 sm:$0xff]  }
  0xfd   : > { %11332 = vst [vmem:[#allocation7_spill] sm:$0xff] %v7645_v55  ;;  %11333 = vst [vmem:[#allocation8_spill] sm:$0xff] %v7647_v5  ;;  %v794_v59 = vpop.permute.xlu1 %793  ;;  %v11013_v51 = vmax.f32 %v7647_v5, 0.0  ;;  %v11015_v31 = vmax.f32 %v7645_v55, 0.0  ;;  %v7675_v37 = vadd.f32 %v1184_v36, %v979_v43 }
  0xfe   : > { %v905_v28 = vmul.f32 %v7331_v6, %v794_v59  ;;  %v906_v50 = vmul.f32 %v7334_v7, %v794_v59  ;;  %v7673_v59 = vadd.f32 %v1183_v29, %v978_v16  ;;  %v6520_v16 = vld [vmem:[%s10963_s6 + $0x54] ss:$8 sps:$4 sm:$0xff]  }
  0xff   : > { %v1356_v53 = vpack.c.bf16 %v11013_v51, %v11014_v20  ;;  %v1355_v15 = vpack.c.bf16 %v11015_v31, %v11016_v48  ;;  %11335 = vst [vmem:[#allocation10_spill] sm:$0xff] %v7675_v37 }
 0x100   : > { %11334 = vst [vmem:[#allocation9_spill] sm:$0xff] %v7673_v59  ;;  %v980_v51 = vadd.f32 %v7337_v8, %v905_v28  ;;  %v981_v20 = vadd.f32 %v7340_v9, %v906_v50  ;;  %v11019_v28 = vmax.f32 %v7675_v37, 0.0 }
 0x101   : > { %1675 = vmatprep.mubr.bf16.mxu1 %v1356_v53 }
 0x102   : > { %v1086_v39 = vpop.permute.xlu1 %1085  ;;  %1676 = vmatmul.mubr.bf16.vlgmr.msra.gmra.mxu1 %v1355_v15  ;;  %v6518_v15 = vld [vmem:[%s10963_s6 + $0x50] ss:$8 sps:$4 sm:$0xff]  }
 0x103   : > { %v1185_v31 = vmul.f32 %v7346_v13, %v1086_v39  ;;  %v1186_v48 = vmul.f32 %v7343_v10, %v1086_v39  ;;  %2185 = vmatpush1.bf16.msra.mxu1 %v6512_v12  ;;  %v11021_v39 = vmax.f32 %v7673_v59, 0.0 }
 0x104   : > { %2186 = vmatprep.subr.bf16.mxu1 %v6517_v49  ;;  %v6521_v49 = vld [vmem:[%s10963_s6 + $0x40] ss:$8 sps:$4 sm:$0xff]  }
 0x105   : > { %v7687_v43 = vadd.f32 %v1185_v31, %v980_v51  ;;  %v7689_v29 = vadd.f32 %v1186_v48, %v981_v20  ;;  %v6523_v20 = vld [vmem:[%s10963_s6 + $0x44] ss:$8 sps:$4 sm:$0xff]  }
 0x107   : > { %11336 = vst [vmem:[#allocation11_spill] sm:$0xff] %v7687_v43  ;;  %11337 = vst [vmem:[#allocation12_spill] sm:$0xff] %v7689_v29  ;;  %v799_v36 = vpop.permute.xlu1 %798  ;;  %v11018_v50 = vmax.f32 %v7689_v29, 0.0  ;;  %v11020_v53 = vmax.f32 %v7687_v43, 0.0  ;;  %2187 = vmatpush1.bf16.msra.mxu1 %v6515_v38  ;;  %v1098_v38 = vpop.permute.xlu0 %1097 }
 0x108   : > { %2188 = vmatprep.subr.bf16.mxu1 %v6520_v16  ;;  %v907_v31 = vmul.f32 %v7331_v6, %v799_v36  ;;  %v908_v12 = vmul.f32 %v7334_v7, %v799_v36  ;;  %v909_v16 = vmul.f32 %v7331_v6, %v7631_v60 }
 0x109   : > { %v1358_v51 = vpack.c.bf16 %v11018_v50, %v11019_v28  ;;  %v1357_v48 = vpack.c.bf16 %v11020_v53, %v11021_v39  ;;  %v910_v50 = vmul.f32 %v7334_v7, %v7631_v60  ;;  %v6526_v53 = vld [vmem:[%s10963_s6 + $0x34] ss:$8 sps:$4 sm:$0xff]   ;;  %v6524_v60 = vld [vmem:[%s10963_s6 + $0x30] ss:$8 sps:$4 sm:$0xff]  }
 0x10a   : > { %v983_v39 = vadd.f32 %v7340_v9, %v908_v12 }
 0x10b   : > { %1685 = vmatprep.mubr.bf16.mxu1 %v1358_v51  ;;  %2189 = vmatpush1.bf16.msra.mxu1 %v6518_v15  ;;  %v982_v51 = vadd.f32 %v7337_v8, %v907_v31  ;;  %v809_v35 = vpop.permute.xlu0 %808 }
 0x10c   : > { %v1090_v28 = vpop.permute.xlu1 %1089  ;;  %1686 = vmatmul.mubr.bf16.gmra.mxu1 %v1357_v48  ;;  %2190 = vmatprep.subr.bf16.mxu1 %v6523_v20  ;;  %v984_v20 = vadd.f32 %v7337_v8, %v909_v16  ;;  %v985_v48 = vadd.f32 %v7340_v9, %v910_v50  ;;  %v911_v59 = vmul.f32 %v7331_v6, %v809_v35 }
 0x10d   : > { %v1187_v36 = vmul.f32 %v7346_v13, %v1090_v28  ;;  %v1188_v15 = vmul.f32 %v7343_v10, %v1090_v28  ;;  %v6529_v28 = vld [vmem:[%s10963_s6 + $0x24] ss:$8 sps:$4 sm:$0xff]   ;;  %v912_v16 = vmul.f32 %v7334_v7, %v809_v35 }
 0x10f   : > { %2191 = vmatpush1.bf16.msra.mxu1 %v6521_v49  ;;  %v7733_v43 = vadd.f32 %v1187_v36, %v982_v51  ;;  %v7735_v31 = vadd.f32 %v1188_v15, %v983_v39  ;;  %v6532_v39 = vld [vmem:[%s10963_s6 + $0x14] ss:$8 sps:$4 sm:$0xff]  }
 0x110   : > { %v1094_v29 = vpop.permute.xlu1 %1093  ;;  %2192 = vmatprep.subr.bf16.mxu1 %v6526_v53  ;;  %v6527_v53 = vld [vmem:[%s10963_s6 + $0x20] ss:$8 sps:$4 sm:$0xff]  }
 0x111   : > { %11338 = vst [vmem:[#allocation13_spill] sm:$0xff] %v7733_v43  ;;  %v1189_v12 = vmul.f32 %v7346_v13, %v1094_v29  ;;  %v1190_v49 = vmul.f32 %v7343_v10, %v1094_v29  ;;  %v11030_v29 = vmax.f32 %v7735_v31, 0.0  ;;  %v11032_v35 = vmax.f32 %v7733_v43, 0.0 }
 0x113   : > { %v7741_v37 = vadd.f32 %v1189_v12, %v984_v20  ;;  %v7743_v50 = vadd.f32 %v1190_v49, %v985_v48  ;;  %2193 = vmatpush1.bf16.msra.mxu1 %v6524_v60  ;;  %v1191_v60 = vmul.f32 %v7346_v13, %v1098_v38  ;;  %v1192_v20 = vmul.f32 %v7343_v10, %v1098_v38  ;;  %v6535_v38 = vld [vmem:[%s10963_s6 + $0x4] ss:$8 sps:$4 sm:$0xff]  }
 0x114   : > { %2194 = vmatprep.subr.bf16.mxu1 %v6529_v28  ;;  %v986_v48 = vadd.f32 %v7337_v8, %v911_v59  ;;  %v987_v28 = vadd.f32 %v7340_v9, %v912_v16  ;;  %v6530_v59 = vld [vmem:[%s10963_s6 + $0x10] ss:$8 sps:$4 sm:$0xff]  }
 0x115   : > { %11339 = vst [vmem:[#allocation14_spill] sm:$0xff] %v7741_v37  ;;  %11340 = vst [vmem:[#allocation15_spill] sm:$0xff] %v7743_v50  ;;  %v814_v36 = vpop.permute.xlu1 %813  ;;  %v11029_v15 = vmax.f32 %v7743_v50, 0.0  ;;  %v11031_v51 = vmax.f32 %v7741_v37, 0.0 }
 0x116   : > { %v913_v12 = vmul.f32 %v7331_v6, %v814_v36  ;;  %v914_v49 = vmul.f32 %v7334_v7, %v814_v36  ;;  %v7775_v36 = vadd.f32 %v1192_v20, %v987_v28 }
 0x117   : > { %v1360_v5 = vpack.c.bf16 %v11029_v15, %v11030_v29  ;;  %v1359_v55 = vpack.c.bf16 %v11031_v51, %v11032_v35  ;;  %2195 = vmatpush1.bf16.msra.mxu1 %v6527_v53  ;;  %v7777_v15 = vadd.f32 %v1191_v60, %v986_v48  ;;  %v824_v48 = vpop.permute.xlu0 %823 }
 0x118   : > { %2196 = vmatprep.subr.bf16.mxu1 %v6532_v39  ;;  %11341 = vst [vmem:[#allocation16_spill] sm:$0xff] %v7775_v36  ;;  %v988_v29 = vadd.f32 %v7337_v8, %v913_v12  ;;  %v989_v53 = vadd.f32 %v7340_v9, %v914_v49  ;;  %v6533_v39 = vld [vmem:[%s10963_s6] ss:$8 sps:$4 sm:$0xff]   ;;  %v11037_v28 = vmax.f32 %v7775_v36, 0.0 }
 0x119   : > { %1695 = vmatprep.mubr.bf16.mxu1 %v1360_v5  ;;  %11342 = vst [vmem:[#allocation17_spill] sm:$0xff] %v7777_v15  ;;  %v6538_v5 = vld [vmem:[%s10963_s6 + $0xf4] ss:$8 sps:$4 sm:$0xff]   ;;  %v11036_v49 = vmax.f32 %v7777_v15, 0.0 }
 0x11a   : > { %v1102_v16 = vpop.permute.xlu1 %1101  ;;  %1696 = vmatmul.mubr.bf16.gmra.mxu1 %v1359_v55 }
 0x11b   : > { %v1193_v51 = vmul.f32 %v7346_v13, %v1102_v16  ;;  %v1194_v35 = vmul.f32 %v7343_v10, %v1102_v16  ;;  %2197 = vmatpush1.bf16.msra.mxu1 %v6530_v59  ;;  %v917_v16 = vmul.f32 %v7331_v6, %v824_v48 }
 0x11c   : > { %2198 = vmatprep.subr.bf16.mxu1 %v6535_v38  ;;  %v6536_v38 = vld [vmem:[%s10963_s6 + $0xf0] ss:$8 sps:$4 sm:$0xff]  }
 0x11d   : > { %v7789_v55 = vadd.f32 %v1193_v51, %v988_v29  ;;  %v7791_v60 = vadd.f32 %v1194_v35, %v989_v53  ;;  %v6541_v29 = vld [vmem:[%s10963_s6 + $0xe4] ss:$8 sps:$4 sm:$0xff]  }
 0x11f   : > { %11343 = vst [vmem:[#allocation18_spill] sm:$0xff] %v7789_v55  ;;  %11344 = vst [vmem:[#allocation19_spill] sm:$0xff] %v7791_v60  ;;  %v819_v20 = vpop.permute.xlu1 %818  ;;  %v11034_v12 = vmax.f32 %v7791_v60, 0.0  ;;  %v11035_v59 = vmax.f32 %v7789_v55, 0.0  ;;  %2199 = vmatpush1.bf16.msra.mxu1 %v6533_v39  ;;  %v6539_v60 = vld [vmem:[%s10963_s6 + $0xe0] ss:$8 sps:$4 sm:$0xff]  }
 0x120   : > { %2200 = vmatprep.subr.bf16.mxu1 %v6538_v5  ;;  %v915_v53 = vmul.f32 %v7331_v6, %v819_v20  ;;  %v916_v39 = vmul.f32 %v7334_v7, %v819_v20  ;;  %v918_v5 = vmul.f32 %v7334_v7, %v824_v48  ;;  %v829_v20 = vpop.permute.xlu0 %828 }
 0x121   : > { %v1362_v35 = vpack.c.bf16 %v11034_v12, %v11037_v28  ;;  %v1361_v51 = vpack.c.bf16 %v11035_v59, %v11036_v49  ;;  %v6544_v59 = vld [vmem:[%s10963_s6 + $0xd4] ss:$8 sps:$4 sm:$0xff]  }
 0x122   : > { %v990_v48 = vadd.f32 %v7337_v8, %v915_v53  ;;  %v993_v55 = vadd.f32 %v7340_v9, %v918_v5  ;;  %v920_v5 = vmul.f32 %v7334_v7, %v829_v20 }
 0x123   : > { %1705 = vmatprep.mubr.bf16.mxu1 %v1362_v35  ;;  %2201 = vmatpush2.bf16.msra.mxu1 %v6536_v38  ;;  %v991_v38 = vadd.f32 %v7340_v9, %v916_v39  ;;  %v992_v35 = vadd.f32 %v7337_v8, %v917_v16 }
 0x124   : > { %v1106_v12 = vpop.permute.xlu1 %1105  ;;  %1706 = vmatmul.mubr.bf16.gmra.mxu1 %v1361_v51  ;;  %2202 = vmatprep.subr.bf16.mxu1 %v6541_v29  ;;  %v6542_v29 = vld [vmem:[%s10963_s6 + $0xd0] ss:$8 sps:$4 sm:$0xff]  }
 0x125   : > { %v1195_v49 = vmul.f32 %v7346_v13, %v1106_v12  ;;  %v1196_v28 = vmul.f32 %v7343_v10, %v1106_v12  ;;  %v6547_v12 = vld [vmem:[%s10963_s6 + $0xc4] ss:$8 sps:$4 sm:$0xff]  }
 0x127   : > { %2203 = vmatpush2.bf16.msra.mxu1 %v6539_v60  ;;  %v7833_v15 = vadd.f32 %v1195_v49, %v990_v48  ;;  %v7835_v53 = vadd.f32 %v1196_v28, %v991_v38  ;;  %v919_v60 = vmul.f32 %v7331_v6, %v829_v20  ;;  %v6545_v49 = vld [vmem:[%s10963_s6 + $0xc0] ss:$8 sps:$4 sm:$0xff]   ;;  %v6550_v28 = vld [vmem:[%s10963_s6 + $0xb4] ss:$8 sps:$4 sm:$0xff]  }
 0x128   : > { %v1110_v51 = vpop.permute.xlu1 %1109  ;;  %2204 = vmatprep.subr.bf16.mxu1 %v6544_v59  ;;  %v1114_v59 = vpop.permute.xlu0 %1113 }
 0x129   : > { %11345 = vst [vmem:[#allocation20_spill] sm:$0xff] %v7833_v15  ;;  %v1197_v39 = vmul.f32 %v7346_v13, %v1110_v51  ;;  %v1198_v16 = vmul.f32 %v7343_v10, %v1110_v51  ;;  %v11046_v38 = vmax.f32 %v7835_v53, 0.0  ;;  %v995_v51 = vadd.f32 %v7340_v9, %v920_v5  ;;  %v6548_v5 = vld [vmem:[%s10963_s6 + $0xb0] ss:$8 sps:$4 sm:$0xff]  }
 0x12b   : > { %v7841_v36 = vadd.f32 %v1197_v39, %v992_v35  ;;  %v7843_v50 = vadd.f32 %v1198_v16, %v993_v55  ;;  %2205 = vmatpush2.bf16.msra.mxu1 %v6542_v29  ;;  %v11048_v35 = vmax.f32 %v7833_v15, 0.0  ;;  %v994_v29 = vadd.f32 %v7337_v8, %v919_v60 }
 0x12c   : > { %2206 = vmatprep.subr.bf16.mxu1 %v6547_v12  ;;  %v1199_v39 = vmul.f32 %v7346_v13, %v1114_v59  ;;  %v1200_v12 = vmul.f32 %v7343_v10, %v1114_v59  ;;  %v6553_v59 = vld [vmem:[%s10963_s6 + $0xa4] ss:$8 sps:$4 sm:$0xff]  }
 0x12d   : > { %11346 = vst [vmem:[#allocation21_spill] sm:$0xff] %v7841_v36  ;;  %11347 = vst [vmem:[#allocation22_spill] sm:$0xff] %v7843_v50  ;;  %v834_v48 = vpop.permute.xlu1 %833  ;;  %v11045_v20 = vmax.f32 %v7843_v50, 0.0  ;;  %v11047_v55 = vmax.f32 %v7841_v36, 0.0 }
 0x12e   : > { %v921_v16 = vmul.f32 %v7331_v6, %v834_v48  ;;  %v922_v37 = vmul.f32 %v7334_v7, %v834_v48  ;;  %v7875_v48 = vadd.f32 %v1199_v39, %v994_v29  ;;  %v7877_v50 = vadd.f32 %v1200_v12, %v995_v51 }
 0x12f   : > { %v1364_v43 = vpack.c.bf16 %v11045_v20, %v11046_v38  ;;  %v1363_v60 = vpack.c.bf16 %v11047_v55, %v11048_v35  ;;  %2207 = vmatpush2.bf16.msra.mxu1 %v6545_v49 }
 0x130   : > { %2208 = vmatprep.subr.bf16.mxu1 %v6550_v28  ;;  %11348 = vst [vmem:[#allocation23_spill] sm:$0xff] %v7875_v48  ;;  %11349 = vst [vmem:[#allocation24_spill] sm:$0xff] %v7877_v50  ;;  %v996_v38 = vadd.f32 %v7337_v8, %v921_v16  ;;  %v997_v49 = vadd.f32 %v7340_v9, %v922_v37  ;;  %v6551_v28 = vld [vmem:[%s10963_s6 + $0xa0] ss:$8 sps:$4 sm:$0xff]   ;;  %v844_v37 = vpop.permute.xlu0 %843  ;;  %v11051_v12 = vmax.f32 %v7877_v50, 0.0  ;;  %v11053_v16 = vmax.f32 %v7875_v48, 0.0 }
 0x131   : > { %1715 = vmatprep.mubr.bf16.mxu1 %v1364_v43  ;;  %v6556_v43 = vld [vmem:[%s10963_s6 + $0x94] ss:$8 sps:$4 sm:$0xff]  }
 0x132   : > { %v1118_v20 = vpop.permute.xlu1 %1117  ;;  %1716 = vmatmul.mubr.bf16.gmra.mxu1 %v1363_v60 }
 0x133   : > { %v1201_v55 = vmul.f32 %v7346_v13, %v1118_v20  ;;  %v1202_v35 = vmul.f32 %v7343_v10, %v1118_v20  ;;  %2209 = vmatpush2.bf16.msra.mxu1 %v6548_v5  ;;  %v6554_v5 = vld [vmem:[%s10963_s6 + $0x90] ss:$8 sps:$4 sm:$0xff]  }
 0x134   : > { %2210 = vmatprep.subr.bf16.mxu1 %v6553_v59  ;;  %v925_v59 = vmul.f32 %v7331_v6, %v844_v37 }
 0x135   : > { %v7889_v29 = vadd.f32 %v1201_v55, %v996_v38  ;;  %v7891_v51 = vadd.f32 %v1202_v35, %v997_v49  ;;  %v6559_v38 = vld [vmem:[%s10963_s6 + $0x84] ss:$8 sps:$4 sm:$0xff]  }
 0x137   : > { %11350 = vst [vmem:[#allocation25_spill] sm:$0xff] %v7889_v29  ;;  %11351 = vst [vmem:[#allocation26_spill] sm:$0xff] %v7891_v51  ;;  %v839_v39 = vpop.permute.xlu1 %838  ;;  %v11050_v20 = vmax.f32 %v7891_v51, 0.0  ;;  %v11052_v60 = vmax.f32 %v7889_v29, 0.0  ;;  %2211 = vmatpush2.bf16.msra.mxu1 %v6551_v28  ;;  %v6557_v51 = vld [vmem:[%s10963_s6 + $0x80] ss:$8 sps:$4 sm:$0xff]  }
 0x138   : > { %2212 = vmatprep.subr.bf16.mxu1 %v6556_v43  ;;  %v923_v49 = vmul.f32 %v7331_v6, %v839_v39  ;;  %v924_v28 = vmul.f32 %v7334_v7, %v839_v39  ;;  %v926_v43 = vmul.f32 %v7334_v7, %v844_v37  ;;  %v1000_v37 = vadd.f32 %v7337_v8, %v925_v59 }
 0x139   : > { %v1366_v35 = vpack.c.bf16 %v11050_v20, %v11051_v12  ;;  %v1365_v55 = vpack.c.bf16 %v11052_v60, %v11053_v16  ;;  %v849_v16 = vpop.permute.xlu0 %848 }
 0x13a   : > { %v998_v29 = vadd.f32 %v7337_v8, %v923_v49  ;;  %v999_v39 = vadd.f32 %v7340_v9, %v924_v28  ;;  %v928_v49 = vmul.f32 %v7334_v7, %v849_v16 }
 0x13b   : > { %1725 = vmatprep.mubr.bf16.mxu1 %v1366_v35  ;;  %2213 = vmatpush2.bf16.msra.mxu1 %v6554_v5  ;;  %v1001_v5 = vadd.f32 %v7340_v9, %v926_v43 }
 0x13c   : > { %v1122_v20 = vpop.permute.xlu1 %1121  ;;  %1726 = vmatmul.mubr.bf16.gmra.mxu1 %v1365_v55  ;;  %2214 = vmatprep.subr.bf16.mxu1 %v6559_v38 }
 0x13d   : > { %v1203_v12 = vmul.f32 %v7346_v13, %v1122_v20  ;;  %v1204_v60 = vmul.f32 %v7343_v10, %v1122_v20  ;;  %v927_v20 = vmul.f32 %v7331_v6, %v849_v16  ;;  %v1130_v59 = vpop.permute.xlu0 %1129 }
 0x13e   : > { %v1207_v16 = vmul.f32 %v7346_v13, %v1130_v59 }
 0x13f   : > { %2215 = vmatpush2.bf16.msra.mxu1 %v6557_v51  ;;  %v7924_v48 = vadd.f32 %v1203_v12, %v998_v29  ;;  %v7926_v50 = vadd.f32 %v1204_v60, %v999_v39  ;;  %v1002_v39 = vadd.f32 %v7337_v8, %v927_v20 }
 0x140   : > { %v1126_v35 = vpop.permute.xlu1 %1125 }
 0x141   : > { %v1205_v38 = vmul.f32 %v7346_v13, %v1126_v35  ;;  %v1206_v55 = vmul.f32 %v7343_v10, %v1126_v35  ;;  %v11060_v51 = vmax.f32 %v7926_v50, 0.0  ;;  %v11097_v12 = vmax.f32 %v7924_v48, 0.0 }
 0x142   : > { %v1003_v35 = vadd.f32 %v7340_v9, %v928_v49  ;;  %v7954_v49 = vadd.f32 %v1207_v16, %v1002_v39 }
 0x143   : > { %v7932_v36 = vadd.f32 %v1205_v38, %v1000_v37  ;;  %v7934_v28 = vadd.f32 %v1206_v55, %v1001_v5  ;;  %v1208_v37 = vmul.f32 %v7343_v10, %v1130_v59 }
 0x145   : > { %11352 = vst [vmem:[#allocation27_spill] sm:$0xff] %v7934_v28  ;;  %v854_v43 = vpop.permute.xlu1 %853  ;;  %v11059_v29 = vmax.f32 %v7934_v28, 0.0  ;;  %v11070_v60 = vmax.f32 %v7932_v36, 0.0  ;;  %v7956_v15 = vadd.f32 %v1208_v37, %v1003_v35  ;;  %v11064_v35 = vmax.f32 %v7954_v49, 0.0 }
 0x146   : > { %v929_v5 = vmul.f32 %v7331_v6, %v854_v43  ;;  %v930_v38 = vmul.f32 %v7334_v7, %v854_v43  ;;  %v11353_v37 = vmax.f32 %v7360_v26, 0.0 }
 0x147   : > { %v1368_v55 = vpack.c.bf16 %v11059_v29, %v11060_v51  ;;  %v1367_v20 = vpack.c.bf16 %v11070_v60, %v11097_v12 }
 0x148   : > { %v1004_v6 = vadd.f32 %v7337_v8, %v929_v5  ;;  %v1005_v7 = vadd.f32 %v7340_v9, %v930_v38 }
 0x149   : > { %1735 = vmatprep.mubr.bf16.mxu1 %v1368_v55  ;;  %v11065_v55 = vmax.f32 %v7956_v15, 0.0 }
 0x14a   : > { %v1134_v59 = vpop.permute.xlu1 %1133  ;;  %1736 = vmatmul.mubr.bf16.gmra.mxu1 %v1367_v20  ;;  %v11354_v20 = vmax.f32 %v7365_v30, 0.0 }
 0x14b   : > { %v1209_v43 = vmul.f32 %v7346_v13, %v1134_v59  ;;  %v1210_v29 = vmul.f32 %v7343_v10, %v1134_v59  ;;  %v1820_v13 = vld [vmem:[%s10962_s5] sm:$0x3] }
 0x14c   : > { %v7984_v38 = vrot.slane %v1820_v13, %v7316_v2 }
 0x14d   : > { %v7962_v51 = vadd.f32 %v1209_v43, %v1004_v6  ;;  %v7964_v28 = vadd.f32 %v1210_v29, %v1005_v7  ;;  %v7989_v6 = vrot.slane %v1820_v13, %v7314_v63  ;;  %v11355_v43 = vmax.f32 %v7369_v34, 0.0 }
 0x14f   : > { %v11062_v39 = vmax.f32 %v7964_v28, 0.0  ;;  %v11063_v16 = vmax.f32 %v7962_v51, 0.0 }
 0x151   : > { %v1370_v8 = vpack.c.bf16 %v11062_v39, %v11065_v55  ;;  %v1369_v9 = vpack.c.bf16 %v11063_v16, %v11064_v35  ;;  %v11359_v35 = vmax.f32 %v7396_v56, 0.0 }
 0x153   : > { %1745 = vmatprep.mubr.bf16.mxu1 %v1370_v8 }
 0x154   : > { %1746 = vmatmul.mubr.bf16.gmra.mxu1 %v1369_v9 }
 0x164   : > { %v1597_v10 = vpop.f32.mrf.mxu0 }
 0x165   : > { %v1756_v59 = vadd.f32 %v1597_v10, %v11354_v20 }
 0x166   : > { %v1599_v29 = vpop.f32.mrf.mxu0 }
 0x167   : > { %v1757_v5 = vadd.f32 %v1599_v29, %v11353_v37  ;;  %v11356_v29 = vmax.f32 %v7367_v33, 0.0  ;;  %v8002_v30 = vadd.f32 %v7989_v6, %v1756_v59 }
 0x168   : > { %v1601_v7 = vpop.f32.mrf.mxu0 }
 0x169   : > { %v1758_v8 = vadd.f32 %v1601_v7, %v11355_v43  ;;  %v7994_v39 = vadd.f32 %v7984_v38, %v1757_v5  ;;  %v11069_v7 = vmax.f32 %v8002_v30, 0.0 }
 0x16a   : > { %v1603_v9 = vpop.f32.mrf.mxu0 }
 0x16b   : > { %v7997_v26 = vadd.f32 %v7989_v6, %v1758_v8  ;;  %v1759_v37 = vadd.f32 %v1603_v9, %v11356_v29  ;;  %v11067_v20 = vmax.f32 %v7994_v39, 0.0  ;;  %v11357_v8 = vmax.f32 %v7404_v3, 0.0 }
 0x16c   : > { %v11358_v29 = vmax.f32 %v7402_v62, 0.0 }
 0x16d   : > { %v8005_v10 = vadd.f32 %v7984_v38, %v1759_v37  ;;  %v11068_v13 = vmax.f32 %v7997_v26, 0.0 }
 0x16f   : > { %v1607_v34 = vpop.f32.mrf.mxu0  ;;  %v11066_v5 = vmax.f32 %v8005_v10, 0.0  ;;  %v1960_v9 = vpack.c.bf16 %v11068_v13, %v11069_v7 }
 0x170   : > { %v1760_v37 = vadd.f32 %v1607_v34, %v11358_v29 }
 0x171   : > { %v1609_v43 = vpop.f32.mrf.mxu0  ;;  %v1961_v59 = vpack.c.bf16 %v11066_v5, %v11067_v20  ;;  %v11360_v5 = vmax.f32 %v7398_v58, 0.0 }
 0x172   : > { %v1761_v33 = vadd.f32 %v1609_v43, %v11357_v8  ;;  %v8034_v13 = vadd.f32 %v7989_v6, %v1760_v37 }
 0x173   : > { %v1611_v16 = vpop.f32.mrf.mxu0  ;;  %2216 = vmatprep.mubr.bf16.mxu1 %v1961_v59 }
 0x174   : > { %v1762_v55 = vadd.f32 %v1611_v16, %v11359_v35  ;;  %2217 = vmatmul.mubr.bf16.vlgmr.msra.gmra.mxu1 %v1960_v9  ;;  %v8026_v43 = vadd.f32 %v7984_v38, %v1761_v33  ;;  %v11080_v33 = vmax.f32 %v8034_v13, 0.0  ;;  %v11362_v9 = vmax.f32 %v7433_v41, 0.0 }
 0x175   : > { %v1613_v3 = vpop.f32.mrf.mxu0 }
 0x176   : > { %v8029_v8 = vadd.f32 %v7989_v6, %v1762_v55  ;;  %v1763_v20 = vadd.f32 %v1613_v3, %v11360_v5  ;;  %v11073_v35 = vmax.f32 %v8026_v43, 0.0  ;;  %v11361_v5 = vmax.f32 %v7435_v54, 0.0 }
 0x177   : > { %v11363_v3 = vmax.f32 %v7440_v44, 0.0 }
 0x178   : > { %v8037_v62 = vadd.f32 %v7984_v38, %v1763_v20  ;;  %v11072_v56 = vmax.f32 %v8029_v8, 0.0 }
 0x17a   : > { %v11071_v16 = vmax.f32 %v8037_v62, 0.0  ;;  %v1617_v34 = vpop.f32.mrf.mxu0  ;;  %v1962_v20 = vpack.c.bf16 %v11072_v56, %v11080_v33 }
 0x17b   : > { %v1764_v29 = vadd.f32 %v1617_v34, %v11362_v9  ;;  %v11365_v9 = vmax.f32 %v7467_v18, 0.0 }
 0x17c   : > { %v1619_v55 = vpop.f32.mrf.mxu0  ;;  %v1963_v58 = vpack.c.bf16 %v11071_v16, %v11073_v35 }
 0x17d   : > { %v1765_v59 = vadd.f32 %v1619_v55, %v11361_v5  ;;  %v11364_v55 = vmax.f32 %v7442_v45, 0.0  ;;  %v8066_v56 = vadd.f32 %v7989_v6, %v1764_v29  ;;  %v11366_v29 = vmax.f32 %v7469_v19, 0.0 }
 0x17e   : > { %v1621_v37 = vpop.f32.mrf.mxu0  ;;  %2226 = vmatprep.mubr.bf16.mxu1 %v1963_v58  ;;  %v11368_v19 = vmax.f32 %v7478_v27, 0.0 }
 0x17f   : > { %v1766_v7 = vadd.f32 %v1621_v37, %v11363_v3  ;;  %2227 = vmatmul.mubr.bf16.gmra.mxu1 %v1962_v20  ;;  %v8058_v16 = vadd.f32 %v7984_v38, %v1765_v59  ;;  %v11077_v20 = vmax.f32 %v8066_v56, 0.0 }
 0x180   : > { %v1623_v60 = vpop.f32.mrf.mxu0 }
 0x181   : > { %v8061_v54 = vadd.f32 %v7989_v6, %v1766_v7  ;;  %v1767_v5 = vadd.f32 %v1623_v60, %v11364_v55  ;;  %v11076_v58 = vmax.f32 %v8058_v16, 0.0 }
 0x183   : > { %v8069_v41 = vadd.f32 %v7984_v38, %v1767_v5  ;;  %v11075_v44 = vmax.f32 %v8061_v54, 0.0  ;;  %v11367_v5 = vmax.f32 %v7476_v25, 0.0 }
 0x184   : > { %v1627_v34 = vpop.f32.mrf.mxu0 }
 0x185   : > { %v11074_v59 = vmax.f32 %v8069_v41, 0.0  ;;  %v1768_v37 = vadd.f32 %v1627_v34, %v11366_v29  ;;  %v1964_v55 = vpack.c.bf16 %v11075_v44, %v11077_v20 }
 0x186   : > { %v1629_v7 = vpop.f32.mrf.mxu0 }
 0x187   : > { %v1769_v45 = vadd.f32 %v1629_v7, %v11365_v9  ;;  %v1965_v60 = vpack.c.bf16 %v11074_v59, %v11076_v58  ;;  %v8098_v29 = vadd.f32 %v7989_v6, %v1768_v37  ;;  %v11371_v58 = vmax.f32 %v7514_v46, 0.0 }
 0x188   : > { %v1631_v3 = vpop.f32.mrf.mxu0 }
 0x189   : > { %v1770_v35 = vadd.f32 %v1631_v3, %v11367_v5  ;;  %2236 = vmatprep.mubr.bf16.mxu1 %v1965_v60  ;;  %v8090_v7 = vadd.f32 %v7984_v38, %v1769_v45  ;;  %v11088_v45 = vmax.f32 %v8098_v29, 0.0  ;;  %v11369_v5 = vmax.f32 %v7509_v32, 0.0 }
 0x18a   : > { %v1633_v18 = vpop.f32.mrf.mxu0  ;;  %2237 = vmatmul.mubr.bf16.gmra.mxu1 %v1964_v55 }
 0x18b   : > { %v8093_v9 = vadd.f32 %v7989_v6, %v1770_v35  ;;  %v1771_v34 = vadd.f32 %v1633_v18, %v11368_v19  ;;  %v11079_v60 = vmax.f32 %v8090_v7, 0.0  ;;  %v11370_v19 = vmax.f32 %v7507_v24, 0.0 }
 0x18d   : > { %v8101_v59 = vadd.f32 %v7984_v38, %v1771_v34  ;;  %v11081_v25 = vmax.f32 %v8093_v9, 0.0 }
 0x18f   : > { %v11078_v3 = vmax.f32 %v8101_v59, 0.0  ;;  %v1966_v37 = vpack.c.bf16 %v11081_v25, %v11088_v45 }
 0x191   : > { %v1967_v27 = vpack.c.bf16 %v11078_v3, %v11079_v60 }
 0x192   : > { %v1637_v35 = vpop.f32.mrf.mxu0 }
 0x193   : > { %2246 = vmatprep.mubr.bf16.mxu1 %v1967_v27  ;;  %v1772_v34 = vadd.f32 %v1637_v35, %v11370_v19  ;;  %v11372_v27 = vmax.f32 %v7516_v47, 0.0 }
 0x194   : > { %v1639_v55 = vpop.f32.mrf.mxu0  ;;  %2247 = vmatmul.mubr.bf16.gmra.mxu1 %v1966_v37 }
 0x195   : > { %v1773_v18 = vadd.f32 %v1639_v55, %v11369_v5  ;;  %v8130_v32 = vadd.f32 %v7989_v6, %v1772_v34  ;;  %v11373_v5 = vmax.f32 %v7539_v42, 0.0 }
 0x196   : > { %v1641_v44 = vpop.f32.mrf.mxu0 }
 0x197   : > { %v1774_v20 = vadd.f32 %v1641_v44, %v11371_v58  ;;  %v8122_v60 = vadd.f32 %v7984_v38, %v1773_v18  ;;  %v11085_v55 = vmax.f32 %v8130_v32, 0.0  ;;  %v11374_v18 = vmax.f32 %v7537_v57, 0.0 }
 0x198   : > { %v1643_v3 = vpop.f32.mrf.mxu0  ;;  %v11376_v57 = vmax.f32 %v7547_v61, 0.0 }
 0x199   : > { %v8125_v33 = vadd.f32 %v7989_v6, %v1774_v20  ;;  %v1775_v37 = vadd.f32 %v1643_v3, %v11372_v27  ;;  %v11084_v44 = vmax.f32 %v8122_v60, 0.0 }
 0x19b   : > { %v8133_v24 = vadd.f32 %v7984_v38, %v1775_v37  ;;  %v11083_v35 = vmax.f32 %v8125_v33, 0.0  ;;  %v11375_v37 = vmax.f32 %v7545_v4, 0.0 }
 0x19c   : > { %v1647_v46 = vpop.f32.mrf.mxu0 }
 0x19d   : > { %v11082_v58 = vmax.f32 %v8133_v24, 0.0  ;;  %v1776_v19 = vadd.f32 %v1647_v46, %v11374_v18  ;;  %v1968_v27 = vpack.c.bf16 %v11083_v35, %v11085_v55 }
 0x19e   : > { %v1649_v20 = vpop.f32.mrf.mxu0 }
 0x19f   : > { %v1777_v47 = vadd.f32 %v1649_v20, %v11373_v5  ;;  %v1969_v3 = vpack.c.bf16 %v11082_v58, %v11084_v44  ;;  %v8162_v18 = vadd.f32 %v7989_v6, %v1776_v19  ;;  %v11379_v44 = vmax.f32 %v7579_v1, 0.0 }
 0x1a0   : > { %v1651_v34 = vpop.f32.mrf.mxu0 }
 0x1a1   : > { %v1778_v25 = vadd.f32 %v1651_v34, %v11375_v37  ;;  %2256 = vmatprep.mubr.bf16.mxu1 %v1969_v3  ;;  %v8154_v20 = vadd.f32 %v7984_v38, %v1777_v47  ;;  %v11094_v47 = vmax.f32 %v8162_v18, 0.0  ;;  %v11377_v37 = vmax.f32 %v7575_v0, 0.0 }
 0x1a2   : > { %v1653_v42 = vpop.f32.mrf.mxu0  ;;  %2257 = vmatmul.mubr.bf16.gmra.mxu1 %v1968_v27 }
 0x1a3   : > { %v8157_v5 = vadd.f32 %v7989_v6, %v1778_v25  ;;  %v1779_v46 = vadd.f32 %v1653_v42, %v11376_v57  ;;  %v11087_v3 = vmax.f32 %v8154_v20, 0.0  ;;  %v11378_v57 = vmax.f32 %v7573_v40, 0.0 }
 0x1a5   : > { %v8165_v58 = vadd.f32 %v7984_v38, %v1779_v46  ;;  %v11089_v4 = vmax.f32 %v8157_v5, 0.0 }
 0x1a7   : > { %v11086_v34 = vmax.f32 %v8165_v58, 0.0  ;;  %v1970_v19 = vpack.c.bf16 %v11089_v4, %v11094_v47 }
 0x1a9   : > { %v1971_v61 = vpack.c.bf16 %v11086_v34, %v11087_v3 }
 0x1aa   : > { %v1657_v25 = vpop.f32.mrf.mxu0 }
 0x1ab   : > { %2266 = vmatprep.mubr.bf16.mxu1 %v1971_v61  ;;  %v1780_v46 = vadd.f32 %v1657_v25, %v11378_v57  ;;  %v11380_v61 = vmax.f32 %v7581_v23, 0.0 }
 0x1ac   : > { %v1659_v27 = vpop.f32.mrf.mxu0  ;;  %2267 = vmatmul.mubr.bf16.gmra.mxu1 %v1970_v19 }
 0x1ad   : > { %v1781_v42 = vadd.f32 %v1659_v27, %v11377_v37  ;;  %v8194_v0 = vadd.f32 %v7989_v6, %v1780_v46  ;;  %v11381_v37 = vmax.f32 %v7601_v22, 0.0 }
 0x1ae   : > { %v1661_v35 = vpop.f32.mrf.mxu0 }
 0x1af   : > { %v1782_v55 = vadd.f32 %v1661_v35, %v11379_v44  ;;  %v8186_v3 = vadd.f32 %v7984_v38, %v1781_v42  ;;  %v11093_v27 = vmax.f32 %v8194_v0, 0.0  ;;  %v11382_v42 = vmax.f32 %v7603_v21, 0.0 }
 0x1b0   : > { %v1663_v34 = vpop.f32.mrf.mxu0  ;;  %v11386_v21 = vmax.f32 %v7611_v52, 0.0 }
 0x1b1   : > { %v8189_v45 = vadd.f32 %v7989_v6, %v1782_v55  ;;  %v1783_v19 = vadd.f32 %v1663_v34, %v11380_v61  ;;  %v11092_v35 = vmax.f32 %v8186_v3, 0.0 }
 0x1b3   : > { %v8197_v40 = vadd.f32 %v7984_v38, %v1783_v19  ;;  %v11091_v25 = vmax.f32 %v8189_v45, 0.0  ;;  %v11383_v19 = vmax.f32 %v7609_v17, 0.0 }
 0x1b4   : > { %v1667_v1 = vpop.f32.mrf.mxu0 }
 0x1b5   : > { %v11090_v44 = vmax.f32 %v8197_v40, 0.0  ;;  %v1784_v57 = vadd.f32 %v1667_v1, %v11382_v42  ;;  %v1972_v61 = vpack.c.bf16 %v11091_v25, %v11093_v27 }
 0x1b6   : > { %v1669_v55 = vpop.f32.mrf.mxu0 }
 0x1b7   : > { %v1785_v23 = vadd.f32 %v1669_v55, %v11381_v37  ;;  %v1973_v34 = vpack.c.bf16 %v11090_v44, %v11092_v35  ;;  %v8226_v42 = vadd.f32 %v7989_v6, %v1784_v57  ;;  %v11390_v35 = vld [vmem:[#allocation7_spill] sm:$0xff] }
 0x1b8   : > { %v1671_v46 = vpop.f32.mrf.mxu0  ;;  %v11391_v27 = vmax.f32 %v11390_v35, 0.0 }
 0x1b9   : > { %v1786_v4 = vadd.f32 %v1671_v46, %v11383_v19  ;;  %2276 = vmatprep.mubr.bf16.mxu1 %v1973_v34  ;;  %v8218_v55 = vadd.f32 %v7984_v38, %v1785_v23  ;;  %v11099_v23 = vmax.f32 %v8226_v42, 0.0  ;;  %v11388_v19 = vmax.f32 %v7641_v14, 0.0 }
 0x1ba   : > { %v1673_v22 = vpop.f32.mrf.mxu0  ;;  %2277 = vmatmul.mubr.bf16.gmra.mxu1 %v1972_v61 }
 0x1bb   : > { %11384 = vst [vmem:[#allocation28_spill] sm:$0xff] %v8218_v55  ;;  %v8221_v37 = vadd.f32 %v7989_v6, %v1786_v4  ;;  %v1787_v1 = vadd.f32 %v1673_v22, %v11386_v21  ;;  %v11096_v34 = vmax.f32 %v8218_v55, 0.0  ;;  %v11389_v21 = vmax.f32 %v7637_v11, 0.0 }
 0x1bd   : > { %11385 = vst [vmem:[#allocation29_spill] sm:$0xff] %v8221_v37  ;;  %v8229_v44 = vadd.f32 %v7984_v38, %v1787_v1  ;;  %v11098_v17 = vmax.f32 %v8221_v37, 0.0 }
 0x1bf   : > { %11387 = vst [vmem:[#allocation30_spill] sm:$0xff] %v8229_v44  ;;  %v11095_v46 = vmax.f32 %v8229_v44, 0.0  ;;  %v1974_v57 = vpack.c.bf16 %v11098_v17, %v11099_v23  ;;  %v11401_v44 = vld [vmem:[#allocation11_spill] sm:$0xff] }
 0x1c0   : > { %v11402_v37 = vmax.f32 %v11401_v44, 0.0 }
 0x1c1   : > { %v1975_v52 = vpack.c.bf16 %v11095_v46, %v11096_v34 }
 0x1c2   : > { %v1677_v4 = vpop.f32.mrf.mxu1 }
 0x1c3   : > { %2286 = vmatprep.mubr.bf16.mxu1 %v1975_v52  ;;  %v1788_v1 = vadd.f32 %v1677_v4, %v11389_v21  ;;  %v11394_v52 = vld [vmem:[#allocation8_spill] sm:$0xff] }
 0x1c4   : > { %v1679_v61 = vpop.f32.mrf.mxu1  ;;  %2287 = vmatmul.mubr.bf16.gmra.mxu1 %v1974_v57  ;;  %v11395_v17 = vmax.f32 %v11394_v52, 0.0 }
 0x1c5   : > { %v1789_v22 = vadd.f32 %v1679_v61, %v11388_v19  ;;  %v8258_v14 = vadd.f32 %v7989_v6, %v1788_v1  ;;  %v11397_v19 = vld [vmem:[#allocation10_spill] sm:$0xff] }
 0x1c6   : > { %v1681_v25 = vpop.f32.mrf.mxu1 }
 0x1c7   : > { %v1790_v47 = vadd.f32 %v1681_v25, %v11391_v27  ;;  %v8250_v34 = vadd.f32 %v7984_v38, %v1789_v22  ;;  %v11106_v61 = vmax.f32 %v8258_v14, 0.0  ;;  %v11398_v22 = vmax.f32 %v11397_v19, 0.0 }
 0x1c8   : > { %v1683_v46 = vpop.f32.mrf.mxu1 }
 0x1c9   : > { %11392 = vst [vmem:[#allocation7_spill] sm:$0xff] %v8250_v34  ;;  %v8253_v12 = vadd.f32 %v7989_v6, %v1790_v47  ;;  %v1791_v57 = vadd.f32 %v1683_v46, %v11395_v17  ;;  %v11105_v25 = vmax.f32 %v8250_v34, 0.0  ;;  %v11399_v46 = vld [vmem:[#allocation9_spill] sm:$0xff] }
 0x1ca   : > { %v11400_v1 = vmax.f32 %v11399_v46, 0.0  ;;  %v11405_v46 = vld [vmem:[#allocation12_spill] sm:$0xff] }
 0x1cb   : > { %11393 = vst [vmem:[#allocation31_spill] sm:$0xff] %v8253_v12  ;;  %v8261_v11 = vadd.f32 %v7984_v38, %v1791_v57  ;;  %v11104_v4 = vmax.f32 %v8253_v12, 0.0 }
 0x1cc   : > { %v1687_v35 = vpop.f32.mrf.mxu1 }
 0x1cd   : > { %11396 = vst [vmem:[#allocation8_spill] sm:$0xff] %v8261_v11  ;;  %v11103_v27 = vmax.f32 %v8261_v11, 0.0  ;;  %v1792_v52 = vadd.f32 %v1687_v35, %v11400_v1  ;;  %v1976_v23 = vpack.c.bf16 %v11104_v4, %v11106_v61  ;;  %v11406_v35 = vmax.f32 %v11405_v46, 0.0 }
 0x1ce   : > { %v1689_v47 = vpop.f32.mrf.mxu1 }
 0x1cf   : > { %v1793_v21 = vadd.f32 %v1689_v47, %v11398_v22  ;;  %v1977_v17 = vpack.c.bf16 %v11103_v27, %v11105_v25  ;;  %v8290_v27 = vadd.f32 %v7989_v6, %v1792_v52 }
 0x1d0   : > { %v1691_v57 = vpop.f32.mrf.mxu1 }
 0x1d1   : > { %v1794_v55 = vadd.f32 %v1691_v57, %v11402_v37  ;;  %2296 = vmatprep.mubr.bf16.mxu1 %v1977_v17  ;;  %v8282_v47 = vadd.f32 %v7984_v38, %v1793_v21  ;;  %11407 = vst [vmem:[#allocation11_spill] sm:$0xff] %v8290_v27  ;;  %v11114_v21 = vmax.f32 %v8290_v27, 0.0  ;;  %v11423_v27 = vld [vmem:[#allocation18_spill] sm:$0xff] }
 0x1d2   : > { %v1693_v19 = vpop.f32.mrf.mxu1  ;;  %2297 = vmatmul.mubr.bf16.gmra.mxu1 %v1976_v23  ;;  %v11424_v12 = vmax.f32 %v11423_v27, 0.0 }
 0x1d3   : > { %11403 = vst [vmem:[#allocation10_spill] sm:$0xff] %v8282_v47  ;;  %v8285_v22 = vadd.f32 %v7989_v6, %v1794_v55  ;;  %v1795_v1 = vadd.f32 %v1693_v19, %v11406_v35  ;;  %v11111_v37 = vmax.f32 %v8282_v47, 0.0  ;;  %v11409_v19 = vmax.f32 %v7735_v31, 0.0  ;;  %v11410_v35 = vld [vmem:[#allocation13_spill] sm:$0xff]  ;;  %v11412_v47 = vld [vmem:[#allocation14_spill] sm:$0xff] }
 0x1d4   : > { %v11413_v11 = vmax.f32 %v11412_v47, 0.0 }
 0x1d5   : > { %11404 = vst [vmem:[#allocation9_spill] sm:$0xff] %v8285_v22  ;;  %v8293_v4 = vadd.f32 %v7984_v38, %v1795_v1  ;;  %v11113_v44 = vmax.f32 %v8285_v22, 0.0  ;;  %v11411_v1 = vmax.f32 %v11410_v35, 0.0 }
 0x1d7   : > { %11408 = vst [vmem:[#allocation12_spill] sm:$0xff] %v8293_v4  ;;  %v11110_v23 = vmax.f32 %v8293_v4, 0.0  ;;  %v1978_v52 = vpack.c.bf16 %v11113_v44, %v11114_v21 }
 0x1d9   : > { %v1979_v55 = vpack.c.bf16 %v11110_v23, %v11111_v37 }
 0x1da   : > { %v1697_v17 = vpop.f32.mrf.mxu1 }
 0x1db   : > { %2306 = vmatprep.mubr.bf16.mxu1 %v1979_v55  ;;  %v1796_v25 = vadd.f32 %v1697_v17, %v11411_v1  ;;  %v11416_v55 = vld [vmem:[#allocation15_spill] sm:$0xff] }
 0x1dc   : > { %v1699_v57 = vpop.f32.mrf.mxu1  ;;  %2307 = vmatmul.mubr.bf16.gmra.mxu1 %v1978_v52  ;;  %v11417_v44 = vmax.f32 %v11416_v55, 0.0 }
 0x1dd   : > { %v1797_v46 = vadd.f32 %v1699_v57, %v11409_v19  ;;  %v8322_v31 = vadd.f32 %v7989_v6, %v1796_v25 }
 0x1de   : > { %v1701_v61 = vpop.f32.mrf.mxu1 }
 0x1df   : > { %v1798_v4 = vadd.f32 %v1701_v61, %v11413_v11  ;;  %v8314_v37 = vadd.f32 %v7984_v38, %v1797_v46  ;;  %v11121_v19 = vmax.f32 %v8322_v31, 0.0  ;;  %v11419_v46 = vld [vmem:[#allocation16_spill] sm:$0xff] }
 0x1e0   : > { %v1703_v23 = vpop.f32.mrf.mxu1  ;;  %v11420_v35 = vmax.f32 %v11419_v46, 0.0 }
 0x1e1   : > { %11414 = vst [vmem:[#allocation13_spill] sm:$0xff] %v8314_v37  ;;  %v8317_v22 = vadd.f32 %v7989_v6, %v1798_v4  ;;  %v1799_v52 = vadd.f32 %v1703_v23, %v11417_v44  ;;  %v11120_v11 = vmax.f32 %v8314_v37, 0.0  ;;  %v11421_v44 = vld [vmem:[#allocation17_spill] sm:$0xff] }
 0x1e2   : > { %v11422_v23 = vmax.f32 %v11421_v44, 0.0  ;;  %v11427_v44 = vld [vmem:[#allocation19_spill] sm:$0xff] }
 0x1e3   : > { %11415 = vst [vmem:[#allocation14_spill] sm:$0xff] %v8317_v22  ;;  %v8325_v57 = vadd.f32 %v7984_v38, %v1799_v52  ;;  %v11119_v17 = vmax.f32 %v8317_v22, 0.0 }
 0x1e4   : > { %v1707_v47 = vpop.f32.mrf.mxu1 }
 0x1e5   : > { %11418 = vst [vmem:[#allocation15_spill] sm:$0xff] %v8325_v57  ;;  %v11118_v61 = vmax.f32 %v8325_v57, 0.0  ;;  %v1800_v55 = vadd.f32 %v1707_v47, %v11422_v23  ;;  %v1980_v21 = vpack.c.bf16 %v11119_v17, %v11121_v19  ;;  %v11428_v47 = vmax.f32 %v11427_v44, 0.0 }
 0x1e6   : > { %v1709_v4 = vpop.f32.mrf.mxu1 }
 0x1e7   : > { %v1801_v1 = vadd.f32 %v1709_v4, %v11420_v35  ;;  %v1981_v25 = vpack.c.bf16 %v11118_v61, %v11120_v11  ;;  %v8354_v61 = vadd.f32 %v7989_v6, %v1800_v55 }
 0x1e8   : > { %v1711_v52 = vpop.f32.mrf.mxu1 }
 0x1e9   : > { %v1802_v34 = vadd.f32 %v1711_v52, %v11424_v12  ;;  %2316 = vmatprep.mubr.bf16.mxu1 %v1981_v25  ;;  %v8346_v4 = vadd.f32 %v7984_v38, %v1801_v1  ;;  %11429 = vst [vmem:[#allocation18_spill] sm:$0xff] %v8354_v61  ;;  %v11129_v1 = vmax.f32 %v8354_v61, 0.0  ;;  %v11442_v61 = vld [vmem:[#allocation25_spill] sm:$0xff] }
 0x1ea   : > { %v1713_v46 = vpop.f32.mrf.mxu1  ;;  %2317 = vmatmul.mubr.bf16.gmra.mxu1 %v1980_v21  ;;  %v11443_v22 = vmax.f32 %v11442_v61, 0.0 }
 0x1eb   : > { %11425 = vst [vmem:[#allocation16_spill] sm:$0xff] %v8346_v4  ;;  %v8349_v35 = vadd.f32 %v7989_v6, %v1802_v34  ;;  %v1803_v23 = vadd.f32 %v1713_v46, %v11428_v47  ;;  %v11126_v27 = vmax.f32 %v8346_v4, 0.0  ;;  %v11431_v46 = vmax.f32 %v7835_v53, 0.0  ;;  %v11432_v47 = vld [vmem:[#allocation20_spill] sm:$0xff]  ;;  %v11434_v4 = vld [vmem:[#allocation21_spill] sm:$0xff] }
 0x1ec   : > { %v11435_v57 = vmax.f32 %v11434_v4, 0.0 }
 0x1ed   : > { %11426 = vst [vmem:[#allocation17_spill] sm:$0xff] %v8349_v35  ;;  %v8357_v17 = vadd.f32 %v7984_v38, %v1803_v23  ;;  %v11128_v12 = vmax.f32 %v8349_v35, 0.0  ;;  %v11433_v23 = vmax.f32 %v11432_v47, 0.0 }
 0x1ef   : > { %11430 = vst [vmem:[#allocation19_spill] sm:$0xff] %v8357_v17  ;;  %v11125_v21 = vmax.f32 %v8357_v17, 0.0  ;;  %v1982_v55 = vpack.c.bf16 %v11128_v12, %v11129_v1 }
 0x1f1   : > { %v1983_v34 = vpack.c.bf16 %v11125_v21, %v11126_v27 }
 0x1f2   : > { %v1717_v25 = vpop.f32.mrf.mxu1 }
 0x1f3   : > { %2326 = vmatprep.mubr.bf16.mxu1 %v1983_v34  ;;  %v1804_v11 = vadd.f32 %v1717_v25, %v11433_v23  ;;  %v11436_v34 = vld [vmem:[#allocation22_spill] sm:$0xff] }
 0x1f4   : > { %v1719_v52 = vpop.f32.mrf.mxu1  ;;  %2327 = vmatmul.mubr.bf16.gmra.mxu1 %v1982_v55  ;;  %v11437_v12 = vmax.f32 %v11436_v34, 0.0 }
 0x1f5   : > { %v1805_v44 = vadd.f32 %v1719_v52, %v11431_v46  ;;  %v8386_v53 = vadd.f32 %v7989_v6, %v1804_v11 }
 0x1f6   : > { %v1721_v19 = vpop.f32.mrf.mxu1 }
 0x1f7   : > { %v1806_v17 = vadd.f32 %v1721_v19, %v11435_v57  ;;  %v8378_v27 = vadd.f32 %v7984_v38, %v1805_v44  ;;  %v11136_v46 = vmax.f32 %v8386_v53, 0.0  ;;  %v11438_v44 = vld [vmem:[#allocation24_spill] sm:$0xff] }
 0x1f8   : > { %v1723_v21 = vpop.f32.mrf.mxu1  ;;  %v11439_v47 = vmax.f32 %v11438_v44, 0.0 }
 0x1f9   : > { %v8381_v35 = vadd.f32 %v7989_v6, %v1806_v17  ;;  %v1807_v55 = vadd.f32 %v1723_v21, %v11437_v12  ;;  %v11135_v57 = vmax.f32 %v8378_v27, 0.0  ;;  %v11440_v12 = vld [vmem:[#allocation23_spill] sm:$0xff] }
 0x1fa   : > { %v11441_v21 = vmax.f32 %v11440_v12, 0.0  ;;  %v11445_v12 = vld [vmem:[#allocation26_spill] sm:$0xff] }
 0x1fb   : > { %v8389_v52 = vadd.f32 %v7984_v38, %v1807_v55  ;;  %v11134_v25 = vmax.f32 %v8381_v35, 0.0 }
 0x1fc   : > { %v1727_v4 = vpop.f32.mrf.mxu1 }
 0x1fd   : > { %v11133_v19 = vmax.f32 %v8389_v52, 0.0  ;;  %v1808_v34 = vadd.f32 %v1727_v4, %v11441_v21  ;;  %v1984_v1 = vpack.c.bf16 %v11134_v25, %v11136_v46  ;;  %v11446_v4 = vmax.f32 %v11445_v12, 0.0 }
 0x1fe   : > { %v1729_v17 = vpop.f32.mrf.mxu1  ;;  %v11450_v46 = vmax.f32 %v7932_v36, 0.0 }
 0x1ff   : > { %v1809_v23 = vadd.f32 %v1729_v17, %v11439_v47  ;;  %v1985_v11 = vpack.c.bf16 %v11133_v19, %v11135_v57  ;;  %v8418_v19 = vadd.f32 %v7989_v6, %v1808_v34 }
 0x200   : > { %v1731_v55 = vpop.f32.mrf.mxu1 }
 0x201   : > { %v1810_v37 = vadd.f32 %v1731_v55, %v11443_v22  ;;  %2336 = vmatprep.mubr.bf16.mxu1 %v1985_v11  ;;  %v8410_v17 = vadd.f32 %v7984_v38, %v1809_v23  ;;  %v11142_v23 = vmax.f32 %v8418_v19, 0.0 }
 0x202   : > { %v1733_v44 = vpop.f32.mrf.mxu1  ;;  %2337 = vmatmul.mubr.bf16.gmra.mxu1 %v1984_v1 }
 0x203   : > { %v8413_v47 = vadd.f32 %v7989_v6, %v1810_v37  ;;  %v1811_v21 = vadd.f32 %v1733_v44, %v11446_v4  ;;  %v11139_v61 = vmax.f32 %v8410_v17, 0.0  ;;  %v11448_v44 = vmax.f32 %v7926_v50, 0.0 }
 0x204   : > { %v11449_v4 = vmax.f32 %v7924_v48, 0.0 }
 0x205   : > { %11444 = vst [vmem:[#allocation20_spill] sm:$0xff] %v8413_v47  ;;  %v8421_v25 = vadd.f32 %v7984_v38, %v1811_v21  ;;  %v11141_v22 = vmax.f32 %v8413_v47, 0.0 }
 0x207   : > { %11447 = vst [vmem:[#allocation21_spill] sm:$0xff] %v8421_v25  ;;  %v11138_v1 = vmax.f32 %v8421_v25, 0.0  ;;  %v1986_v34 = vpack.c.bf16 %v11141_v22, %v11142_v23 }
 0x209   : > { %v1987_v37 = vpack.c.bf16 %v11138_v1, %v11139_v61 }
 0x20a   : > { %v1737_v11 = vpop.f32.mrf.mxu1 }
 0x20b   : > { %2346 = vmatprep.mubr.bf16.mxu1 %v1987_v37  ;;  %v1812_v21 = vadd.f32 %v1737_v11, %v11449_v4  ;;  %v11451_v37 = vld [vmem:[#allocation27_spill] sm:$0xff] }
 0x20c   : > { %v1739_v55 = vpop.f32.mrf.mxu1  ;;  %2347 = vmatmul.mubr.bf16.gmra.mxu1 %v1986_v34  ;;  %v11452_v22 = vmax.f32 %v11451_v37, 0.0 }
 0x20d   : > { %v1813_v12 = vadd.f32 %v1739_v55, %v11448_v44  ;;  %v8450_v50 = vadd.f32 %v7989_v6, %v1812_v21  ;;  %v11453_v44 = vmax.f32 %v7956_v15, 0.0 }
 0x20e   : > { %v1741_v57 = vpop.f32.mrf.mxu1 }
 0x20f   : > { %v1814_v25 = vadd.f32 %v1741_v57, %v11450_v46  ;;  %v8442_v61 = vadd.f32 %v7984_v38, %v1813_v12  ;;  %v11150_v55 = vmax.f32 %v8450_v50, 0.0 }
 0x210   : > { %v1743_v1 = vpop.f32.mrf.mxu1 }
 0x211   : > { %v8445_v47 = vadd.f32 %v7989_v6, %v1814_v25  ;;  %v1815_v34 = vadd.f32 %v1743_v1, %v11452_v22  ;;  %v11149_v57 = vmax.f32 %v8442_v61, 0.0  ;;  %v11454_v1 = vmax.f32 %v7954_v49, 0.0 }
 0x212   : > { %v11457_v49 = vmax.f32 %v7964_v28, 0.0 }
 0x213   : > { %v8453_v48 = vadd.f32 %v7984_v38, %v1815_v34  ;;  %v11148_v11 = vmax.f32 %v8445_v47, 0.0  ;;  %v11455_v34 = vmax.f32 %v7962_v51, 0.0 }
 0x214   : > { %v1747_v36 = vpop.f32.mrf.mxu1 }
 0x215   : > { %v11143_v46 = vmax.f32 %v8453_v48, 0.0  ;;  %v1816_v4 = vadd.f32 %v1747_v36, %v11454_v1  ;;  %v1988_v37 = vpack.c.bf16 %v11148_v11, %v11150_v55  ;;  %v11461_v11 = vmax.f32 %v7997_v26, 0.0 }
 0x216   : > { %v1749_v25 = vpop.f32.mrf.mxu1  ;;  %v11462_v55 = vmax.f32 %v8005_v10, 0.0 }
 0x217   : > { %v1817_v12 = vadd.f32 %v1749_v25, %v11453_v44  ;;  %v1989_v22 = vpack.c.bf16 %v11143_v46, %v11149_v57  ;;  %v8482_v1 = vadd.f32 %v7989_v6, %v1816_v4 }
 0x218   : > { %v1751_v21 = vpop.f32.mrf.mxu1 }
 0x219   : > { %v1818_v23 = vadd.f32 %v1751_v21, %v11455_v34  ;;  %2356 = vmatprep.mubr.bf16.mxu1 %v1989_v22  ;;  %v8474_v25 = vadd.f32 %v7984_v38, %v1817_v12  ;;  %v11147_v12 = vmax.f32 %v8482_v1, 0.0 }
 0x21a   : > { %v1753_v15 = vpop.f32.mrf.mxu1  ;;  %2357 = vmatmul.mubr.bf16.gmra.mxu1 %v1988_v37  ;;  %v11459_v37 = vmax.f32 %v8002_v30, 0.0 }
 0x21b   : > { %v8477_v44 = vadd.f32 %v7989_v6, %v1818_v23  ;;  %v1819_v36 = vadd.f32 %v1753_v15, %v11457_v49  ;;  %v11146_v22 = vmax.f32 %v8474_v25, 0.0  ;;  %v6212_v49 = vld [vmem:[%s10965_s8 + $0x1] ss:$2 sm:$0x3] }
 0x21c   : > { %v8520_v30 = vrot.slane %v6212_v49, %v7314_v63 }
 0x21d   : > { %11456 = vst [vmem:[#allocation22_spill] sm:$0xff] %v8477_v44  ;;  %v8485_v46 = vadd.f32 %v7984_v38, %v1819_v36  ;;  %v11145_v51 = vmax.f32 %v8477_v44, 0.0  ;;  %v2441_v38 = vld [vmem:[%s10964_s7] sm:$0x3] }
 0x21e   : > { %v8503_v23 = vrot.slane %v2441_v38, %v7314_v63  ;;  %v8508_v15 = vrot.slane %v2441_v38, %v7316_v2  ;;  %v2581_v36 = vld [vmem:[%s10965_s8] ss:$2 sm:$0x3]  ;;  %v8523_v38 = vrot.slane %v6212_v49, %v7316_v2 }
 0x21f   : > { %11458 = vst [vmem:[#allocation24_spill] sm:$0xff] %v8485_v46  ;;  %v11144_v21 = vmax.f32 %v8485_v46, 0.0  ;;  %v1990_v6 = vpack.c.bf16 %v11145_v51, %v11147_v12 }
 0x221   : > { %v1991_v28 = vpack.c.bf16 %v11144_v21, %v11146_v22  ;;  %v11460_v21 = vmax.f32 %v7994_v39, 0.0 }
 0x223   : > { %2366 = vmatprep.mubr.bf16.mxu1 %v1991_v28 }
 0x224   : > { %2367 = vmatmul.mubr.bf16.gmra.mxu1 %v1990_v6 }
 0x234   : > { %v2218_v4 = vpop.f32.mrf.mxu1 }
 0x235   : > { %v2377_v34 = vadd.f32 %v2218_v4, %v11459_v37  ;;  %v8526_v4 = vrot.slane %v2581_v36, %v7314_v63 }
 0x236   : > { %v2220_v28 = vpop.f32.mrf.mxu1 }
 0x237   : > { %v2453_v6 = vadd.f32 %v8503_v23, %v2377_v34  ;;  %v2378_v51 = vadd.f32 %v2220_v28, %v11460_v21  ;;  %v8532_v34 = vrot.slane %v2581_v36, %v7316_v2 }
 0x238   : > { %v2222_v22 = vpop.f32.mrf.mxu1 }
 0x239   : > { %v2517_v37 = vmax.f32 %v2453_v6, 0.0  ;;  %v2454_v12 = vadd.f32 %v8508_v15, %v2378_v51  ;;  %v2379_v57 = vadd.f32 %v2222_v22, %v11461_v11 }
 0x23a   : > { %v2224_v39 = vpop.f32.mrf.mxu1 }
 0x23b   : > { %v2518_v21 = vmax.f32 %v2454_v12, 0.0  ;;  %v2455_v28 = vadd.f32 %v8503_v23, %v2379_v57  ;;  %v2380_v49 = vadd.f32 %v2224_v39, %v11462_v55  ;;  %v2837_v46 = vmul.f32 %v8520_v30, %v2517_v37 }
 0x23c   : > { %v2593_v63 = vmul.f32 %v8526_v4, %v2517_v37  ;;  %v11463_v12 = vmax.f32 %v8034_v13, 0.0  ;;  %v11464_v37 = vmax.f32 %v8026_v43, 0.0 }
 0x23d   : > { %v2519_v6 = vmax.f32 %v2455_v28, 0.0  ;;  %v2456_v51 = vadd.f32 %v8508_v15, %v2380_v49  ;;  %v2838_v26 = vmul.f32 %v8523_v38, %v2518_v21  ;;  %v2594_v11 = vmul.f32 %v8532_v34, %v2518_v21 }
 0x23f   : > { %v2228_v22 = vpop.f32.mrf.mxu1  ;;  %v2520_v36 = vmax.f32 %v2456_v51, 0.0  ;;  %v2901_v57 = vadd.f32 %v2838_v26, %v2837_v46  ;;  %v2657_v44 = vadd.f32 %v2594_v11, %v2593_v63  ;;  %v2839_v55 = vmul.f32 %v8520_v30, %v2519_v6 }
 0x240   : > { %v2381_v2 = vadd.f32 %v2228_v22, %v11463_v12  ;;  %v2595_v51 = vmul.f32 %v8526_v4, %v2519_v6  ;;  %v11465_v46 = vmax.f32 %v8029_v8, 0.0 }
 0x241   : > { %v2230_v10 = vpop.f32.mrf.mxu1  ;;  %2902 = vadd.xlane.f32.xlu0 %v2901_v57  ;;  %2658 = vadd.xlane.f32.xlu1 %v2657_v44  ;;  %v2840_v49 = vmul.f32 %v8523_v38, %v2520_v36  ;;  %v2596_v13 = vmul.f32 %v8532_v34, %v2520_v36  ;;  %v11466_v57 = vmax.f32 %v8037_v62, 0.0 }
 0x242   : > { %v2457_v39 = vadd.f32 %v8503_v23, %v2381_v2  ;;  %v2382_v28 = vadd.f32 %v2230_v10, %v11464_v37 }
 0x243   : > { %v2232_v21 = vpop.f32.mrf.mxu1  ;;  %v2904_v11 = vadd.f32 %v2840_v49, %v2839_v55  ;;  %v2660_v2 = vadd.f32 %v2596_v13, %v2595_v51 }
 0x244   : > { %v2521_v22 = vmax.f32 %v2457_v39, 0.0  ;;  %v2458_v63 = vadd.f32 %v8508_v15, %v2382_v28  ;;  %v2383_v26 = vadd.f32 %v2232_v21, %v11465_v46  ;;  %v11467_v21 = vmax.f32 %v8066_v56, 0.0 }
 0x245   : > { %v2234_v12 = vpop.f32.mrf.mxu1  ;;  %2905 = vadd.xlane.f32.xlu1 %v2904_v11  ;;  %2661 = vadd.xlane.f32.xlu0 %v2660_v2  ;;  %v11468_v11 = vmax.f32 %v8058_v16, 0.0 }
 0x246   : > { %v2522_v44 = vmax.f32 %v2458_v63, 0.0  ;;  %v2459_v43 = vadd.f32 %v8503_v23, %v2383_v26  ;;  %v2384_v10 = vadd.f32 %v2234_v12, %v11466_v57  ;;  %v2597_v39 = vmul.f32 %v8526_v4, %v2521_v22 }
 0x247   : > { %v2841_v62 = vmul.f32 %v8520_v30, %v2521_v22 }
 0x248   : > { %v2523_v6 = vmax.f32 %v2459_v43, 0.0  ;;  %v2460_v36 = vadd.f32 %v8508_v15, %v2384_v10  ;;  %v2598_v37 = vmul.f32 %v8532_v34, %v2522_v44  ;;  %v2842_v49 = vmul.f32 %v8523_v38, %v2522_v44 }
 0x24a   : > { %v2524_v8 = vmax.f32 %v2460_v36, 0.0  ;;  %v2238_v28 = vpop.f32.mrf.mxu1  ;;  %v2663_v55 = vadd.f32 %v2598_v37, %v2597_v39  ;;  %v2599_v63 = vmul.f32 %v8526_v4, %v2523_v6  ;;  %v2907_v43 = vadd.f32 %v2842_v49, %v2841_v62 }
 0x24b   : > { %v2385_v51 = vadd.f32 %v2238_v28, %v11467_v21  ;;  %v11469_v36 = vmax.f32 %v8061_v54, 0.0  ;;  %v2843_v37 = vmul.f32 %v8520_v30, %v2523_v6  ;;  %v11471_v6 = vmax.f32 %v8098_v29, 0.0 }
 0x24c   : > { %2664 = vadd.xlane.f32.xlu0 %v2663_v55  ;;  %v2240_v13 = vpop.f32.mrf.mxu1  ;;  %v2600_v46 = vmul.f32 %v8532_v34, %v2524_v8  ;;  %v2844_v44 = vmul.f32 %v8523_v38, %v2524_v8  ;;  %v11470_v55 = vmax.f32 %v8069_v41, 0.0 }
 0x24d   : > { %v2461_v26 = vadd.f32 %v8503_v23, %v2385_v51  ;;  %v2386_v2 = vadd.f32 %v2240_v13, %v11468_v11 }
 0x24e   : > { %v2242_v12 = vpop.f32.mrf.mxu1  ;;  %v2666_v57 = vadd.f32 %v2600_v46, %v2599_v63  ;;  %v2910_v21 = vadd.f32 %v2844_v44, %v2843_v37 }
 0x24f   : > { %v2525_v56 = vmax.f32 %v2461_v26, 0.0  ;;  %v2462_v10 = vadd.f32 %v8508_v15, %v2386_v2  ;;  %v2387_v22 = vadd.f32 %v2242_v12, %v11469_v36 }
 0x250   : > { %2908 = vadd.xlane.f32.xlu0 %v2907_v43  ;;  %2667 = vadd.xlane.f32.xlu1 %v2666_v57  ;;  %v2244_v39 = vpop.f32.mrf.mxu1  ;;  %v11472_v43 = vmax.f32 %v8090_v7, 0.0 }
 0x251   : > { %v2526_v28 = vmax.f32 %v2462_v10, 0.0  ;;  %v2463_v16 = vadd.f32 %v8503_v23, %v2387_v22  ;;  %v2388_v49 = vadd.f32 %v2244_v39, %v11470_v55  ;;  %v2601_v13 = vmul.f32 %v8526_v4, %v2525_v56 }
 0x252   : > { %v2845_v41 = vmul.f32 %v8520_v30, %v2525_v56 }
 0x253   : > { %v2527_v51 = vmax.f32 %v2463_v16, 0.0  ;;  %v2464_v8 = vadd.f32 %v8508_v15, %v2388_v49  ;;  %v2602_v54 = vmul.f32 %v8532_v34, %v2526_v28  ;;  %v2846_v63 = vmul.f32 %v8523_v38, %v2526_v28 }
 0x254   : > { %2911 = vadd.xlane.f32.xlu1 %v2910_v21  ;;  %v2248_v62 = vpop.f32.mrf.mxu1  ;;  %v11473_v28 = vmax.f32 %v8093_v9, 0.0 }
 0x255   : > { %v2528_v46 = vmax.f32 %v2464_v8, 0.0  ;;  %v2389_v26 = vadd.f32 %v2248_v62, %v11471_v6  ;;  %v2669_v11 = vadd.f32 %v2602_v54, %v2601_v13  ;;  %v2603_v44 = vmul.f32 %v8526_v4, %v2527_v51 }
 0x256   : > { %v2250_v2 = vpop.f32.mrf.mxu1  ;;  %v2913_v22 = vadd.f32 %v2846_v63, %v2845_v41  ;;  %v2847_v7 = vmul.f32 %v8520_v30, %v2527_v51  ;;  %v11474_v8 = vmax.f32 %v8101_v59, 0.0 }
 0x257   : > { %v2465_v12 = vadd.f32 %v8503_v23, %v2389_v26  ;;  %v2390_v57 = vadd.f32 %v2250_v2, %v11472_v43  ;;  %2670 = vadd.xlane.f32.xlu0 %v2669_v11  ;;  %v2604_v10 = vmul.f32 %v8532_v34, %v2528_v46  ;;  %v2848_v39 = vmul.f32 %v8523_v38, %v2528_v46 }
 0x258   : > { %v2252_v36 = vpop.f32.mrf.mxu1 }
 0x259   : > { %v2529_v29 = vmax.f32 %v2465_v12, 0.0  ;;  %v2466_v37 = vadd.f32 %v8508_v15, %v2390_v57  ;;  %v2391_v56 = vadd.f32 %v2252_v36, %v11473_v28  ;;  %v2672_v16 = vadd.f32 %v2604_v10, %v2603_v44 }
 0x25a   : > { %v2254_v55 = vpop.f32.mrf.mxu1  ;;  %v2916_v54 = vadd.f32 %v2848_v39, %v2847_v7  ;;  %v11475_v12 = vmax.f32 %v8130_v32, 0.0  ;;  %v11476_v39 = vmax.f32 %v8122_v60, 0.0  ;;  %v11477_v32 = vmax.f32 %v8125_v33, 0.0 }
 0x25b   : > { %v2530_v49 = vmax.f32 %v2466_v37, 0.0  ;;  %v2467_v21 = vadd.f32 %v8503_v23, %v2391_v56  ;;  %v2392_v13 = vadd.f32 %v2254_v55, %v11474_v8  ;;  %2914 = vadd.xlane.f32.xlu0 %v2913_v22  ;;  %2673 = vadd.xlane.f32.xlu1 %v2672_v16  ;;  %v2605_v46 = vmul.f32 %v8526_v4, %v2529_v29 }
 0x25c   : > { %v2849_v11 = vmul.f32 %v8520_v30, %v2529_v29 }
 0x25d   : > { %v2531_v62 = vmax.f32 %v2467_v21, 0.0  ;;  %v2468_v63 = vadd.f32 %v8508_v15, %v2392_v13  ;;  %v2606_v9 = vmul.f32 %v8532_v34, %v2530_v49  ;;  %v2850_v51 = vmul.f32 %v8523_v38, %v2530_v49 }
 0x25e   : > { %v11478_v13 = vmax.f32 %v8133_v24, 0.0 }
 0x25f   : > { %v2532_v6 = vmax.f32 %v2468_v63, 0.0  ;;  %2917 = vadd.xlane.f32.xlu1 %v2916_v54  ;;  %v2675_v26 = vadd.f32 %v2606_v9, %v2605_v46  ;;  %v2607_v59 = vmul.f32 %v8526_v4, %v2531_v62  ;;  %v2919_v57 = vadd.f32 %v2850_v51, %v2849_v11 }
 0x260   : > { %v2851_v29 = vmul.f32 %v8520_v30, %v2531_v62 }
 0x261   : > { %2676 = vadd.xlane.f32.xlu0 %v2675_v26  ;;  %v2608_v2 = vmul.f32 %v8532_v34, %v2532_v6  ;;  %v2852_v10 = vmul.f32 %v8523_v38, %v2532_v6  ;;  %v11479_v26 = vmax.f32 %v8162_v18, 0.0 }
 0x262   : > { %v2258_v41 = vpop.f32.mrf.mxu1 }
 0x263   : > { %v2393_v43 = vadd.f32 %v2258_v41, %v11475_v12  ;;  %v2678_v44 = vadd.f32 %v2608_v2, %v2607_v59  ;;  %v2922_v7 = vadd.f32 %v2852_v10, %v2851_v29  ;;  %v11480_v41 = vmax.f32 %v8154_v20, 0.0 }
 0x264   : > { %v2260_v36 = vpop.f32.mrf.mxu1 }
 0x265   : > { %v2469_v22 = vadd.f32 %v8503_v23, %v2393_v43  ;;  %v2394_v37 = vadd.f32 %v2260_v36, %v11476_v39  ;;  %2920 = vadd.xlane.f32.xlu0 %v2919_v57  ;;  %2679 = vadd.xlane.f32.xlu1 %v2678_v44  ;;  %v11481_v39 = vmax.f32 %v8157_v5, 0.0 }
 0x266   : > { %v2262_v28 = vpop.f32.mrf.mxu1 }
 0x267   : > { %v2533_v56 = vmax.f32 %v2469_v22, 0.0  ;;  %v2470_v16 = vadd.f32 %v8508_v15, %v2394_v37  ;;  %v2395_v55 = vadd.f32 %v2262_v28, %v11477_v32  ;;  %v11482_v32 = vmax.f32 %v8165_v58, 0.0 }
 0x268   : > { %v2264_v49 = vpop.f32.mrf.mxu1 }
 0x269   : > { %v2534_v21 = vmax.f32 %v2470_v16, 0.0  ;;  %v2471_v8 = vadd.f32 %v8503_v23, %v2395_v55  ;;  %v2396_v60 = vadd.f32 %v2264_v49, %v11478_v13  ;;  %2923 = vadd.xlane.f32.xlu1 %v2922_v7  ;;  %v2609_v62 = vmul.f32 %v8526_v4, %v2533_v56 }
 0x26a   : > { %v2853_v24 = vmul.f32 %v8520_v30, %v2533_v56 }
 0x26b   : > { %v2535_v54 = vmax.f32 %v2471_v8, 0.0  ;;  %v2472_v63 = vadd.f32 %v8508_v15, %v2396_v60  ;;  %v2610_v46 = vmul.f32 %v8532_v34, %v2534_v21  ;;  %v2854_v33 = vmul.f32 %v8523_v38, %v2534_v21 }
 0x26c   : > { %v2268_v9 = vpop.f32.mrf.mxu1 }
 0x26d   : > { %v2536_v6 = vmax.f32 %v2472_v63, 0.0  ;;  %v2397_v51 = vadd.f32 %v2268_v9, %v11479_v26  ;;  %v2681_v11 = vadd.f32 %v2610_v46, %v2609_v62  ;;  %v2611_v43 = vmul.f32 %v8526_v4, %v2535_v54 }
 0x26e   : > { %v2270_v59 = vpop.f32.mrf.mxu1  ;;  %v2925_v10 = vadd.f32 %v2854_v33, %v2853_v24  ;;  %v2855_v20 = vmul.f32 %v8520_v30, %v2535_v54  ;;  %v11483_v33 = vmax.f32 %v8194_v0, 0.0 }
 0x26f   : > { %v2473_v2 = vadd.f32 %v8503_v23, %v2397_v51  ;;  %v2398_v12 = vadd.f32 %v2270_v59, %v11480_v41  ;;  %2682 = vadd.xlane.f32.xlu0 %v2681_v11  ;;  %v2612_v57 = vmul.f32 %v8532_v34, %v2536_v6  ;;  %v2856_v36 = vmul.f32 %v8523_v38, %v2536_v6 }
 0x270   : > { %v2272_v44 = vpop.f32.mrf.mxu1 }
 0x271   : > { %v2537_v18 = vmax.f32 %v2473_v2, 0.0  ;;  %v2474_v22 = vadd.f32 %v8508_v15, %v2398_v12  ;;  %v2399_v37 = vadd.f32 %v2272_v44, %v11481_v39  ;;  %v2684_v29 = vadd.f32 %v2612_v57, %v2611_v43 }
 0x272   : > { %v2274_v28 = vpop.f32.mrf.mxu1  ;;  %v2928_v7 = vadd.f32 %v2856_v36, %v2855_v20  ;;  %v11484_v2 = vmax.f32 %v8186_v3, 0.0  ;;  %v11485_v57 = vmax.f32 %v8189_v45, 0.0  ;;  %v11486_v39 = vmax.f32 %v8197_v40, 0.0 }
 0x273   : > { %v2538_v56 = vmax.f32 %v2474_v22, 0.0  ;;  %v2475_v16 = vadd.f32 %v8503_v23, %v2399_v37  ;;  %v2400_v55 = vadd.f32 %v2274_v28, %v11482_v32  ;;  %2926 = vadd.xlane.f32.xlu0 %v2925_v10  ;;  %2685 = vadd.xlane.f32.xlu1 %v2684_v29  ;;  %v2613_v8 = vmul.f32 %v8526_v4, %v2537_v18 }
 0x274   : > { %v2857_v62 = vmul.f32 %v8520_v30, %v2537_v18 }
 0x275   : > { %v2539_v49 = vmax.f32 %v2475_v16, 0.0  ;;  %v2476_v21 = vadd.f32 %v8508_v15, %v2400_v55  ;;  %v2614_v5 = vmul.f32 %v8532_v34, %v2538_v56  ;;  %v2858_v54 = vmul.f32 %v8523_v38, %v2538_v56 }
 0x276   : > { %v11487_v16 = vmax.f32 %v8226_v42, 0.0 }
 0x277   : > { %v2540_v13 = vmax.f32 %v2476_v21, 0.0  ;;  %2929 = vadd.xlane.f32.xlu1 %v2928_v7  ;;  %v2687_v60 = vadd.f32 %v2614_v5, %v2613_v8  ;;  %v2615_v63 = vmul.f32 %v8526_v4, %v2539_v49  ;;  %v2931_v26 = vadd.f32 %v2858_v54, %v2857_v62  ;;  %v11488_v5 = vld [vmem:[#allocation28_spill] sm:$0xff] }
 0x278   : > { %v2859_v59 = vmul.f32 %v8520_v30, %v2539_v49 }
 0x279   : > { %v2616_v58 = vmul.f32 %v8532_v34, %v2540_v13  ;;  %2688 = vadd.xlane.f32.xlu0 %v2687_v60  ;;  %v2860_v9 = vmul.f32 %v8523_v38, %v2540_v13  ;;  %v11489_v13 = vmax.f32 %v11488_v5, 0.0 }
 0x27a   : > { %v2278_v46 = vpop.f32.mrf.mxu1 }
 0x27b   : > { %v2401_v6 = vadd.f32 %v2278_v46, %v11483_v33  ;;  %v2690_v51 = vadd.f32 %v2616_v58, %v2615_v63  ;;  %v2934_v0 = vadd.f32 %v2860_v9, %v2859_v59  ;;  %v11490_v46 = vld [vmem:[#allocation29_spill] sm:$0xff] }
 0x27c   : > { %v2280_v11 = vpop.f32.mrf.mxu1  ;;  %v11491_v9 = vmax.f32 %v11490_v46, 0.0  ;;  %v11499_v46 = vld [vmem:[#allocation8_spill] sm:$0xff] }
 0x27d   : > { %v2477_v24 = vadd.f32 %v8503_v23, %v2401_v6  ;;  %v2402_v41 = vadd.f32 %v2280_v11, %v11484_v2  ;;  %2932 = vadd.xlane.f32.xlu0 %v2931_v26  ;;  %2691 = vadd.xlane.f32.xlu1 %v2690_v51  ;;  %v11492_v2 = vld [vmem:[#allocation30_spill] sm:$0xff] }
 0x27e   : > { %v2282_v12 = vpop.f32.mrf.mxu1 }
 0x27f   : > { %v2478_v43 = vadd.f32 %v8508_v15, %v2402_v41  ;;  %v2403_v44 = vadd.f32 %v2282_v12, %v11485_v57  ;;  %v2541_v10 = vmax.f32 %v2477_v24, 0.0  ;;  %v11493_v41 = vmax.f32 %v11492_v2, 0.0  ;;  %v11501_v2 = vld [vmem:[#allocation11_spill] sm:$0xff] }
 0x280   : > { %v2284_v36 = vpop.f32.mrf.mxu1 }
 0x281   : > { %v2542_v18 = vmax.f32 %v2478_v43, 0.0  ;;  %v2479_v22 = vadd.f32 %v8503_v23, %v2403_v44  ;;  %v2404_v37 = vadd.f32 %v2284_v36, %v11486_v39  ;;  %2935 = vadd.xlane.f32.xlu1 %v2934_v0  ;;  %v2617_v56 = vmul.f32 %v8526_v4, %v2541_v10 }
 0x282   : > { %v2861_v42 = vmul.f32 %v8520_v30, %v2541_v10 }
 0x283   : > { %v2543_v3 = vmax.f32 %v2479_v22, 0.0  ;;  %v2480_v29 = vadd.f32 %v8508_v15, %v2404_v37  ;;  %v2618_v28 = vmul.f32 %v8532_v34, %v2542_v18  ;;  %v2862_v49 = vmul.f32 %v8523_v38, %v2542_v18 }
 0x284   : > { %v2288_v20 = vpop.f32.mrf.mxu1 }
 0x285   : > { %v2544_v45 = vmax.f32 %v2480_v29, 0.0  ;;  %v2405_v32 = vadd.f32 %v2288_v20, %v11487_v16  ;;  %v2693_v7 = vadd.f32 %v2618_v28, %v2617_v56  ;;  %v2619_v40 = vmul.f32 %v8526_v4, %v2543_v3 }
 0x286   : > { %v2290_v55 = vpop.f32.mrf.mxu1  ;;  %v2863_v26 = vmul.f32 %v8520_v30, %v2543_v3  ;;  %v2937_v11 = vadd.f32 %v2862_v49, %v2861_v42  ;;  %v11494_v20 = vmax.f32 %v8258_v14, 0.0  ;;  %v11495_v49 = vld [vmem:[#allocation7_spill] sm:$0xff] }
 0x287   : > { %v2620_v21 = vmul.f32 %v8532_v34, %v2544_v45  ;;  %v2481_v8 = vadd.f32 %v8503_v23, %v2405_v32  ;;  %v2406_v60 = vadd.f32 %v2290_v55, %v11489_v13  ;;  %v2864_v54 = vmul.f32 %v8523_v38, %v2544_v45  ;;  %2694 = vadd.xlane.f32.xlu0 %v2693_v7  ;;  %v11497_v13 = vld [vmem:[#allocation31_spill] sm:$0xff] }
 0x288   : > { %v2292_v63 = vpop.f32.mrf.mxu1 }
 0x289   : > { %v2545_v58 = vmax.f32 %v2481_v8, 0.0  ;;  %v2482_v62 = vadd.f32 %v8508_v15, %v2406_v60  ;;  %v2407_v33 = vadd.f32 %v2292_v63, %v11491_v9  ;;  %v2696_v6 = vadd.f32 %v2620_v21, %v2619_v40 }
 0x28a   : > { %v2294_v51 = vpop.f32.mrf.mxu1  ;;  %v2940_v43 = vadd.f32 %v2864_v54, %v2863_v26  ;;  %v11496_v40 = vmax.f32 %v11495_v49, 0.0  ;;  %v11498_v60 = vmax.f32 %v11497_v13, 0.0  ;;  %v11500_v9 = vmax.f32 %v11499_v46, 0.0 }
 0x28b   : > { %v2546_v59 = vmax.f32 %v2482_v62, 0.0  ;;  %v2483_v24 = vadd.f32 %v8503_v23, %v2407_v33  ;;  %v2408_v12 = vadd.f32 %v2294_v51, %v11493_v41  ;;  %2697 = vadd.xlane.f32.xlu1 %v2696_v6  ;;  %2938 = vadd.xlane.f32.xlu0 %v2937_v11  ;;  %v2621_v0 = vmul.f32 %v8526_v4, %v2545_v58 }
 0x28c   : > { %v2865_v3 = vmul.f32 %v8520_v30, %v2545_v58  ;;  %v11502_v41 = vmax.f32 %v11501_v2, 0.0 }
 0x28d   : > { %v2547_v57 = vmax.f32 %v2483_v24, 0.0  ;;  %v2484_v44 = vadd.f32 %v8508_v15, %v2408_v12  ;;  %v2622_v10 = vmul.f32 %v8532_v34, %v2546_v59  ;;  %v2866_v22 = vmul.f32 %v8523_v38, %v2546_v59 }
 0x28f   : > { %v2548_v36 = vmax.f32 %v2484_v44, 0.0  ;;  %2941 = vadd.xlane.f32.xlu1 %v2940_v43  ;;  %v2699_v18 = vadd.f32 %v2622_v10, %v2621_v0  ;;  %v2623_v39 = vmul.f32 %v8526_v4, %v2547_v57  ;;  %v2943_v45 = vadd.f32 %v2866_v22, %v2865_v3 }
 0x290   : > { %v2867_v55 = vmul.f32 %v8520_v30, %v2547_v57 }
 0x291   : > { %v2624_v37 = vmul.f32 %v8532_v34, %v2548_v36  ;;  %2700 = vadd.xlane.f32.xlu0 %v2699_v18  ;;  %v2868_v28 = vmul.f32 %v8523_v38, %v2548_v36  ;;  %v11503_v18 = vld [vmem:[#allocation10_spill] sm:$0xff] }
 0x292   : > { %v2298_v29 = vpop.f32.mrf.mxu1  ;;  %v11504_v22 = vmax.f32 %v11503_v18, 0.0  ;;  %v11512_v18 = vld [vmem:[#allocation14_spill] sm:$0xff] }
 0x293   : > { %v2409_v56 = vadd.f32 %v2298_v29, %v11494_v20  ;;  %v2702_v16 = vadd.f32 %v2624_v37, %v2623_v39  ;;  %v2946_v14 = vadd.f32 %v2868_v28, %v2867_v55 }
 0x294   : > { %v2300_v32 = vpop.f32.mrf.mxu1 }
 0x295   : > { %v2485_v7 = vadd.f32 %v8503_v23, %v2409_v56  ;;  %v2410_v21 = vadd.f32 %v2300_v32, %v11496_v40  ;;  %2944 = vadd.xlane.f32.xlu0 %v2943_v45  ;;  %2703 = vadd.xlane.f32.xlu1 %v2702_v16  ;;  %v11505_v56 = vld [vmem:[#allocation9_spill] sm:$0xff] }
 0x296   : > { %v2302_v8 = vpop.f32.mrf.mxu1  ;;  %v11506_v45 = vmax.f32 %v11505_v56, 0.0 }
 0x297   : > { %v2486_v5 = vadd.f32 %v8508_v15, %v2410_v21  ;;  %v2411_v54 = vadd.f32 %v2302_v8, %v11498_v60  ;;  %v2549_v63 = vmax.f32 %v2485_v7, 0.0  ;;  %v11507_v8 = vld [vmem:[#allocation12_spill] sm:$0xff] }
 0x298   : > { %v2304_v42 = vpop.f32.mrf.mxu1 }
 0x299   : > { %v2550_v58 = vmax.f32 %v2486_v5, 0.0  ;;  %v2487_v62 = vadd.f32 %v8503_v23, %v2411_v54  ;;  %v2412_v33 = vadd.f32 %v2304_v42, %v11500_v9  ;;  %2947 = vadd.xlane.f32.xlu1 %v2946_v14  ;;  %v2625_v59 = vmul.f32 %v8526_v4, %v2549_v63 }
 0x29a   : > { %v2869_v29 = vmul.f32 %v8520_v30, %v2549_v63  ;;  %v11508_v5 = vmax.f32 %v11507_v8, 0.0 }
 0x29b   : > { %v2551_v6 = vmax.f32 %v2487_v62, 0.0  ;;  %v2488_v26 = vadd.f32 %v8508_v15, %v2412_v33  ;;  %v2626_v51 = vmul.f32 %v8532_v34, %v2550_v58  ;;  %v2870_v44 = vmul.f32 %v8523_v38, %v2550_v58 }
 0x29c   : > { %v2308_v11 = vpop.f32.mrf.mxu1 }
 0x29d   : > { %v2552_v24 = vmax.f32 %v2488_v26, 0.0  ;;  %v2413_v12 = vadd.f32 %v2308_v11, %v11502_v41  ;;  %v2705_v57 = vadd.f32 %v2626_v51, %v2625_v59  ;;  %v2627_v0 = vmul.f32 %v8526_v4, %v2551_v6 }
 0x29e   : > { %v2310_v43 = vpop.f32.mrf.mxu1  ;;  %v2871_v55 = vmul.f32 %v8520_v30, %v2551_v6  ;;  %v2949_v49 = vadd.f32 %v2870_v44, %v2869_v29  ;;  %v11509_v11 = vmax.f32 %v8322_v31, 0.0 }
 0x29f   : > { %v2628_v10 = vmul.f32 %v8532_v34, %v2552_v24  ;;  %v2489_v36 = vadd.f32 %v8503_v23, %v2413_v12  ;;  %v2414_v39 = vadd.f32 %v2310_v43, %v11504_v22  ;;  %v2872_v37 = vmul.f32 %v8523_v38, %v2552_v24  ;;  %2706 = vadd.xlane.f32.xlu0 %v2705_v57  ;;  %v11510_v57 = vld [vmem:[#allocation13_spill] sm:$0xff] }
 0x2a0   : > { %v2312_v3 = vpop.f32.mrf.mxu1  ;;  %v11511_v44 = vmax.f32 %v11510_v57, 0.0  ;;  %v11513_v22 = vmax.f32 %v11512_v18, 0.0 }
 0x2a1   : > { %v2553_v28 = vmax.f32 %v2489_v36, 0.0  ;;  %v2490_v20 = vadd.f32 %v8508_v15, %v2414_v39  ;;  %v2415_v16 = vadd.f32 %v2312_v3, %v11506_v45  ;;  %v2708_v32 = vadd.f32 %v2628_v10, %v2627_v0 }
 0x2a2   : > { %v2314_v7 = vpop.f32.mrf.mxu1  ;;  %v2952_v60 = vadd.f32 %v2872_v37, %v2871_v55 }
 0x2a3   : > { %v2554_v40 = vmax.f32 %v2490_v20, 0.0  ;;  %v2491_v21 = vadd.f32 %v8503_v23, %v2415_v16  ;;  %v2416_v13 = vadd.f32 %v2314_v7, %v11508_v5  ;;  %2709 = vadd.xlane.f32.xlu1 %v2708_v32  ;;  %2950 = vadd.xlane.f32.xlu0 %v2949_v49  ;;  %v2629_v63 = vmul.f32 %v8526_v4, %v2553_v28  ;;  %v11514_v20 = vld [vmem:[#allocation15_spill] sm:$0xff] }
 0x2a4   : > { %v2873_v6 = vmul.f32 %v8520_v30, %v2553_v28  ;;  %v11515_v56 = vmax.f32 %v11514_v20, 0.0 }
 0x2a5   : > { %v2555_v54 = vmax.f32 %v2491_v21, 0.0  ;;  %v2492_v14 = vadd.f32 %v8508_v15, %v2416_v13  ;;  %v2630_v42 = vmul.f32 %v8532_v34, %v2554_v40  ;;  %v2874_v46 = vmul.f32 %v8523_v38, %v2554_v40  ;;  %v11516_v21 = vld [vmem:[#allocation18_spill] sm:$0xff] }
 0x2a6   : > { %v11517_v8 = vmax.f32 %v11516_v21, 0.0 }
 0x2a7   : > { %v2556_v58 = vmax.f32 %v2492_v14, 0.0  ;;  %2953 = vadd.xlane.f32.xlu1 %v2952_v60  ;;  %v2711_v62 = vadd.f32 %v2630_v42, %v2629_v63  ;;  %v2631_v9 = vmul.f32 %v8526_v4, %v2555_v54  ;;  %v2955_v24 = vadd.f32 %v2874_v46, %v2873_v6 }
 0x2a8   : > { %v2875_v12 = vmul.f32 %v8520_v30, %v2555_v54 }
 0x2a9   : > { %v2632_v33 = vmul.f32 %v8532_v34, %v2556_v58  ;;  %2712 = vadd.xlane.f32.xlu0 %v2711_v62  ;;  %v2876_v51 = vmul.f32 %v8523_v38, %v2556_v58  ;;  %v11518_v58 = vld [vmem:[#allocation16_spill] sm:$0xff] }
 0x2aa   : > { %v2318_v26 = vpop.f32.mrf.mxu1  ;;  %v11519_v62 = vmax.f32 %v11518_v58, 0.0  ;;  %v11526_v58 = vmax.f32 %v8381_v35, 0.0  ;;  %v11528_v35 = vmax.f32 %v8418_v19, 0.0 }
 0x2ab   : > { %v2417_v59 = vadd.f32 %v2318_v26, %v11509_v11  ;;  %v2714_v2 = vadd.f32 %v2632_v33, %v2631_v9  ;;  %v2958_v31 = vadd.f32 %v2876_v51, %v2875_v12  ;;  %v11520_v11 = vld [vmem:[#allocation17_spill] sm:$0xff] }
 0x2ac   : > { %v2320_v41 = vpop.f32.mrf.mxu1 }
 0x2ad   : > { %v2493_v43 = vadd.f32 %v8503_v23, %v2417_v59  ;;  %v2418_v0 = vadd.f32 %v2320_v41, %v11511_v44  ;;  %2956 = vadd.xlane.f32.xlu0 %v2955_v24  ;;  %2715 = vadd.xlane.f32.xlu1 %v2714_v2  ;;  %v11521_v59 = vmax.f32 %v11520_v11, 0.0 }
 0x2ae   : > { %v2322_v10 = vpop.f32.mrf.mxu1 }
 0x2af   : > { %v2494_v36 = vadd.f32 %v8508_v15, %v2418_v0  ;;  %v2419_v39 = vadd.f32 %v2322_v10, %v11513_v22  ;;  %v2557_v37 = vmax.f32 %v2493_v43, 0.0  ;;  %v11522_v0 = vld [vmem:[#allocation19_spill] sm:$0xff] }
 0x2b0   : > { %v2324_v3 = vpop.f32.mrf.mxu1  ;;  %v11523_v10 = vmax.f32 %v11522_v0, 0.0 }
 0x2b1   : > { %v2558_v29 = vmax.f32 %v2494_v36, 0.0  ;;  %v2495_v28 = vadd.f32 %v8503_v23, %v2419_v39  ;;  %v2420_v45 = vadd.f32 %v2324_v3, %v11515_v56  ;;  %2959 = vadd.xlane.f32.xlu1 %v2958_v31  ;;  %v2633_v49 = vmul.f32 %v8526_v4, %v2557_v37 }
 0x2b2   : > { %v2877_v6 = vmul.f32 %v8520_v30, %v2557_v37 }
 0x2b3   : > { %v2559_v16 = vmax.f32 %v2495_v28, 0.0  ;;  %v2496_v32 = vadd.f32 %v8508_v15, %v2420_v45  ;;  %v2634_v55 = vmul.f32 %v8532_v34, %v2558_v29  ;;  %v2878_v54 = vmul.f32 %v8523_v38, %v2558_v29 }
 0x2b4   : > { %v2328_v7 = vpop.f32.mrf.mxu1 }
 0x2b5   : > { %v2560_v40 = vmax.f32 %v2496_v32, 0.0  ;;  %v2421_v5 = vadd.f32 %v2328_v7, %v11517_v8  ;;  %v2717_v60 = vadd.f32 %v2634_v55, %v2633_v49  ;;  %v2635_v14 = vmul.f32 %v8526_v4, %v2559_v16 }
 0x2b6   : > { %v2330_v13 = vpop.f32.mrf.mxu1  ;;  %v2879_v41 = vmul.f32 %v8520_v30, %v2559_v16  ;;  %v2961_v43 = vadd.f32 %v2878_v54, %v2877_v6  ;;  %v11524_v49 = vmax.f32 %v8386_v53, 0.0 }
 0x2b7   : > { %v2636_v63 = vmul.f32 %v8532_v34, %v2560_v40  ;;  %v2497_v42 = vadd.f32 %v8503_v23, %v2421_v5  ;;  %v2422_v46 = vadd.f32 %v2330_v13, %v11519_v62  ;;  %v2880_v9 = vmul.f32 %v8523_v38, %v2560_v40  ;;  %2718 = vadd.xlane.f32.xlu0 %v2717_v60 }
 0x2b8   : > { %v2332_v33 = vpop.f32.mrf.mxu1  ;;  %v11525_v13 = vmax.f32 %v8378_v27, 0.0 }
 0x2b9   : > { %v2561_v26 = vmax.f32 %v2497_v42, 0.0  ;;  %v2498_v51 = vadd.f32 %v8508_v15, %v2422_v46  ;;  %v2423_v24 = vadd.f32 %v2332_v33, %v11521_v59  ;;  %v2720_v2 = vadd.f32 %v2636_v63, %v2635_v14 }
 0x2ba   : > { %v2334_v12 = vpop.f32.mrf.mxu1  ;;  %v2964_v18 = vadd.f32 %v2880_v9, %v2879_v41  ;;  %v11527_v33 = vmax.f32 %v8389_v52, 0.0 }
 0x2bb   : > { %v2562_v57 = vmax.f32 %v2498_v51, 0.0  ;;  %v2499_v44 = vadd.f32 %v8503_v23, %v2423_v24  ;;  %v2424_v36 = vadd.f32 %v2334_v12, %v11523_v10  ;;  %2721 = vadd.xlane.f32.xlu1 %v2720_v2  ;;  %2962 = vadd.xlane.f32.xlu0 %v2961_v43  ;;  %v2881_v22 = vmul.f32 %v8520_v30, %v2561_v26 }
 0x2bc   : > { %v2637_v29 = vmul.f32 %v8526_v4, %v2561_v26 }
 0x2bd   : > { %v2638_v39 = vmul.f32 %v8532_v34, %v2562_v57  ;;  %v2563_v31 = vmax.f32 %v2499_v44, 0.0  ;;  %v2500_v37 = vadd.f32 %v8508_v15, %v2424_v36  ;;  %v2882_v3 = vmul.f32 %v8523_v38, %v2562_v57 }
 0x2be   : > { %v11529_v44 = vmax.f32 %v8410_v17, 0.0 }
 0x2bf   : > { %v2564_v28 = vmax.f32 %v2500_v37, 0.0  ;;  %2965 = vadd.xlane.f32.xlu1 %v2964_v18  ;;  %v2967_v20 = vadd.f32 %v2882_v3, %v2881_v22  ;;  %v2723_v45 = vadd.f32 %v2638_v39, %v2637_v29  ;;  %v2639_v16 = vmul.f32 %v8526_v4, %v2563_v31  ;;  %v11530_v39 = vld [vmem:[#allocation20_spill] sm:$0xff] }
 0x2c0   : > { %v2883_v7 = vmul.f32 %v8520_v30, %v2563_v31  ;;  %v11531_v31 = vmax.f32 %v11530_v39, 0.0 }
 0x2c1   : > { %v2884_v56 = vmul.f32 %v8523_v38, %v2564_v28  ;;  %2968 = vadd.xlane.f32.xlu0 %v2967_v20  ;;  %v2640_v32 = vmul.f32 %v8532_v34, %v2564_v28 }
 0x2c2   : > { %v2338_v55 = vpop.f32.mrf.mxu1 }
 0x2c3   : > { %v2425_v40 = vadd.f32 %v2338_v55, %v11524_v49  ;;  %2724 = vadd.xlane.f32.xlu1 %v2723_v45  ;;  %v2726_v21 = vadd.f32 %v2640_v32, %v2639_v16  ;;  %v2970_v54 = vadd.f32 %v2884_v56, %v2883_v7  ;;  %v11532_v16 = vld [vmem:[#allocation21_spill] sm:$0xff] }
 0x2c4   : > { %v2340_v8 = vpop.f32.mrf.mxu1  ;;  %v11533_v32 = vmax.f32 %v11532_v16, 0.0 }
 0x2c5   : > { %v2501_v5 = vadd.f32 %v8503_v23, %v2425_v40  ;;  %v2426_v60 = vadd.f32 %v2340_v8, %v11525_v13  ;;  %2727 = vadd.xlane.f32.xlu0 %v2726_v21 }
 0x2c6   : > { %v2342_v14 = vpop.f32.mrf.mxu1 }
 0x2c7   : > { %v2565_v63 = vmax.f32 %v2501_v5, 0.0  ;;  %v2502_v42 = vadd.f32 %v8508_v15, %v2426_v60  ;;  %v2427_v62 = vadd.f32 %v2342_v14, %v11526_v58  ;;  %2971 = vadd.xlane.f32.xlu1 %v2970_v54  ;;  %v6562_v14 = vld [vmem:[%s10968_s11 + $0x74] ss:$8 sps:$4 sm:$0xff]  }
 0x2c8   : > { %v2344_v53 = vpop.f32.mrf.mxu1  ;;  %3962 = vmatprep.subr.bf16.mxu0 %v6562_v14 }
 0x2c9   : > { %v2566_v46 = vmax.f32 %v2502_v42, 0.0  ;;  %v2503_v9 = vadd.f32 %v8503_v23, %v2427_v62  ;;  %v2428_v6 = vadd.f32 %v2344_v53, %v11527_v33  ;;  %v2641_v27 = vmul.f32 %v8526_v4, %v2565_v63  ;;  %v6560_v62 = vld [vmem:[%s10968_s11 + $0x70] ss:$8 sps:$4 sm:$0xff]  }
 0x2ca   : > { %v2885_v57 = vmul.f32 %v8520_v30, %v2565_v63  ;;  %v11534_v53 = vmax.f32 %v8450_v50, 0.0  ;;  %3963 = vmatpush1.bf16.msra.mxu0 %v6560_v62  ;;  %v6572_v62 = vld [vmem:[%s10968_s11 + $0x30] ss:$8 sps:$4 sm:$0xff]  }
 0x2cb   : > { %v2642_v26 = vmul.f32 %v8532_v34, %v2566_v46  ;;  %v2567_v51 = vmax.f32 %v2503_v9, 0.0  ;;  %v2504_v11 = vadd.f32 %v8508_v15, %v2428_v6  ;;  %v2886_v24 = vmul.f32 %v8523_v38, %v2566_v46 }
 0x2cc   : > { %v2348_v59 = vpop.f32.mrf.mxu1 }
 0x2cd   : > { %v2429_v2 = vadd.f32 %v2348_v59, %v11528_v35  ;;  %v2729_v41 = vadd.f32 %v2642_v26, %v2641_v27  ;;  %v2568_v12 = vmax.f32 %v2504_v11, 0.0  ;;  %v2643_v10 = vmul.f32 %v8526_v4, %v2567_v51  ;;  %v6565_v59 = vld [vmem:[%s10968_s11 + $0x64] ss:$8 sps:$4 sm:$0xff]   ;;  %v6563_v35 = vld [vmem:[%s10968_s11 + $0x60] ss:$8 sps:$4 sm:$0xff]  }
 0x2ce   : > { %v2350_v43 = vpop.f32.mrf.mxu1  ;;  %v2973_v3 = vadd.f32 %v2886_v24, %v2885_v57  ;;  %v2887_v17 = vmul.f32 %v8520_v30, %v2567_v51  ;;  %v11535_v51 = vmax.f32 %v8442_v61, 0.0  ;;  %3964 = vmatprep.subr.bf16.mxu0 %v6565_v59  ;;  %v8826_v61 = vpop.xlane.xlu0 %2902 }
 0x2cf   : > { %v2505_v52 = vadd.f32 %v8503_v23, %v2429_v2  ;;  %v2430_v0 = vadd.f32 %v2350_v43, %v11529_v44  ;;  %2730 = vadd.xlane.f32.xlu0 %v2729_v41  ;;  %v2644_v36 = vmul.f32 %v8532_v34, %v2568_v12  ;;  %v2888_v29 = vmul.f32 %v8523_v38, %v2568_v12 }
 0x2d0   : > { %v2352_v18 = vpop.f32.mrf.mxu1  ;;  %v11536_v41 = vmax.f32 %v8445_v47, 0.0  ;;  %3965 = vmatpush1.bf16.msra.mxu0 %v6563_v35  ;;  %v6566_v47 = vld [vmem:[%s10968_s11 + $0x50] ss:$8 sps:$4 sm:$0xff]  }
 0x2d1   : > { %v2569_v22 = vmax.f32 %v2505_v52, 0.0  ;;  %v2506_v19 = vadd.f32 %v8508_v15, %v2430_v0  ;;  %v2431_v37 = vadd.f32 %v2352_v18, %v11531_v31  ;;  %v2732_v20 = vadd.f32 %v2644_v36, %v2643_v10  ;;  %v6568_v10 = vld [vmem:[%s10968_s11 + $0x54] ss:$8 sps:$4 sm:$0xff]  }
 0x2d2   : > { %v2354_v28 = vpop.f32.mrf.mxu1  ;;  %v2976_v8 = vadd.f32 %v2888_v29, %v2887_v17  ;;  %v11537_v36 = vmax.f32 %v8453_v48, 0.0  ;;  %3966 = vmatprep.subr.bf16.mxu0 %v6568_v10  ;;  %v6569_v48 = vld [vmem:[%s10968_s11 + $0x40] ss:$8 sps:$4 sm:$0xff]   ;;  %v6571_v29 = vld [vmem:[%s10968_s11 + $0x44] ss:$8 sps:$4 sm:$0xff]   ;;  %v11538_v17 = vmax.f32 %v8482_v1, 0.0 }
 0x2d3   : > { %v2570_v56 = vmax.f32 %v2506_v19, 0.0  ;;  %2974 = vadd.xlane.f32.xlu0 %v2973_v3  ;;  %v2507_v45 = vadd.f32 %v8503_v23, %v2431_v37  ;;  %v2432_v55 = vadd.f32 %v2354_v28, %v11533_v32  ;;  %2733 = vadd.xlane.f32.xlu1 %v2732_v20  ;;  %v2645_v7 = vmul.f32 %v8526_v4, %v2569_v22  ;;  %v8848_v28 = vpop.xlane.xlu0 %2661 }
 0x2d4   : > { %v2889_v54 = vmul.f32 %v8520_v30, %v2569_v22  ;;  %v8837_v22 = vpop.xlane.xlu1 %2658  ;;  %3967 = vmatpush1.bf16.msra.mxu0 %v6566_v47 }
 0x2d5   : > { %v2646_v49 = vmul.f32 %v8532_v34, %v2570_v56  ;;  %v2571_v40 = vmax.f32 %v2507_v45, 0.0  ;;  %v2508_v21 = vadd.f32 %v8508_v15, %v2432_v55  ;;  %v2890_v5 = vmul.f32 %v8523_v38, %v2570_v56  ;;  %3968 = vmatprep.subr.bf16.mxu0 %v6571_v29 }
 0x2d7   : > { %v2735_v13 = vadd.f32 %v2646_v49, %v2645_v7  ;;  %v2572_v60 = vmax.f32 %v2508_v21, 0.0  ;;  %2977 = vadd.xlane.f32.xlu1 %v2976_v8  ;;  %v2647_v63 = vmul.f32 %v8526_v4, %v2571_v40  ;;  %v2979_v9 = vadd.f32 %v2890_v5, %v2889_v54  ;;  %v11540_v54 = vld [vmem:[#allocation22_spill] sm:$0xff] }
 0x2d8   : > { %v2891_v50 = vmul.f32 %v8520_v30, %v2571_v40  ;;  %3969 = vmatpush1.bf16.msra.mxu0 %v6569_v48  ;;  %v8857_v21 = vpop.xlane.xlu1 %2905  ;;  %v11539_v8 = vmax.f32 %v8474_v25, 0.0  ;;  %v11541_v14 = vmax.f32 %v11540_v54, 0.0  ;;  %v6581_v48 = vld [vmem:[%s10968_s11] ss:$8 sps:$4 sm:$0xff]  }
 0x2d9   : > { %2736 = vadd.xlane.f32.xlu0 %v2735_v13  ;;  %v2648_v42 = vmul.f32 %v8532_v34, %v2572_v60  ;;  %v2892_v33 = vmul.f32 %v8523_v38, %v2572_v60  ;;  %v6574_v13 = vld [vmem:[%s10968_s11 + $0x34] ss:$8 sps:$4 sm:$0xff]   ;;  %v8864_v60 = vpop.xlane.xlu0 %2664 }
 0x2da   : > { %v2358_v58 = vpop.f32.mrf.mxu1  ;;  %3970 = vmatprep.subr.bf16.mxu0 %v6574_v13  ;;  %v6595_v13 = vld [vmem:[%s10968_s11 + $0xc4] ss:$8 sps:$4 sm:$0xff]  }
 0x2db   : > { %v2433_v46 = vadd.f32 %v2358_v58, %v11534_v53  ;;  %v2738_v27 = vadd.f32 %v2648_v42, %v2647_v63  ;;  %v2982_v52 = vadd.f32 %v2892_v33, %v2891_v50  ;;  %v6577_v50 = vld [vmem:[%s10968_s11 + $0x24] ss:$8 sps:$4 sm:$0xff]  }
 0x2dc   : > { %v2360_v6 = vpop.f32.mrf.mxu1  ;;  %3971 = vmatpush1.bf16.msra.mxu0 %v6572_v62 }
 0x2dd   : > { %v2509_v26 = vadd.f32 %v8503_v23, %v2433_v46  ;;  %v2434_v11 = vadd.f32 %v2360_v6, %v11535_v51  ;;  %2980 = vadd.xlane.f32.xlu0 %v2979_v9  ;;  %2739 = vadd.xlane.f32.xlu1 %v2738_v27  ;;  %v11542_v6 = vld [vmem:[#allocation24_spill] sm:$0xff]  ;;  %v8876_v51 = vpop.xlane.xlu1 %2667 }
 0x2de   : > { %v2362_v24 = vpop.f32.mrf.mxu1  ;;  %v11543_v27 = vmax.f32 %v11542_v6, 0.0  ;;  %3972 = vmatprep.subr.bf16.mxu0 %v6577_v50 }
 0x2df   : > { %v2510_v2 = vadd.f32 %v8508_v15, %v2434_v11  ;;  %v2435_v12 = vadd.f32 %v2362_v24, %v11536_v41  ;;  %v2573_v43 = vmax.f32 %v2509_v26, 0.0 }
 0x2e0   : > { %v2364_v57 = vpop.f32.mrf.mxu1 }
 0x2e1   : > { %v2574_v44 = vmax.f32 %v2510_v2, 0.0  ;;  %v2511_v0 = vadd.f32 %v8503_v23, %v2435_v12  ;;  %v2436_v18 = vadd.f32 %v2364_v57, %v11537_v36  ;;  %2983 = vadd.xlane.f32.xlu1 %v2982_v52  ;;  %v2649_v39 = vmul.f32 %v8526_v4, %v2573_v43  ;;  %v6578_v36 = vld [vmem:[%s10968_s11 + $0x10] ss:$8 sps:$4 sm:$0xff]  }
 0x2e2   : > { %v2893_v32 = vmul.f32 %v8520_v30, %v2573_v43  ;;  %v2909_v43 = vpop.xlane.xlu0 %2908 }
 0x2e3   : > { %v2650_v19 = vmul.f32 %v8532_v34, %v2574_v44  ;;  %v2575_v31 = vmax.f32 %v2511_v0, 0.0  ;;  %v2512_v37 = vadd.f32 %v8508_v15, %v2436_v18  ;;  %v2894_v20 = vmul.f32 %v8523_v38, %v2574_v44  ;;  %v2912_v18 = vpop.xlane.xlu1 %2911 }
 0x2e4   : > { %v2368_v3 = vpop.f32.mrf.mxu1 }
 0x2e5   : > { %v2576_v56 = vmax.f32 %v2512_v37, 0.0  ;;  %v2437_v45 = vadd.f32 %v2368_v3, %v11538_v17  ;;  %v2741_v16 = vadd.f32 %v2650_v19, %v2649_v39  ;;  %v2651_v7 = vmul.f32 %v8526_v4, %v2575_v31 }
 0x2e6   : > { %v2370_v55 = vpop.f32.mrf.mxu1  ;;  %v2985_v42 = vadd.f32 %v2894_v20, %v2893_v32  ;;  %v2895_v11 = vmul.f32 %v8520_v30, %v2575_v31  ;;  %v2671_v19 = vpop.xlane.xlu0 %2670 }
 0x2e7   : > { %v2652_v49 = vmul.f32 %v8532_v34, %v2576_v56  ;;  %v2513_v40 = vadd.f32 %v8503_v23, %v2437_v45  ;;  %2742 = vadd.xlane.f32.xlu0 %v2741_v16  ;;  %v2438_v5 = vadd.f32 %v2370_v55, %v11539_v8  ;;  %v2896_v53 = vmul.f32 %v8523_v38, %v2576_v56  ;;  %v6586_v56 = vld [vmem:[%s10968_s11 + $0xf4] ss:$8 sps:$4 sm:$0xff]  }
 0x2e8   : > { %v2372_v1 = vpop.f32.mrf.mxu1 }
 0x2e9   : > { %v2439_v63 = vadd.f32 %v2372_v1, %v11541_v14  ;;  %v2744_v58 = vadd.f32 %v2652_v49, %v2651_v7  ;;  %v2577_v25 = vmax.f32 %v2513_v40, 0.0  ;;  %v2514_v46 = vadd.f32 %v8508_v15, %v2438_v5  ;;  %v6587_v7 = vld [vmem:[%s10968_s11 + $0xe0] ss:$8 sps:$4 sm:$0xff]   ;;  %v6592_v40 = vld [vmem:[%s10968_s11 + $0xd4] ss:$8 sps:$4 sm:$0xff]  }
 0x2ea   : > { %v2374_v9 = vpop.f32.mrf.mxu1  ;;  %v2988_v12 = vadd.f32 %v2896_v53, %v2895_v11  ;;  %v2915_v17 = vpop.xlane.xlu0 %2914  ;;  %v6596_v53 = vld [vmem:[%s10968_s11 + $0xb0] ss:$8 sps:$4 sm:$0xff]  }
 0x2eb   : > { %v2515_v33 = vadd.f32 %v8503_v23, %v2439_v63  ;;  %v2440_v26 = vadd.f32 %v2374_v9, %v11543_v27  ;;  %2986 = vadd.xlane.f32.xlu0 %v2985_v42  ;;  %v2578_v59 = vmax.f32 %v2514_v46, 0.0  ;;  %2745 = vadd.xlane.f32.xlu1 %v2744_v58  ;;  %v6575_v23 = vld [vmem:[%s10968_s11 + $0x20] ss:$8 sps:$4 sm:$0xff]   ;;  %v2653_v2 = vmul.f32 %v8526_v4, %v2577_v25  ;;  %v6598_v42 = vld [vmem:[%s10968_s11 + $0xb4] ss:$8 sps:$4 sm:$0xff]  }
 0x2ec   : > { %3973 = vmatpush1.bf16.msra.mxu0 %v6575_v23  ;;  %v2897_v47 = vmul.f32 %v8520_v30, %v2577_v25 }
 0x2ed   : > { %v2579_v24 = vmax.f32 %v2515_v33, 0.0  ;;  %v2516_v35 = vadd.f32 %v8508_v15, %v2440_v26  ;;  %v2654_v41 = vmul.f32 %v8532_v34, %v2578_v59  ;;  %v2898_v52 = vmul.f32 %v8523_v38, %v2578_v59  ;;  %v6580_v15 = vld [vmem:[%s10968_s11 + $0x14] ss:$8 sps:$4 sm:$0xff]   ;;  %v6601_v33 = vld [vmem:[%s10968_s11 + $0xa4] ss:$8 sps:$4 sm:$0xff]  }
 0x2ee   : > { %3974 = vmatprep.subr.bf16.mxu0 %v6580_v15  ;;  %v2677_v55 = vpop.xlane.xlu0 %2676  ;;  %v6599_v26 = vld [vmem:[%s10968_s11 + $0xa0] ss:$8 sps:$4 sm:$0xff]   ;;  %v11544_v59 = vmov 0   ;;  %v6607_v15 = vld [vmem:[%s10968_s11 + $0x84] ss:$8 sps:$4 sm:$0xff]  }
 0x2ef   : > { %v2580_v57 = vmax.f32 %v2516_v35, 0.0  ;;  %2989 = vadd.xlane.f32.xlu1 %v2988_v12  ;;  %v2747_v44 = vadd.f32 %v2654_v41, %v2653_v2  ;;  %v2655_v0 = vmul.f32 %v8526_v4, %v2579_v24  ;;  %v2991_v37 = vadd.f32 %v2898_v52, %v2897_v47  ;;  %v6583_v4 = vld [vmem:[%s10968_s11 + $0x4] ss:$8 sps:$4 sm:$0xff]   ;;  %v6604_v35 = vld [vmem:[%s10968_s11 + $0x94] ss:$8 sps:$4 sm:$0xff]  }
 0x2f0   : > { %3975 = vmatpush1.bf16.msra.mxu0 %v6578_v36  ;;  %v2899_v3 = vmul.f32 %v8520_v30, %v2579_v24  ;;  %v6584_v30 = vld [vmem:[%s10968_s11 + $0xf0] ss:$8 sps:$4 sm:$0xff]   ;;  %v11545_v52 = vmov 1  }
 0x2f1   : > { %v2656_v10 = vmul.f32 %v8532_v34, %v2580_v57  ;;  %2748 = vadd.xlane.f32.xlu0 %v2747_v44  ;;  %v2900_v39 = vmul.f32 %v8523_v38, %v2580_v57  ;;  %v8905_v34 = vld [vmem:[%s10966_s9] ss:$0 sm:$0xff]  ;;  %v2674_v38 = vpop.xlane.xlu1 %2673  ;;  %3976 = vmatprep.subr.bf16.mxu0 %v6583_v4  ;;  %v6602_v41 = vld [vmem:[%s10968_s11 + $0x90] ss:$8 sps:$4 sm:$0xff]  }
 0x2f2   : > { %v2997_v20 = vadd.f32 %v8905_v34, %v8826_v61  ;;  %v2760_v45 = vadd.f32 %v8905_v34, %v8837_v22  ;;  %v6589_v61 = vld [vmem:[%s10968_s11 + $0xe4] ss:$8 sps:$4 sm:$0xff]   ;;  %v2761_v32 = vadd.f32 %v8905_v34, %v8848_v28  ;;  %v2762_v22 = vadd.f32 %v8905_v34, %v8864_v60  ;;  %v6590_v28 = vld [vmem:[%s10968_s11 + $0xd0] ss:$8 sps:$4 sm:$0xff]   ;;  %v2921_v1 = vpop.xlane.xlu0 %2920 }
 0x2f3   : > { %v2750_v31 = vadd.f32 %v2656_v10, %v2655_v0  ;;  %v2994_v29 = vadd.f32 %v2900_v39, %v2899_v3  ;;  %v2998_v8 = vadd.f32 %v8905_v34, %v8857_v21  ;;  %v2763_v5 = vadd.f32 %v8905_v34, %v8876_v51  ;;  %v6593_v21 = vld [vmem:[%s10968_s11 + $0xc0] ss:$8 sps:$4 sm:$0xff]  }
 0x2f4   : > { %3977 = vmatpush1.bf16.msra.mxu0 %v6581_v48  ;;  %6704 = vtanh.f32 %v2997_v20  ;;  %v2999_v60 = vadd.f32 %v8905_v34, %v2909_v43  ;;  %v2764_v54 = vadd.f32 %v8905_v34, %v2671_v19  ;;  %v3000_v62 = vadd.f32 %v8905_v34, %v2912_v18  ;;  %v6605_v10 = vld [vmem:[%s10968_s11 + $0x80] ss:$8 sps:$4 sm:$0xff]  }
 0x2f5   : > { %2751 = vadd.xlane.f32.xlu1 %v2750_v31  ;;  %2992 = vadd.xlane.f32.xlu0 %v2991_v37  ;;  %v2918_v16 = vpop.xlane.xlu1 %2917  ;;  %6706 = vtanh.f32 %v2760_v45  ;;  %v2765_v25 = vadd.f32 %v8905_v34, %v2674_v38  ;;  %v3001_v6 = vadd.f32 %v8905_v34, %v2915_v17  ;;  %v2766_v11 = vadd.f32 %v8905_v34, %v2677_v55 }
 0x2f6   : > { %3978 = vmatprep.subr.bf16.mxu0 %v6586_v56  ;;  %6708 = vtanh.f32 %v2761_v32  ;;  %v3002_v23 = vadd.f32 %v8905_v34, %v2918_v16  ;;  %v3003_v0 = vadd.f32 %v8905_v34, %v2921_v1 }
 0x2f7   : > { %6710 = vtanh.f32 %v2762_v22 }
 0x2f8   : > { %3979 = vmatpush2.bf16.msra.mxu0 %v6584_v30  ;;  %6712 = vtanh.f32 %v2998_v8  ;;  %v2683_v63 = vpop.xlane.xlu0 %2682 }
 0x2f9   : > { %2995 = vadd.xlane.f32.xlu1 %v2994_v29  ;;  %3980 = vmatprep.subr.bf16.mxu0 %v6589_v61  ;;  %v2680_v49 = vpop.xlane.xlu1 %2679  ;;  %6714 = vtanh.f32 %v2763_v5  ;;  %v2768_v18 = vadd.f32 %v8905_v34, %v2683_v63 }
 0x2fa   : > { %6716 = vtanh.f32 %v2999_v60  ;;  %v2767_v43 = vadd.f32 %v8905_v34, %v2680_v49 }
 0x2fb   : > { %6718 = vtanh.f32 %v2764_v54 }
 0x2fc   : > { %3981 = vmatpush2.bf16.msra.mxu0 %v6587_v7  ;;  %6720 = vtanh.f32 %v3000_v62  ;;  %v2927_v27 = vpop.xlane.xlu0 %2926 }
 0x2fd   : > { %3982 = vmatprep.subr.bf16.mxu0 %v6592_v40  ;;  %v2924_v14 = vpop.xlane.xlu1 %2923  ;;  %6722 = vtanh.f32 %v2765_v25  ;;  %v3005_v38 = vadd.f32 %v8905_v34, %v2927_v27 }
 0x2fe   : > { %6724 = vtanh.f32 %v3001_v6  ;;  %v3004_v39 = vadd.f32 %v8905_v34, %v2924_v14 }
 0x2ff   : > { %6726 = vtanh.f32 %v2766_v11 }
 0x300   : > { %3983 = vmatpush2.bf16.msra.mxu0 %v6590_v28  ;;  %6728 = vtanh.f32 %v3002_v23 }
 0x301   : > { %3984 = vmatprep.subr.bf16.mxu0 %v6595_v13  ;;  %v6705_v58 = vpop.eup %6704  ;;  %v2686_v46 = vpop.xlane.xlu1 %2685  ;;  %6730 = vtanh.f32 %v2767_v43 }
 0x302   : > { %v6707_v9 = vpop.eup %6706  ;;  %v2689_v2 = vpop.xlane.xlu0 %2688  ;;  %6732 = vtanh.f32 %v3003_v0  ;;  %v2769_v37 = vadd.f32 %v8905_v34, %v2686_v46 }
 0x303   : > { %v6709_v51 = vpop.eup %6708  ;;  %6734 = vtanh.f32 %v2768_v18  ;;  %v2770_v20 = vadd.f32 %v8905_v34, %v2689_v2 }
 0x304   : > { %3985 = vmatpush2.bf16.msra.mxu0 %v6593_v21  ;;  %v6711_v50 = vpop.eup %6710  ;;  %6736 = vtanh.f32 %v3004_v39 }
 0x305   : > { %3986 = vmatprep.subr.bf16.mxu0 %v6598_v42  ;;  %v2930_v24 = vpop.xlane.xlu1 %2929  ;;  %v6713_v12 = vpop.eup %6712  ;;  %6738 = vtanh.f32 %v2769_v37 }
 0x306   : > { %v6715_v57 = vpop.eup %6714  ;;  %v2933_v19 = vpop.xlane.xlu0 %2932  ;;  %6740 = vtanh.f32 %v3005_v38  ;;  %v3006_v16 = vadd.f32 %v8905_v34, %v2930_v24 }
 0x307   : > { %v6717_v36 = vpop.eup %6716  ;;  %6742 = vtanh.f32 %v2770_v20  ;;  %v3007_v32 = vadd.f32 %v8905_v34, %v2933_v19 }
 0x308   : > { %3987 = vmatpush2.bf16.msra.mxu0 %v6596_v53  ;;  %v6719_v47 = vpop.eup %6718  ;;  %6744 = vtanh.f32 %v3006_v16 }
 0x309   : > { %3988 = vmatprep.subr.bf16.mxu0 %v6601_v33  ;;  %v2692_v44 = vpop.xlane.xlu1 %2691  ;;  %v6721_v31 = vpop.eup %6720  ;;  %6746 = vtanh.f32 %v3007_v32 }
 0x30a   : > { %3377 = vperm.xlu1 %6429, %v6705_v58   ;;  %v6723_v3 = vpop.eup %6722  ;;  %v2771_v8 = vadd.f32 %v8905_v34, %v2692_v44 }
 0x30b   : > { %3065 = vperm.xlu0 %6430, %v6707_v9   ;;  %v6725_v29 = vpop.eup %6724 }
 0x30c   : > { %3989 = vmatpush2.bf16.msra.mxu0 %v6599_v26  ;;  %v6727_v17 = vpop.eup %6726 }
 0x30d   : > { %3990 = vmatprep.subr.bf16.mxu0 %v6604_v35  ;;  %v2936_v4 = vpop.xlane.xlu1 %2935  ;;  %v6729_v45 = vpop.eup %6728 }
 0x30e   : > { %6431 = vset.pattern.permute.xlu1 %v11544_v59  ;;  %v6731_v61 = vpop.eup %6730  ;;  %v3008_v49 = vadd.f32 %v8905_v34, %v2936_v4 }
 0x30f   : > { %3070 = vperm.xlu1 %6431, %v6709_v51   ;;  %3075 = vperm.xlu0 %6430, %v6711_v50   ;;  %v6733_v22 = vpop.eup %6732 }
 0x310   : > { %3991 = vmatpush2.bf16.msra.mxu0 %v6602_v41  ;;  %v2695_v48 = vpop.xlane.xlu0 %2694  ;;  %v6735_v40 = vpop.eup %6734  ;;  %6748 = vtanh.f32 %v3008_v49 }
 0x311   : > { %3992 = vmatprep.subr.bf16.mxu0 %v6607_v15  ;;  %v6737_v5 = vpop.eup %6736  ;;  %6750 = vtanh.f32 %v2771_v8  ;;  %v2772_v21 = vadd.f32 %v8905_v34, %v2695_v48 }
 0x312   : > { %v6739_v13 = vpop.eup %6738 }
 0x313   : > { %6432 = vset.pattern.permute.xlu1 %v11545_v52  ;;  %3080 = vperm.xlu0 %6430, %v6715_v57   ;;  %v6741_v54 = vpop.eup %6740 }
 0x314   : > { %3382 = vperm.xlu1 %6432, %v6713_v12   ;;  %3993 = vmatpush2.bf16.msra.mxu0 %v6605_v10  ;;  %v2698_v56 = vpop.xlane.xlu1 %2697  ;;  %v2939_v30 = vpop.xlane.xlu0 %2938 }
 0x315   : > { %v6743_v63 = vpop.eup %6742  ;;  %v3009_v62 = vadd.f32 %v8905_v34, %v2939_v30  ;;  %v2773_v6 = vadd.f32 %v8905_v34, %v2698_v56 }
 0x316   : > { %v6745_v25 = vpop.eup %6744 }
 0x317   : > { %3085 = vperm.xlu0 %6430, %v6719_v47   ;;  %v6747_v46 = vpop.eup %6746 }
 0x318   : > { %3387 = vperm.xlu1 %6432, %v6717_v36   ;;  %v2942_v55 = vpop.xlane.xlu1 %2941 }
 0x319   : > { %v3010_v1 = vadd.f32 %v8905_v34, %v2942_v55 }
 0x31a   : > { %v2701_v7 = vpop.xlane.xlu0 %2700 }
 0x31b   : > { %3090 = vperm.xlu0 %6430, %v6723_v3   ;;  %6752 = vtanh.f32 %v3010_v1  ;;  %v2774_v42 = vadd.f32 %v8905_v34, %v2701_v7 }
 0x31c   : > { %3392 = vperm.xlu1 %6432, %v6721_v31   ;;  %6754 = vtanh.f32 %v2772_v21 }
 0x31d   : > { %6756 = vtanh.f32 %v2774_v42  ;;  %v6749_v27 = vpop.eup %6748 }
 0x31e   : > { %v2704_v28 = vpop.xlane.xlu1 %2703  ;;  %v2945_v60 = vpop.xlane.xlu0 %2944  ;;  %6758 = vtanh.f32 %v3009_v62 }
 0x31f   : > { %3095 = vperm.xlu0 %6430, %v6727_v17   ;;  %v3011_v9 = vadd.f32 %v8905_v34, %v2945_v60  ;;  %v6751_v11 = vpop.eup %6750  ;;  %v2775_v24 = vadd.f32 %v8905_v34, %v2704_v28 }
 0x320   : > { %3397 = vperm.xlu1 %6432, %v6725_v29  }
 0x321   : > { %6760 = vtanh.f32 %v3011_v9 }
 0x322   : > { %v2948_v14 = vpop.xlane.xlu1 %2947  ;;  %6762 = vtanh.f32 %v2773_v6 }
 0x323   : > { %3100 = vperm.xlu0 %6430, %v6731_v61   ;;  %v3012_v26 = vadd.f32 %v8905_v34, %v2948_v14 }
 0x324   : > { %3402 = vperm.xlu1 %6432, %v6729_v45  }
 0x325   : > { %6764 = vtanh.f32 %v3012_v26 }
 0x326   : > { %6766 = vtanh.f32 %v2775_v24 }
 0x327   : > { %3105 = vperm.xlu0 %6430, %v6735_v40  }
 0x328   : > { %3407 = vperm.xlu1 %6432, %v6733_v22   ;;  %v2707_v58 = vpop.xlane.xlu0 %2706  ;;  %v6753_v35 = vpop.eup %6752 }
 0x329   : > { %v6755_v2 = vpop.eup %6754  ;;  %v2776_v12 = vadd.f32 %v8905_v34, %v2707_v58 }
 0x32a   : > { %v6757_v57 = vpop.eup %6756 }
 0x32b   : > { %3110 = vperm.xlu0 %6430, %v6739_v13   ;;  %v6759_v44 = vpop.eup %6758 }
 0x32c   : > { %3412 = vperm.xlu1 %6432, %v6737_v5   ;;  %v2710_v53 = vpop.xlane.xlu1 %2709  ;;  %v2951_v33 = vpop.xlane.xlu0 %2950 }
 0x32d   : > { %v2777_v41 = vadd.f32 %v8905_v34, %v2710_v53  ;;  %v3013_v10 = vadd.f32 %v8905_v34, %v2951_v33 }
 0x32e   : > { %v6761_v18 = vpop.eup %6760 }
 0x32f   : > { %3115 = vperm.xlu0 %6430, %v6743_v63   ;;  %6768 = vtanh.f32 %v2777_v41  ;;  %v6763_v19 = vpop.eup %6762 }
 0x330   : > { %3417 = vperm.xlu1 %6432, %v6741_v54   ;;  %v2954_v51 = vpop.xlane.xlu1 %2953  ;;  %6770 = vtanh.f32 %v2776_v12 }
 0x331   : > { %v3014_v15 = vadd.f32 %v8905_v34, %v2954_v51 }
 0x332   : > { %v2713_v50 = vpop.xlane.xlu0 %2712  ;;  %v6765_v37 = vpop.eup %6764 }
 0x333   : > { %6433 = vset.pattern.permute.xlu0 %v11545_v52  ;;  %6772 = vtanh.f32 %v3014_v15  ;;  %v2778_v39 = vadd.f32 %v8905_v34, %v2713_v50  ;;  %v6767_v3 = vpop.eup %6766 }
 0x334   : > { %3422 = vperm.xlu1 %6432, %v6745_v25   ;;  %3427 = vperm.xlu0 %6433, %v6747_v46   ;;  %6774 = vtanh.f32 %v3013_v10 }
 0x335   : > { %6776 = vtanh.f32 %v2778_v39 }
 0x336   : > { %v2716_v23 = vpop.xlane.xlu1 %2715  ;;  %v2957_v43 = vpop.xlane.xlu0 %2956 }
 0x337   : > { %v2779_v31 = vadd.f32 %v8905_v34, %v2716_v23  ;;  %v3015_v48 = vadd.f32 %v8905_v34, %v2957_v43 }
 0x338   : > { %3432 = vperm.xlu1 %6432, %v6749_v27   ;;  %6434 = vset.pattern.permute.xlu0 %v11544_v59 }
 0x339   : > { %3120 = vperm.xlu0 %6434, %v6751_v11   ;;  %6778 = vtanh.f32 %v2779_v31 }
 0x33a   : > { %v2960_v0 = vpop.xlane.xlu1 %2959  ;;  %6780 = vtanh.f32 %v3015_v48  ;;  %v3062_v48 = vld [vmem:[%s10967_s10] ss:$2 sm:$0x3] }
 0x33b   : > { %v3016_v30 = vadd.f32 %v8905_v34, %v2960_v0 }
 0x33c   : > { %3442 = vperm.xlu1 %6432, %v6753_v35   ;;  %v6769_v56 = vpop.eup %6768 }
 0x33d   : > { %3125 = vperm.xlu0 %6434, %v6755_v2   ;;  %v6771_v17 = vpop.eup %6770 }
 0x340   : > { %6437 = vset.pattern.permute.xlu1 %v11544_v59  ;;  %v2719_v36 = vpop.xlane.xlu0 %2718  ;;  %v6773_v61 = vpop.eup %6772 }
 0x341   : > { %3135 = vperm.xlu1 %6437, %v6757_v57   ;;  %6435 = vset.pattern.permute.xlu0 %v11545_v52  ;;  %v2780_v38 = vadd.f32 %v8905_v34, %v2719_v36  ;;  %v6775_v55 = vpop.eup %6774 }
 0x342   : > { %3437 = vperm.xlu0 %6435, %v6759_v44   ;;  %v6777_v40 = vpop.eup %6776 }
 0x343   : > { %6782 = vtanh.f32 %v2780_v38 }
 0x344   : > { %v2722_v47 = vpop.xlane.xlu1 %2721  ;;  %v2963_v4 = vpop.xlane.xlu0 %2962  ;;  %6784 = vtanh.f32 %v3016_v30  ;;  %v11547_v30 = vld [vmem:[#allocation5_spill] sm:$0xff] }
 0x345   : > { %6438 = vset.pattern.permute.xlu1 %v11545_v52  ;;  %v3017_v45 = vadd.f32 %v8905_v34, %v2963_v4  ;;  %v2781_v7 = vadd.f32 %v8905_v34, %v2722_v47 }
 0x346   : > { %3447 = vperm.xlu1 %6438, %v6761_v18   ;;  %6436 = vset.pattern.permute.xlu0 %v11544_v59  ;;  %v6779_v28 = vpop.eup %6778 }
 0x347   : > { %3130 = vperm.xlu0 %6436, %v6763_v19   ;;  %6786 = vtanh.f32 %v3017_v45  ;;  %v6781_v13 = vpop.eup %6780  ;;  %v9059_v45 = vrot.slane %v3062_v48, %v11547_v30 }
 0x348   : > { %v2966_v29 = vpop.xlane.xlu1 %2965  ;;  %6788 = vtanh.f32 %v2781_v7 }
 0x349   : > { %v3018_v5 = vadd.f32 %v8905_v34, %v2966_v29 }
 0x34a   : > { %3452 = vperm.xlu1 %6438, %v6765_v37   ;;  %v2969_v20 = vpop.xlane.xlu0 %2968 }
 0x34b   : > { %3140 = vperm.xlu0 %6436, %v6767_v3   ;;  %v3019_v53 = vadd.f32 %v8905_v34, %v2969_v20 }
 0x34c   : > { %v2725_v16 = vpop.xlane.xlu1 %2724 }
 0x34d   : > { %v2782_v14 = vadd.f32 %v8905_v34, %v2725_v16 }
 0x34e   : > { %6440 = vset.pattern.permute.xlu1 %v11544_v59  ;;  %v2728_v32 = vpop.xlane.xlu0 %2727 }
 0x34f   : > { %3150 = vperm.xlu1 %6440, %v6769_v56   ;;  %3145 = vperm.xlu0 %6436, %v6771_v17   ;;  %v2783_v22 = vadd.f32 %v8905_v34, %v2728_v32  ;;  %v3061_v17 = vld [vmem:[%s645_s24] sm:$0x3] }
 0x350   : > { %v2972_v8 = vpop.xlane.xlu1 %2971  ;;  %v6783_v54 = vpop.eup %6782 }
 0x351   : > { %6790 = vtanh.f32 %v2783_v22  ;;  %v6785_v42 = vpop.eup %6784  ;;  %v3020_v27 = vadd.f32 %v8905_v34, %v2972_v8  ;;  %v9070_v22 = vrot.slane %v3061_v17, %v11547_v30  ;;  %v6610_v8 = vld [vmem:[%s10970_s13 + $0x74] ss:$8 sps:$4 sm:$0xff]  }
 0x352   : > { %6792 = vtanh.f32 %v3018_v5  ;;  %4583 = vmatprep.subr.bf16.mxu1 %v6610_v8 }
 0x353   : > { %6441 = vset.pattern.permute.xlu1 %v11545_v52  ;;  %6439 = vset.pattern.permute.xlu0 %v11545_v52 }
 0x354   : > { %3462 = vperm.xlu1 %6441, %v6773_v61   ;;  %3457 = vperm.xlu0 %6439, %v6775_v55   ;;  %v6787_v58 = vpop.eup %6786  ;;  %v11548_v61 = vld [vmem:[#allocation6_spill] sm:$0xff]  ;;  %v6213_v55 = vld [vmem:[%s10967_s10 + $0x1] ss:$2 sm:$0x3] }
 0x355   : > { %v6789_v25 = vpop.eup %6788  ;;  %v9064_v32 = vrot.slane %v3062_v48, %v11548_v61 }
 0x358   : > { %v2731_v49 = vpop.xlane.xlu0 %2730  ;;  %6442 = vset.pattern.permute.xlu1 %v11544_v59  ;;  %6444 = vset.pattern.permute.xlu0 %v11544_v59 }
 0x359   : > { %3155 = vperm.xlu1 %6442, %v6777_v40   ;;  %v2784_v1 = vadd.f32 %v8905_v34, %v2731_v49  ;;  %3160 = vperm.xlu0 %6444, %v6779_v28   ;;  %v6608_v40 = vld [vmem:[%s10970_s13 + $0x70] ss:$8 sps:$4 sm:$0xff]  }
 0x35a   : > { %4584 = vmatpush1.bf16.msra.mxu1 %v6608_v40 }
 0x35b   : > { %6794 = vtanh.f32 %v2784_v1  ;;  %v9081_v1 = vrot.slane %v3061_v17, %v11548_v61 }
 0x35c   : > { %v2975_v60 = vpop.xlane.xlu0 %2974  ;;  %v2734_v21 = vpop.xlane.xlu1 %2733  ;;  %6796 = vtanh.f32 %v2782_v14 }
 0x35d   : > { %6443 = vset.pattern.permute.xlu1 %v11545_v52  ;;  %3165 = vperm.xlu0 %6444, %v6783_v54   ;;  %v3021_v63 = vadd.f32 %v8905_v34, %v2975_v60  ;;  %v2785_v50 = vadd.f32 %v8905_v34, %v2734_v21  ;;  %v9085_v60 = vrot.slane %v6213_v55, %v11547_v30 }
 0x35e   : > { %3467 = vperm.xlu1 %6443, %v6781_v13   ;;  %v6791_v33 = vpop.eup %6790 }
 0x35f   : > { %6798 = vtanh.f32 %v3021_v63  ;;  %v6793_v26 = vpop.eup %6792  ;;  %v9091_v63 = vrot.slane %v6213_v55, %v11548_v61 }
 0x360   : > { %v2978_v62 = vpop.xlane.xlu1 %2977  ;;  %6800 = vtanh.f32 %v3019_v53 }
 0x361   : > { %6445 = vset.pattern.permute.xlu0 %v11545_v52  ;;  %v3022_v12 = vadd.f32 %v8905_v34, %v2978_v62 }
 0x362   : > { %3472 = vperm.xlu1 %6443, %v6785_v42   ;;  %3477 = vperm.xlu0 %6445, %v6787_v58   ;;  %v2737_v46 = vpop.xlane.xlu0 %2736 }
 0x363   : > { %v2786_v10 = vadd.f32 %v8905_v34, %v2737_v46 }
 0x366   : > { %v2740_v9 = vpop.xlane.xlu1 %2739  ;;  %6446 = vset.pattern.permute.xlu1 %v11544_v59  ;;  %6450 = vset.pattern.permute.xlu0 %v11544_v59  ;;  %v2981_v11 = vpop.xlane.xlu0 %2980 }
 0x367   : > { %v2787_v6 = vadd.f32 %v8905_v34, %v2740_v9  ;;  %3170 = vperm.xlu1 %6446, %v6789_v25   ;;  %3180 = vperm.xlu0 %6450, %v6791_v33   ;;  %v3023_v47 = vadd.f32 %v8905_v34, %v2981_v11 }
 0x368   : > { %v6795_v51 = vpop.eup %6794 }
 0x369   : > { %6802 = vtanh.f32 %v2787_v6  ;;  %v6797_v24 = vpop.eup %6796 }
 0x36a   : > { %6804 = vtanh.f32 %v3020_v27  ;;  %v2984_v2 = vpop.xlane.xlu1 %2983 }
 0x36b   : > { %6447 = vset.pattern.permute.xlu1 %v11545_v52  ;;  %3185 = vperm.xlu0 %6450, %v6795_v51   ;;  %6806 = vtanh.f32 %v2785_v50  ;;  %v3024_v3 = vadd.f32 %v8905_v34, %v2984_v2 }
 0x36c   : > { %3482 = vperm.xlu1 %6447, %v6793_v26   ;;  %v6799_v35 = vpop.eup %6798 }
 0x36d   : > { %v6801_v57 = vpop.eup %6800 }
 0x36f   : > { %6451 = vset.pattern.permute.xlu0 %v11545_v52 }
 0x370   : > { %v2743_v23 = vpop.xlane.xlu0 %2742  ;;  %6448 = vset.pattern.permute.xlu1 %v11544_v59  ;;  %3497 = vperm.xlu0 %6451, %v6799_v35  }
 0x371   : > { %v2788_v41 = vadd.f32 %v8905_v34, %v2743_v23  ;;  %3175 = vperm.xlu1 %6448, %v6797_v24  }
 0x373   : > { %6808 = vtanh.f32 %v2788_v41 }
 0x374   : > { %v2987_v43 = vpop.xlane.xlu0 %2986  ;;  %v2746_v15 = vpop.xlane.xlu1 %2745  ;;  %6456 = vset.pattern.permute.xlu0 %v11544_v59  ;;  %6810 = vtanh.f32 %v3022_v12 }
 0x375   : > { %v3025_v44 = vadd.f32 %v8905_v34, %v2987_v43  ;;  %6449 = vset.pattern.permute.xlu1 %v11545_v52  ;;  %v2789_v16 = vadd.f32 %v8905_v34, %v2746_v15 }
 0x376   : > { %v6803_v0 = vpop.eup %6802  ;;  %3487 = vperm.xlu1 %6449, %v6801_v57   ;;  %v6611_v57 = vld [vmem:[%s10970_s13 + $0x60] ss:$8 sps:$4 sm:$0xff]  }
 0x377   : > { %6812 = vtanh.f32 %v3025_v44  ;;  %3200 = vperm.xlu0 %6456, %v6803_v0   ;;  %v6805_v36 = vpop.eup %6804  ;;  %v6613_v44 = vld [vmem:[%s10970_s13 + $0x64] ss:$8 sps:$4 sm:$0xff]  }
 0x378   : > { %v2990_v18 = vpop.xlane.xlu1 %2989  ;;  %6814 = vtanh.f32 %v2786_v10  ;;  %v6807_v39 = vpop.eup %6806  ;;  %4585 = vmatprep.subr.bf16.mxu1 %v6613_v44 }
 0x379   : > { %6816 = vtanh.f32 %v3023_v47  ;;  %v3026_v21 = vadd.f32 %v8905_v34, %v2990_v18  ;;  %4586 = vmatpush1.bf16.msra.mxu1 %v6611_v57 }
 0x37a   : > { %3492 = vperm.xlu1 %6449, %v6805_v36   ;;  %v2749_v19 = vpop.xlane.xlu0 %2748 }
 0x37b   : > { %v2790_v33 = vadd.f32 %v8905_v34, %v2749_v19 }
 0x37e   : > { %6452 = vset.pattern.permute.xlu1 %v11544_v59  ;;  %v2752_v31 = vpop.xlane.xlu1 %2751  ;;  %v2993_v20 = vpop.xlane.xlu0 %2992 }
 0x37f   : > { %v2791_v37 = vadd.f32 %v8905_v34, %v2752_v31  ;;  %3190 = vperm.xlu1 %6452, %v6807_v39   ;;  %v3027_v41 = vadd.f32 %v8905_v34, %v2993_v20  ;;  %v6614_v20 = vld [vmem:[%s10970_s13 + $0x50] ss:$8 sps:$4 sm:$0xff]  }
 0x380   : > { %v6809_v4 = vpop.eup %6808 }
 0x381   : > { %6818 = vtanh.f32 %v2791_v37  ;;  %3205 = vperm.xlu0 %6456, %v6809_v4   ;;  %v6811_v29 = vpop.eup %6810 }
 0x382   : > { %v9055_v38 = vpop.xlane.xlu1 %2995  ;;  %6820 = vtanh.f32 %v3024_v3 }
 0x383   : > { %6453 = vset.pattern.permute.xlu1 %v11545_v52  ;;  %6822 = vtanh.f32 %v2789_v16  ;;  %v3028_v17 = vadd.f32 %v8905_v34, %v9055_v38 }
 0x384   : > { %v6813_v56 = vpop.eup %6812  ;;  %3502 = vperm.xlu1 %6453, %v6811_v29   ;;  %6824 = vtanh.f32 %v3026_v21 }
 0x385   : > { %6457 = vset.pattern.permute.xlu0 %v11545_v52  ;;  %v6815_v28 = vpop.eup %6814  ;;  %6826 = vtanh.f32 %v2790_v33 }
 0x386   : > { %3517 = vperm.xlu0 %6457, %v6813_v56   ;;  %v3378_v7 = vpop.permute.xlu1 %3377  ;;  %v3066_v49 = vpop.permute.xlu0 %3065  ;;  %6828 = vtanh.f32 %v3027_v41  ;;  %v6616_v56 = vld [vmem:[%s10970_s13 + $0x54] ss:$8 sps:$4 sm:$0xff]  }
 0x387   : > { %v3234_v5 = vmul.f32 %v9059_v45, %v3066_v49  ;;  %v3235_v13 = vmul.f32 %v9064_v32, %v3066_v49  ;;  %v6817_v53 = vpop.eup %6816  ;;  %v3546_v46 = vmul.f32 %v9085_v60, %v3378_v7  ;;  %v3547_v6 = vmul.f32 %v9091_v63, %v3378_v7  ;;  %4587 = vmatprep.subr.bf16.mxu1 %v6616_v56 }
 0x388   : > { %6454 = vset.pattern.permute.xlu1 %v11544_v59  ;;  %4588 = vmatpush1.bf16.msra.mxu1 %v6614_v20  ;;  %6830 = vtanh.f32 %v3028_v17 }
 0x389   : > { %3195 = vperm.xlu1 %6454, %v6815_v28   ;;  %v3309_v14 = vadd.f32 %v9070_v22, %v3234_v5  ;;  %v3310_v25 = vadd.f32 %v9081_v1, %v3235_v13 }
 0x38a   : > { %v3071_v54 = vpop.permute.xlu1 %3070  ;;  %6461 = vset.pattern.permute.xlu0 %v11544_v59  ;;  %v3076_v42 = vpop.permute.xlu0 %3075 }
 0x38b   : > { %v3236_v58 = vmul.f32 %v9059_v45, %v3071_v54  ;;  %v3237_v62 = vmul.f32 %v9064_v32, %v3071_v54  ;;  %v9100_v27 = vadd.f32 %v3546_v46, %v3309_v14  ;;  %v9106_v2 = vadd.f32 %v3547_v6, %v3310_v25 }
 0x38c   : > { %v3238_v15 = vmul.f32 %v9059_v45, %v3076_v42  ;;  %v3239_v0 = vmul.f32 %v9064_v32, %v3076_v42 }
 0x38d   : > { %6455 = vset.pattern.permute.xlu1 %v11545_v52  ;;  %v3311_v11 = vadd.f32 %v9070_v22, %v3236_v58  ;;  %v3312_v50 = vadd.f32 %v9081_v1, %v3237_v62  ;;  %v11189_v18 = vmax.f32 %v9100_v27, 0.0  ;;  %v11192_v4 = vmax.f32 %v9106_v2, 0.0 }
 0x38e   : > { %v6819_v9 = vpop.eup %6818  ;;  %3507 = vperm.xlu1 %6455, %v6817_v53   ;;  %v3081_v26 = vpop.permute.xlu0 %3080  ;;  %v3313_v16 = vadd.f32 %v9070_v22, %v3238_v15  ;;  %v3314_v55 = vadd.f32 %v9081_v1, %v3239_v0  ;;  %v6619_v0 = vld [vmem:[%s10970_s13 + $0x44] ss:$8 sps:$4 sm:$0xff]  }
 0x38f   : > { %3220 = vperm.xlu0 %6461, %v6819_v9   ;;  %v3383_v51 = vpop.permute.xlu1 %3382  ;;  %v6821_v23 = vpop.eup %6820  ;;  %v3240_v47 = vmul.f32 %v9059_v45, %v3081_v26  ;;  %v3241_v19 = vmul.f32 %v9064_v32, %v3081_v26  ;;  %4589 = vmatprep.subr.bf16.mxu1 %v6619_v0 }
 0x390   : > { %v3548_v24 = vmul.f32 %v9085_v60, %v3383_v51  ;;  %v3549_v35 = vmul.f32 %v9091_v63, %v3383_v51  ;;  %v6823_v48 = vpop.eup %6822 }
 0x391   : > { %v3315_v8 = vadd.f32 %v9070_v22, %v3240_v47  ;;  %v3316_v28 = vadd.f32 %v9081_v1, %v3241_v19  ;;  %v6825_v58 = vpop.eup %6824 }
 0x392   : > { %v9109_v12 = vadd.f32 %v3548_v24, %v3311_v11  ;;  %v9111_v43 = vadd.f32 %v3549_v35, %v3312_v50  ;;  %3512 = vperm.xlu1 %6455, %v6821_v23   ;;  %v3086_v10 = vpop.permute.xlu0 %3085 }
 0x393   : > { %v3388_v36 = vpop.permute.xlu1 %3387  ;;  %6463 = vset.pattern.permute.xlu0 %v11545_v52  ;;  %v3242_v21 = vmul.f32 %v9059_v45, %v3086_v10  ;;  %v3243_v54 = vmul.f32 %v9064_v32, %v3086_v10  ;;  %v6827_v10 = vpop.eup %6826 }
 0x394   : > { %v11188_v39 = vmax.f32 %v9109_v12, 0.0  ;;  %v3550_v31 = vmul.f32 %v9085_v60, %v3388_v36  ;;  %v3551_v37 = vmul.f32 %v9091_v63, %v3388_v36  ;;  %v11187_v3 = vmax.f32 %v9111_v43, 0.0  ;;  %v6829_v20 = vpop.eup %6828 }
 0x395   : > { %v3317_v50 = vadd.f32 %v9070_v22, %v3242_v21  ;;  %v3318_v24 = vadd.f32 %v9081_v1, %v3243_v54 }
 0x396   : > { %v3738_v29 = vpack.c.bf16 %v11188_v39, %v11189_v18  ;;  %6458 = vset.pattern.permute.xlu1 %v11544_v59  ;;  %v3091_v7 = vpop.permute.xlu0 %3090  ;;  %v3739_v40 = vpack.c.bf16 %v11187_v3, %v11192_v4  ;;  %v9153_v38 = vadd.f32 %v3550_v31, %v3313_v16  ;;  %v9155_v13 = vadd.f32 %v3551_v37, %v3314_v55  ;;  %v6617_v37 = vld [vmem:[%s10970_s13 + $0x40] ss:$8 sps:$4 sm:$0xff]   ;;  %v6649_v39 = vld [vmem:[%s10970_s13 + $0xa4] ss:$8 sps:$4 sm:$0xff]  }
 0x397   : > { %3210 = vperm.xlu1 %6458, %v6823_v48   ;;  %v3393_v49 = vpop.permute.xlu1 %3392  ;;  %v3244_v62 = vmul.f32 %v9059_v45, %v3091_v7  ;;  %v3245_v53 = vmul.f32 %v9064_v32, %v3091_v7  ;;  %4590 = vmatpush1.bf16.msra.mxu1 %v6617_v37  ;;  %v6622_v37 = vld [vmem:[%s10970_s13 + $0x34] ss:$8 sps:$4 sm:$0xff]  }
 0x398   : > { %v3552_v5 = vmul.f32 %v9085_v60, %v3393_v49  ;;  %v3553_v34 = vmul.f32 %v9091_v63, %v3393_v49  ;;  %3994 = vmatprep.mubr.bf16.mxu0 %v3739_v40  ;;  %v11182_v6 = vmax.f32 %v9155_v13, 0.0  ;;  %v11175_v51 = vmax.f32 %v9153_v38, 0.0  ;;  %4591 = vmatprep.subr.bf16.mxu1 %v6622_v37 }
 0x399   : > { %3995 = vmatmul.mubr.bf16.vlgmr.msra.gmra.mxu0 %v3738_v29  ;;  %v3319_v35 = vadd.f32 %v9070_v22, %v3244_v62  ;;  %v3320_v23 = vadd.f32 %v9081_v1, %v3245_v53 }
 0x39a   : > { %v9159_v14 = vadd.f32 %v3552_v5, %v3315_v8  ;;  %v9161_v42 = vadd.f32 %v3553_v34, %v3316_v28  ;;  %v3096_v25 = vpop.permute.xlu0 %3095 }
 0x39b   : > { %6459 = vset.pattern.permute.xlu1 %v11545_v52  ;;  %v3398_v46 = vpop.permute.xlu1 %3397  ;;  %v3246_v56 = vmul.f32 %v9059_v45, %v3096_v25  ;;  %v3247_v17 = vmul.f32 %v9064_v32, %v3096_v25 }
 0x39c   : > { %v3554_v9 = vmul.f32 %v9085_v60, %v3398_v46  ;;  %v3555_v33 = vmul.f32 %v9091_v63, %v3398_v46  ;;  %3522 = vperm.xlu1 %6459, %v6825_v58   ;;  %v11173_v26 = vmax.f32 %v9161_v42, 0.0  ;;  %v11174_v11 = vmax.f32 %v9159_v14, 0.0 }
 0x39d   : > { %v3321_v21 = vadd.f32 %v9070_v22, %v3246_v56  ;;  %v3322_v54 = vadd.f32 %v9081_v1, %v3247_v17 }
 0x39e   : > { %v3101_v41 = vpop.permute.xlu0 %3100  ;;  %v3741_v44 = vpack.c.bf16 %v11173_v26, %v11182_v6  ;;  %v3740_v15 = vpack.c.bf16 %v11174_v11, %v11175_v51  ;;  %v9187_v36 = vadd.f32 %v3554_v9, %v3317_v50  ;;  %v9189_v47 = vadd.f32 %v3555_v33, %v3318_v24  ;;  %v6831_v50 = vpop.eup %6830 }
 0x39f   : > { %v3403_v57 = vpop.permute.xlu1 %3402  ;;  %v3249_v7 = vmul.f32 %v9064_v32, %v3101_v41 }
 0x3a0   : > { %v3556_v19 = vmul.f32 %v9085_v60, %v3403_v57  ;;  %v3557_v31 = vmul.f32 %v9091_v63, %v3403_v57  ;;  %6460 = vset.pattern.permute.xlu1 %v11544_v59  ;;  %4004 = vmatprep.mubr.bf16.mxu0 %v3741_v44  ;;  %v3248_v59 = vmul.f32 %v9059_v45, %v3101_v41  ;;  %v11172_v49 = vmax.f32 %v9189_v47, 0.0 }
 0x3a1   : > { %3215 = vperm.xlu1 %6460, %v6827_v10   ;;  %4005 = vmatmul.mubr.bf16.gmra.mxu0 %v3740_v15  ;;  %v11171_v40 = vmax.f32 %v9187_v36, 0.0  ;;  %v3324_v46 = vadd.f32 %v9081_v1, %v3249_v7 }
 0x3a2   : > { %v9197_v48 = vadd.f32 %v3556_v19, %v3319_v35  ;;  %v9199_v29 = vadd.f32 %v3557_v31, %v3320_v23  ;;  %v3106_v16 = vpop.permute.xlu0 %3105  ;;  %v3323_v25 = vadd.f32 %v9070_v22, %v3248_v59  ;;  %v6620_v31 = vld [vmem:[%s10970_s13 + $0x30] ss:$8 sps:$4 sm:$0xff]  }
 0x3a3   : > { %v3408_v55 = vpop.permute.xlu1 %3407  ;;  %v3250_v23 = vmul.f32 %v9059_v45, %v3106_v16  ;;  %v3251_v41 = vmul.f32 %v9064_v32, %v3106_v16  ;;  %4592 = vmatpush1.bf16.msra.mxu1 %v6620_v31 }
 0x3a4   : > { %v3558_v8 = vmul.f32 %v9085_v60, %v3408_v55  ;;  %v3559_v28 = vmul.f32 %v9091_v63, %v3408_v55  ;;  %v11169_v5 = vmax.f32 %v9199_v29, 0.0  ;;  %v11170_v34 = vmax.f32 %v9197_v48, 0.0 }
 0x3a5   : > { %6462 = vset.pattern.permute.xlu1 %v11545_v52  ;;  %v3325_v7 = vadd.f32 %v9070_v22, %v3250_v23  ;;  %v6628_v23 = vld [vmem:[%s10970_s13 + $0x14] ss:$8 sps:$4 sm:$0xff]  }
 0x3a6   : > { %3527 = vperm.xlu1 %6462, %v6829_v20   ;;  %v3111_v58 = vpop.permute.xlu0 %3110  ;;  %v3743_v53 = vpack.c.bf16 %v11169_v5, %v11172_v49  ;;  %v3742_v52 = vpack.c.bf16 %v11170_v34, %v11171_v40  ;;  %v9226_v24 = vadd.f32 %v3558_v8, %v3321_v21  ;;  %v9228_v35 = vadd.f32 %v3559_v28, %v3322_v54 }
 0x3a7   : > { %v3413_v62 = vpop.permute.xlu1 %3412  ;;  %v3252_v15 = vmul.f32 %v9059_v45, %v3111_v58  ;;  %v3253_v0 = vmul.f32 %v9064_v32, %v3111_v58  ;;  %v3326_v8 = vadd.f32 %v9081_v1, %v3251_v41 }
 0x3a8   : > { %v3560_v9 = vmul.f32 %v9085_v60, %v3413_v62  ;;  %v3561_v33 = vmul.f32 %v9091_v63, %v3413_v62  ;;  %4014 = vmatprep.mubr.bf16.mxu0 %v3743_v53  ;;  %v11168_v17 = vmax.f32 %v9228_v35, 0.0  ;;  %v11167_v55 = vmax.f32 %v9226_v24, 0.0  ;;  %v6623_v53 = vld [vmem:[%s10970_s13 + $0x20] ss:$8 sps:$4 sm:$0xff]  }
 0x3a9   : > { %4015 = vmatmul.mubr.bf16.gmra.mxu0 %v3742_v52  ;;  %v3327_v28 = vadd.f32 %v9070_v22, %v3252_v15  ;;  %v3328_v21 = vadd.f32 %v9081_v1, %v3253_v0  ;;  %v6625_v52 = vld [vmem:[%s10970_s13 + $0x24] ss:$8 sps:$4 sm:$0xff]  }
 0x3aa   : > { %v9232_v57 = vadd.f32 %v3560_v9, %v3323_v25  ;;  %v9234_v44 = vadd.f32 %v3561_v33, %v3324_v46  ;;  %v3116_v10 = vpop.permute.xlu0 %3115  ;;  %3532 = vperm.xlu1 %6462, %v6831_v50   ;;  %4593 = vmatprep.subr.bf16.mxu1 %v6625_v52 }
 0x3ab   : > { %v3418_v19 = vpop.permute.xlu1 %3417  ;;  %v3255_v41 = vmul.f32 %v9064_v32, %v3116_v10  ;;  %4594 = vmatpush1.bf16.msra.mxu1 %v6623_v53  ;;  %v3254_v31 = vmul.f32 %v9059_v45, %v3116_v10 }
 0x3ac   : > { %v3562_v20 = vmul.f32 %v9085_v60, %v3418_v19  ;;  %v3563_v56 = vmul.f32 %v9091_v63, %v3418_v19  ;;  %v11159_v16 = vmax.f32 %v9234_v44, 0.0  ;;  %v11166_v59 = vmax.f32 %v9232_v57, 0.0  ;;  %v6626_v19 = vld [vmem:[%s10970_s13 + $0x10] ss:$8 sps:$4 sm:$0xff]   ;;  %4595 = vmatprep.subr.bf16.mxu1 %v6628_v23 }
 0x3ae   : > { %v3745_v58 = vpack.c.bf16 %v11159_v16, %v11168_v17  ;;  %v3744_v62 = vpack.c.bf16 %v11166_v59, %v11167_v55  ;;  %v9268_v25 = vadd.f32 %v3562_v20, %v3325_v7  ;;  %v9270_v46 = vadd.f32 %v3563_v56, %v3326_v8  ;;  %v6631_v56 = vld [vmem:[%s10970_s13 + $0x4] ss:$8 sps:$4 sm:$0xff]  }
 0x3af   : > { %v3423_v54 = vpop.permute.xlu1 %3422  ;;  %v3428_v9 = vpop.permute.xlu0 %3427  ;;  %4596 = vmatpush1.bf16.msra.mxu1 %v6626_v19  ;;  %v6634_v19 = vld [vmem:[%s10970_s13 + $0xf4] ss:$8 sps:$4 sm:$0xff]  }
 0x3b0   : > { %v3564_v33 = vmul.f32 %v9085_v60, %v3423_v54  ;;  %v3565_v50 = vmul.f32 %v9091_v63, %v3423_v54  ;;  %4024 = vmatprep.mubr.bf16.mxu0 %v3745_v58  ;;  %v3567_v37 = vmul.f32 %v9091_v63, %v3428_v9  ;;  %v11158_v7 = vmax.f32 %v9270_v46, 0.0  ;;  %4597 = vmatprep.subr.bf16.mxu1 %v6631_v56 }
 0x3b1   : > { %4025 = vmatmul.mubr.bf16.gmra.mxu0 %v3744_v62  ;;  %v3330_v54 = vadd.f32 %v9081_v1, %v3255_v41  ;;  %v3566_v10 = vmul.f32 %v9085_v60, %v3428_v9  ;;  %v6629_v41 = vld [vmem:[%s10970_s13] ss:$8 sps:$4 sm:$0xff]  }
 0x3b2   : > { %v9278_v15 = vadd.f32 %v3564_v33, %v3327_v28  ;;  %v9280_v0 = vadd.f32 %v3565_v50, %v3328_v21  ;;  %v11163_v28 = vmax.f32 %v9268_v25, 0.0  ;;  %v3329_v50 = vadd.f32 %v9070_v22, %v3254_v31 }
 0x3b3   : > { %v3433_v20 = vpop.permute.xlu1 %3432  ;;  %v9307_v23 = vadd.f32 %v3567_v37, %v3330_v54  ;;  %4598 = vmatpush1.bf16.msra.mxu1 %v6629_v41  ;;  %v6640_v41 = vld [vmem:[%s10970_s13 + $0xd4] ss:$8 sps:$4 sm:$0xff]  }
 0x3b4   : > { %v11157_v8 = vmax.f32 %v9280_v0, 0.0  ;;  %v11160_v21 = vmax.f32 %v9278_v15, 0.0  ;;  %v3121_v58 = vpop.permute.xlu0 %3120  ;;  %v9319_v37 = vadd.f32 %v3566_v10, %v3329_v50  ;;  %4599 = vmatprep.subr.bf16.mxu1 %v6634_v19 }
 0x3b5   : > { %v3256_v62 = vmul.f32 %v9059_v45, %v3121_v58  ;;  %v3257_v53 = vmul.f32 %v9064_v32, %v3121_v58  ;;  %v3568_v58 = vmul.f32 %v9085_v60, %v3433_v20 }
 0x3b6   : > { %v3747_v52 = vpack.c.bf16 %v11157_v8, %v11158_v7  ;;  %v3746_v33 = vpack.c.bf16 %v11160_v21, %v11163_v28  ;;  %v3569_v8 = vmul.f32 %v9091_v63, %v3433_v20  ;;  %v6632_v20 = vld [vmem:[%s10970_s13 + $0xf0] ss:$8 sps:$4 sm:$0xff]   ;;  %v11165_v10 = vmax.f32 %v9319_v37, 0.0 }
 0x3b7   : > { %v3443_v9 = vpop.permute.xlu1 %3442  ;;  %v3331_v7 = vadd.f32 %v9070_v22, %v3256_v62  ;;  %v3332_v16 = vadd.f32 %v9081_v1, %v3257_v53  ;;  %v11162_v53 = vmax.f32 %v9307_v23, 0.0  ;;  %4600 = vmatpush2.bf16.msra.mxu1 %v6632_v20 }
 0x3b8   : > { %4034 = vmatprep.mubr.bf16.mxu0 %v3747_v52  ;;  %v3126_v31 = vpop.permute.xlu0 %3125  ;;  %v3572_v55 = vmul.f32 %v9085_v60, %v3443_v9  ;;  %v3573_v17 = vmul.f32 %v9091_v63, %v3443_v9 }
 0x3b9   : > { %4035 = vmatmul.mubr.bf16.gmra.mxu0 %v3746_v33  ;;  %v9321_v54 = vadd.f32 %v3569_v8, %v3332_v16  ;;  %v9323_v56 = vadd.f32 %v3568_v58, %v3331_v7  ;;  %v6637_v16 = vld [vmem:[%s10970_s13 + $0xe4] ss:$8 sps:$4 sm:$0xff]   ;;  %v6635_v33 = vld [vmem:[%s10970_s13 + $0xe0] ss:$8 sps:$4 sm:$0xff]   ;;  %v3258_v58 = vmul.f32 %v9059_v45, %v3126_v31  ;;  %v3259_v19 = vmul.f32 %v9064_v32, %v3126_v31 }
 0x3ba   : > { %4601 = vmatprep.subr.bf16.mxu1 %v6637_v16  ;;  %v6638_v16 = vld [vmem:[%s10970_s13 + $0xd0] ss:$8 sps:$4 sm:$0xff]   ;;  %v6643_v31 = vld [vmem:[%s10970_s13 + $0xc4] ss:$8 sps:$4 sm:$0xff]  }
 0x3bb   : > { %v11161_v52 = vmax.f32 %v9321_v54, 0.0  ;;  %v11164_v21 = vmax.f32 %v9323_v56, 0.0  ;;  %4602 = vmatpush2.bf16.msra.mxu1 %v6635_v33  ;;  %v3334_v59 = vadd.f32 %v9081_v1, %v3259_v19  ;;  %v6641_v19 = vld [vmem:[%s10970_s13 + $0xc0] ss:$8 sps:$4 sm:$0xff]  }
 0x3bc   : > { %v3136_v62 = vpop.permute.xlu1 %3135  ;;  %4603 = vmatprep.subr.bf16.mxu1 %v6640_v41 }
 0x3bd   : > { %v3438_v8 = vpop.permute.xlu0 %3437  ;;  %v3749_v7 = vpack.c.bf16 %v11161_v52, %v11162_v53  ;;  %v3748_v50 = vpack.c.bf16 %v11164_v21, %v11165_v10  ;;  %v3263_v52 = vmul.f32 %v9064_v32, %v3136_v62 }
 0x3be   : > { %v3571_v53 = vmul.f32 %v9091_v63, %v3438_v8 }
 0x3bf   : > { %4044 = vmatprep.mubr.bf16.mxu0 %v3749_v7  ;;  %v3570_v7 = vmul.f32 %v9085_v60, %v3438_v8  ;;  %v3338_v41 = vadd.f32 %v9081_v1, %v3263_v52  ;;  %4604 = vmatpush2.bf16.msra.mxu1 %v6638_v16  ;;  %v3262_v52 = vmul.f32 %v9059_v45, %v3136_v62 }
 0x3c0   : > { %v9372_v40 = vadd.f32 %v3571_v53, %v3334_v59  ;;  %4605 = vmatprep.subr.bf16.mxu1 %v6643_v31 }
 0x3c1   : > { %v3448_v20 = vpop.permute.xlu1 %3447  ;;  %4045 = vmatmul.mubr.bf16.gmra.mxu0 %v3748_v50  ;;  %v3333_v50 = vadd.f32 %v9070_v22, %v3258_v58 }
 0x3c2   : > { %v3131_v28 = vpop.permute.xlu0 %3130  ;;  %v3575_v8 = vmul.f32 %v9091_v63, %v3448_v20  ;;  %v3574_v62 = vmul.f32 %v9085_v60, %v3448_v20  ;;  %v3337_v20 = vadd.f32 %v9070_v22, %v3262_v52 }
 0x3c3   : > { %v3260_v21 = vmul.f32 %v9059_v45, %v3131_v28  ;;  %v3261_v10 = vmul.f32 %v9064_v32, %v3131_v28  ;;  %v9370_v34 = vadd.f32 %v3570_v7, %v3333_v50  ;;  %v11177_v50 = vmax.f32 %v9372_v40, 0.0  ;;  %4606 = vmatpush2.bf16.msra.mxu1 %v6641_v19 }
 0x3c5   : > { %v3453_v33 = vpop.permute.xlu1 %3452  ;;  %v3335_v5 = vadd.f32 %v9070_v22, %v3260_v21  ;;  %v3336_v28 = vadd.f32 %v9081_v1, %v3261_v10  ;;  %v9384_v10 = vadd.f32 %v3575_v8, %v3338_v41 }
 0x3c6   : > { %v3141_v58 = vpop.permute.xlu0 %3140  ;;  %v3577_v59 = vmul.f32 %v9091_v63, %v3453_v33  ;;  %v3576_v8 = vmul.f32 %v9085_v60, %v3453_v33 }
 0x3c7   : > { %v9377_v49 = vadd.f32 %v3572_v55, %v3335_v5  ;;  %v9379_v26 = vadd.f32 %v3573_v17, %v3336_v28  ;;  %v3264_v21 = vmul.f32 %v9059_v45, %v3141_v58  ;;  %v3265_v9 = vmul.f32 %v9064_v32, %v3141_v58 }
 0x3c8   : > { %v11179_v55 = vmax.f32 %v9370_v34, 0.0  ;;  %v11181_v33 = vmax.f32 %v9384_v10, 0.0 }
 0x3c9   : > { %v3339_v53 = vadd.f32 %v9070_v22, %v3264_v21  ;;  %v3340_v7 = vadd.f32 %v9081_v1, %v3265_v9  ;;  %v11176_v5 = vmax.f32 %v9379_v26, 0.0  ;;  %v11178_v17 = vmax.f32 %v9377_v49, 0.0 }
 0x3ca   : > { %v3151_v16 = vpop.permute.xlu1 %3150  ;;  %v3146_v31 = vpop.permute.xlu0 %3145 }
 0x3cb   : > { %v9395_v28 = vadd.f32 %v3577_v59, %v3340_v7  ;;  %v3269_v41 = vmul.f32 %v9064_v32, %v3151_v16  ;;  %v3267_v58 = vmul.f32 %v9064_v32, %v3146_v31  ;;  %v3751_v21 = vpack.c.bf16 %v11176_v5, %v11177_v50 }
 0x3cc   : > { %v3750_v19 = vpack.c.bf16 %v11178_v17, %v11179_v55  ;;  %v9408_v9 = vadd.f32 %v3576_v8, %v3339_v53  ;;  %v3266_v7 = vmul.f32 %v9059_v45, %v3146_v31  ;;  %v3268_v11 = vmul.f32 %v9059_v45, %v3151_v16 }
 0x3cd   : > { %v11180_v59 = vmax.f32 %v9395_v28, 0.0  ;;  %4054 = vmatprep.mubr.bf16.mxu0 %v3751_v21  ;;  %v9414_v5 = vadd.f32 %v3574_v62, %v3337_v20  ;;  %v3344_v50 = vadd.f32 %v9081_v1, %v3269_v41  ;;  %v3342_v8 = vadd.f32 %v9081_v1, %v3267_v58 }
 0x3ce   : > { %4055 = vmatmul.mubr.bf16.gmra.mxu0 %v3750_v19  ;;  %v11185_v41 = vmax.f32 %v9408_v9, 0.0  ;;  %v3341_v19 = vadd.f32 %v9070_v22, %v3266_v7  ;;  %v3343_v20 = vadd.f32 %v9070_v22, %v3268_v11 }
 0x3cf   : > { %v3463_v51 = vpop.permute.xlu1 %3462  ;;  %v3458_v17 = vpop.permute.xlu0 %3457  ;;  %v3753_v53 = vpack.c.bf16 %v11180_v59, %v11181_v33  ;;  %v11186_v58 = vmax.f32 %v9414_v5, 0.0 }
 0x3d0   : > { %v3581_v52 = vmul.f32 %v9091_v63, %v3463_v51  ;;  %v3578_v31 = vmul.f32 %v9085_v60, %v3458_v17  ;;  %v3579_v16 = vmul.f32 %v9091_v63, %v3458_v17  ;;  %v3580_v62 = vmul.f32 %v9085_v60, %v3463_v51 }
 0x3d1   : > { %4064 = vmatprep.mubr.bf16.mxu0 %v3753_v53  ;;  %v3752_v7 = vpack.c.bf16 %v11185_v41, %v11186_v58 }
 0x3d2   : > { %v9426_v21 = vadd.f32 %v3581_v52, %v3344_v50  ;;  %v9431_v55 = vadd.f32 %v3579_v16, %v3342_v8  ;;  %v9435_v6 = vadd.f32 %v3578_v31, %v3341_v19  ;;  %v9438_v17 = vadd.f32 %v3580_v62, %v3343_v20  ;;  %v6646_v20 = vld [vmem:[%s10970_s13 + $0xb4] ss:$8 sps:$4 sm:$0xff]  }
 0x3d3   : > { %4607 = vmatprep.subr.bf16.mxu1 %v6646_v20 }
 0x3d4   : > { %11549 = vst [vmem:[#allocation23_spill] sm:$0xff] %v9426_v21  ;;  %v3156_v59 = vpop.permute.xlu1 %3155  ;;  %v11183_v33 = vmax.f32 %v9426_v21, 0.0  ;;  %v11184_v51 = vmax.f32 %v9431_v55, 0.0  ;;  %v3161_v50 = vpop.permute.xlu0 %3160  ;;  %v11191_v8 = vmax.f32 %v9435_v6, 0.0  ;;  %v11190_v19 = vmax.f32 %v9438_v17, 0.0 }
 0x3d5   : > { %v3270_v52 = vmul.f32 %v9059_v45, %v3156_v59  ;;  %v3271_v53 = vmul.f32 %v9064_v32, %v3156_v59  ;;  %v3272_v31 = vmul.f32 %v9059_v45, %v3161_v50  ;;  %v3273_v16 = vmul.f32 %v9064_v32, %v3161_v50 }
 0x3d6   : > { %v3755_v11 = vpack.c.bf16 %v11183_v33, %v11184_v51  ;;  %4065 = vmatmul.mubr.bf16.gmra.mxu0 %v3752_v7  ;;  %v6644_v7 = vld [vmem:[%s10970_s13 + $0xb0] ss:$8 sps:$4 sm:$0xff]  }
 0x3d7   : > { %v3345_v50 = vadd.f32 %v9070_v22, %v3270_v52  ;;  %4608 = vmatpush2.bf16.msra.mxu1 %v6644_v7  ;;  %v3347_v41 = vadd.f32 %v9070_v22, %v3272_v31  ;;  %v3348_v58 = vadd.f32 %v9081_v1, %v3273_v16  ;;  %v6647_v16 = vld [vmem:[%s10970_s13 + $0xa0] ss:$8 sps:$4 sm:$0xff]  }
 0x3d8   : > { %4074 = vmatprep.mubr.bf16.mxu0 %v3755_v11  ;;  %v3166_v33 = vpop.permute.xlu0 %3165  ;;  %v3346_v11 = vadd.f32 %v9081_v1, %v3271_v53  ;;  %4609 = vmatprep.subr.bf16.mxu1 %v6649_v39 }
 0x3d9   : > { %v3468_v62 = vpop.permute.xlu1 %3467 }
 0x3da   : > { %v3582_v51 = vmul.f32 %v9085_v60, %v3468_v62  ;;  %v3583_v59 = vmul.f32 %v9091_v63, %v3468_v62  ;;  %v3754_v62 = vpack.c.bf16 %v11190_v19, %v11191_v8 }
 0x3db   : > { %4610 = vmatpush2.bf16.msra.mxu1 %v6647_v16 }
 0x3dc   : > { %v9473_v20 = vadd.f32 %v3582_v51, %v3345_v50  ;;  %v9475_v52 = vadd.f32 %v3583_v59, %v3346_v11  ;;  %v3274_v51 = vmul.f32 %v9059_v45, %v3166_v33  ;;  %v3275_v59 = vmul.f32 %v9064_v32, %v3166_v33 }
 0x3dd   : > { %v3473_v3 = vpop.permute.xlu1 %3472  ;;  %v3478_v7 = vpop.permute.xlu0 %3477 }
 0x3de   : > { %11550 = vst [vmem:[#allocation25_spill] sm:$0xff] %v9473_v20  ;;  %11551 = vst [vmem:[#allocation26_spill] sm:$0xff] %v9475_v52  ;;  %v3584_v53 = vmul.f32 %v9085_v60, %v3473_v3  ;;  %v3585_v31 = vmul.f32 %v9091_v63, %v3473_v3  ;;  %4075 = vmatmul.mubr.bf16.gmra.mxu0 %v3754_v62  ;;  %v6652_v3 = vld [vmem:[%s10970_s13 + $0x94] ss:$8 sps:$4 sm:$0xff]   ;;  %v11198_v50 = vmax.f32 %v9473_v20, 0.0  ;;  %v11195_v11 = vmax.f32 %v9475_v52, 0.0 }
 0x3df   : > { %v6650_v62 = vld [vmem:[%s10970_s13 + $0x90] ss:$8 sps:$4 sm:$0xff]   ;;  %v3587_v33 = vmul.f32 %v9091_v63, %v3478_v7  ;;  %4611 = vmatprep.subr.bf16.mxu1 %v6652_v3  ;;  %v3349_v21 = vadd.f32 %v9070_v22, %v3274_v51  ;;  %v6655_v3 = vld [vmem:[%s10970_s13 + $0x84] ss:$8 sps:$4 sm:$0xff]  }
 0x3e0   : > { %v9482_v18 = vadd.f32 %v3584_v53, %v3347_v41  ;;  %v9484_v19 = vadd.f32 %v3585_v31, %v3348_v58  ;;  %v3586_v53 = vmul.f32 %v9085_v60, %v3478_v7  ;;  %4612 = vmatpush2.bf16.msra.mxu1 %v6650_v62  ;;  %v3350_v7 = vadd.f32 %v9081_v1, %v3275_v59 }
 0x3e1   : > { %4613 = vmatprep.subr.bf16.mxu1 %v6655_v3 }
 0x3e2   : > { %11552 = vst [vmem:[#allocation27_spill] sm:$0xff] %v9482_v18  ;;  %11553 = vst [vmem:[#allocation28_spill] sm:$0xff] %v9484_v19  ;;  %v11197_v39 = vmax.f32 %v9482_v18, 0.0  ;;  %v11194_v41 = vmax.f32 %v9484_v19, 0.0  ;;  %v3171_v58 = vpop.permute.xlu1 %3170 }
 0x3e3   : > { %v3276_v31 = vmul.f32 %v9059_v45, %v3171_v58  ;;  %v3277_v16 = vmul.f32 %v9064_v32, %v3171_v58  ;;  %v6653_v58 = vld [vmem:[%s10970_s13 + $0x80] ss:$8 sps:$4 sm:$0xff]  }
 0x3e4   : > { %v3757_v8 = vpack.c.bf16 %v11194_v41, %v11195_v11  ;;  %v3756_v4 = vpack.c.bf16 %v11197_v39, %v11198_v50  ;;  %v9518_v41 = vadd.f32 %v3586_v53, %v3349_v21  ;;  %v9520_v11 = vadd.f32 %v3587_v33, %v3350_v7  ;;  %4614 = vmatpush2.bf16.msra.mxu1 %v6653_v58  ;;  %v3181_v33 = vpop.permute.xlu0 %3180 }
 0x3e5   : > { %v3351_v62 = vadd.f32 %v9070_v22, %v3276_v31  ;;  %v3352_v51 = vadd.f32 %v9081_v1, %v3277_v16  ;;  %v3280_v58 = vmul.f32 %v9059_v45, %v3181_v33 }
 0x3e6   : > { %4084 = vmatprep.mubr.bf16.mxu0 %v3757_v8  ;;  %11554 = vst [vmem:[#allocation29_spill] sm:$0xff] %v9518_v41  ;;  %11555 = vst [vmem:[#allocation30_spill] sm:$0xff] %v9520_v11  ;;  %v11203_v21 = vmax.f32 %v9518_v41, 0.0  ;;  %v11201_v53 = vmax.f32 %v9520_v11, 0.0 }
 0x3e7   : > { %v3483_v19 = vpop.permute.xlu1 %3482  ;;  %4085 = vmatmul.mubr.bf16.gmra.mxu0 %v3756_v4 }
 0x3e8   : > { %v3588_v59 = vmul.f32 %v9085_v60, %v3483_v19  ;;  %v3589_v39 = vmul.f32 %v9091_v63, %v3483_v19 }
 0x3ea   : > { %v9526_v8 = vadd.f32 %v3588_v59, %v3351_v62  ;;  %v9528_v50 = vadd.f32 %v3589_v39, %v3352_v51  ;;  %v3281_v62 = vmul.f32 %v9064_v32, %v3181_v33  ;;  %v3186_v59 = vpop.permute.xlu0 %3185 }
 0x3ec   : > { %11556 = vst [vmem:[#allocation7_spill] sm:$0xff] %v9526_v8  ;;  %11557 = vst [vmem:[#allocation31_spill] sm:$0xff] %v9528_v50  ;;  %v11202_v7 = vmax.f32 %v9526_v8, 0.0  ;;  %v11200_v31 = vmax.f32 %v9528_v50, 0.0  ;;  %v3176_v16 = vpop.permute.xlu1 %3175 }
 0x3ed   : > { %v3278_v39 = vmul.f32 %v9059_v45, %v3176_v16  ;;  %v3279_v3 = vmul.f32 %v9064_v32, %v3176_v16  ;;  %v3356_v16 = vadd.f32 %v9081_v1, %v3281_v62 }
 0x3ee   : > { %v3759_v4 = vpack.c.bf16 %v11200_v31, %v11201_v53  ;;  %v3758_v19 = vpack.c.bf16 %v11202_v7, %v11203_v21  ;;  %v3355_v21 = vadd.f32 %v9070_v22, %v3280_v58  ;;  %v3498_v11 = vpop.permute.xlu0 %3497 }
 0x3ef   : > { %v3353_v53 = vadd.f32 %v9070_v22, %v3278_v39  ;;  %v3354_v7 = vadd.f32 %v9081_v1, %v3279_v3  ;;  %v3282_v39 = vmul.f32 %v9059_v45, %v3186_v59  ;;  %v3283_v3 = vmul.f32 %v9064_v32, %v3186_v59 }
 0x3f0   : > { %4094 = vmatprep.mubr.bf16.mxu0 %v3759_v4  ;;  %v3594_v62 = vmul.f32 %v9085_v60, %v3498_v11 }
 0x3f1   : > { %4095 = vmatmul.mubr.bf16.gmra.mxu0 %v3758_v19  ;;  %v3488_v51 = vpop.permute.xlu1 %3487  ;;  %v3358_v20 = vadd.f32 %v9081_v1, %v3283_v3 }
 0x3f2   : > { %v3590_v50 = vmul.f32 %v9085_v60, %v3488_v51  ;;  %v3591_v31 = vmul.f32 %v9091_v63, %v3488_v51 }
 0x3f4   : > { %v9552_v8 = vadd.f32 %v3590_v50, %v3353_v53  ;;  %v9554_v41 = vadd.f32 %v3591_v31, %v3354_v7 }
 0x3f5   : > { %v3493_v4 = vpop.permute.xlu1 %3492 }
 0x3f6   : > { %11558 = vst [vmem:[#allocation8_spill] sm:$0xff] %v9552_v8  ;;  %11559 = vst [vmem:[#allocation11_spill] sm:$0xff] %v9554_v41  ;;  %v3592_v33 = vmul.f32 %v9085_v60, %v3493_v4  ;;  %v3593_v19 = vmul.f32 %v9091_v63, %v3493_v4  ;;  %v11215_v58 = vmax.f32 %v9552_v8, 0.0  ;;  %v11212_v50 = vmax.f32 %v9554_v41, 0.0 }
 0x3f8   : > { %v9558_v18 = vadd.f32 %v3592_v33, %v3355_v21  ;;  %v9560_v51 = vadd.f32 %v3593_v19, %v3356_v16  ;;  %v3595_v21 = vmul.f32 %v9091_v63, %v3498_v11  ;;  %v3357_v19 = vadd.f32 %v9070_v22, %v3282_v39 }
 0x3fa   : > { %11560 = vst [vmem:[#allocation10_spill] sm:$0xff] %v9558_v18  ;;  %11561 = vst [vmem:[#allocation9_spill] sm:$0xff] %v9560_v51  ;;  %v11214_v53 = vmax.f32 %v9558_v18, 0.0  ;;  %v11211_v7 = vmax.f32 %v9560_v51, 0.0  ;;  %v3191_v31 = vpop.permute.xlu1 %3190  ;;  %v9582_v11 = vadd.f32 %v3594_v62, %v3357_v19  ;;  %v9584_v52 = vadd.f32 %v3595_v21, %v3358_v20 }
 0x3fb   : > { %v3284_v16 = vmul.f32 %v9059_v45, %v3191_v31  ;;  %v3285_v4 = vmul.f32 %v9064_v32, %v3191_v31 }
 0x3fc   : > { %v3761_v59 = vpack.c.bf16 %v11211_v7, %v11212_v50  ;;  %v3760_v33 = vpack.c.bf16 %v11214_v53, %v11215_v58  ;;  %11562 = vst [vmem:[#allocation12_spill] sm:$0xff] %v9582_v11  ;;  %11563 = vst [vmem:[#allocation13_spill] sm:$0xff] %v9584_v52  ;;  %v11219_v3 = vmax.f32 %v9582_v11, 0.0  ;;  %v11217_v62 = vmax.f32 %v9584_v52, 0.0 }
 0x3fd   : > { %v3359_v41 = vadd.f32 %v9070_v22, %v3284_v16  ;;  %v3360_v7 = vadd.f32 %v9081_v1, %v3285_v4  ;;  %v3201_v16 = vpop.permute.xlu0 %3200 }
 0x3fe   : > { %4104 = vmatprep.mubr.bf16.mxu0 %v3761_v59 }
 0x3ff   : > { %4105 = vmatmul.mubr.bf16.gmra.mxu0 %v3760_v33  ;;  %v3503_v31 = vpop.permute.xlu1 %3502  ;;  %v3289_v33 = vmul.f32 %v9064_v32, %v3201_v16 }
 0x400   : > { %v3596_v50 = vmul.f32 %v9085_v60, %v3503_v31  ;;  %v3597_v51 = vmul.f32 %v9091_v63, %v3503_v31 }
 0x401   : > { %v3206_v31 = vpop.permute.xlu0 %3205 }
 0x402   : > { %v9590_v53 = vadd.f32 %v3596_v50, %v3359_v41  ;;  %v9592_v39 = vadd.f32 %v3597_v51, %v3360_v7  ;;  %v3288_v7 = vmul.f32 %v9059_v45, %v3201_v16 }
 0x404   : > { %11564 = vst [vmem:[#allocation14_spill] sm:$0xff] %v9590_v53  ;;  %11565 = vst [vmem:[#allocation15_spill] sm:$0xff] %v9592_v39  ;;  %v11218_v20 = vmax.f32 %v9590_v53, 0.0  ;;  %v11216_v21 = vmax.f32 %v9592_v39, 0.0  ;;  %v3196_v59 = vpop.permute.xlu1 %3195 }
 0x405   : > { %v3286_v51 = vmul.f32 %v9059_v45, %v3196_v59  ;;  %v3287_v50 = vmul.f32 %v9064_v32, %v3196_v59  ;;  %v3364_v59 = vadd.f32 %v9081_v1, %v3289_v33  ;;  %v3518_v11 = vpop.permute.xlu0 %3517 }
 0x406   : > { %v3763_v4 = vpack.c.bf16 %v11216_v21, %v11217_v62  ;;  %v3762_v41 = vpack.c.bf16 %v11218_v20, %v11219_v3  ;;  %v3363_v3 = vadd.f32 %v9070_v22, %v3288_v7  ;;  %v3602_v33 = vmul.f32 %v9085_v60, %v3518_v11 }
 0x407   : > { %v3361_v62 = vadd.f32 %v9070_v22, %v3286_v51  ;;  %v3362_v20 = vadd.f32 %v9081_v1, %v3287_v50  ;;  %v3290_v51 = vmul.f32 %v9059_v45, %v3206_v31  ;;  %v3291_v50 = vmul.f32 %v9064_v32, %v3206_v31 }
 0x408   : > { %4114 = vmatprep.mubr.bf16.mxu0 %v3763_v4 }
 0x409   : > { %4115 = vmatmul.mubr.bf16.gmra.mxu0 %v3762_v41  ;;  %v3508_v19 = vpop.permute.xlu1 %3507  ;;  %v3366_v18 = vadd.f32 %v9081_v1, %v3291_v50 }
 0x40a   : > { %v3598_v58 = vmul.f32 %v9085_v60, %v3508_v19  ;;  %v3599_v21 = vmul.f32 %v9091_v63, %v3508_v19 }
 0x40c   : > { %v9616_v39 = vadd.f32 %v3598_v58, %v3361_v62  ;;  %v9618_v53 = vadd.f32 %v3599_v21, %v3362_v20 }
 0x40d   : > { %v3513_v4 = vpop.permute.xlu1 %3512 }
 0x40e   : > { %11566 = vst [vmem:[#allocation18_spill] sm:$0xff] %v9618_v53  ;;  %v3600_v16 = vmul.f32 %v9085_v60, %v3513_v4  ;;  %v3601_v41 = vmul.f32 %v9091_v63, %v3513_v4  ;;  %v11235_v7 = vmax.f32 %v9616_v39, 0.0  ;;  %v11228_v58 = vmax.f32 %v9618_v53, 0.0 }
 0x410   : > { %v9622_v52 = vadd.f32 %v3600_v16, %v3363_v3  ;;  %v9624_v19 = vadd.f32 %v3601_v41, %v3364_v59  ;;  %v3603_v3 = vmul.f32 %v9091_v63, %v3518_v11  ;;  %v3365_v41 = vadd.f32 %v9070_v22, %v3290_v51 }
 0x412   : > { %11567 = vst [vmem:[#allocation16_spill] sm:$0xff] %v9624_v19  ;;  %v11230_v62 = vmax.f32 %v9622_v52, 0.0  ;;  %v11227_v20 = vmax.f32 %v9624_v19, 0.0  ;;  %v3211_v21 = vpop.permute.xlu1 %3210  ;;  %v9646_v11 = vadd.f32 %v3602_v33, %v3365_v41  ;;  %v9648_v8 = vadd.f32 %v3603_v3, %v3366_v18 }
 0x413   : > { %v3292_v59 = vmul.f32 %v9059_v45, %v3211_v21  ;;  %v3293_v4 = vmul.f32 %v9064_v32, %v3211_v21 }
 0x414   : > { %v3765_v31 = vpack.c.bf16 %v11227_v20, %v11228_v58  ;;  %v3764_v16 = vpack.c.bf16 %v11230_v62, %v11235_v7  ;;  %v11234_v50 = vmax.f32 %v9646_v11, 0.0  ;;  %v11232_v33 = vmax.f32 %v9648_v8, 0.0 }
 0x415   : > { %v3367_v53 = vadd.f32 %v9070_v22, %v3292_v59  ;;  %v3368_v20 = vadd.f32 %v9081_v1, %v3293_v4 }
 0x416   : > { %4124 = vmatprep.mubr.bf16.mxu0 %v3765_v31 }
 0x417   : > { %4125 = vmatmul.mubr.bf16.gmra.mxu0 %v3764_v16  ;;  %v3523_v21 = vpop.permute.xlu1 %3522 }
 0x418   : > { %v3604_v58 = vmul.f32 %v9085_v60, %v3523_v21  ;;  %v3605_v19 = vmul.f32 %v9091_v63, %v3523_v21 }
 0x41a   : > { %v9654_v62 = vadd.f32 %v3604_v58, %v3367_v53  ;;  %v9656_v51 = vadd.f32 %v3605_v19, %v3368_v20  ;;  %v3221_v19 = vpop.permute.xlu0 %3220 }
 0x41b   : > { %v3296_v16 = vmul.f32 %v9059_v45, %v3221_v19  ;;  %v3297_v41 = vmul.f32 %v9064_v32, %v3221_v19 }
 0x41c   : > { %v11233_v18 = vmax.f32 %v9654_v62, 0.0  ;;  %v11231_v3 = vmax.f32 %v9656_v51, 0.0  ;;  %v3216_v31 = vpop.permute.xlu1 %3215 }
 0x41d   : > { %v3294_v58 = vmul.f32 %v9059_v45, %v3216_v31  ;;  %v3295_v20 = vmul.f32 %v9064_v32, %v3216_v31 }
 0x41e   : > { %v3767_v59 = vpack.c.bf16 %v11231_v3, %v11232_v33  ;;  %v3766_v53 = vpack.c.bf16 %v11233_v18, %v11234_v50  ;;  %v3372_v50 = vadd.f32 %v9081_v1, %v3297_v41 }
 0x41f   : > { %v3369_v33 = vadd.f32 %v9070_v22, %v3294_v58  ;;  %v3370_v18 = vadd.f32 %v9081_v1, %v3295_v20 }
 0x420   : > { %4134 = vmatprep.mubr.bf16.mxu0 %v3767_v59  ;;  %v3371_v59 = vadd.f32 %v9070_v22, %v3296_v16  ;;  %v11568_v16 = vmax.f32 %v9106_v2, 0.0 }
 0x421   : > { %4135 = vmatmul.mubr.bf16.gmra.mxu0 %v3766_v53  ;;  %v3528_v4 = vpop.permute.xlu1 %3527 }
 0x422   : > { %v3606_v21 = vmul.f32 %v9085_v60, %v3528_v4  ;;  %v3607_v3 = vmul.f32 %v9091_v63, %v3528_v4 }
 0x424   : > { %v9680_v31 = vadd.f32 %v3606_v21, %v3369_v33  ;;  %v9682_v53 = vadd.f32 %v3607_v3, %v3370_v18  ;;  %v4219_v18 = vld [vmem:[%s10969_s12] sm:$0x3] }
 0x425   : > { %v3533_v7 = vpop.permute.xlu1 %3532  ;;  %v9714_v21 = vrot.slane %v4219_v18, %v11548_v61 }
 0x426   : > { %v3608_v45 = vmul.f32 %v9085_v60, %v3533_v7  ;;  %v3609_v32 = vmul.f32 %v9091_v63, %v3533_v7  ;;  %v11238_v58 = vmax.f32 %v9680_v31, 0.0  ;;  %v11239_v20 = vmax.f32 %v9682_v53, 0.0  ;;  %v6656_v63 = vld [vmem:[%s10972_s15 + $0x70] ss:$8 sps:$4 sm:$0xff]   ;;  %v6658_v7 = vld [vmem:[%s10972_s15 + $0x74] ss:$8 sps:$4 sm:$0xff]  }
 0x427   : > { %5216 = vmatprep.subr.bf16.mxu0 %v6658_v7 }
 0x428   : > { %v9686_v19 = vadd.f32 %v3608_v45, %v3371_v59  ;;  %v9688_v4 = vadd.f32 %v3609_v32, %v3372_v50  ;;  %5217 = vmatpush1.bf16.msra.mxu0 %v6656_v63  ;;  %v11569_v59 = vmax.f32 %v9100_v27, 0.0  ;;  %v9719_v32 = vrot.slane %v4219_v18, %v11547_v30  ;;  %v6659_v18 = vld [vmem:[%s10972_s15 + $0x60] ss:$8 sps:$4 sm:$0xff]  }
 0x42a   : > { %v11237_v22 = vmax.f32 %v9686_v19, 0.0  ;;  %v11236_v1 = vmax.f32 %v9688_v4, 0.0 }
 0x42c   : > { %v3769_v33 = vpack.c.bf16 %v11236_v1, %v11239_v20  ;;  %v3768_v60 = vpack.c.bf16 %v11237_v22, %v11238_v58 }
 0x42e   : > { %4144 = vmatprep.mubr.bf16.mxu0 %v3769_v33 }
 0x42f   : > { %4145 = vmatmul.mubr.bf16.gmra.mxu0 %v3768_v60  ;;  %v11570_v60 = vmax.f32 %v9109_v12, 0.0  ;;  %v6661_v12 = vld [vmem:[%s10972_s15 + $0x64] ss:$8 sps:$4 sm:$0xff]  }
 0x430   : > { %5218 = vmatprep.subr.bf16.mxu0 %v6661_v12 }
 0x431   : > { %5219 = vmatpush1.bf16.msra.mxu0 %v6659_v18 }
 0x459   : > { %v3996_v50 = vpop.f32.mrf.mxu0 }
 0x45a   : > { %v4155_v45 = vadd.f32 %v3996_v50, %v11569_v59 }
 0x45b   : > { %v3998_v3 = vpop.f32.mrf.mxu0 }
 0x45c   : > { %v4156_v41 = vadd.f32 %v3998_v3, %v11568_v16  ;;  %v11571_v3 = vmax.f32 %v9111_v43, 0.0  ;;  %v9732_v27 = vadd.f32 %v9719_v32, %v4155_v45 }
 0x45d   : > { %v4000_v33 = vpop.f32.mrf.mxu0 }
 0x45e   : > { %v4157_v63 = vadd.f32 %v4000_v33, %v11570_v60  ;;  %v9724_v1 = vadd.f32 %v9714_v21, %v4156_v41  ;;  %v11572_v60 = vmax.f32 %v9155_v13, 0.0 }
 0x45f   : > { %v4002_v7 = vpop.f32.mrf.mxu0 }
 0x460   : > { %v9727_v2 = vadd.f32 %v9719_v32, %v4157_v63  ;;  %v4158_v16 = vadd.f32 %v4002_v7, %v11571_v3  ;;  %v11243_v43 = vmax.f32 %v9724_v1, 0.0  ;;  %v11242_v7 = vmax.f32 %v9732_v27, 0.0 }
 0x461   : > { %v4006_v50 = vpop.f32.mrf.mxu0  ;;  %v11573_v3 = vmax.f32 %v9153_v38, 0.0 }
 0x462   : > { %v9741_v41 = vadd.f32 %v9714_v21, %v4158_v16  ;;  %v11241_v59 = vmax.f32 %v9727_v2, 0.0  ;;  %v11574_v16 = vmax.f32 %v9159_v14, 0.0  ;;  %v11575_v14 = vmax.f32 %v9161_v42, 0.0  ;;  %v6664_v42 = vld [vmem:[%s10972_s15 + $0x54] ss:$8 sps:$4 sm:$0xff]  }
 0x463   : > { %v4008_v33 = vpop.f32.mrf.mxu0  ;;  %v4159_v22 = vadd.f32 %v4006_v50, %v11573_v3  ;;  %5220 = vmatprep.subr.bf16.mxu0 %v6664_v42 }
 0x464   : > { %v11240_v45 = vmax.f32 %v9741_v41, 0.0  ;;  %v4160_v63 = vadd.f32 %v4008_v33, %v11572_v60  ;;  %v4359_v13 = vpack.c.bf16 %v11241_v59, %v11242_v7 }
 0x465   : > { %v4010_v58 = vpop.f32.mrf.mxu0  ;;  %v9770_v50 = vadd.f32 %v9719_v32, %v4159_v22 }
 0x466   : > { %v4161_v20 = vadd.f32 %v4010_v58, %v11574_v16  ;;  %v4360_v12 = vpack.c.bf16 %v11240_v45, %v11243_v43  ;;  %v9762_v33 = vadd.f32 %v9714_v21, %v4160_v63  ;;  %v11578_v43 = vmax.f32 %v9197_v48, 0.0 }
 0x467   : > { %v4012_v18 = vpop.f32.mrf.mxu0 }
 0x468   : > { %v9765_v38 = vadd.f32 %v9719_v32, %v4161_v20  ;;  %v4162_v58 = vadd.f32 %v4012_v18, %v11575_v14  ;;  %4615 = vmatprep.mubr.bf16.mxu1 %v4360_v12  ;;  %v6662_v20 = vld [vmem:[%s10972_s15 + $0x50] ss:$8 sps:$4 sm:$0xff]   ;;  %v11246_v63 = vmax.f32 %v9762_v33, 0.0  ;;  %v11576_v12 = vmax.f32 %v9189_v47, 0.0  ;;  %v6667_v18 = vld [vmem:[%s10972_s15 + $0x44] ss:$8 sps:$4 sm:$0xff]  }
 0x469   : > { %v4016_v60 = vpop.f32.mrf.mxu0  ;;  %4616 = vmatmul.mubr.bf16.vlgmr.msra.gmra.mxu1 %v4359_v13  ;;  %v11245_v14 = vmax.f32 %v9770_v50, 0.0  ;;  %5221 = vmatpush1.bf16.msra.mxu0 %v6662_v20 }
 0x46a   : > { %v9773_v3 = vadd.f32 %v9714_v21, %v4162_v58  ;;  %v11577_v58 = vmax.f32 %v9187_v36, 0.0  ;;  %v11579_v36 = vmax.f32 %v9765_v38, 0.0  ;;  %5222 = vmatprep.subr.bf16.mxu0 %v6667_v18 }
 0x46b   : > { %v4018_v45 = vpop.f32.mrf.mxu0 }
 0x46c   : > { %v11244_v22 = vmax.f32 %v9773_v3, 0.0  ;;  %v4164_v13 = vadd.f32 %v4018_v45, %v11576_v12  ;;  %v4163_v59 = vadd.f32 %v4016_v60, %v11577_v58  ;;  %v6665_v45 = vld [vmem:[%s10972_s15 + $0x40] ss:$8 sps:$4 sm:$0xff]   ;;  %v4361_v60 = vpack.c.bf16 %v11579_v36, %v11245_v14 }
 0x46d   : > { %v4020_v7 = vpop.f32.mrf.mxu0  ;;  %5223 = vmatpush1.bf16.msra.mxu0 %v6665_v45 }
 0x46e   : > { %v4165_v16 = vadd.f32 %v4020_v7, %v11578_v43  ;;  %v4362_v47 = vpack.c.bf16 %v11244_v22, %v11246_v63  ;;  %v9806_v48 = vadd.f32 %v9714_v21, %v4164_v13  ;;  %v11580_v7 = vmax.f32 %v9199_v29, 0.0 }
 0x46f   : > { %v4022_v12 = vpop.f32.mrf.mxu0  ;;  %v9814_v42 = vadd.f32 %v9719_v32, %v4163_v59  ;;  %v11581_v29 = vmax.f32 %v9228_v35, 0.0  ;;  %v11582_v59 = vmax.f32 %v9226_v24, 0.0 }
 0x470   : > { %v9809_v43 = vadd.f32 %v9719_v32, %v4165_v16  ;;  %v4166_v20 = vadd.f32 %v4022_v12, %v11580_v7  ;;  %4625 = vmatprep.mubr.bf16.mxu1 %v4362_v47  ;;  %v11250_v36 = vmax.f32 %v9806_v48, 0.0 }
 0x471   : > { %v4026_v58 = vpop.f32.mrf.mxu0  ;;  %4626 = vmatmul.mubr.bf16.gmra.mxu1 %v4361_v60  ;;  %v11249_v47 = vmax.f32 %v9814_v42, 0.0 }
 0x472   : > { %v9817_v22 = vadd.f32 %v9714_v21, %v4166_v20  ;;  %v11248_v18 = vmax.f32 %v9809_v43, 0.0  ;;  %v4167_v7 = vadd.f32 %v4026_v58, %v11582_v59  ;;  %v11583_v20 = vmax.f32 %v9232_v57, 0.0 }
 0x473   : > { %v4028_v13 = vpop.f32.mrf.mxu0  ;;  %v11584_v57 = vmax.f32 %v9234_v44, 0.0 }
 0x474   : > { %v11247_v16 = vmax.f32 %v9817_v22, 0.0  ;;  %v4168_v12 = vadd.f32 %v4028_v13, %v11581_v29  ;;  %v4363_v35 = vpack.c.bf16 %v11248_v18, %v11249_v47  ;;  %v9846_v29 = vadd.f32 %v9719_v32, %v4167_v7 }
 0x475   : > { %v4030_v60 = vpop.f32.mrf.mxu0  ;;  %v11587_v47 = vmax.f32 %v9278_v15, 0.0 }
 0x476   : > { %v4169_v14 = vadd.f32 %v4030_v60, %v11583_v20  ;;  %v4364_v45 = vpack.c.bf16 %v11247_v16, %v11250_v36  ;;  %v9838_v13 = vadd.f32 %v9714_v21, %v4168_v12  ;;  %v6668_v12 = vld [vmem:[%s10972_s15 + $0x30] ss:$8 sps:$4 sm:$0xff]  }
 0x477   : > { %v4032_v63 = vpop.f32.mrf.mxu0 }
 0x478   : > { %v9841_v24 = vadd.f32 %v9719_v32, %v4169_v14  ;;  %v4170_v58 = vadd.f32 %v4032_v63, %v11584_v57  ;;  %4635 = vmatprep.mubr.bf16.mxu1 %v4364_v45  ;;  %v6670_v14 = vld [vmem:[%s10972_s15 + $0x34] ss:$8 sps:$4 sm:$0xff]   ;;  %v11253_v20 = vmax.f32 %v9838_v13, 0.0  ;;  %v11585_v45 = vmax.f32 %v9270_v46, 0.0  ;;  %v6671_v46 = vld [vmem:[%s10972_s15 + $0x20] ss:$8 sps:$4 sm:$0xff]  }
 0x479   : > { %v4036_v59 = vpop.f32.mrf.mxu0  ;;  %4636 = vmatmul.mubr.bf16.gmra.mxu1 %v4363_v35  ;;  %5224 = vmatprep.subr.bf16.mxu0 %v6670_v14  ;;  %v11252_v57 = vmax.f32 %v9846_v29, 0.0  ;;  %v6673_v14 = vld [vmem:[%s10972_s15 + $0x24] ss:$8 sps:$4 sm:$0xff]  }
 0x47a   : > { %v9849_v60 = vadd.f32 %v9714_v21, %v4170_v58  ;;  %v11586_v58 = vmax.f32 %v9268_v25, 0.0  ;;  %5225 = vmatpush1.bf16.msra.mxu0 %v6668_v12 }
 0x47b   : > { %v4038_v63 = vpop.f32.mrf.mxu0  ;;  %5226 = vmatprep.subr.bf16.mxu0 %v6673_v14 }
 0x47c   : > { %v11251_v7 = vmax.f32 %v9849_v60, 0.0  ;;  %v4172_v35 = vadd.f32 %v4038_v63, %v11585_v45  ;;  %v4171_v16 = vadd.f32 %v4036_v59, %v11586_v58  ;;  %v11588_v59 = vmax.f32 %v9841_v24, 0.0 }
 0x47d   : > { %v4040_v18 = vpop.f32.mrf.mxu0  ;;  %v11589_v63 = vmax.f32 %v9280_v0, 0.0  ;;  %v6679_v0 = vld [vmem:[%s10972_s15 + $0x4] ss:$8 sps:$4 sm:$0xff]  }
 0x47e   : > { %v4173_v36 = vadd.f32 %v4040_v18, %v11587_v47  ;;  %v4366_v44 = vpack.c.bf16 %v11251_v7, %v11253_v20  ;;  %v4365_v15 = vpack.c.bf16 %v11588_v59, %v11252_v57  ;;  %v6676_v18 = vld [vmem:[%s10972_s15 + $0x14] ss:$8 sps:$4 sm:$0xff]   ;;  %v9885_v47 = vadd.f32 %v9714_v21, %v4172_v35  ;;  %5227 = vmatpush1.bf16.msra.mxu0 %v6671_v46  ;;  %v6674_v59 = vld [vmem:[%s10972_s15 + $0x10] ss:$8 sps:$4 sm:$0xff]   ;;  %v6677_v57 = vld [vmem:[%s10972_s15] ss:$8 sps:$4 sm:$0xff]  }
 0x47f   : > { %v4042_v25 = vpop.f32.mrf.mxu0  ;;  %v9893_v58 = vadd.f32 %v9719_v32, %v4171_v16  ;;  %5228 = vmatprep.subr.bf16.mxu0 %v6676_v18  ;;  %v11590_v46 = vmax.f32 %v9307_v23, 0.0  ;;  %v11592_v20 = vmax.f32 %v9323_v56, 0.0 }
 0x480   : > { %v9888_v12 = vadd.f32 %v9719_v32, %v4173_v36  ;;  %v4174_v45 = vadd.f32 %v4042_v25, %v11589_v63  ;;  %4645 = vmatprep.mubr.bf16.mxu1 %v4366_v44  ;;  %v11268_v16 = vmax.f32 %v9885_v47, 0.0  ;;  %v11591_v63 = vmax.f32 %v9319_v37, 0.0  ;;  %v6682_v37 = vld [vmem:[%s10972_s15 + $0xf4] ss:$8 sps:$4 sm:$0xff]  }
 0x481   : > { %v4046_v7 = vpop.f32.mrf.mxu0  ;;  %4646 = vmatmul.mubr.bf16.gmra.mxu1 %v4365_v15  ;;  %v11259_v15 = vmax.f32 %v9893_v58, 0.0 }
 0x482   : > { %v9899_v35 = vadd.f32 %v9714_v21, %v4174_v45  ;;  %v4175_v45 = vadd.f32 %v4046_v7, %v11591_v63  ;;  %5229 = vmatpush1.bf16.msra.mxu0 %v6674_v59  ;;  %v11593_v7 = vmax.f32 %v9888_v12, 0.0 }
 0x483   : > { %v4048_v44 = vpop.f32.mrf.mxu0  ;;  %5230 = vmatprep.subr.bf16.mxu0 %v6679_v0 }
 0x484   : > { %v11256_v14 = vmax.f32 %v9899_v35, 0.0  ;;  %v4176_v25 = vadd.f32 %v4048_v44, %v11590_v46  ;;  %v4367_v59 = vpack.c.bf16 %v11593_v7, %v11259_v15  ;;  %v9937_v0 = vadd.f32 %v9719_v32, %v4175_v45  ;;  %v6689_v15 = vld [vmem:[%s10972_s15 + $0xc0] ss:$8 sps:$4 sm:$0xff]  }
 0x485   : > { %v4050_v18 = vpop.f32.mrf.mxu0 }
 0x486   : > { %v4177_v36 = vadd.f32 %v4050_v18, %v11592_v20  ;;  %v4368_v23 = vpack.c.bf16 %v11256_v14, %v11268_v16  ;;  %v9929_v46 = vadd.f32 %v9714_v21, %v4176_v25  ;;  %v11594_v20 = vmax.f32 %v9321_v54, 0.0  ;;  %5231 = vmatpush1.bf16.msra.mxu0 %v6677_v57  ;;  %v6680_v18 = vld [vmem:[%s10972_s15 + $0xf0] ss:$8 sps:$4 sm:$0xff]  }
 0x487   : > { %v4052_v44 = vpop.f32.mrf.mxu0  ;;  %5232 = vmatprep.subr.bf16.mxu0 %v6682_v37  ;;  %v11258_v57 = vmax.f32 %v9937_v0, 0.0  ;;  %v11596_v14 = vmax.f32 %v9370_v34, 0.0 }
 0x488   : > { %v9932_v56 = vadd.f32 %v9719_v32, %v4177_v36  ;;  %v4178_v63 = vadd.f32 %v4052_v44, %v11594_v20  ;;  %4655 = vmatprep.mubr.bf16.mxu1 %v4368_v23  ;;  %v6685_v36 = vld [vmem:[%s10972_s15 + $0xe4] ss:$8 sps:$4 sm:$0xff]   ;;  %v11255_v25 = vmax.f32 %v9929_v46, 0.0  ;;  %v6683_v23 = vld [vmem:[%s10972_s15 + $0xe0] ss:$8 sps:$4 sm:$0xff]  }
 0x489   : > { %4656 = vmatmul.mubr.bf16.gmra.mxu1 %v4367_v59  ;;  %v6688_v59 = vld [vmem:[%s10972_s15 + $0xd4] ss:$8 sps:$4 sm:$0xff]  }
 0x48a   : > { %v9943_v7 = vadd.f32 %v9714_v21, %v4178_v63  ;;  %v11257_v54 = vmax.f32 %v9932_v56, 0.0  ;;  %5233 = vmatpush2.bf16.msra.mxu0 %v6680_v18  ;;  %v6686_v18 = vld [vmem:[%s10972_s15 + $0xd0] ss:$8 sps:$4 sm:$0xff]  }
 0x48b   : > { %5234 = vmatprep.subr.bf16.mxu0 %v6685_v36  ;;  %v11595_v36 = vmax.f32 %v9372_v40, 0.0 }
 0x48c   : > { %v11254_v45 = vmax.f32 %v9943_v7, 0.0  ;;  %v4369_v44 = vpack.c.bf16 %v11257_v54, %v11258_v57 }
 0x48e   : > { %v4370_v37 = vpack.c.bf16 %v11254_v45, %v11255_v25  ;;  %v4056_v20 = vpop.f32.mrf.mxu0  ;;  %5235 = vmatpush2.bf16.msra.mxu0 %v6683_v23  ;;  %v6691_v25 = vld [vmem:[%s10972_s15 + $0xc4] ss:$8 sps:$4 sm:$0xff]  }
 0x48f   : > { %5236 = vmatprep.subr.bf16.mxu0 %v6688_v59  ;;  %v4179_v54 = vadd.f32 %v4056_v20, %v11596_v14 }
 0x490   : > { %4665 = vmatprep.mubr.bf16.mxu1 %v4370_v37  ;;  %v4058_v63 = vpop.f32.mrf.mxu0  ;;  %v11597_v37 = vmax.f32 %v9377_v49, 0.0 }
 0x491   : > { %4666 = vmatmul.mubr.bf16.gmra.mxu1 %v4369_v44  ;;  %v4180_v45 = vadd.f32 %v4058_v63, %v11595_v36  ;;  %v11598_v63 = vmax.f32 %v9379_v26, 0.0  ;;  %v9990_v14 = vadd.f32 %v9719_v32, %v4179_v54  ;;  %v11600_v54 = vmax.f32 %v9414_v5, 0.0 }
 0x492   : > { %v4060_v57 = vpop.f32.mrf.mxu0  ;;  %5237 = vmatpush2.bf16.msra.mxu0 %v6686_v18 }
 0x493   : > { %v4181_v44 = vadd.f32 %v4060_v57, %v11597_v37  ;;  %v9982_v40 = vadd.f32 %v9714_v21, %v4180_v45  ;;  %5238 = vmatprep.subr.bf16.mxu0 %v6691_v25  ;;  %v11599_v37 = vmax.f32 %v9384_v10, 0.0  ;;  %v11262_v25 = vmax.f32 %v9990_v14, 0.0 }
 0x494   : > { %v4062_v23 = vpop.f32.mrf.mxu0 }
 0x495   : > { %v9985_v59 = vadd.f32 %v9719_v32, %v4181_v44  ;;  %v4182_v34 = vadd.f32 %v4062_v23, %v11598_v63  ;;  %v11263_v45 = vmax.f32 %v9982_v40, 0.0  ;;  %v11601_v63 = vmax.f32 %v9408_v9, 0.0 }
 0x496   : > { %v4066_v49 = vpop.f32.mrf.mxu0  ;;  %5239 = vmatpush2.bf16.msra.mxu0 %v6689_v15  ;;  %v11604_v9 = vmax.f32 %v9395_v28, 0.0 }
 0x497   : > { %v9993_v57 = vadd.f32 %v9714_v21, %v4182_v34  ;;  %v11261_v20 = vmax.f32 %v9985_v59, 0.0  ;;  %v4183_v44 = vadd.f32 %v4066_v49, %v11600_v54 }
 0x498   : > { %v4068_v18 = vpop.f32.mrf.mxu0 }
 0x499   : > { %v11260_v36 = vmax.f32 %v9993_v57, 0.0  ;;  %v4184_v26 = vadd.f32 %v4068_v18, %v11599_v37  ;;  %v4371_v10 = vpack.c.bf16 %v11261_v20, %v11262_v25  ;;  %v10022_v54 = vadd.f32 %v9719_v32, %v4183_v44 }
 0x49a   : > { %v4070_v23 = vpop.f32.mrf.mxu0  ;;  %v11607_v25 = vmax.f32 %v9431_v55, 0.0  ;;  %v11608_v44 = vmax.f32 %v9435_v6, 0.0 }
 0x49b   : > { %v4185_v34 = vadd.f32 %v4070_v23, %v11601_v63  ;;  %v4372_v15 = vpack.c.bf16 %v11260_v36, %v11263_v45  ;;  %v10014_v37 = vadd.f32 %v9714_v21, %v4184_v26  ;;  %11605 = vst [vmem:[#allocation20_spill] sm:$0xff] %v10022_v54 }
 0x49c   : > { %v4072_v18 = vpop.f32.mrf.mxu0 }
 0x49d   : > { %11602 = vst [vmem:[#allocation17_spill] sm:$0xff] %v10014_v37  ;;  %v10017_v5 = vadd.f32 %v9719_v32, %v4185_v34  ;;  %v4186_v49 = vadd.f32 %v4072_v18, %v11604_v9  ;;  %4675 = vmatprep.mubr.bf16.mxu1 %v4372_v15  ;;  %v11267_v26 = vmax.f32 %v10014_v37, 0.0  ;;  %v11266_v15 = vmax.f32 %v10022_v54, 0.0 }
 0x49e   : > { %v4076_v23 = vpop.f32.mrf.mxu0  ;;  %4676 = vmatmul.mubr.bf16.gmra.mxu1 %v4371_v10  ;;  %v11609_v10 = vmax.f32 %v9438_v17, 0.0 }
 0x49f   : > { %11603 = vst [vmem:[#allocation19_spill] sm:$0xff] %v10017_v5  ;;  %v10025_v63 = vadd.f32 %v9714_v21, %v4186_v49  ;;  %v11265_v36 = vmax.f32 %v10017_v5, 0.0  ;;  %v4187_v18 = vadd.f32 %v4076_v23, %v11608_v44  ;;  %v11612_v23 = vld [vmem:[#allocation23_spill] sm:$0xff] }
 0x4a0   : > { %v4078_v20 = vpop.f32.mrf.mxu0  ;;  %v11613_v17 = vmax.f32 %v11612_v23, 0.0 }
 0x4a1   : > { %11606 = vst [vmem:[#allocation21_spill] sm:$0xff] %v10025_v63  ;;  %v11264_v34 = vmax.f32 %v10025_v63, 0.0  ;;  %v4188_v28 = vadd.f32 %v4078_v20, %v11607_v25  ;;  %v4373_v55 = vpack.c.bf16 %v11265_v36, %v11266_v15  ;;  %v11618_v15 = vld [vmem:[#allocation25_spill] sm:$0xff]  ;;  %v11620_v36 = vld [vmem:[#allocation27_spill] sm:$0xff] }
 0x4a2   : > { %v4080_v9 = vpop.f32.mrf.mxu0  ;;  %v11621_v5 = vmax.f32 %v11620_v36, 0.0  ;;  %v6695_v36 = vld [vmem:[%s10972_s15 + $0xa0] ss:$8 sps:$4 sm:$0xff]  }
 0x4a3   : > { %v4189_v49 = vadd.f32 %v4080_v9, %v11609_v10  ;;  %v4374_v45 = vpack.c.bf16 %v11264_v34, %v11267_v26  ;;  %v10046_v25 = vadd.f32 %v9714_v21, %v4188_v28  ;;  %v10054_v9 = vadd.f32 %v9719_v32, %v4187_v18  ;;  %v6694_v28 = vld [vmem:[%s10972_s15 + $0xb4] ss:$8 sps:$4 sm:$0xff]  }
 0x4a4   : > { %v4082_v20 = vpop.f32.mrf.mxu0  ;;  %5240 = vmatprep.subr.bf16.mxu0 %v6694_v28  ;;  %v11619_v26 = vmax.f32 %v11618_v15, 0.0 }
 0x4a5   : > { %11610 = vst [vmem:[#allocation22_spill] sm:$0xff] %v10046_v25  ;;  %v10049_v6 = vadd.f32 %v9719_v32, %v4189_v49  ;;  %v4190_v44 = vadd.f32 %v4082_v20, %v11613_v17  ;;  %4685 = vmatprep.mubr.bf16.mxu1 %v4374_v45  ;;  %11614 = vst [vmem:[#allocation23_spill] sm:$0xff] %v10054_v9  ;;  %v6692_v20 = vld [vmem:[%s10972_s15 + $0xb0] ss:$8 sps:$4 sm:$0xff]   ;;  %v11275_v45 = vmax.f32 %v10046_v25, 0.0 }
 0x4a6   : > { %4686 = vmatmul.mubr.bf16.gmra.mxu1 %v4373_v55  ;;  %v11616_v55 = vld [vmem:[#allocation26_spill] sm:$0xff]  ;;  %5241 = vmatpush2.bf16.msra.mxu0 %v6692_v20 }
 0x4a7   : > { %11611 = vst [vmem:[#allocation24_spill] sm:$0xff] %v10049_v6  ;;  %v4086_v10 = vpop.f32.mrf.mxu0  ;;  %v10057_v34 = vadd.f32 %v9714_v21, %v4190_v44  ;;  %v11617_v23 = vmax.f32 %v11616_v55, 0.0  ;;  %v11274_v44 = vmax.f32 %v10054_v9, 0.0  ;;  %v11622_v28 = vmax.f32 %v10049_v6, 0.0  ;;  %v6703_v6 = vld [vmem:[%s10972_s15 + $0x84] ss:$8 sps:$4 sm:$0xff]  }
 0x4a8   : > { %v4191_v16 = vadd.f32 %v4086_v10, %v11619_v26  ;;  %v11625_v10 = vld [vmem:[#allocation28_spill] sm:$0xff] }
 0x4a9   : > { %11615 = vst [vmem:[#allocation32_spill] sm:$0xff] %v10057_v34  ;;  %v4088_v49 = vpop.f32.mrf.mxu0  ;;  %v11273_v18 = vmax.f32 %v10057_v34, 0.0  ;;  %v4375_v15 = vpack.c.bf16 %v11622_v28, %v11274_v44  ;;  %v11626_v20 = vmax.f32 %v11625_v10, 0.0 }
 0x4aa   : > { %v4192_v17 = vadd.f32 %v4088_v49, %v11617_v23  ;;  %v6697_v49 = vld [vmem:[%s10972_s15 + $0xa4] ss:$8 sps:$4 sm:$0xff]   ;;  %v10098_v23 = vadd.f32 %v9719_v32, %v4191_v16 }
 0x4ab   : > { %v4090_v63 = vpop.f32.mrf.mxu0  ;;  %v4376_v37 = vpack.c.bf16 %v11273_v18, %v11275_v45  ;;  %5242 = vmatprep.subr.bf16.mxu0 %v6697_v49 }
 0x4ac   : > { %v4193_v54 = vadd.f32 %v4090_v63, %v11621_v5  ;;  %v10090_v5 = vadd.f32 %v9714_v21, %v4192_v17  ;;  %11627 = vst [vmem:[#allocation27_spill] sm:$0xff] %v10098_v23  ;;  %5243 = vmatpush2.bf16.msra.mxu0 %v6695_v36  ;;  %v6700_v17 = vld [vmem:[%s10972_s15 + $0x94] ss:$8 sps:$4 sm:$0xff]   ;;  %v11629_v36 = vld [vmem:[#allocation30_spill] sm:$0xff] }
 0x4ad   : > { %v4092_v26 = vpop.f32.mrf.mxu0  ;;  %4695 = vmatprep.mubr.bf16.mxu1 %v4376_v37  ;;  %v6698_v37 = vld [vmem:[%s10972_s15 + $0x90] ss:$8 sps:$4 sm:$0xff]   ;;  %5244 = vmatprep.subr.bf16.mxu0 %v6700_v17  ;;  %v11630_v10 = vmax.f32 %v11629_v36, 0.0 }
 0x4ae   : > { %11623 = vst [vmem:[#allocation26_spill] sm:$0xff] %v10090_v5  ;;  %v10093_v63 = vadd.f32 %v9719_v32, %v4193_v54  ;;  %v4194_v55 = vadd.f32 %v4092_v26, %v11626_v20  ;;  %4696 = vmatmul.mubr.bf16.gmra.mxu1 %v4375_v15  ;;  %v11279_v49 = vmax.f32 %v10090_v5, 0.0  ;;  %v11282_v26 = vmax.f32 %v10098_v23, 0.0 }
 0x4b0   : > { %11624 = vst [vmem:[#allocation25_spill] sm:$0xff] %v10093_v63  ;;  %v10101_v28 = vadd.f32 %v9714_v21, %v4194_v55  ;;  %5245 = vmatpush2.bf16.msra.mxu0 %v6698_v37  ;;  %v11631_v55 = vld [vmem:[#allocation29_spill] sm:$0xff]  ;;  %v11633_v17 = vmax.f32 %v10093_v63, 0.0 }
 0x4b1   : > { %v4096_v18 = vpop.f32.mrf.mxu0  ;;  %v11632_v44 = vmax.f32 %v11631_v55, 0.0  ;;  %5246 = vmatprep.subr.bf16.mxu0 %v6703_v6 }
 0x4b2   : > { %11628 = vst [vmem:[#allocation28_spill] sm:$0xff] %v10101_v28  ;;  %v11278_v16 = vmax.f32 %v10101_v28, 0.0  ;;  %v4377_v36 = vpack.c.bf16 %v11633_v17, %v11282_v26 }
 0x4b3   : > { %v4098_v15 = vpop.f32.mrf.mxu0  ;;  %v4195_v45 = vadd.f32 %v4096_v18, %v11632_v44  ;;  %v6701_v18 = vld [vmem:[%s10972_s15 + $0x80] ss:$8 sps:$4 sm:$0xff]  }
 0x4b4   : > { %v4196_v20 = vadd.f32 %v4098_v15, %v11630_v10  ;;  %v4378_v34 = vpack.c.bf16 %v11278_v16, %v11279_v49  ;;  %v11634_v15 = vld [vmem:[#allocation7_spill] sm:$0xff]  ;;  %5247 = vmatpush2.bf16.msra.mxu0 %v6701_v18  ;;  %v11644_v18 = vld [vmem:[#allocation8_spill] sm:$0xff] }
 0x4b5   : > { %v4100_v54 = vpop.f32.mrf.mxu0  ;;  %v11635_v37 = vmax.f32 %v11634_v15, 0.0  ;;  %v11638_v49 = vld [vmem:[#allocation31_spill] sm:$0xff] }
 0x4b6   : > { %4705 = vmatprep.mubr.bf16.mxu1 %v4378_v34  ;;  %v10134_v55 = vadd.f32 %v9714_v21, %v4196_v20  ;;  %v11639_v28 = vmax.f32 %v11638_v49, 0.0 }
 0x4b7   : > { %v4197_v10 = vadd.f32 %v4100_v54, %v11635_v37  ;;  %v4102_v44 = vpop.f32.mrf.mxu0  ;;  %4706 = vmatmul.mubr.bf16.gmra.mxu1 %v4377_v36  ;;  %v10142_v54 = vadd.f32 %v9719_v32, %v4195_v45  ;;  %v11642_v36 = vld [vmem:[#allocation11_spill] sm:$0xff] }
 0x4b8   : > { %11636 = vst [vmem:[#allocation30_spill] sm:$0xff] %v10134_v55  ;;  %v4198_v63 = vadd.f32 %v4102_v44, %v11639_v28  ;;  %v11288_v6 = vmax.f32 %v10134_v55, 0.0  ;;  %v11643_v37 = vmax.f32 %v11642_v36, 0.0  ;;  %v11645_v44 = vmax.f32 %v11644_v18, 0.0  ;;  %v11646_v55 = vld [vmem:[#allocation10_spill] sm:$0xff] }
 0x4b9   : > { %v10137_v16 = vadd.f32 %v9719_v32, %v4197_v10  ;;  %11640 = vst [vmem:[#allocation7_spill] sm:$0xff] %v10142_v54  ;;  %v11290_v15 = vmax.f32 %v10142_v54, 0.0  ;;  %v11647_v5 = vmax.f32 %v11646_v55, 0.0  ;;  %v11655_v54 = vld [vmem:[#allocation14_spill] sm:$0xff] }
 0x4ba   : > { %v10145_v17 = vadd.f32 %v9714_v21, %v4198_v63  ;;  %v11656_v9 = vmax.f32 %v11655_v54, 0.0 }
 0x4bb   : > { %11637 = vst [vmem:[#allocation29_spill] sm:$0xff] %v10137_v16  ;;  %v11289_v34 = vmax.f32 %v10137_v16, 0.0 }
 0x4bc   : > { %11641 = vst [vmem:[#allocation31_spill] sm:$0xff] %v10145_v17  ;;  %v11287_v20 = vmax.f32 %v10145_v17, 0.0 }
 0x4bd   : > { %v4379_v45 = vpack.c.bf16 %v11289_v34, %v11290_v15 }
 0x4be   : > { %v4380_v28 = vpack.c.bf16 %v11287_v20, %v11288_v6 }
 0x4bf   : > { %v4106_v63 = vpop.f32.mrf.mxu0 }
 0x4c0   : > { %4715 = vmatprep.mubr.bf16.mxu1 %v4380_v28  ;;  %v4199_v26 = vadd.f32 %v4106_v63, %v11645_v44  ;;  %v11648_v28 = vld [vmem:[#allocation9_spill] sm:$0xff] }
 0x4c1   : > { %v4108_v49 = vpop.f32.mrf.mxu0  ;;  %4716 = vmatmul.mubr.bf16.gmra.mxu1 %v4379_v45  ;;  %v11649_v15 = vmax.f32 %v11648_v28, 0.0 }
 0x4c2   : > { %v4200_v10 = vadd.f32 %v4108_v49, %v11643_v37  ;;  %v10174_v36 = vadd.f32 %v9719_v32, %v4199_v26 }
 0x4c3   : > { %v4110_v23 = vpop.f32.mrf.mxu0 }
 0x4c4   : > { %v4201_v17 = vadd.f32 %v4110_v23, %v11647_v5  ;;  %v10166_v6 = vadd.f32 %v9714_v21, %v4200_v10  ;;  %v11299_v37 = vmax.f32 %v10174_v36, 0.0  ;;  %v11651_v10 = vld [vmem:[#allocation13_spill] sm:$0xff] }
 0x4c5   : > { %v4112_v20 = vpop.f32.mrf.mxu0  ;;  %v11652_v18 = vmax.f32 %v11651_v10, 0.0 }
 0x4c6   : > { %v10169_v34 = vadd.f32 %v9719_v32, %v4201_v17  ;;  %v4202_v45 = vadd.f32 %v4112_v20, %v11649_v15  ;;  %v11296_v5 = vmax.f32 %v10166_v6, 0.0  ;;  %v11653_v15 = vld [vmem:[#allocation12_spill] sm:$0xff] }
 0x4c7   : > { %v11654_v28 = vmax.f32 %v11653_v15, 0.0 }
 0x4c8   : > { %v10177_v49 = vadd.f32 %v9714_v21, %v4202_v45  ;;  %v11298_v63 = vmax.f32 %v10169_v34, 0.0 }
 0x4c9   : > { %v4116_v55 = vpop.f32.mrf.mxu0 }
 0x4ca   : > { %11650 = vst [vmem:[#allocation11_spill] sm:$0xff] %v10177_v49  ;;  %v11295_v23 = vmax.f32 %v10177_v49, 0.0  ;;  %v4381_v20 = vpack.c.bf16 %v11298_v63, %v11299_v37  ;;  %v4203_v45 = vadd.f32 %v4116_v55, %v11654_v28  ;;  %v11663_v28 = vmax.f32 %v9616_v39, 0.0 }
 0x4cb   : > { %v4118_v17 = vpop.f32.mrf.mxu0  ;;  %v11664_v37 = vmax.f32 %v9622_v52, 0.0 }
 0x4cc   : > { %v4204_v44 = vadd.f32 %v4118_v17, %v11652_v18  ;;  %v4382_v26 = vpack.c.bf16 %v11295_v23, %v11296_v5  ;;  %v11658_v23 = vld [vmem:[#allocation15_spill] sm:$0xff]  ;;  %v10206_v63 = vadd.f32 %v9719_v32, %v4203_v45 }
 0x4cd   : > { %v4120_v16 = vpop.f32.mrf.mxu0  ;;  %v11659_v5 = vmax.f32 %v11658_v23, 0.0 }
 0x4ce   : > { %v4205_v25 = vadd.f32 %v4120_v16, %v11656_v9  ;;  %4725 = vmatprep.mubr.bf16.mxu1 %v4382_v26  ;;  %v10198_v17 = vadd.f32 %v9714_v21, %v4204_v44  ;;  %v11304_v44 = vmax.f32 %v10206_v63, 0.0  ;;  %v11661_v26 = vld [vmem:[#allocation18_spill] sm:$0xff] }
 0x4cf   : > { %v4122_v10 = vpop.f32.mrf.mxu0  ;;  %4726 = vmatmul.mubr.bf16.gmra.mxu1 %v4381_v20  ;;  %v11662_v20 = vmax.f32 %v11661_v26, 0.0 }
 0x4d0   : > { %v10201_v18 = vadd.f32 %v9719_v32, %v4205_v25  ;;  %v4206_v49 = vadd.f32 %v4122_v10, %v11659_v5  ;;  %v11302_v16 = vmax.f32 %v10198_v17, 0.0 }
 0x4d2   : > { %11657 = vst [vmem:[#allocation8_spill] sm:$0xff] %v10201_v18  ;;  %v10209_v55 = vadd.f32 %v9714_v21, %v4206_v49  ;;  %v11303_v9 = vmax.f32 %v10201_v18, 0.0 }
 0x4d4   : > { %11660 = vst [vmem:[#allocation10_spill] sm:$0xff] %v10209_v55  ;;  %v11301_v54 = vmax.f32 %v10209_v55, 0.0  ;;  %v4383_v5 = vpack.c.bf16 %v11303_v9, %v11304_v44 }
 0x4d6   : > { %v4384_v25 = vpack.c.bf16 %v11301_v54, %v11302_v16 }
 0x4d7   : > { %v4126_v49 = vpop.f32.mrf.mxu0 }
 0x4d8   : > { %4735 = vmatprep.mubr.bf16.mxu1 %v4384_v25  ;;  %v4207_v45 = vadd.f32 %v4126_v49, %v11663_v28  ;;  %v11665_v25 = vld [vmem:[#allocation16_spill] sm:$0xff] }
 0x4d9   : > { %v4128_v23 = vpop.f32.mrf.mxu0  ;;  %4736 = vmatmul.mubr.bf16.gmra.mxu1 %v4383_v5  ;;  %v11666_v44 = vmax.f32 %v11665_v25, 0.0 }
 0x4da   : > { %v4208_v15 = vadd.f32 %v4128_v23, %v11662_v20  ;;  %v10238_v26 = vadd.f32 %v9719_v32, %v4207_v45  ;;  %v11668_v45 = vmax.f32 %v9646_v11, 0.0 }
 0x4db   : > { %v4130_v10 = vpop.f32.mrf.mxu0 }
 0x4dc   : > { %v4209_v55 = vadd.f32 %v4130_v10, %v11664_v37  ;;  %v10230_v16 = vadd.f32 %v9714_v21, %v4208_v15  ;;  %v11309_v20 = vmax.f32 %v10238_v26, 0.0  ;;  %v11667_v15 = vmax.f32 %v9648_v8, 0.0 }
 0x4dd   : > { %v4132_v54 = vpop.f32.mrf.mxu0 }
 0x4de   : > { %v10233_v9 = vadd.f32 %v9719_v32, %v4209_v55  ;;  %v4210_v5 = vadd.f32 %v4132_v54, %v11666_v44  ;;  %v11307_v37 = vmax.f32 %v10230_v16, 0.0 }
 0x4e0   : > { %v10241_v39 = vadd.f32 %v9714_v21, %v4210_v5  ;;  %v11308_v49 = vmax.f32 %v10233_v9, 0.0  ;;  %v11669_v5 = vmax.f32 %v9654_v62, 0.0 }
 0x4e1   : > { %v4136_v52 = vpop.f32.mrf.mxu0 }
 0x4e2   : > { %v11306_v23 = vmax.f32 %v10241_v39, 0.0  ;;  %v4385_v44 = vpack.c.bf16 %v11308_v49, %v11309_v20  ;;  %v4211_v10 = vadd.f32 %v4136_v52, %v11668_v45 }
 0x4e3   : > { %v4138_v55 = vpop.f32.mrf.mxu0 }
 0x4e4   : > { %v4212_v28 = vadd.f32 %v4138_v55, %v11667_v15  ;;  %v4386_v54 = vpack.c.bf16 %v11306_v23, %v11307_v37  ;;  %v11670_v23 = vmax.f32 %v9656_v51, 0.0  ;;  %v10270_v49 = vadd.f32 %v9719_v32, %v4211_v10 }
 0x4e5   : > { %v4140_v25 = vpop.f32.mrf.mxu0  ;;  %v11672_v10 = vmax.f32 %v9680_v31, 0.0 }
 0x4e6   : > { %v4213_v18 = vadd.f32 %v4140_v25, %v11669_v5  ;;  %4745 = vmatprep.mubr.bf16.mxu1 %v4386_v54  ;;  %v10262_v55 = vadd.f32 %v9714_v21, %v4212_v28  ;;  %v11317_v28 = vmax.f32 %v10270_v49, 0.0 }
 0x4e7   : > { %v4142_v8 = vpop.f32.mrf.mxu0  ;;  %4746 = vmatmul.mubr.bf16.gmra.mxu1 %v4385_v44  ;;  %v11671_v44 = vmax.f32 %v9682_v53, 0.0 }
 0x4e8   : > { %v10265_v15 = vadd.f32 %v9719_v32, %v4213_v18  ;;  %v4214_v37 = vadd.f32 %v4142_v8, %v11670_v23  ;;  %v11311_v52 = vmax.f32 %v10262_v55, 0.0  ;;  %v11673_v8 = vmax.f32 %v9686_v19, 0.0 }
 0x4ea   : > { %v10273_v11 = vadd.f32 %v9714_v21, %v4214_v37  ;;  %v11312_v62 = vmax.f32 %v10265_v15, 0.0 }
 0x4ec   : > { %v11310_v54 = vmax.f32 %v10273_v11, 0.0  ;;  %v4387_v18 = vpack.c.bf16 %v11312_v62, %v11317_v28 }
 0x4ee   : > { %v4388_v51 = vpack.c.bf16 %v11310_v54, %v11311_v52 }
 0x4ef   : > { %v4146_v37 = vpop.f32.mrf.mxu0 }
 0x4f0   : > { %4755 = vmatprep.mubr.bf16.mxu1 %v4388_v51  ;;  %v4215_v25 = vadd.f32 %v4146_v37, %v11672_v10  ;;  %v11674_v51 = vmax.f32 %v9688_v4, 0.0 }
 0x4f1   : > { %4756 = vmatmul.mubr.bf16.gmra.mxu1 %v4387_v18  ;;  %v4148_v23 = vpop.f32.mrf.mxu0 }
 0x4f2   : > { %v4216_v45 = vadd.f32 %v4148_v23, %v11671_v44  ;;  %v10302_v53 = vadd.f32 %v9719_v32, %v4215_v25 }
 0x4f3   : > { %v4150_v5 = vpop.f32.mrf.mxu0 }
 0x4f4   : > { %v4217_v20 = vadd.f32 %v4150_v5, %v11673_v8  ;;  %v10294_v52 = vadd.f32 %v9714_v21, %v4216_v45  ;;  %v11315_v44 = vmax.f32 %v10302_v53, 0.0  ;;  %v11675_v45 = vmax.f32 %v9724_v1, 0.0 }
 0x4f5   : > { %v4152_v54 = vpop.f32.mrf.mxu0  ;;  %v11676_v5 = vmax.f32 %v9732_v27, 0.0  ;;  %v11678_v1 = vmax.f32 %v9741_v41, 0.0  ;;  %v11681_v41 = vmax.f32 %v9765_v38, 0.0 }
 0x4f6   : > { %v10297_v62 = vadd.f32 %v9719_v32, %v4217_v20  ;;  %v4218_v18 = vadd.f32 %v4152_v54, %v11674_v51  ;;  %v11316_v19 = vmax.f32 %v10294_v52, 0.0  ;;  %v4840_v20 = vld [vmem:[%s10971_s14] sm:$0x3] }
 0x4f7   : > { %v10325_v25 = vrot.slane %v4840_v20, %v11548_v61  ;;  %v10330_v51 = vrot.slane %v4840_v20, %v11547_v30 }
 0x4f8   : > { %v10305_v31 = vadd.f32 %v9714_v21, %v4218_v18  ;;  %v11314_v37 = vmax.f32 %v10297_v62, 0.0 }
 0x4fa   : > { %v11313_v23 = vmax.f32 %v10305_v31, 0.0  ;;  %v4389_v32 = vpack.c.bf16 %v11314_v37, %v11315_v44 }
 0x4fc   : > { %v4390_v4 = vpack.c.bf16 %v11313_v23, %v11316_v19 }
 0x4fe   : > { %4765 = vmatprep.mubr.bf16.mxu1 %v4390_v4  ;;  %v11677_v4 = vmax.f32 %v9727_v2, 0.0  ;;  %v11679_v2 = vmax.f32 %v9762_v33, 0.0 }
 0x4ff   : > { %4766 = vmatmul.mubr.bf16.gmra.mxu1 %v4389_v32 }
 0x529   : > { %v4617_v21 = vpop.f32.mrf.mxu1 }
 0x52a   : > { %v4776_v8 = vadd.f32 %v4617_v21, %v11676_v5 }
 0x52b   : > { %v4619_v54 = vpop.f32.mrf.mxu1 }
 0x52c   : > { %v4777_v10 = vadd.f32 %v4619_v54, %v11675_v45  ;;  %v4852_v45 = vadd.f32 %v10330_v51, %v4776_v8 }
 0x52d   : > { %v4621_v18 = vpop.f32.mrf.mxu1 }
 0x52e   : > { %v4778_v32 = vadd.f32 %v4621_v18, %v11677_v4  ;;  %v4853_v37 = vadd.f32 %v10325_v25, %v4777_v10  ;;  %v4916_v4 = vmax.f32 %v4852_v45, 0.0  ;;  %v11680_v10 = vmax.f32 %v9770_v50, 0.0 }
 0x52f   : > { %v4623_v23 = vpop.f32.mrf.mxu1 }
 0x530   : > { %v4854_v44 = vadd.f32 %v10330_v51, %v4778_v32  ;;  %v4779_v54 = vadd.f32 %v4623_v23, %v11678_v1  ;;  %v4917_v5 = vmax.f32 %v4853_v37, 0.0  ;;  %v11682_v37 = vmax.f32 %v9773_v3, 0.0 }
 0x531   : > { %v4627_v19 = vpop.f32.mrf.mxu1 }
 0x532   : > { %v4855_v27 = vadd.f32 %v10325_v25, %v4779_v54  ;;  %v4918_v21 = vmax.f32 %v4854_v44, 0.0  ;;  %v4780_v61 = vadd.f32 %v4627_v19, %v11680_v10 }
 0x533   : > { %v4629_v20 = vpop.f32.mrf.mxu1 }
 0x534   : > { %v4919_v28 = vmax.f32 %v4855_v27, 0.0  ;;  %v4781_v18 = vadd.f32 %v4629_v20, %v11679_v2  ;;  %v4980_v8 = vpack.c.bf16 %v4918_v21, %v4916_v4  ;;  %v4856_v33 = vadd.f32 %v10330_v51, %v4780_v61 }
 0x535   : > { %v4631_v32 = vpop.f32.mrf.mxu1  ;;  %v11683_v21 = vmax.f32 %v9806_v48, 0.0 }
 0x536   : > { %v4782_v23 = vadd.f32 %v4631_v32, %v11681_v41  ;;  %v4981_v1 = vpack.c.bf16 %v4919_v28, %v4917_v5  ;;  %v4857_v54 = vadd.f32 %v10325_v25, %v4781_v18  ;;  %v4920_v2 = vmax.f32 %v4856_v33, 0.0 }
 0x537   : > { %v4633_v30 = vpop.f32.mrf.mxu1  ;;  %v11684_v18 = vmax.f32 %v9814_v42, 0.0 }
 0x538   : > { %v4858_v44 = vadd.f32 %v10330_v51, %v4782_v23  ;;  %v4783_v27 = vadd.f32 %v4633_v30, %v11682_v37  ;;  %5248 = vmatprep.mubr.bf16.mxu0 %v4981_v1  ;;  %v4921_v20 = vmax.f32 %v4857_v54, 0.0  ;;  %v11685_v30 = vmax.f32 %v9809_v43, 0.0 }
 0x539   : > { %v4637_v45 = vpop.f32.mrf.mxu1  ;;  %5249 = vmatmul.mubr.bf16.vlgmr.msra.gmra.mxu0 %v4980_v8  ;;  %v11686_v8 = vmax.f32 %v9817_v22, 0.0 }
 0x53a   : > { %v4859_v50 = vadd.f32 %v10325_v25, %v4783_v27  ;;  %v4922_v19 = vmax.f32 %v4858_v44, 0.0  ;;  %v4784_v4 = vadd.f32 %v4637_v45, %v11684_v18  ;;  %v11687_v45 = vmax.f32 %v9838_v13, 0.0 }
 0x53b   : > { %v4639_v38 = vpop.f32.mrf.mxu1 }
 0x53c   : > { %v4923_v28 = vmax.f32 %v4859_v50, 0.0  ;;  %v4785_v5 = vadd.f32 %v4639_v38, %v11683_v21  ;;  %v4982_v41 = vpack.c.bf16 %v4922_v19, %v4920_v2  ;;  %v4860_v48 = vadd.f32 %v10330_v51, %v4784_v4 }
 0x53d   : > { %v4641_v3 = vpop.f32.mrf.mxu1  ;;  %v11688_v38 = vmax.f32 %v9846_v29, 0.0 }
 0x53e   : > { %v4786_v10 = vadd.f32 %v4641_v3, %v11685_v30  ;;  %v4983_v61 = vpack.c.bf16 %v4923_v28, %v4921_v20  ;;  %v4861_v23 = vadd.f32 %v10325_v25, %v4785_v5  ;;  %v4924_v19 = vmax.f32 %v4860_v48, 0.0 }
 0x53f   : > { %v4643_v32 = vpop.f32.mrf.mxu1  ;;  %v11689_v28 = vmax.f32 %v9841_v24, 0.0  ;;  %v11690_v30 = vmax.f32 %v9849_v60, 0.0  ;;  %v11692_v48 = vmax.f32 %v9893_v58, 0.0 }
 0x540   : > { %v4862_v1 = vadd.f32 %v10330_v51, %v4786_v10  ;;  %v4787_v54 = vadd.f32 %v4643_v32, %v11686_v8  ;;  %5258 = vmatprep.mubr.bf16.mxu0 %v4983_v61  ;;  %v4925_v27 = vmax.f32 %v4861_v23, 0.0 }
 0x541   : > { %v4647_v44 = vpop.f32.mrf.mxu1  ;;  %5259 = vmatmul.mubr.bf16.gmra.mxu0 %v4982_v41 }
 0x542   : > { %v4863_v42 = vadd.f32 %v10325_v25, %v4787_v54  ;;  %v4926_v37 = vmax.f32 %v4862_v1, 0.0  ;;  %v4788_v20 = vadd.f32 %v4647_v44, %v11688_v38  ;;  %v11691_v1 = vmax.f32 %v9885_v47, 0.0 }
 0x543   : > { %v4649_v43 = vpop.f32.mrf.mxu1 }
 0x544   : > { %v4927_v33 = vmax.f32 %v4863_v42, 0.0  ;;  %v4789_v50 = vadd.f32 %v4649_v43, %v11687_v45  ;;  %v4984_v18 = vpack.c.bf16 %v4926_v37, %v4924_v19  ;;  %v4864_v13 = vadd.f32 %v10330_v51, %v4788_v20 }
 0x545   : > { %v4651_v22 = vpop.f32.mrf.mxu1  ;;  %v11693_v42 = vmax.f32 %v9888_v12, 0.0  ;;  %v11694_v19 = vmax.f32 %v9899_v35, 0.0 }
 0x546   : > { %v4790_v21 = vadd.f32 %v4651_v22, %v11689_v28  ;;  %v4985_v5 = vpack.c.bf16 %v4927_v33, %v4925_v27  ;;  %v4865_v4 = vadd.f32 %v10325_v25, %v4789_v50  ;;  %v4928_v54 = vmax.f32 %v4864_v13, 0.0 }
 0x547   : > { %v4653_v2 = vpop.f32.mrf.mxu1 }
 0x548   : > { %v4866_v3 = vadd.f32 %v10330_v51, %v4790_v21  ;;  %v4791_v10 = vadd.f32 %v4653_v2, %v11690_v30  ;;  %5268 = vmatprep.mubr.bf16.mxu0 %v4985_v5  ;;  %v4929_v41 = vmax.f32 %v4865_v4, 0.0  ;;  %v11695_v5 = vmax.f32 %v9929_v46, 0.0 }
 0x549   : > { %v4657_v61 = vpop.f32.mrf.mxu1  ;;  %5269 = vmatmul.mubr.bf16.gmra.mxu0 %v4984_v18  ;;  %v11696_v4 = vmax.f32 %v9937_v0, 0.0  ;;  %v11697_v30 = vmax.f32 %v9932_v56, 0.0 }
 0x54a   : > { %v4867_v29 = vadd.f32 %v10325_v25, %v4791_v10  ;;  %v4930_v32 = vmax.f32 %v4866_v3, 0.0  ;;  %v4792_v44 = vadd.f32 %v4657_v61, %v11692_v48 }
 0x54b   : > { %v4659_v24 = vpop.f32.mrf.mxu1 }
 0x54c   : > { %v4931_v23 = vmax.f32 %v4867_v29, 0.0  ;;  %v4793_v8 = vadd.f32 %v4659_v24, %v11691_v1  ;;  %v4986_v33 = vpack.c.bf16 %v4930_v32, %v4928_v54  ;;  %v4868_v47 = vadd.f32 %v10330_v51, %v4792_v44 }
 0x54d   : > { %v4661_v60 = vpop.f32.mrf.mxu1 }
 0x54e   : > { %v4794_v37 = vadd.f32 %v4661_v60, %v11693_v42  ;;  %v4987_v43 = vpack.c.bf16 %v4931_v23, %v4929_v41  ;;  %v4869_v45 = vadd.f32 %v10325_v25, %v4793_v8  ;;  %v4932_v18 = vmax.f32 %v4868_v47, 0.0 }
 0x54f   : > { %v4663_v27 = vpop.f32.mrf.mxu1  ;;  %v11698_v41 = vmax.f32 %v9943_v7, 0.0 }
 0x550   : > { %v4870_v50 = vadd.f32 %v10330_v51, %v4794_v37  ;;  %v4795_v38 = vadd.f32 %v4663_v27, %v11694_v19  ;;  %5278 = vmatprep.mubr.bf16.mxu0 %v4987_v43  ;;  %v4933_v28 = vmax.f32 %v4869_v45, 0.0  ;;  %v11699_v37 = vmax.f32 %v9982_v40, 0.0 }
 0x551   : > { %v4667_v20 = vpop.f32.mrf.mxu1  ;;  %5279 = vmatmul.mubr.bf16.gmra.mxu0 %v4986_v33  ;;  %v11700_v43 = vmax.f32 %v9990_v14, 0.0  ;;  %v11701_v45 = vmax.f32 %v9985_v59, 0.0 }
 0x552   : > { %v4871_v58 = vadd.f32 %v10325_v25, %v4795_v38  ;;  %v4934_v22 = vmax.f32 %v4870_v50, 0.0  ;;  %v4796_v3 = vadd.f32 %v4667_v20, %v11696_v4  ;;  %v11702_v20 = vmax.f32 %v9993_v57, 0.0 }
 0x553   : > { %v4669_v12 = vpop.f32.mrf.mxu1 }
 0x554   : > { %v4935_v21 = vmax.f32 %v4871_v58, 0.0  ;;  %v4797_v2 = vadd.f32 %v4669_v12, %v11695_v5  ;;  %v4988_v61 = vpack.c.bf16 %v4934_v22, %v4932_v18  ;;  %v4872_v46 = vadd.f32 %v10330_v51, %v4796_v3  ;;  %v11705_v3 = vld [vmem:[#allocation20_spill] sm:$0xff] }
 0x555   : > { %v4671_v35 = vpop.f32.mrf.mxu1 }
 0x556   : > { %v4798_v10 = vadd.f32 %v4671_v35, %v11697_v30  ;;  %v4989_v13 = vpack.c.bf16 %v4935_v21, %v4933_v28  ;;  %v4873_v32 = vadd.f32 %v10325_v25, %v4797_v2  ;;  %v4936_v54 = vmax.f32 %v4872_v46, 0.0  ;;  %v11703_v2 = vld [vmem:[#allocation17_spill] sm:$0xff] }
 0x557   : > { %v4673_v29 = vpop.f32.mrf.mxu1  ;;  %v11704_v59 = vmax.f32 %v11703_v2, 0.0  ;;  %v11706_v35 = vmax.f32 %v11705_v3, 0.0  ;;  %v11709_v46 = vld [vmem:[#allocation21_spill] sm:$0xff] }
 0x558   : > { %v4874_v24 = vadd.f32 %v10330_v51, %v4798_v10  ;;  %v4799_v23 = vadd.f32 %v4673_v29, %v11698_v41  ;;  %5288 = vmatprep.mubr.bf16.mxu0 %v4989_v13  ;;  %v4937_v8 = vmax.f32 %v4873_v32, 0.0  ;;  %v11707_v13 = vld [vmem:[#allocation19_spill] sm:$0xff] }
 0x559   : > { %5289 = vmatmul.mubr.bf16.gmra.mxu0 %v4988_v61  ;;  %v11708_v57 = vmax.f32 %v11707_v13, 0.0 }
 0x55a   : > { %v4875_v0 = vadd.f32 %v10325_v25, %v4799_v23  ;;  %v4938_v1 = vmax.f32 %v4874_v24, 0.0 }
 0x55c   : > { %v4939_v56 = vmax.f32 %v4875_v0, 0.0  ;;  %v4990_v44 = vpack.c.bf16 %v4938_v1, %v4936_v54  ;;  %v11710_v0 = vmax.f32 %v11709_v46, 0.0 }
 0x55e   : > { %v4991_v48 = vpack.c.bf16 %v4939_v56, %v4937_v8  ;;  %v4677_v60 = vpop.f32.mrf.mxu1 }
 0x55f   : > { %v4800_v27 = vadd.f32 %v4677_v60, %v11700_v43 }
 0x560   : > { %5298 = vmatprep.mubr.bf16.mxu0 %v4991_v48  ;;  %v4679_v42 = vpop.f32.mrf.mxu1 }
 0x561   : > { %5299 = vmatmul.mubr.bf16.gmra.mxu0 %v4990_v44  ;;  %v4801_v7 = vadd.f32 %v4679_v42, %v11699_v37  ;;  %v4876_v22 = vadd.f32 %v10330_v51, %v4800_v27  ;;  %v11711_v37 = vld [vmem:[#allocation22_spill] sm:$0xff] }
 0x562   : > { %v4681_v33 = vpop.f32.mrf.mxu1 }
 0x563   : > { %v4802_v50 = vadd.f32 %v4681_v33, %v11701_v45  ;;  %v4877_v38 = vadd.f32 %v10325_v25, %v4801_v7  ;;  %v4940_v4 = vmax.f32 %v4876_v22, 0.0  ;;  %v11712_v7 = vmax.f32 %v11711_v37, 0.0  ;;  %v11713_v33 = vld [vmem:[#allocation23_spill] sm:$0xff] }
 0x564   : > { %v4683_v19 = vpop.f32.mrf.mxu1  ;;  %v11714_v45 = vmax.f32 %v11713_v33, 0.0 }
 0x565   : > { %v4878_v47 = vadd.f32 %v10330_v51, %v4802_v50  ;;  %v4803_v58 = vadd.f32 %v4683_v19, %v11702_v20  ;;  %v4941_v21 = vmax.f32 %v4877_v38, 0.0  ;;  %v11715_v38 = vld [vmem:[#allocation24_spill] sm:$0xff] }
 0x566   : > { %v4687_v12 = vpop.f32.mrf.mxu1 }
 0x567   : > { %v4879_v40 = vadd.f32 %v10325_v25, %v4803_v58  ;;  %v4942_v28 = vmax.f32 %v4878_v47, 0.0  ;;  %v4804_v30 = vadd.f32 %v4687_v12, %v11706_v35  ;;  %v11716_v47 = vmax.f32 %v11715_v38, 0.0  ;;  %v11727_v38 = vld [vmem:[#allocation30_spill] sm:$0xff] }
 0x568   : > { %v4689_v14 = vpop.f32.mrf.mxu1 }
 0x569   : > { %v4943_v5 = vmax.f32 %v4879_v40, 0.0  ;;  %v4805_v18 = vadd.f32 %v4689_v14, %v11704_v59  ;;  %v4992_v32 = vpack.c.bf16 %v4942_v28, %v4940_v4  ;;  %v4880_v8 = vadd.f32 %v10330_v51, %v4804_v30  ;;  %v11717_v14 = vld [vmem:[#allocation32_spill] sm:$0xff] }
 0x56a   : > { %v4691_v10 = vpop.f32.mrf.mxu1 }
 0x56b   : > { %v4806_v61 = vadd.f32 %v4691_v10, %v11708_v57  ;;  %v4993_v29 = vpack.c.bf16 %v4943_v5, %v4941_v21  ;;  %v4881_v41 = vadd.f32 %v10325_v25, %v4805_v18  ;;  %v4944_v27 = vmax.f32 %v4880_v8, 0.0  ;;  %v11719_v10 = vld [vmem:[#allocation26_spill] sm:$0xff] }
 0x56c   : > { %v4693_v24 = vpop.f32.mrf.mxu1  ;;  %v11718_v21 = vmax.f32 %v11717_v14, 0.0  ;;  %v11720_v13 = vmax.f32 %v11719_v10, 0.0 }
 0x56d   : > { %v4882_v23 = vadd.f32 %v10330_v51, %v4806_v61  ;;  %v4807_v1 = vadd.f32 %v4693_v24, %v11710_v0  ;;  %5308 = vmatprep.mubr.bf16.mxu0 %v4993_v29  ;;  %v4945_v60 = vmax.f32 %v4881_v41, 0.0  ;;  %v11721_v29 = vld [vmem:[#allocation27_spill] sm:$0xff] }
 0x56e   : > { %v4697_v56 = vpop.f32.mrf.mxu1  ;;  %5309 = vmatmul.mubr.bf16.gmra.mxu0 %v4992_v32  ;;  %v11722_v32 = vmax.f32 %v11721_v29, 0.0 }
 0x56f   : > { %v4883_v54 = vadd.f32 %v10325_v25, %v4807_v1  ;;  %v4946_v48 = vmax.f32 %v4882_v23, 0.0  ;;  %v4808_v50 = vadd.f32 %v4697_v56, %v11714_v45  ;;  %v11723_v23 = vld [vmem:[#allocation25_spill] sm:$0xff] }
 0x570   : > { %v4699_v44 = vpop.f32.mrf.mxu1  ;;  %v11724_v46 = vmax.f32 %v11723_v23, 0.0 }
 0x571   : > { %v4947_v42 = vmax.f32 %v4883_v54, 0.0  ;;  %v4809_v43 = vadd.f32 %v4699_v44, %v11712_v7  ;;  %v4994_v22 = vpack.c.bf16 %v4946_v48, %v4944_v27  ;;  %v4884_v2 = vadd.f32 %v10330_v51, %v4808_v50  ;;  %v11725_v44 = vld [vmem:[#allocation28_spill] sm:$0xff] }
 0x572   : > { %v4701_v19 = vpop.f32.mrf.mxu1 }
 0x573   : > { %v4810_v20 = vadd.f32 %v4701_v19, %v11716_v47  ;;  %v4995_v58 = vpack.c.bf16 %v4947_v42, %v4945_v60  ;;  %v4885_v40 = vadd.f32 %v10325_v25, %v4809_v43  ;;  %v4948_v61 = vmax.f32 %v4884_v2, 0.0 }
 0x574   : > { %v4703_v12 = vpop.f32.mrf.mxu1  ;;  %v11726_v60 = vmax.f32 %v11725_v44, 0.0  ;;  %v11728_v47 = vmax.f32 %v11727_v38, 0.0 }
 0x575   : > { %v4886_v28 = vadd.f32 %v10330_v51, %v4810_v20  ;;  %v4811_v5 = vadd.f32 %v4703_v12, %v11718_v21  ;;  %5318 = vmatprep.mubr.bf16.mxu0 %v4995_v58  ;;  %v4949_v35 = vmax.f32 %v4885_v40, 0.0  ;;  %v11729_v58 = vld [vmem:[#allocation7_spill] sm:$0xff]  ;;  %v11731_v21 = vld [vmem:[#allocation29_spill] sm:$0xff] }
 0x576   : > { %5319 = vmatmul.mubr.bf16.gmra.mxu0 %v4994_v22  ;;  %v11730_v22 = vmax.f32 %v11729_v58, 0.0 }
 0x577   : > { %v4707_v59 = vpop.f32.mrf.mxu1  ;;  %v4887_v18 = vadd.f32 %v10325_v25, %v4811_v5  ;;  %v4950_v4 = vmax.f32 %v4886_v28, 0.0  ;;  %v11732_v5 = vmax.f32 %v11731_v21, 0.0 }
 0x578   : > { %v4812_v24 = vadd.f32 %v4707_v59, %v11722_v32 }
 0x579   : > { %v4709_v3 = vpop.f32.mrf.mxu1  ;;  %v4951_v30 = vmax.f32 %v4887_v18, 0.0  ;;  %v4996_v8 = vpack.c.bf16 %v4950_v4, %v4948_v61 }
 0x57a   : > { %v4813_v57 = vadd.f32 %v4709_v3, %v11720_v13  ;;  %v4888_v37 = vadd.f32 %v10330_v51, %v4812_v24  ;;  %v11733_v3 = vld [vmem:[#allocation31_spill] sm:$0xff] }
 0x57b   : > { %v4711_v41 = vpop.f32.mrf.mxu1  ;;  %v4997_v1 = vpack.c.bf16 %v4951_v30, %v4949_v35  ;;  %v11734_v35 = vmax.f32 %v11733_v3, 0.0 }
 0x57c   : > { %v4814_v0 = vadd.f32 %v4711_v41, %v11724_v46  ;;  %v4889_v54 = vadd.f32 %v10325_v25, %v4813_v57  ;;  %v4952_v19 = vmax.f32 %v4888_v37, 0.0 }
 0x57d   : > { %v4713_v56 = vpop.f32.mrf.mxu1  ;;  %5328 = vmatprep.mubr.bf16.mxu0 %v4997_v1 }
 0x57e   : > { %v4890_v48 = vadd.f32 %v10330_v51, %v4814_v0  ;;  %v4815_v42 = vadd.f32 %v4713_v56, %v11726_v60  ;;  %5329 = vmatmul.mubr.bf16.gmra.mxu0 %v4996_v8  ;;  %v4953_v33 = vmax.f32 %v4889_v54, 0.0  ;;  %v11735_v0 = vmax.f32 %v10166_v6, 0.0 }
 0x57f   : > { %v11736_v8 = vmax.f32 %v10174_v36, 0.0 }
 0x580   : > { %v4891_v7 = vadd.f32 %v10325_v25, %v4815_v42  ;;  %v4954_v27 = vmax.f32 %v4890_v48, 0.0  ;;  %v11737_v48 = vmax.f32 %v10169_v34, 0.0  ;;  %v11740_v34 = vmax.f32 %v10198_v17, 0.0 }
 0x581   : > { %v4717_v43 = vpop.f32.mrf.mxu1 }
 0x582   : > { %v4955_v45 = vmax.f32 %v4891_v7, 0.0  ;;  %v4816_v12 = vadd.f32 %v4717_v43, %v11730_v22  ;;  %v4998_v14 = vpack.c.bf16 %v4954_v27, %v4952_v19  ;;  %v11738_v7 = vld [vmem:[#allocation11_spill] sm:$0xff] }
 0x583   : > { %v4719_v50 = vpop.f32.mrf.mxu1  ;;  %v11739_v43 = vmax.f32 %v11738_v7, 0.0 }
 0x584   : > { %v4817_v20 = vadd.f32 %v4719_v50, %v11728_v47  ;;  %v4999_v28 = vpack.c.bf16 %v4955_v45, %v4953_v33  ;;  %v4892_v10 = vadd.f32 %v10330_v51, %v4816_v12  ;;  %v11741_v12 = vmax.f32 %v10206_v63, 0.0 }
 0x585   : > { %v4721_v40 = vpop.f32.mrf.mxu1 }
 0x586   : > { %v4818_v2 = vadd.f32 %v4721_v40, %v11732_v5  ;;  %5338 = vmatprep.mubr.bf16.mxu0 %v4999_v28  ;;  %v4893_v18 = vadd.f32 %v10325_v25, %v4817_v20  ;;  %v4956_v32 = vmax.f32 %v4892_v10, 0.0 }
 0x587   : > { %v4723_v59 = vpop.f32.mrf.mxu1  ;;  %5339 = vmatmul.mubr.bf16.gmra.mxu0 %v4998_v14  ;;  %v11742_v14 = vld [vmem:[#allocation8_spill] sm:$0xff] }
 0x588   : > { %v4894_v4 = vadd.f32 %v10330_v51, %v4818_v2  ;;  %v4819_v30 = vadd.f32 %v4723_v59, %v11734_v35  ;;  %v4957_v61 = vmax.f32 %v4893_v18, 0.0  ;;  %v11743_v21 = vmax.f32 %v11742_v14, 0.0 }
 0x58a   : > { %v4895_v13 = vadd.f32 %v10325_v25, %v4819_v30  ;;  %v4958_v57 = vmax.f32 %v4894_v4, 0.0  ;;  %v11744_v4 = vld [vmem:[#allocation10_spill] sm:$0xff] }
 0x58b   : > { %v11745_v3 = vmax.f32 %v11744_v4, 0.0  ;;  %v11754_v4 = vmax.f32 %v10294_v52, 0.0 }
 0x58c   : > { %v4959_v29 = vmax.f32 %v4895_v13, 0.0  ;;  %v5000_v41 = vpack.c.bf16 %v4958_v57, %v4956_v32 }
 0x58e   : > { %v5001_v24 = vpack.c.bf16 %v4959_v29, %v4957_v61 }
 0x58f   : > { %v4727_v23 = vpop.f32.mrf.mxu1 }
 0x590   : > { %5348 = vmatprep.mubr.bf16.mxu0 %v5001_v24  ;;  %v4820_v56 = vadd.f32 %v4727_v23, %v11736_v8  ;;  %v11748_v8 = vmax.f32 %v10233_v9, 0.0  ;;  %v11750_v9 = vmax.f32 %v10262_v55, 0.0 }
 0x591   : > { %v4729_v46 = vpop.f32.mrf.mxu1  ;;  %5349 = vmatmul.mubr.bf16.gmra.mxu0 %v5000_v41  ;;  %v11746_v41 = vmax.f32 %v10230_v16, 0.0 }
 0x592   : > { %v4821_v1 = vadd.f32 %v4729_v46, %v11735_v0  ;;  %v4896_v33 = vadd.f32 %v10330_v51, %v4820_v56  ;;  %v11747_v46 = vmax.f32 %v10238_v26, 0.0 }
 0x593   : > { %v4731_v54 = vpop.f32.mrf.mxu1 }
 0x594   : > { %v4822_v44 = vadd.f32 %v4731_v54, %v11737_v48  ;;  %v4897_v42 = vadd.f32 %v10325_v25, %v4821_v1  ;;  %v4960_v38 = vmax.f32 %v4896_v33, 0.0 }
 0x595   : > { %v4733_v60 = vpop.f32.mrf.mxu1 }
 0x596   : > { %v4898_v37 = vadd.f32 %v10330_v51, %v4822_v44  ;;  %v4823_v27 = vadd.f32 %v4733_v60, %v11739_v43  ;;  %v4961_v36 = vmax.f32 %v4897_v42, 0.0  ;;  %v11749_v60 = vmax.f32 %v10241_v39, 0.0 }
 0x598   : > { %v4899_v6 = vadd.f32 %v10325_v25, %v4823_v27  ;;  %v4962_v45 = vmax.f32 %v4898_v37, 0.0 }
 0x599   : > { %v4737_v50 = vpop.f32.mrf.mxu1 }
 0x59a   : > { %v4963_v19 = vmax.f32 %v4899_v6, 0.0  ;;  %v5002_v22 = vpack.c.bf16 %v4962_v45, %v4960_v38  ;;  %v4824_v40 = vadd.f32 %v4737_v50, %v11741_v12  ;;  %v11753_v12 = vmax.f32 %v10273_v11, 0.0 }
 0x59b   : > { %v4739_v47 = vpop.f32.mrf.mxu1  ;;  %v11755_v11 = vmax.f32 %v10302_v53, 0.0 }
 0x59c   : > { %v4825_v20 = vadd.f32 %v4739_v47, %v11740_v34  ;;  %v5003_v58 = vpack.c.bf16 %v4963_v19, %v4961_v36  ;;  %v4900_v35 = vadd.f32 %v10330_v51, %v4824_v40  ;;  %v11751_v19 = vmax.f32 %v10270_v49, 0.0 }
 0x59d   : > { %v4741_v28 = vpop.f32.mrf.mxu1  ;;  %v11752_v47 = vmax.f32 %v10265_v15, 0.0 }
 0x59e   : > { %v4826_v5 = vadd.f32 %v4741_v28, %v11743_v21  ;;  %5358 = vmatprep.mubr.bf16.mxu0 %v5003_v58  ;;  %v4901_v59 = vadd.f32 %v10325_v25, %v4825_v20  ;;  %v4964_v57 = vmax.f32 %v4900_v35, 0.0 }
 0x59f   : > { %v4743_v2 = vpop.f32.mrf.mxu1  ;;  %5359 = vmatmul.mubr.bf16.gmra.mxu0 %v5002_v22 }
 0x5a0   : > { %v4902_v18 = vadd.f32 %v10330_v51, %v4826_v5  ;;  %v4827_v17 = vadd.f32 %v4743_v2, %v11745_v3  ;;  %v4965_v10 = vmax.f32 %v4901_v59, 0.0 }
 0x5a2   : > { %v4903_v30 = vadd.f32 %v10325_v25, %v4827_v17  ;;  %v4966_v63 = vmax.f32 %v4902_v18, 0.0 }
 0x5a4   : > { %v4967_v13 = vmax.f32 %v4903_v30, 0.0  ;;  %v5004_v29 = vpack.c.bf16 %v4966_v63, %v4964_v57  ;;  %v11756_v30 = vmax.f32 %v10297_v62, 0.0  ;;  %v5044_v62 = vld [vmem:[%s10973_s16] sm:$0x3] }
 0x5a6   : > { %v5005_v61 = vpack.c.bf16 %v4967_v13, %v4965_v10 }
 0x5a7   : > { %v4747_v32 = vpop.f32.mrf.mxu1 }
 0x5a8   : > { %5368 = vmatprep.mubr.bf16.mxu0 %v5005_v61  ;;  %v4828_v0 = vadd.f32 %v4747_v32, %v11747_v46  ;;  %v11757_v61 = vmax.f32 %v10305_v31, 0.0  ;;  %v11759_v31 = vld [vmem:[#allocation6_spill] sm:$0xff] }
 0x5a9   : > { %v4749_v24 = vpop.f32.mrf.mxu1  ;;  %5369 = vmatmul.mubr.bf16.gmra.mxu0 %v5004_v29 }
 0x5aa   : > { %v4829_v23 = vadd.f32 %v4749_v24, %v11746_v41  ;;  %v4904_v37 = vadd.f32 %v10330_v51, %v4828_v0 }
 0x5ab   : > { %v4751_v1 = vpop.f32.mrf.mxu1 }
 0x5ac   : > { %v4830_v56 = vadd.f32 %v4751_v1, %v11748_v8  ;;  %v4905_v48 = vadd.f32 %v10325_v25, %v4829_v23  ;;  %v4968_v33 = vmax.f32 %v4904_v37, 0.0  ;;  %v11758_v1 = vld [vmem:[#allocation5_spill] sm:$0xff] }
 0x5ad   : > { %v4753_v54 = vpop.f32.mrf.mxu1  ;;  %v10524_v8 = vrot.slane %v5044_v62, %v11758_v1 }
 0x5ae   : > { %v4906_v44 = vadd.f32 %v10330_v51, %v4830_v56  ;;  %v4831_v42 = vadd.f32 %v4753_v54, %v11749_v60  ;;  %v4969_v26 = vmax.f32 %v4905_v48, 0.0  ;;  %v10527_v56 = vrot.slane %v5044_v62, %v11759_v31  ;;  %v5473_v54 = vld [vmem:[%s10974_s17] ss:$2 sm:$0x3] }
 0x5af   : > { %v10535_v60 = vrot.slane %v5473_v54, %v11759_v31  ;;  %v10538_v37 = vrot.slane %v5473_v54, %v11758_v1 }
 0x5b0   : > { %v4907_v16 = vadd.f32 %v10325_v25, %v4831_v42  ;;  %v4970_v7 = vmax.f32 %v4906_v44, 0.0 }
 0x5b1   : > { %v4757_v43 = vpop.f32.mrf.mxu1 }
 0x5b2   : > { %v4971_v27 = vmax.f32 %v4907_v16, 0.0  ;;  %v5006_v36 = vpack.c.bf16 %v4970_v7, %v4968_v33  ;;  %v4832_v38 = vadd.f32 %v4757_v43, %v11751_v19  ;;  %v6311_v7 = vld [vmem:[%s10974_s17 + $0x1] ss:$2 sm:$0x3] }
 0x5b3   : > { %v4759_v6 = vpop.f32.mrf.mxu1 }
 0x5b4   : > { %v4833_v45 = vadd.f32 %v4759_v6, %v11750_v9  ;;  %v5007_v50 = vpack.c.bf16 %v4971_v27, %v4969_v26  ;;  %v4908_v40 = vadd.f32 %v10330_v51, %v4832_v38  ;;  %v10545_v27 = vrot.slane %v6311_v7, %v11759_v31 }
 0x5b5   : > { %v4761_v39 = vpop.f32.mrf.mxu1 }
 0x5b6   : > { %v4834_v34 = vadd.f32 %v4761_v39, %v11752_v47  ;;  %5378 = vmatprep.mubr.bf16.mxu0 %v5007_v50  ;;  %v4909_v58 = vadd.f32 %v10325_v25, %v4833_v45  ;;  %v4972_v5 = vmax.f32 %v4908_v40, 0.0  ;;  %v10551_v50 = vrot.slane %v6311_v7, %v11758_v1 }
 0x5b7   : > { %v4763_v20 = vpop.f32.mrf.mxu1  ;;  %5379 = vmatmul.mubr.bf16.gmra.mxu0 %v5006_v36 }
 0x5b8   : > { %v4910_v22 = vadd.f32 %v10330_v51, %v4834_v34  ;;  %v4835_v55 = vadd.f32 %v4763_v20, %v11753_v12  ;;  %v4973_v14 = vmax.f32 %v4909_v58, 0.0 }
 0x5ba   : > { %v4911_v28 = vadd.f32 %v10325_v25, %v4835_v55  ;;  %v4974_v49 = vmax.f32 %v4910_v22, 0.0 }
 0x5bc   : > { %v4975_v21 = vmax.f32 %v4911_v28, 0.0  ;;  %v5008_v2 = vpack.c.bf16 %v4974_v49, %v4972_v5 }
 0x5be   : > { %v5009_v15 = vpack.c.bf16 %v4975_v21, %v4973_v14 }
 0x5bf   : > { %v4767_v59 = vpop.f32.mrf.mxu1 }
 0x5c0   : > { %5388 = vmatprep.mubr.bf16.mxu0 %v5009_v15  ;;  %v4836_v17 = vadd.f32 %v4767_v59, %v11755_v11 }
 0x5c1   : > { %5389 = vmatmul.mubr.bf16.gmra.mxu0 %v5008_v2  ;;  %v4769_v18 = vpop.f32.mrf.mxu1 }
 0x5c2   : > { %v4837_v3 = vadd.f32 %v4769_v18, %v11754_v4  ;;  %v4912_v32 = vadd.f32 %v10330_v51, %v4836_v17 }
 0x5c3   : > { %v4771_v35 = vpop.f32.mrf.mxu1 }
 0x5c4   : > { %v4838_v63 = vadd.f32 %v4771_v35, %v11756_v30  ;;  %v4913_v13 = vadd.f32 %v10325_v25, %v4837_v3  ;;  %v4976_v23 = vmax.f32 %v4912_v32, 0.0 }
 0x5c5   : > { %v4773_v10 = vpop.f32.mrf.mxu1 }
 0x5c6   : > { %v4914_v57 = vadd.f32 %v10330_v51, %v4838_v63  ;;  %v4839_v29 = vadd.f32 %v4773_v10, %v11757_v61  ;;  %v4977_v41 = vmax.f32 %v4913_v13, 0.0 }
 0x5c8   : > { %v4915_v52 = vadd.f32 %v10325_v25, %v4839_v29  ;;  %v4978_v24 = vmax.f32 %v4914_v57, 0.0 }
 0x5ca   : > { %v4979_v53 = vmax.f32 %v4915_v52, 0.0  ;;  %v5010_v0 = vpack.c.bf16 %v4978_v24, %v4976_v23 }
 0x5cc   : > { %v5011_v46 = vpack.c.bf16 %v4979_v53, %v4977_v41 }
 0x5ce   : > { %5398 = vmatprep.mubr.bf16.mxu0 %v5011_v46 }
 0x5cf   : > { %5399 = vmatmul.mubr.bf16.gmra.mxu0 %v5010_v0 }
 0x5f9   : > { %v5250_v51 = vpop.f32.mrf.mxu0 }
 0x5fa   : > { %v5251_v25 = vadd.f32 %v5250_v51, %v10524_v8 }
 0x5fb   : > { %v5252_v48 = vpop.f32.mrf.mxu0 }
 0x5fc   : > { %v5253_v44 = vadd.f32 %v5252_v48, %v10527_v56  ;;  %v5409_v42 = vmax.f32 %v5251_v25, 0.0 }
 0x5fd   : > { %v5254_v16 = vpop.f32.mrf.mxu0 }
 0x5fe   : > { %v5410_v43 = vmax.f32 %v5253_v44, 0.0  ;;  %v5255_v26 = vadd.f32 %v5254_v16, %v10524_v8  ;;  %v5485_v45 = vmul.f32 %v10538_v37, %v5409_v42  ;;  %v5762_v12 = vmul.f32 %v10551_v50, %v5409_v42 }
 0x5ff   : > { %v5256_v33 = vpop.f32.mrf.mxu0 }
 0x600   : > { %v5486_v6 = vmul.f32 %v10535_v60, %v5410_v43  ;;  %v5257_v9 = vadd.f32 %v5256_v33, %v10527_v56  ;;  %v5411_v36 = vmax.f32 %v5255_v26, 0.0  ;;  %v5763_v47 = vmul.f32 %v10545_v27, %v5410_v43 }
 0x601   : > { %v5260_v19 = vpop.f32.mrf.mxu0 }
 0x602   : > { %v5412_v38 = vmax.f32 %v5257_v9, 0.0  ;;  %v5261_v39 = vadd.f32 %v5260_v19, %v10524_v8  ;;  %v5549_v20 = vadd.f32 %v5486_v6, %v5485_v45  ;;  %v5487_v55 = vmul.f32 %v10538_v37, %v5411_v36 }
 0x603   : > { %v5262_v34 = vpop.f32.mrf.mxu0  ;;  %v5826_v2 = vadd.f32 %v5763_v47, %v5762_v12  ;;  %v5764_v4 = vmul.f32 %v10551_v50, %v5411_v36 }
 0x604   : > { %v5488_v58 = vmul.f32 %v10535_v60, %v5412_v38  ;;  %v5263_v22 = vadd.f32 %v5262_v34, %v10527_v56  ;;  %v5413_v40 = vmax.f32 %v5261_v39, 0.0  ;;  %5550 = vadd.xlane.f32.xlu0 %v5549_v20  ;;  %v5765_v21 = vmul.f32 %v10545_v27, %v5412_v38 }
 0x605   : > { %v5264_v28 = vpop.f32.mrf.mxu0 }
 0x606   : > { %v5414_v49 = vmax.f32 %v5263_v22, 0.0  ;;  %v5265_v14 = vadd.f32 %v5264_v28, %v10524_v8  ;;  %v5552_v15 = vadd.f32 %v5488_v58, %v5487_v55  ;;  %v5489_v3 = vmul.f32 %v10538_v37, %v5413_v40 }
 0x607   : > { %v5266_v5 = vpop.f32.mrf.mxu0  ;;  %v5829_v10 = vadd.f32 %v5765_v21, %v5764_v4  ;;  %v5766_v29 = vmul.f32 %v10551_v50, %v5413_v40 }
 0x608   : > { %v5490_v59 = vmul.f32 %v10535_v60, %v5414_v49  ;;  %v5267_v18 = vadd.f32 %v5266_v5, %v10527_v56  ;;  %v5415_v11 = vmax.f32 %v5265_v14, 0.0  ;;  %5553 = vadd.xlane.f32.xlu1 %v5552_v15  ;;  %5827 = vadd.xlane.f32.xlu0 %v5826_v2  ;;  %v5767_v30 = vmul.f32 %v10545_v27, %v5414_v49 }
 0x609   : > { %v5270_v17 = vpop.f32.mrf.mxu0 }
 0x60a   : > { %v5416_v35 = vmax.f32 %v5267_v18, 0.0  ;;  %v5555_v13 = vadd.f32 %v5490_v59, %v5489_v3  ;;  %v5768_v32 = vmul.f32 %v10551_v50, %v5415_v11  ;;  %v5271_v52 = vadd.f32 %v5270_v17, %v10524_v8 }
 0x60b   : > { %v5272_v63 = vpop.f32.mrf.mxu0  ;;  %v5832_v62 = vadd.f32 %v5767_v30, %v5766_v29  ;;  %v5491_v31 = vmul.f32 %v10538_v37, %v5415_v11 }
 0x60c   : > { %v5769_v57 = vmul.f32 %v10545_v27, %v5416_v35  ;;  %v5273_v61 = vadd.f32 %v5272_v63, %v10527_v56  ;;  %5830 = vadd.xlane.f32.xlu1 %v5829_v10  ;;  %5556 = vadd.xlane.f32.xlu0 %v5555_v13  ;;  %v5492_v53 = vmul.f32 %v10535_v60, %v5416_v35  ;;  %v5417_v51 = vmax.f32 %v5271_v52, 0.0 }
 0x60d   : > { %v5274_v24 = vpop.f32.mrf.mxu0 }
 0x60e   : > { %v5275_v41 = vadd.f32 %v5274_v24, %v10524_v8  ;;  %v5418_v23 = vmax.f32 %v5273_v61, 0.0  ;;  %v5835_v0 = vadd.f32 %v5769_v57, %v5768_v32  ;;  %v5558_v16 = vadd.f32 %v5492_v53, %v5491_v31 }
 0x60f   : > { %v5276_v46 = vpop.f32.mrf.mxu0  ;;  %v5493_v26 = vmul.f32 %v10538_v37, %v5417_v51  ;;  %v5770_v58 = vmul.f32 %v10551_v50, %v5417_v51 }
 0x610   : > { %v5277_v1 = vadd.f32 %v5276_v46, %v10527_v56  ;;  %v5419_v25 = vmax.f32 %v5275_v41, 0.0  ;;  %5836 = vadd.xlane.f32.xlu1 %v5835_v0  ;;  %5833 = vadd.xlane.f32.xlu0 %v5832_v62  ;;  %v5494_v44 = vmul.f32 %v10535_v60, %v5418_v23  ;;  %v5771_v45 = vmul.f32 %v10545_v27, %v5418_v23 }
 0x611   : > { %v5280_v54 = vpop.f32.mrf.mxu0 }
 0x612   : > { %v5420_v48 = vmax.f32 %v5277_v1, 0.0  ;;  %v5495_v33 = vmul.f32 %v10538_v37, %v5419_v25  ;;  %v5281_v6 = vadd.f32 %v5280_v54, %v10524_v8  ;;  %v5561_v34 = vadd.f32 %v5494_v44, %v5493_v26 }
 0x613   : > { %v5282_v42 = vpop.f32.mrf.mxu0  ;;  %v5772_v22 = vmul.f32 %v10551_v50, %v5419_v25  ;;  %v5838_v5 = vadd.f32 %v5771_v45, %v5770_v58 }
 0x614   : > { %v5496_v7 = vmul.f32 %v10535_v60, %v5420_v48  ;;  %v5283_v43 = vadd.f32 %v5282_v42, %v10527_v56  ;;  %5559 = vadd.xlane.f32.xlu0 %v5558_v16  ;;  %v5773_v19 = vmul.f32 %v10545_v27, %v5420_v48  ;;  %v5421_v12 = vmax.f32 %v5281_v6, 0.0 }
 0x615   : > { %v5284_v9 = vpop.f32.mrf.mxu0 }
 0x616   : > { %v5285_v36 = vadd.f32 %v5284_v9, %v10524_v8  ;;  %v5422_v38 = vmax.f32 %v5283_v43, 0.0  ;;  %v5564_v47 = vadd.f32 %v5496_v7, %v5495_v33  ;;  %v5841_v21 = vadd.f32 %v5773_v19, %v5772_v22 }
 0x617   : > { %v5286_v39 = vpop.f32.mrf.mxu0  ;;  %v5497_v59 = vmul.f32 %v10538_v37, %v5421_v12  ;;  %v5774_v61 = vmul.f32 %v10551_v50, %v5421_v12 }
 0x618   : > { %v5287_v20 = vadd.f32 %v5286_v39, %v10527_v56  ;;  %v5423_v55 = vmax.f32 %v5285_v36, 0.0  ;;  %5565 = vadd.xlane.f32.xlu1 %v5564_v47  ;;  %5562 = vadd.xlane.f32.xlu0 %v5561_v34  ;;  %v5498_v49 = vmul.f32 %v10535_v60, %v5422_v38  ;;  %v5775_v11 = vmul.f32 %v10545_v27, %v5422_v38 }
 0x619   : > { %v5290_v40 = vpop.f32.mrf.mxu0 }
 0x61a   : > { %v5424_v28 = vmax.f32 %v5287_v20, 0.0  ;;  %v5499_v18 = vmul.f32 %v10538_v37, %v5423_v55  ;;  %v5291_v4 = vadd.f32 %v5290_v40, %v10524_v8  ;;  %v5567_v13 = vadd.f32 %v5498_v49, %v5497_v59 }
 0x61b   : > { %v5292_v14 = vpop.f32.mrf.mxu0  ;;  %v5776_v29 = vmul.f32 %v10551_v50, %v5423_v55  ;;  %v5844_v0 = vadd.f32 %v5775_v11, %v5774_v61 }
 0x61c   : > { %v5500_v15 = vmul.f32 %v10535_v60, %v5424_v28  ;;  %v5293_v2 = vadd.f32 %v5292_v14, %v10527_v56  ;;  %5842 = vadd.xlane.f32.xlu1 %v5841_v21  ;;  %5839 = vadd.xlane.f32.xlu0 %v5838_v5  ;;  %v5777_v35 = vmul.f32 %v10545_v27, %v5424_v28  ;;  %v5425_v32 = vmax.f32 %v5291_v4, 0.0 }
 0x61d   : > { %v5294_v3 = vpop.f32.mrf.mxu0 }
 0x61e   : > { %v5295_v17 = vadd.f32 %v5294_v3, %v10524_v8  ;;  %v5426_v30 = vmax.f32 %v5293_v2, 0.0  ;;  %v5570_v10 = vadd.f32 %v5500_v15, %v5499_v18  ;;  %v5847_v46 = vadd.f32 %v5777_v35, %v5776_v29 }
 0x61f   : > { %v5296_v63 = vpop.f32.mrf.mxu0  ;;  %v5501_v31 = vmul.f32 %v10538_v37, %v5425_v32  ;;  %v5778_v9 = vmul.f32 %v10551_v50, %v5425_v32 }
 0x620   : > { %v5297_v57 = vadd.f32 %v5296_v63, %v10527_v56  ;;  %v5427_v52 = vmax.f32 %v5295_v17, 0.0  ;;  %5571 = vadd.xlane.f32.xlu1 %v5570_v10  ;;  %5568 = vadd.xlane.f32.xlu0 %v5567_v13  ;;  %v5502_v53 = vmul.f32 %v10535_v60, %v5426_v30  ;;  %v5779_v48 = vmul.f32 %v10545_v27, %v5426_v30 }
 0x621   : > { %v5300_v24 = vpop.f32.mrf.mxu0 }
 0x622   : > { %v5428_v41 = vmax.f32 %v5297_v57, 0.0  ;;  %v5503_v51 = vmul.f32 %v10538_v37, %v5427_v52  ;;  %v5301_v25 = vadd.f32 %v5300_v24, %v10524_v8  ;;  %v5573_v26 = vadd.f32 %v5502_v53, %v5501_v31 }
 0x623   : > { %v5302_v23 = vpop.f32.mrf.mxu0  ;;  %v5780_v45 = vmul.f32 %v10551_v50, %v5427_v52  ;;  %v5850_v47 = vadd.f32 %v5779_v48, %v5778_v9 }
 0x624   : > { %v5504_v62 = vmul.f32 %v10535_v60, %v5428_v41  ;;  %v5303_v1 = vadd.f32 %v5302_v23, %v10527_v56  ;;  %5848 = vadd.xlane.f32.xlu1 %v5847_v46  ;;  %5845 = vadd.xlane.f32.xlu0 %v5844_v0  ;;  %v5781_v42 = vmul.f32 %v10545_v27, %v5428_v41  ;;  %v5429_v36 = vmax.f32 %v5301_v25, 0.0 }
 0x625   : > { %v5304_v54 = vpop.f32.mrf.mxu0 }
 0x626   : > { %v5305_v44 = vadd.f32 %v5304_v54, %v10524_v8  ;;  %v5430_v16 = vmax.f32 %v5303_v1, 0.0  ;;  %v5576_v43 = vadd.f32 %v5504_v62, %v5503_v51  ;;  %v5853_v39 = vadd.f32 %v5781_v42, %v5780_v45 }
 0x627   : > { %v5306_v7 = vpop.f32.mrf.mxu0  ;;  %v5505_v58 = vmul.f32 %v10538_v37, %v5429_v36  ;;  %v5782_v14 = vmul.f32 %v10551_v50, %v5429_v36 }
 0x628   : > { %v5431_v33 = vmax.f32 %v5305_v44, 0.0  ;;  %v5307_v6 = vadd.f32 %v5306_v7, %v10527_v56  ;;  %5577 = vadd.xlane.f32.xlu1 %v5576_v43  ;;  %5574 = vadd.xlane.f32.xlu0 %v5573_v26  ;;  %v5506_v38 = vmul.f32 %v10535_v60, %v5430_v16  ;;  %v5783_v12 = vmul.f32 %v10545_v27, %v5430_v16 }
 0x62a   : > { %v5432_v19 = vmax.f32 %v5307_v6, 0.0  ;;  %v5507_v34 = vmul.f32 %v10538_v37, %v5431_v33  ;;  %v5579_v28 = vadd.f32 %v5506_v38, %v5505_v58  ;;  %v5784_v21 = vmul.f32 %v10551_v50, %v5431_v33 }
 0x62b   : > { %v5856_v4 = vadd.f32 %v5783_v12, %v5782_v14 }
 0x62c   : > { %v5508_v20 = vmul.f32 %v10535_v60, %v5432_v19  ;;  %5854 = vadd.xlane.f32.xlu1 %v5853_v39  ;;  %5851 = vadd.xlane.f32.xlu0 %v5850_v47  ;;  %v5785_v55 = vmul.f32 %v10545_v27, %v5432_v19 }
 0x62e   : > { %v5582_v22 = vadd.f32 %v5508_v20, %v5507_v34  ;;  %v5310_v40 = vpop.f32.mrf.mxu0  ;;  %v5859_v18 = vadd.f32 %v5785_v55, %v5784_v21 }
 0x62f   : > { %v5311_v49 = vadd.f32 %v5310_v40, %v10524_v8 }
 0x630   : > { %v5312_v5 = vpop.f32.mrf.mxu0  ;;  %5583 = vadd.xlane.f32.xlu1 %v5582_v22  ;;  %5580 = vadd.xlane.f32.xlu0 %v5579_v28 }
 0x631   : > { %v5313_v15 = vadd.f32 %v5312_v5, %v10527_v56  ;;  %v5433_v2 = vmax.f32 %v5311_v49, 0.0 }
 0x632   : > { %v5314_v59 = vpop.f32.mrf.mxu0 }
 0x633   : > { %v5434_v3 = vmax.f32 %v5313_v15, 0.0  ;;  %v5315_v11 = vadd.f32 %v5314_v59, %v10524_v8  ;;  %v5509_v63 = vmul.f32 %v10538_v37, %v5433_v2  ;;  %v5786_v53 = vmul.f32 %v10551_v50, %v5433_v2 }
 0x634   : > { %v5316_v17 = vpop.f32.mrf.mxu0  ;;  %5860 = vadd.xlane.f32.xlu1 %v5859_v18  ;;  %5857 = vadd.xlane.f32.xlu0 %v5856_v4 }
 0x635   : > { %v5510_v35 = vmul.f32 %v10535_v60, %v5434_v3  ;;  %v5317_v30 = vadd.f32 %v5316_v17, %v10527_v56  ;;  %v5435_v10 = vmax.f32 %v5315_v11, 0.0  ;;  %v5787_v29 = vmul.f32 %v10545_v27, %v5434_v3 }
 0x636   : > { %v5320_v13 = vpop.f32.mrf.mxu0 }
 0x637   : > { %v5436_v57 = vmax.f32 %v5317_v30, 0.0  ;;  %v5321_v61 = vadd.f32 %v5320_v13, %v10524_v8  ;;  %v5585_v52 = vadd.f32 %v5510_v35, %v5509_v63  ;;  %v5511_v23 = vmul.f32 %v10538_v37, %v5435_v10 }
 0x638   : > { %v5322_v32 = vpop.f32.mrf.mxu0  ;;  %v5862_v54 = vadd.f32 %v5787_v29, %v5786_v53  ;;  %v5788_v42 = vmul.f32 %v10551_v50, %v5435_v10 }
 0x639   : > { %v5512_v24 = vmul.f32 %v10535_v60, %v5436_v57  ;;  %v5323_v41 = vadd.f32 %v5322_v32, %v10527_v56  ;;  %v5437_v46 = vmax.f32 %v5321_v61, 0.0  ;;  %5586 = vadd.xlane.f32.xlu0 %v5585_v52  ;;  %v5789_v31 = vmul.f32 %v10545_v27, %v5436_v57 }
 0x63a   : > { %v5324_v0 = vpop.f32.mrf.mxu0 }
 0x63b   : > { %v5438_v62 = vmax.f32 %v5323_v41, 0.0  ;;  %v5325_v1 = vadd.f32 %v5324_v0, %v10524_v8  ;;  %v5588_v25 = vadd.f32 %v5512_v24, %v5511_v23  ;;  %v5513_v16 = vmul.f32 %v10538_v37, %v5437_v46 }
 0x63c   : > { %v5326_v51 = vpop.f32.mrf.mxu0  ;;  %v5865_v45 = vadd.f32 %v5789_v31, %v5788_v42  ;;  %v5790_v39 = vmul.f32 %v10551_v50, %v5437_v46 }
 0x63d   : > { %v5514_v48 = vmul.f32 %v10535_v60, %v5438_v62  ;;  %v5327_v44 = vadd.f32 %v5326_v51, %v10527_v56  ;;  %v5439_v7 = vmax.f32 %v5325_v1, 0.0  ;;  %5589 = vadd.xlane.f32.xlu1 %v5588_v25  ;;  %5863 = vadd.xlane.f32.xlu0 %v5862_v54  ;;  %v5791_v6 = vmul.f32 %v10545_v27, %v5438_v62 }
 0x63e   : > { %v5330_v43 = vpop.f32.mrf.mxu0 }
 0x63f   : > { %v5440_v26 = vmax.f32 %v5327_v44, 0.0  ;;  %v5331_v33 = vadd.f32 %v5330_v43, %v10524_v8  ;;  %v5591_v36 = vadd.f32 %v5514_v48, %v5513_v16  ;;  %v5515_v47 = vmul.f32 %v10538_v37, %v5439_v7 }
 0x640   : > { %v5332_v9 = vpop.f32.mrf.mxu0  ;;  %v5868_v28 = vadd.f32 %v5791_v6, %v5790_v39  ;;  %v5792_v21 = vmul.f32 %v10551_v50, %v5439_v7 }
 0x641   : > { %v5516_v19 = vmul.f32 %v10535_v60, %v5440_v26  ;;  %v5333_v38 = vadd.f32 %v5332_v9, %v10527_v56  ;;  %v5441_v34 = vmax.f32 %v5331_v33, 0.0  ;;  %5866 = vadd.xlane.f32.xlu1 %v5865_v45  ;;  %5592 = vadd.xlane.f32.xlu0 %v5591_v36  ;;  %v5793_v12 = vmul.f32 %v10545_v27, %v5440_v26 }
 0x642   : > { %v5334_v20 = vpop.f32.mrf.mxu0 }
 0x643   : > { %v5442_v58 = vmax.f32 %v5333_v38, 0.0  ;;  %v5335_v22 = vadd.f32 %v5334_v20, %v10524_v8  ;;  %v5594_v40 = vadd.f32 %v5516_v19, %v5515_v47  ;;  %v5517_v5 = vmul.f32 %v10538_v37, %v5441_v34 }
 0x644   : > { %v5336_v55 = vpop.f32.mrf.mxu0  ;;  %v5871_v11 = vadd.f32 %v5793_v12, %v5792_v21  ;;  %v5794_v10 = vmul.f32 %v10551_v50, %v5441_v34 }
 0x645   : > { %v5518_v49 = vmul.f32 %v10535_v60, %v5442_v58  ;;  %v5337_v14 = vadd.f32 %v5336_v55, %v10527_v56  ;;  %v5443_v15 = vmax.f32 %v5335_v22, 0.0  ;;  %5595 = vadd.xlane.f32.xlu1 %v5594_v40  ;;  %5869 = vadd.xlane.f32.xlu0 %v5868_v28  ;;  %v5795_v4 = vmul.f32 %v10545_v27, %v5442_v58 }
 0x647   : > { %v5340_v2 = vpop.f32.mrf.mxu0  ;;  %v5444_v59 = vmax.f32 %v5337_v14, 0.0  ;;  %v5597_v17 = vadd.f32 %v5518_v49, %v5517_v5  ;;  %v5519_v13 = vmul.f32 %v10538_v37, %v5443_v15  ;;  %v5874_v41 = vadd.f32 %v5795_v4, %v5794_v10 }
 0x648   : > { %v5341_v18 = vadd.f32 %v5340_v2, %v10524_v8  ;;  %v5796_v62 = vmul.f32 %v10551_v50, %v5443_v15 }
 0x649   : > { %v5342_v3 = vpop.f32.mrf.mxu0  ;;  %v5520_v35 = vmul.f32 %v10535_v60, %v5444_v59  ;;  %5872 = vadd.xlane.f32.xlu1 %v5871_v11  ;;  %5598 = vadd.xlane.f32.xlu0 %v5597_v17  ;;  %v5797_v32 = vmul.f32 %v10545_v27, %v5444_v59 }
 0x64a   : > { %v5445_v30 = vmax.f32 %v5341_v18, 0.0  ;;  %v5343_v63 = vadd.f32 %v5342_v3, %v10527_v56 }
 0x64b   : > { %v5344_v57 = vpop.f32.mrf.mxu0  ;;  %v5600_v24 = vadd.f32 %v5520_v35, %v5519_v13  ;;  %v5877_v48 = vadd.f32 %v5797_v32, %v5796_v62 }
 0x64c   : > { %v5446_v61 = vmax.f32 %v5343_v63, 0.0  ;;  %v5345_v29 = vadd.f32 %v5344_v57, %v10524_v8  ;;  %v5521_v53 = vmul.f32 %v10538_v37, %v5445_v30  ;;  %v5798_v7 = vmul.f32 %v10551_v50, %v5445_v30 }
 0x64d   : > { %v5346_v52 = vpop.f32.mrf.mxu0  ;;  %5601 = vadd.xlane.f32.xlu1 %v5600_v24  ;;  %5875 = vadd.xlane.f32.xlu0 %v5874_v41 }
 0x64e   : > { %v5522_v23 = vmul.f32 %v10535_v60, %v5446_v61  ;;  %v5447_v46 = vmax.f32 %v5345_v29, 0.0  ;;  %v5347_v0 = vadd.f32 %v5346_v52, %v10527_v56  ;;  %v5799_v25 = vmul.f32 %v10545_v27, %v5446_v61 }
 0x650   : > { %v5448_v1 = vmax.f32 %v5347_v0, 0.0  ;;  %v5603_v51 = vadd.f32 %v5522_v23, %v5521_v53  ;;  %v5523_v44 = vmul.f32 %v10538_v37, %v5447_v46  ;;  %v5880_v19 = vadd.f32 %v5799_v25, %v5798_v7 }
 0x651   : > { %v5350_v31 = vpop.f32.mrf.mxu0  ;;  %5878 = vadd.xlane.f32.xlu1 %v5877_v48  ;;  %v5800_v38 = vmul.f32 %v10551_v50, %v5447_v46 }
 0x652   : > { %v5351_v54 = vadd.f32 %v5350_v31, %v10524_v8  ;;  %v5524_v42 = vmul.f32 %v10535_v60, %v5448_v1  ;;  %5604 = vadd.xlane.f32.xlu0 %v5603_v51  ;;  %v5801_v9 = vmul.f32 %v10545_v27, %v5448_v1 }
 0x653   : > { %v5352_v16 = vpop.f32.mrf.mxu0 }
 0x654   : > { %v5449_v43 = vmax.f32 %v5351_v54, 0.0  ;;  %v5353_v26 = vadd.f32 %v5352_v16, %v10527_v56  ;;  %v5606_v6 = vadd.f32 %v5524_v42, %v5523_v44  ;;  %v5883_v55 = vadd.f32 %v5801_v9, %v5800_v38 }
 0x655   : > { %v5354_v33 = vpop.f32.mrf.mxu0 }
 0x656   : > { %v5450_v45 = vmax.f32 %v5353_v26, 0.0  ;;  %v5355_v36 = vadd.f32 %v5354_v33, %v10524_v8  ;;  %v5525_v47 = vmul.f32 %v10538_v37, %v5449_v43  ;;  %5607 = vadd.xlane.f32.xlu1 %v5606_v6  ;;  %5881 = vadd.xlane.f32.xlu0 %v5880_v19  ;;  %v5802_v28 = vmul.f32 %v10551_v50, %v5449_v43 }
 0x657   : > { %v5356_v39 = vpop.f32.mrf.mxu0 }
 0x658   : > { %v5526_v34 = vmul.f32 %v10535_v60, %v5450_v45  ;;  %v5451_v20 = vmax.f32 %v5355_v36, 0.0  ;;  %v5357_v58 = vadd.f32 %v5356_v39, %v10527_v56  ;;  %v5803_v22 = vmul.f32 %v10545_v27, %v5450_v45 }
 0x65a   : > { %v5452_v12 = vmax.f32 %v5357_v58, 0.0  ;;  %v5609_v40 = vadd.f32 %v5526_v34, %v5525_v47  ;;  %v5527_v49 = vmul.f32 %v10538_v37, %v5451_v20  ;;  %5884 = vadd.xlane.f32.xlu1 %v5883_v55  ;;  %v5886_v15 = vadd.f32 %v5803_v22, %v5802_v28 }
 0x65b   : > { %v5804_v59 = vmul.f32 %v10551_v50, %v5451_v20 }
 0x65c   : > { %v5528_v14 = vmul.f32 %v10535_v60, %v5452_v12  ;;  %5610 = vadd.xlane.f32.xlu0 %v5609_v40  ;;  %v5805_v21 = vmul.f32 %v10545_v27, %v5452_v12 }
 0x65e   : > { %v5612_v5 = vadd.f32 %v5528_v14, %v5527_v49  ;;  %v5889_v17 = vadd.f32 %v5805_v21, %v5804_v59 }
 0x65f   : > { %v5360_v2 = vpop.f32.mrf.mxu0 }
 0x660   : > { %v5361_v18 = vadd.f32 %v5360_v2, %v10524_v8  ;;  %5613 = vadd.xlane.f32.xlu1 %v5612_v5  ;;  %5887 = vadd.xlane.f32.xlu0 %v5886_v15 }
 0x661   : > { %v5362_v4 = vpop.f32.mrf.mxu0 }
 0x662   : > { %v5453_v3 = vmax.f32 %v5361_v18, 0.0  ;;  %v5363_v11 = vadd.f32 %v5362_v4, %v10527_v56 }
 0x663   : > { %v5364_v35 = vpop.f32.mrf.mxu0 }
 0x664   : > { %v5454_v30 = vmax.f32 %v5363_v11, 0.0  ;;  %v5365_v63 = vadd.f32 %v5364_v35, %v10524_v8  ;;  %5890 = vadd.xlane.f32.xlu1 %v5889_v17  ;;  %v5529_v13 = vmul.f32 %v10538_v37, %v5453_v3  ;;  %v5806_v53 = vmul.f32 %v10551_v50, %v5453_v3 }
 0x665   : > { %v5366_v10 = vpop.f32.mrf.mxu0 }
 0x666   : > { %v5530_v57 = vmul.f32 %v10535_v60, %v5454_v30  ;;  %v5455_v61 = vmax.f32 %v5365_v63, 0.0  ;;  %v5367_v29 = vadd.f32 %v5366_v10, %v10527_v56  ;;  %v5807_v32 = vmul.f32 %v10545_v27, %v5454_v30 }
 0x668   : > { %v5456_v52 = vmax.f32 %v5367_v29, 0.0  ;;  %v5615_v24 = vadd.f32 %v5530_v57, %v5529_v13  ;;  %v5531_v23 = vmul.f32 %v10538_v37, %v5455_v61  ;;  %v5892_v54 = vadd.f32 %v5807_v32, %v5806_v53 }
 0x669   : > { %v5370_v41 = vpop.f32.mrf.mxu0  ;;  %v5808_v48 = vmul.f32 %v10551_v50, %v5455_v61 }
 0x66a   : > { %v5532_v46 = vmul.f32 %v10535_v60, %v5456_v52  ;;  %v5371_v0 = vadd.f32 %v5370_v41, %v10524_v8  ;;  %5616 = vadd.xlane.f32.xlu0 %v5615_v24  ;;  %v5809_v62 = vmul.f32 %v10545_v27, %v5456_v52 }
 0x66b   : > { %v5372_v1 = vpop.f32.mrf.mxu0 }
 0x66c   : > { %v5457_v31 = vmax.f32 %v5371_v0, 0.0  ;;  %v5373_v51 = vadd.f32 %v5372_v1, %v10527_v56  ;;  %v5618_v25 = vadd.f32 %v5532_v46, %v5531_v23  ;;  %v5895_v43 = vadd.f32 %v5809_v62, %v5808_v48 }
 0x66d   : > { %v5374_v44 = vpop.f32.mrf.mxu0 }
 0x66e   : > { %v5458_v42 = vmax.f32 %v5373_v51, 0.0  ;;  %v5375_v16 = vadd.f32 %v5374_v44, %v10524_v8  ;;  %5619 = vadd.xlane.f32.xlu1 %v5618_v25  ;;  %5893 = vadd.xlane.f32.xlu0 %v5892_v54  ;;  %v5533_v26 = vmul.f32 %v10538_v37, %v5457_v31  ;;  %v5810_v38 = vmul.f32 %v10551_v50, %v5457_v31 }
 0x66f   : > { %v5376_v7 = vpop.f32.mrf.mxu0 }
 0x670   : > { %v5534_v33 = vmul.f32 %v10535_v60, %v5458_v42  ;;  %v5459_v6 = vmax.f32 %v5375_v16, 0.0  ;;  %v5377_v9 = vadd.f32 %v5376_v7, %v10527_v56  ;;  %v5811_v45 = vmul.f32 %v10545_v27, %v5458_v42 }
 0x672   : > { %v5460_v36 = vmax.f32 %v5377_v9, 0.0  ;;  %5896 = vadd.xlane.f32.xlu1 %v5895_v43  ;;  %v5621_v19 = vadd.f32 %v5534_v33, %v5533_v26  ;;  %v5535_v39 = vmul.f32 %v10538_v37, %v5459_v6  ;;  %v5898_v58 = vadd.f32 %v5811_v45, %v5810_v38  ;;  %v10728_v26 = vld [vmem:[%s10975_s18] ss:$0 sm:$0xff] }
 0x673   : > { %v5812_v12 = vmul.f32 %v10551_v50, %v5459_v6 }
 0x674   : > { %v5536_v47 = vmul.f32 %v10535_v60, %v5460_v36  ;;  %5622 = vadd.xlane.f32.xlu0 %v5621_v19  ;;  %v5813_v34 = vmul.f32 %v10545_v27, %v5460_v36 }
 0x676   : > { %v5624_v20 = vadd.f32 %v5536_v47, %v5535_v39  ;;  %v5901_v14 = vadd.f32 %v5813_v34, %v5812_v12 }
 0x677   : > { %v5380_v22 = vpop.f32.mrf.mxu0 }
 0x678   : > { %v5381_v55 = vadd.f32 %v5380_v22, %v10524_v8  ;;  %5625 = vadd.xlane.f32.xlu1 %v5624_v20  ;;  %5899 = vadd.xlane.f32.xlu0 %v5898_v58 }
 0x679   : > { %v5382_v40 = vpop.f32.mrf.mxu0 }
 0x67a   : > { %v5461_v28 = vmax.f32 %v5381_v55, 0.0  ;;  %v5383_v49 = vadd.f32 %v5382_v40, %v10527_v56 }
 0x67b   : > { %v5384_v21 = vpop.f32.mrf.mxu0 }
 0x67c   : > { %v5462_v5 = vmax.f32 %v5383_v49, 0.0  ;;  %v5385_v15 = vadd.f32 %v5384_v21, %v10524_v8  ;;  %5902 = vadd.xlane.f32.xlu1 %v5901_v14  ;;  %v5537_v59 = vmul.f32 %v10538_v37, %v5461_v28  ;;  %v5814_v63 = vmul.f32 %v10551_v50, %v5461_v28 }
 0x67d   : > { %v5386_v2 = vpop.f32.mrf.mxu0 }
 0x67e   : > { %v5538_v18 = vmul.f32 %v10535_v60, %v5462_v5  ;;  %v5463_v4 = vmax.f32 %v5385_v15, 0.0  ;;  %v5387_v3 = vadd.f32 %v5386_v2, %v10527_v56  ;;  %v5815_v11 = vmul.f32 %v10545_v27, %v5462_v5 }
 0x680   : > { %v5464_v17 = vmax.f32 %v5387_v3, 0.0  ;;  %v5627_v35 = vadd.f32 %v5538_v18, %v5537_v59  ;;  %v5539_v10 = vmul.f32 %v10538_v37, %v5463_v4  ;;  %v5904_v41 = vadd.f32 %v5815_v11, %v5814_v63 }
 0x681   : > { %v5390_v30 = vpop.f32.mrf.mxu0  ;;  %v5816_v53 = vmul.f32 %v10551_v50, %v5463_v4 }
 0x682   : > { %v5540_v13 = vmul.f32 %v10535_v60, %v5464_v17  ;;  %v5391_v57 = vadd.f32 %v5390_v30, %v10524_v8  ;;  %5628 = vadd.xlane.f32.xlu0 %v5627_v35  ;;  %v5817_v61 = vmul.f32 %v10545_v27, %v5464_v17 }
 0x683   : > { %v5392_v29 = vpop.f32.mrf.mxu0 }
 0x684   : > { %v5465_v32 = vmax.f32 %v5391_v57, 0.0  ;;  %v5393_v52 = vadd.f32 %v5392_v29, %v10527_v56  ;;  %v5630_v24 = vadd.f32 %v5540_v13, %v5539_v10  ;;  %v5907_v1 = vadd.f32 %v5817_v61, %v5816_v53 }
 0x685   : > { %v5394_v23 = vpop.f32.mrf.mxu0 }
 0x686   : > { %v5466_v46 = vmax.f32 %v5393_v52, 0.0  ;;  %v5395_v0 = vadd.f32 %v5394_v23, %v10524_v8  ;;  %5631 = vadd.xlane.f32.xlu1 %v5630_v24  ;;  %5905 = vadd.xlane.f32.xlu0 %v5904_v41  ;;  %v5541_v31 = vmul.f32 %v10538_v37, %v5465_v32  ;;  %v5818_v16 = vmul.f32 %v10551_v50, %v5465_v32 }
 0x687   : > { %v5396_v62 = vpop.f32.mrf.mxu0 }
 0x688   : > { %v5542_v51 = vmul.f32 %v10535_v60, %v5466_v46  ;;  %v5467_v25 = vmax.f32 %v5395_v0, 0.0  ;;  %v5397_v54 = vadd.f32 %v5396_v62, %v10527_v56  ;;  %v5819_v48 = vmul.f32 %v10545_v27, %v5466_v46 }
 0x68a   : > { %v5468_v44 = vmax.f32 %v5397_v54, 0.0  ;;  %5908 = vadd.xlane.f32.xlu1 %v5907_v1  ;;  %v5633_v42 = vadd.f32 %v5542_v51, %v5541_v31  ;;  %v5543_v7 = vmul.f32 %v10538_v37, %v5467_v25  ;;  %v5910_v9 = vadd.f32 %v5819_v48, %v5818_v16 }
 0x68b   : > { %v5820_v36 = vmul.f32 %v10551_v50, %v5467_v25 }
 0x68c   : > { %v5544_v43 = vmul.f32 %v10535_v60, %v5468_v44  ;;  %5634 = vadd.xlane.f32.xlu0 %v5633_v42  ;;  %v5821_v33 = vmul.f32 %v10545_v27, %v5468_v44 }
 0x68d   : > { %v5551_v45 = vpop.xlane.xlu0 %5550 }
 0x68e   : > { %v5636_v6 = vadd.f32 %v5544_v43, %v5543_v7  ;;  %v5652_v19 = vadd.f32 %v10728_v26, %v5551_v45  ;;  %v5913_v34 = vadd.f32 %v5821_v33, %v5820_v36 }
 0x68f   : > { %v5400_v38 = vpop.f32.mrf.mxu0 }
 0x690   : > { %5637 = vadd.xlane.f32.xlu1 %v5636_v6  ;;  %5911 = vadd.xlane.f32.xlu0 %v5910_v9  ;;  %v5401_v39 = vadd.f32 %v5400_v38, %v10524_v8  ;;  %6832 = vtanh.f32 %v5652_v19 }
 0x691   : > { %v5402_v47 = vpop.f32.mrf.mxu0  ;;  %v5554_v58 = vpop.xlane.xlu1 %5553 }
 0x692   : > { %v5469_v20 = vmax.f32 %v5401_v39, 0.0  ;;  %v5828_v22 = vpop.xlane.xlu0 %5827  ;;  %v5403_v12 = vadd.f32 %v5402_v47, %v10527_v56  ;;  %v5653_v55 = vadd.f32 %v10728_v26, %v5554_v58 }
 0x693   : > { %v5929_v40 = vadd.f32 %v10728_v26, %v5828_v22  ;;  %v5404_v28 = vpop.f32.mrf.mxu0 }
 0x694   : > { %5914 = vadd.xlane.f32.xlu1 %v5913_v34  ;;  %v5470_v49 = vmax.f32 %v5403_v12, 0.0  ;;  %v5405_v14 = vadd.f32 %v5404_v28, %v10524_v8  ;;  %6834 = vtanh.f32 %v5653_v55  ;;  %v5545_v5 = vmul.f32 %v10538_v37, %v5469_v20 }
 0x695   : > { %v5406_v21 = vpop.f32.mrf.mxu0  ;;  %6836 = vtanh.f32 %v5929_v40  ;;  %v5831_v2 = vpop.xlane.xlu1 %5830  ;;  %v5822_v30 = vmul.f32 %v10551_v50, %v5469_v20 }
 0x696   : > { %v5546_v15 = vmul.f32 %v10535_v60, %v5470_v49  ;;  %v5557_v59 = vpop.xlane.xlu0 %5556  ;;  %v5471_v18 = vmax.f32 %v5405_v14, 0.0  ;;  %v5930_v4 = vadd.f32 %v10728_v26, %v5831_v2  ;;  %v5407_v11 = vadd.f32 %v5406_v21, %v10527_v56 }
 0x697   : > { %v5654_v3 = vadd.f32 %v10728_v26, %v5557_v59  ;;  %v5823_v17 = vmul.f32 %v10545_v27, %v5470_v49 }
 0x698   : > { %v5639_v35 = vadd.f32 %v5546_v15, %v5545_v5  ;;  %6838 = vtanh.f32 %v5930_v4  ;;  %v5472_v8 = vmax.f32 %v5407_v11, 0.0  ;;  %v5547_v10 = vmul.f32 %v10538_v37, %v5471_v18 }
 0x699   : > { %6840 = vtanh.f32 %v5654_v3  ;;  %v5837_v57 = vpop.xlane.xlu1 %5836  ;;  %v5916_v56 = vadd.f32 %v5823_v17, %v5822_v30  ;;  %v5824_v37 = vmul.f32 %v10551_v50, %v5471_v18 }
 0x69a   : > { %v5834_v63 = vpop.xlane.xlu0 %5833  ;;  %5640 = vadd.xlane.f32.xlu0 %v5639_v35  ;;  %v5548_v13 = vmul.f32 %v10535_v60, %v5472_v8  ;;  %v5825_v29 = vmul.f32 %v10545_v27, %v5472_v8  ;;  %v5932_v24 = vadd.f32 %v10728_v26, %v5837_v57 }
 0x69b   : > { %v5931_v61 = vadd.f32 %v10728_v26, %v5834_v63 }
 0x69c   : > { %v5642_v32 = vadd.f32 %v5548_v13, %v5547_v10  ;;  %v5919_v53 = vadd.f32 %v5825_v29, %v5824_v37 }
 0x69d   : > { %v6833_v52 = vpop.eup %6832  ;;  %6842 = vtanh.f32 %v5931_v61 }
 0x69e   : > { %v5560_v60 = vpop.xlane.xlu0 %5559  ;;  %5917 = vadd.xlane.f32.xlu0 %v5916_v56  ;;  %5717 = vst.msk [vmem:[%s10752_s29] sm:$0xff] %vm5716_vm0, %v6833_v52  ;;  %5643 = vadd.xlane.f32.xlu1 %v5642_v32 }
 0x69f   : > { %v5655_v41 = vadd.f32 %v10728_v26, %v5560_v60 }
 0x6a1   : > { %6844 = vtanh.f32 %v5655_v41  ;;  %v6835_v27 = vpop.eup %6834  ;;  %v5566_v23 = vpop.xlane.xlu1 %5565 }
 0x6a2   : > { %6846 = vtanh.f32 %v5932_v24  ;;  %v5563_v46 = vpop.xlane.xlu0 %5562  ;;  %v6837_v0 = vpop.eup %6836  ;;  %5718 = vst.msk [vmem:[%s10752_s29 + $0x8] sm:$0xff] %vm5716_vm0, %v6835_v27  ;;  %v5657_v62 = vadd.f32 %v10728_v26, %v5566_v23  ;;  %5920 = vadd.xlane.f32.xlu1 %v5919_v53 }
 0x6a3   : > { %v5656_v1 = vadd.f32 %v10728_v26, %v5563_v46  ;;  %5994 = vst.msk [vmem:[%s10752_s29] sm:$0xff] %vm5993_vm1, %v6837_v0 }
 0x6a4   : > { %6848 = vtanh.f32 %v5657_v62 }
 0x6a5   : > { %v6839_v50 = vpop.eup %6838  ;;  %6850 = vtanh.f32 %v5656_v1  ;;  %v5843_v31 = vpop.xlane.xlu1 %5842 }
 0x6a6   : > { %v5840_v51 = vpop.xlane.xlu0 %5839  ;;  %v6841_v25 = vpop.eup %6840  ;;  %5995 = vst.msk [vmem:[%s10752_s29 + $0x8] sm:$0xff] %vm5993_vm1, %v6839_v50  ;;  %v5934_v54 = vadd.f32 %v10728_v26, %v5843_v31 }
 0x6a7   : > { %v5933_v48 = vadd.f32 %v10728_v26, %v5840_v51  ;;  %5719 = vst.msk [vmem:[%s10752_s29 + $0x10] sm:$0xff] %vm5716_vm0, %v6841_v25 }
 0x6a8   : > { %6852 = vtanh.f32 %v5934_v54 }
 0x6a9   : > { %6854 = vtanh.f32 %v5933_v48  ;;  %v5572_v44 = vpop.xlane.xlu1 %5571 }
 0x6aa   : > { %v5569_v42 = vpop.xlane.xlu0 %5568  ;;  %v6843_v16 = vpop.eup %6842  ;;  %v5659_v7 = vadd.f32 %v10728_v26, %v5572_v44 }
 0x6ab   : > { %v5658_v43 = vadd.f32 %v10728_v26, %v5569_v42  ;;  %5996 = vst.msk [vmem:[%s10752_s29 + $0x10] sm:$0xff] %vm5993_vm1, %v6843_v16 }
 0x6ac   : > { %6856 = vtanh.f32 %v5659_v7 }
 0x6ad   : > { %6858 = vtanh.f32 %v5658_v43  ;;  %v5849_v6 = vpop.xlane.xlu1 %5848 }
 0x6ae   : > { %v6845_v33 = vpop.eup %6844  ;;  %v5846_v9 = vpop.xlane.xlu0 %5845  ;;  %v5936_v36 = vadd.f32 %v10728_v26, %v5849_v6 }
 0x6af   : > { %v6847_v45 = vpop.eup %6846  ;;  %5720 = vst.msk [vmem:[%s10752_s29 + $0x18] sm:$0xff] %vm5716_vm0, %v6845_v33  ;;  %v5935_v19 = vadd.f32 %v10728_v26, %v5846_v9 }
 0x6b0   : > { %5997 = vst.msk [vmem:[%s10752_s29 + $0x18] sm:$0xff] %vm5993_vm1, %v6847_v45  ;;  %6860 = vtanh.f32 %v5936_v36 }
 0x6b1   : > { %v6849_v38 = vpop.eup %6848  ;;  %6862 = vtanh.f32 %v5935_v19  ;;  %v5578_v39 = vpop.xlane.xlu1 %5577 }
 0x6b2   : > { %v5575_v47 = vpop.xlane.xlu0 %5574  ;;  %v6851_v34 = vpop.eup %6850  ;;  %5722 = vst.msk [vmem:[%s10752_s29 + $0x28] sm:$0xff] %vm5716_vm0, %v6849_v38  ;;  %v5661_v20 = vadd.f32 %v10728_v26, %v5578_v39 }
 0x6b3   : > { %v5660_v58 = vadd.f32 %v10728_v26, %v5575_v47  ;;  %5721 = vst.msk [vmem:[%s10752_s29 + $0x20] sm:$0xff] %vm5716_vm0, %v6851_v34 }
 0x6b4   : > { %6864 = vtanh.f32 %v5661_v20 }
 0x6b5   : > { %v6853_v22 = vpop.eup %6852  ;;  %6866 = vtanh.f32 %v5660_v58  ;;  %v5855_v12 = vpop.xlane.xlu1 %5854 }
 0x6b6   : > { %v5852_v55 = vpop.xlane.xlu0 %5851  ;;  %v6855_v40 = vpop.eup %6854  ;;  %5999 = vst.msk [vmem:[%s10752_s29 + $0x28] sm:$0xff] %vm5993_vm1, %v6853_v22  ;;  %v5938_v28 = vadd.f32 %v10728_v26, %v5855_v12 }
 0x6b7   : > { %v5937_v49 = vadd.f32 %v10728_v26, %v5852_v55  ;;  %5998 = vst.msk [vmem:[%s10752_s29 + $0x20] sm:$0xff] %vm5993_vm1, %v6855_v40 }
 0x6b8   : > { %6868 = vtanh.f32 %v5938_v28 }
 0x6b9   : > { %v6857_v14 = vpop.eup %6856  ;;  %6870 = vtanh.f32 %v5937_v49  ;;  %v5584_v21 = vpop.xlane.xlu1 %5583 }
 0x6ba   : > { %v5581_v5 = vpop.xlane.xlu0 %5580  ;;  %v6859_v15 = vpop.eup %6858  ;;  %5724 = vst.msk [vmem:[%s10752_s29 + $0x38] sm:$0xff] %vm5716_vm0, %v6857_v14  ;;  %v5663_v2 = vadd.f32 %v10728_v26, %v5584_v21 }
 0x6bb   : > { %v5662_v59 = vadd.f32 %v10728_v26, %v5581_v5  ;;  %5723 = vst.msk [vmem:[%s10752_s29 + $0x30] sm:$0xff] %vm5716_vm0, %v6859_v15 }
 0x6bc   : > { %6872 = vtanh.f32 %v5663_v2 }
 0x6bd   : > { %v6861_v18 = vpop.eup %6860  ;;  %6874 = vtanh.f32 %v5662_v59  ;;  %v5861_v4 = vpop.xlane.xlu1 %5860 }
 0x6be   : > { %v5858_v3 = vpop.xlane.xlu0 %5857  ;;  %v6863_v11 = vpop.eup %6862  ;;  %6001 = vst.msk [vmem:[%s10752_s29 + $0x38] sm:$0xff] %vm5993_vm1, %v6861_v18  ;;  %v5940_v17 = vadd.f32 %v10728_v26, %v5861_v4 }
 0x6bf   : > { %v5939_v35 = vadd.f32 %v10728_v26, %v5858_v3  ;;  %6000 = vst.msk [vmem:[%s10752_s29 + $0x30] sm:$0xff] %vm5993_vm1, %v6863_v11 }
 0x6c0   : > { %6876 = vtanh.f32 %v5940_v17 }
 0x6c1   : > { %v6865_v8 = vpop.eup %6864  ;;  %6878 = vtanh.f32 %v5939_v35 }
 0x6c2   : > { %v6867_v30 = vpop.eup %6866  ;;  %5726 = vst.msk [vmem:[%s10752_s29 + $0x48] sm:$0xff] %vm5716_vm0, %v6865_v8  ;;  %v5587_v63 = vpop.xlane.xlu0 %5586 }
 0x6c3   : > { %5725 = vst.msk [vmem:[%s10752_s29 + $0x40] sm:$0xff] %vm5716_vm0, %v6867_v30  ;;  %v5664_v10 = vadd.f32 %v10728_v26, %v5587_v63 }
 0x6c5   : > { %v6869_v13 = vpop.eup %6868  ;;  %6880 = vtanh.f32 %v5664_v10 }
 0x6c6   : > { %v6871_v57 = vpop.eup %6870  ;;  %6003 = vst.msk [vmem:[%s10752_s29 + $0x48] sm:$0xff] %vm5993_vm1, %v6869_v13  ;;  %v5590_v61 = vpop.xlane.xlu1 %5589 }
 0x6c7   : > { %6002 = vst.msk [vmem:[%s10752_s29 + $0x40] sm:$0xff] %vm5993_vm1, %v6871_v57  ;;  %v5864_v56 = vpop.xlane.xlu0 %5863  ;;  %v5665_v29 = vadd.f32 %v10728_v26, %v5590_v61 }
 0x6c8   : > { %v5941_v32 = vadd.f32 %v10728_v26, %v5864_v56 }
 0x6c9   : > { %v6873_v52 = vpop.eup %6872  ;;  %6882 = vtanh.f32 %v5665_v29 }
 0x6ca   : > { %v6875_v24 = vpop.eup %6874  ;;  %5728 = vst.msk [vmem:[%s10752_s29 + $0x58] sm:$0xff] %vm5716_vm0, %v6873_v52  ;;  %6884 = vtanh.f32 %v5941_v32  ;;  %v5867_v60 = vpop.xlane.xlu1 %5866 }
 0x6cb   : > { %5727 = vst.msk [vmem:[%s10752_s29 + $0x50] sm:$0xff] %vm5716_vm0, %v6875_v24  ;;  %v5593_v37 = vpop.xlane.xlu0 %5592  ;;  %v5942_v41 = vadd.f32 %v10728_v26, %v5867_v60 }
 0x6cc   : > { %v5666_v53 = vadd.f32 %v10728_v26, %v5593_v37 }
 0x6cd   : > { %v6877_v27 = vpop.eup %6876  ;;  %6886 = vtanh.f32 %v5942_v41 }
 0x6ce   : > { %v6879_v23 = vpop.eup %6878  ;;  %6005 = vst.msk [vmem:[%s10752_s29 + $0x58] sm:$0xff] %vm5993_vm1, %v6877_v27  ;;  %6888 = vtanh.f32 %v5666_v53  ;;  %v5596_v46 = vpop.xlane.xlu1 %5595 }
 0x6cf   : > { %6004 = vst.msk [vmem:[%s10752_s29 + $0x50] sm:$0xff] %vm5993_vm1, %v6879_v23  ;;  %v5870_v0 = vpop.xlane.xlu0 %5869  ;;  %v5667_v62 = vadd.f32 %v10728_v26, %v5596_v46 }
 0x6d0   : > { %v5943_v1 = vadd.f32 %v10728_v26, %v5870_v0 }
 0x6d1   : > { %6890 = vtanh.f32 %v5667_v62 }
 0x6d2   : > { %v6881_v50 = vpop.eup %6880  ;;  %6892 = vtanh.f32 %v5943_v1  ;;  %v5873_v31 = vpop.xlane.xlu1 %5872 }
 0x6d3   : > { %v5599_v51 = vpop.xlane.xlu0 %5598  ;;  %5729 = vst.msk [vmem:[%s10752_s29 + $0x60] sm:$0xff] %vm5716_vm0, %v6881_v50  ;;  %v5944_v25 = vadd.f32 %v10728_v26, %v5873_v31 }
 0x6d4   : > { %v5668_v54 = vadd.f32 %v10728_v26, %v5599_v51 }
 0x6d5   : > { %6894 = vtanh.f32 %v5944_v25 }
 0x6d6   : > { %v6883_v48 = vpop.eup %6882  ;;  %6896 = vtanh.f32 %v5668_v54  ;;  %v5602_v44 = vpop.xlane.xlu1 %5601 }
 0x6d7   : > { %v5876_v42 = vpop.xlane.xlu0 %5875  ;;  %v6885_v16 = vpop.eup %6884  ;;  %5730 = vst.msk [vmem:[%s10752_s29 + $0x68] sm:$0xff] %vm5716_vm0, %v6883_v48  ;;  %v5669_v7 = vadd.f32 %v10728_v26, %v5602_v44 }
 0x6d8   : > { %v5945_v43 = vadd.f32 %v10728_v26, %v5876_v42  ;;  %6006 = vst.msk [vmem:[%s10752_s29 + $0x60] sm:$0xff] %vm5993_vm1, %v6885_v16 }
 0x6d9   : > { %6898 = vtanh.f32 %v5669_v7 }
 0x6da   : > { %v6887_v33 = vpop.eup %6886  ;;  %6900 = vtanh.f32 %v5945_v43  ;;  %v5879_v6 = vpop.xlane.xlu1 %5878 }
 0x6db   : > { %v5605_v9 = vpop.xlane.xlu0 %5604  ;;  %v6889_v45 = vpop.eup %6888  ;;  %6007 = vst.msk [vmem:[%s10752_s29 + $0x68] sm:$0xff] %vm5993_vm1, %v6887_v33  ;;  %v5946_v36 = vadd.f32 %v10728_v26, %v5879_v6 }
 0x6dc   : > { %v5670_v19 = vadd.f32 %v10728_v26, %v5605_v9  ;;  %5731 = vst.msk [vmem:[%s10752_s29 + $0x70] sm:$0xff] %vm5716_vm0, %v6889_v45 }
 0x6dd   : > { %6902 = vtanh.f32 %v5946_v36 }
 0x6de   : > { %v6891_v38 = vpop.eup %6890  ;;  %6904 = vtanh.f32 %v5670_v19 }
 0x6df   : > { %v5608_v39 = vpop.xlane.xlu1 %5607  ;;  %v5882_v47 = vpop.xlane.xlu0 %5881  ;;  %5732 = vst.msk [vmem:[%s10752_s29 + $0x78] sm:$0xff] %vm5716_vm0, %v6891_v38 }
 0x6e0   : > { %v6893_v34 = vpop.eup %6892  ;;  %v5671_v20 = vadd.f32 %v10728_v26, %v5608_v39  ;;  %v5947_v58 = vadd.f32 %v10728_v26, %v5882_v47 }
 0x6e1   : > { %6008 = vst.msk [vmem:[%s10752_s29 + $0x70] sm:$0xff] %vm5993_vm1, %v6893_v34 }
 0x6e2   : > { %6906 = vtanh.f32 %v5671_v20  ;;  %v6895_v22 = vpop.eup %6894 }
 0x6e3   : > { %6908 = vtanh.f32 %v5947_v58  ;;  %v5885_v12 = vpop.xlane.xlu1 %5884  ;;  %v6897_v40 = vpop.eup %6896  ;;  %6009 = vst.msk [vmem:[%s10752_s29 + $0x78] sm:$0xff] %vm5993_vm1, %v6895_v22 }
 0x6e4   : > { %v5948_v28 = vadd.f32 %v10728_v26, %v5885_v12  ;;  %5733 = vst.msk [vmem:[%s10752_s29 + $0x80] sm:$0xff] %vm5716_vm0, %v6897_v40 }
 0x6e5   : > { %v5611_v55 = vpop.xlane.xlu0 %5610 }
 0x6e6   : > { %v5672_v49 = vadd.f32 %v10728_v26, %v5611_v55  ;;  %6910 = vtanh.f32 %v5948_v28  ;;  %v6899_v14 = vpop.eup %6898 }
 0x6e7   : > { %v6901_v15 = vpop.eup %6900  ;;  %5734 = vst.msk [vmem:[%s10752_s29 + $0x88] sm:$0xff] %vm5716_vm0, %v6899_v14 }
 0x6e8   : > { %6912 = vtanh.f32 %v5672_v49  ;;  %6010 = vst.msk [vmem:[%s10752_s29 + $0x80] sm:$0xff] %vm5993_vm1, %v6901_v15 }
 0x6e9   : > { %v5614_v21 = vpop.xlane.xlu1 %5613  ;;  %v5888_v5 = vpop.xlane.xlu0 %5887 }
 0x6ea   : > { %v5673_v2 = vadd.f32 %v10728_v26, %v5614_v21  ;;  %v5949_v59 = vadd.f32 %v10728_v26, %v5888_v5  ;;  %v6903_v18 = vpop.eup %6902 }
 0x6eb   : > { %v6905_v3 = vpop.eup %6904  ;;  %6011 = vst.msk [vmem:[%s10752_s29 + $0x88] sm:$0xff] %vm5993_vm1, %v6903_v18 }
 0x6ec   : > { %6914 = vtanh.f32 %v5673_v2  ;;  %5735 = vst.msk [vmem:[%s10752_s29 + $0x90] sm:$0xff] %vm5716_vm0, %v6905_v3 }
 0x6ed   : > { %6916 = vtanh.f32 %v5949_v59  ;;  %v5891_v4 = vpop.xlane.xlu1 %5890 }
 0x6ee   : > { %v5950_v11 = vadd.f32 %v10728_v26, %v5891_v4 }
 0x6ef   : > { %v6907_v17 = vpop.eup %6906 }
 0x6f0   : > { %6918 = vtanh.f32 %v5950_v11  ;;  %v6909_v35 = vpop.eup %6908  ;;  %5736 = vst.msk [vmem:[%s10752_s29 + $0x98] sm:$0xff] %vm5716_vm0, %v6907_v17 }
 0x6f1   : > { %6012 = vst.msk [vmem:[%s10752_s29 + $0x90] sm:$0xff] %vm5993_vm1, %v6909_v35 }
 0x6f3   : > { %v5617_v8 = vpop.xlane.xlu0 %5616  ;;  %v6911_v63 = vpop.eup %6910 }
 0x6f4   : > { %v5674_v30 = vadd.f32 %v10728_v26, %v5617_v8  ;;  %6013 = vst.msk [vmem:[%s10752_s29 + $0x98] sm:$0xff] %vm5993_vm1, %v6911_v63 }
 0x6f5   : > { %v6913_v10 = vpop.eup %6912 }
 0x6f6   : > { %6920 = vtanh.f32 %v5674_v30  ;;  %5737 = vst.msk [vmem:[%s10752_s29 + $0xa0] sm:$0xff] %vm5716_vm0, %v6913_v10 }
 0x6f7   : > { %v5620_v13 = vpop.xlane.xlu1 %5619  ;;  %v5894_v57 = vpop.xlane.xlu0 %5893 }
 0x6f8   : > { %v5675_v61 = vadd.f32 %v10728_v26, %v5620_v13  ;;  %v5951_v56 = vadd.f32 %v10728_v26, %v5894_v57 }
 0x6f9   : > { %v6915_v29 = vpop.eup %6914 }
 0x6fa   : > { %v6917_v32 = vpop.eup %6916  ;;  %5738 = vst.msk [vmem:[%s10752_s29 + $0xa8] sm:$0xff] %vm5716_vm0, %v6915_v29  ;;  %6922 = vtanh.f32 %v5675_v61 }
 0x6fb   : > { %6014 = vst.msk [vmem:[%s10752_s29 + $0xa0] sm:$0xff] %vm5993_vm1, %v6917_v32  ;;  %6924 = vtanh.f32 %v5951_v56  ;;  %v5897_v52 = vpop.xlane.xlu1 %5896 }
 0x6fc   : > { %v5952_v24 = vadd.f32 %v10728_v26, %v5897_v52 }
 0x6fd   : > { %v6919_v60 = vpop.eup %6918  ;;  %v5623_v37 = vpop.xlane.xlu0 %5622 }
 0x6fe   : > { %6015 = vst.msk [vmem:[%s10752_s29 + $0xa8] sm:$0xff] %vm5993_vm1, %v6919_v60  ;;  %6926 = vtanh.f32 %v5952_v24  ;;  %v5676_v41 = vadd.f32 %v10728_v26, %v5623_v37 }
 0x700   : > { %6928 = vtanh.f32 %v5676_v41 }
 0x701   : > { %v5626_v53 = vpop.xlane.xlu1 %5625  ;;  %v5900_v27 = vpop.xlane.xlu0 %5899 }
 0x702   : > { %v5677_v23 = vadd.f32 %v10728_v26, %v5626_v53  ;;  %v5953_v46 = vadd.f32 %v10728_v26, %v5900_v27 }
 0x703   : > { %v6921_v0 = vpop.eup %6920 }
 0x704   : > { %5739 = vst.msk [vmem:[%s10752_s29 + $0xb0] sm:$0xff] %vm5716_vm0, %v6921_v0  ;;  %6930 = vtanh.f32 %v5677_v23 }
 0x705   : > { %6932 = vtanh.f32 %v5953_v46  ;;  %v5903_v62 = vpop.xlane.xlu1 %5902 }
 0x706   : > { %v5954_v1 = vadd.f32 %v10728_v26, %v5903_v62 }
 0x707   : > { %v6923_v50 = vpop.eup %6922 }
 0x708   : > { %v6925_v31 = vpop.eup %6924  ;;  %5740 = vst.msk [vmem:[%s10752_s29 + $0xb8] sm:$0xff] %vm5716_vm0, %v6923_v50  ;;  %6934 = vtanh.f32 %v5954_v1 }
 0x709   : > { %6016 = vst.msk [vmem:[%s10752_s29 + $0xb0] sm:$0xff] %vm5993_vm1, %v6925_v31 }
 0x70b   : > { %v6927_v51 = vpop.eup %6926  ;;  %v5629_v25 = vpop.xlane.xlu0 %5628 }
 0x70c   : > { %6017 = vst.msk [vmem:[%s10752_s29 + $0xb8] sm:$0xff] %vm5993_vm1, %v6927_v51  ;;  %v5678_v54 = vadd.f32 %v10728_v26, %v5629_v25 }
 0x70d   : > { %v6929_v48 = vpop.eup %6928 }
 0x70e   : > { %5741 = vst.msk [vmem:[%s10752_s29 + $0xc0] sm:$0xff] %vm5716_vm0, %v6929_v48  ;;  %6936 = vtanh.f32 %v5678_v54 }
 0x70f   : > { %v5632_v44 = vpop.xlane.xlu1 %5631  ;;  %v5906_v42 = vpop.xlane.xlu0 %5905 }
 0x710   : > { %v5679_v16 = vadd.f32 %v10728_v26, %v5632_v44  ;;  %v5955_v7 = vadd.f32 %v10728_v26, %v5906_v42 }
 0x711   : > { %v6931_v43 = vpop.eup %6930 }
 0x712   : > { %v6933_v33 = vpop.eup %6932  ;;  %5742 = vst.msk [vmem:[%s10752_s29 + $0xc8] sm:$0xff] %vm5716_vm0, %v6931_v43  ;;  %6938 = vtanh.f32 %v5679_v16 }
 0x713   : > { %6018 = vst.msk [vmem:[%s10752_s29 + $0xc0] sm:$0xff] %vm5993_vm1, %v6933_v33  ;;  %6940 = vtanh.f32 %v5955_v7  ;;  %v5909_v6 = vpop.xlane.xlu1 %5908 }
 0x714   : > { %v5956_v9 = vadd.f32 %v10728_v26, %v5909_v6 }
 0x715   : > { %v6935_v45 = vpop.eup %6934  ;;  %v5635_v36 = vpop.xlane.xlu0 %5634 }
 0x716   : > { %6019 = vst.msk [vmem:[%s10752_s29 + $0xc8] sm:$0xff] %vm5993_vm1, %v6935_v45  ;;  %6942 = vtanh.f32 %v5956_v9  ;;  %v5680_v19 = vadd.f32 %v10728_v26, %v5635_v36 }
 0x718   : > { %6944 = vtanh.f32 %v5680_v19 }
 0x719   : > { %v5638_v38 = vpop.xlane.xlu1 %5637  ;;  %v5912_v39 = vpop.xlane.xlu0 %5911 }
 0x71a   : > { %v5681_v47 = vadd.f32 %v10728_v26, %v5638_v38  ;;  %v5957_v34 = vadd.f32 %v10728_v26, %v5912_v39 }
 0x71b   : > { %v6937_v20 = vpop.eup %6936 }
 0x71c   : > { %5743 = vst.msk [vmem:[%s10752_s29 + $0xd0] sm:$0xff] %vm5716_vm0, %v6937_v20  ;;  %6946 = vtanh.f32 %v5681_v47 }
 0x71d   : > { %6948 = vtanh.f32 %v5957_v34  ;;  %v5915_v58 = vpop.xlane.xlu1 %5914 }
 0x71e   : > { %v5958_v22 = vadd.f32 %v10728_v26, %v5915_v58 }
 0x71f   : > { %v6939_v12 = vpop.eup %6938 }
 0x720   : > { %v6941_v55 = vpop.eup %6940  ;;  %5744 = vst.msk [vmem:[%s10752_s29 + $0xd8] sm:$0xff] %vm5716_vm0, %v6939_v12  ;;  %6950 = vtanh.f32 %v5958_v22 }
 0x721   : > { %6020 = vst.msk [vmem:[%s10752_s29 + $0xd0] sm:$0xff] %vm5993_vm1, %v6941_v55 }
 0x723   : > { %v6943_v40 = vpop.eup %6942  ;;  %v5641_v28 = vpop.xlane.xlu0 %5640 }
 0x724   : > { %6021 = vst.msk [vmem:[%s10752_s29 + $0xd8] sm:$0xff] %vm5993_vm1, %v6943_v40  ;;  %v5682_v14 = vadd.f32 %v10728_v26, %v5641_v28 }
 0x725   : > { %v6945_v49 = vpop.eup %6944 }
 0x726   : > { %5745 = vst.msk [vmem:[%s10752_s29 + $0xe0] sm:$0xff] %vm5716_vm0, %v6945_v49  ;;  %6952 = vtanh.f32 %v5682_v14 }
 0x727   : > { %v5918_v21 = vpop.xlane.xlu0 %5917  ;;  %v5644_v15 = vpop.xlane.xlu1 %5643 }
 0x728   : > { %v5959_v2 = vadd.f32 %v10728_v26, %v5918_v21  ;;  %v5683_v18 = vadd.f32 %v10728_v26, %v5644_v15 }
 0x729   : > { %v6947_v5 = vpop.eup %6946 }
 0x72a   : > { %v6949_v59 = vpop.eup %6948  ;;  %5746 = vst.msk [vmem:[%s10752_s29 + $0xe8] sm:$0xff] %vm5716_vm0, %v6947_v5  ;;  %6954 = vtanh.f32 %v5959_v2 }
 0x72b   : > { %6022 = vst.msk [vmem:[%s10752_s29 + $0xe0] sm:$0xff] %vm5993_vm1, %v6949_v59  ;;  %6956 = vtanh.f32 %v5683_v18  ;;  %v5921_v3 = vpop.xlane.xlu1 %5920 }
 0x72c   : > { %v5960_v11 = vadd.f32 %v10728_v26, %v5921_v3 }
 0x72d   : > { %v6951_v4 = vpop.eup %6950 }
 0x72e   : > { %6023 = vst.msk [vmem:[%s10752_s29 + $0xe8] sm:$0xff] %vm5993_vm1, %v6951_v4  ;;  %6958 = vtanh.f32 %v5960_v11 }
 0x733   : > { %v6953_v17 = vpop.eup %6952 }
 0x734   : > { %5747 = vst.msk [vmem:[%s10752_s29 + $0xf0] sm:$0xff] %vm5716_vm0, %v6953_v17 }
 0x737   : > { %v6955_v35 = vpop.eup %6954 }
 0x738   : > { %v6957_v8 = vpop.eup %6956  ;;  %6024 = vst.msk [vmem:[%s10752_s29 + $0xf0] sm:$0xff] %vm5993_vm1, %v6955_v35 }
 0x739   : > { %5748 = vst.msk [vmem:[%s10752_s29 + $0xf8] sm:$0xff] %vm5716_vm0, %v6957_v8 }
 0x73b   : > { %v6959_v30 = vpop.eup %6958 }
 0x73c   : > { %6025 = vst.msk [vmem:[%s10752_s29 + $0xf8] sm:$0xff] %vm5993_vm1, %v6959_v30 }
 0x73d PF: > { %s29_s1 = sadd.s32 1, %s6998_s1   ;;  %s11760_s30 = sld [smem:[#allocation2_spill]] }
 0x73e   : > { %p26_p7 = scmp.ge.s32.totalorder %s29_s1, 18   ;;  %s11761_s21 = sld [smem:[#allocation3_spill]] }
 0x73f   : > { %s11762_s3 = sld [smem:[#allocation4_spill]]  ;;  %s11763_s0 = smov %s6990_s20 }
 0x741   :  { %28 = sbr.rel (!%p26_p7) target bundleno = 5 (0x5), region = 136 }
 0x744   : > { %s11764_s20 = smov %s11761_s21 }
 0x745   : > { %s11765_s21 = smov %s11762_s3 }

</bundles_post_ra>
